<compile_context>
chip_gen: v7x
topology: tpu7x:2x2x1
jax: 0.10.0
libtpu: 0.0.40
codegen_flags: <defaults>
</compile_context>

<pallas_src>
import functools

import jax
import jax.numpy as jnp
from jax.experimental import pallas as pl
from jax.experimental.pallas import tpu as pltpu


# ----------------------------------------------------------------- small helpers

def _round_up(x, m):
    return ((x + m - 1) // m) * m


def _pick_tile(rows, cap=1024):
    """Largest row tile <= cap that is a multiple of 8 and divides `rows`.
    Falls back to the full extent (always a legal block).  cap=1024 keeps the
    double-buffered working set well under v7x's 64 MiB VMEM as well."""
    if rows <= cap:
        return rows
    t = (cap // 8) * 8
    while t >= 8:
        if rows % t == 0:
            return t
        t -= 8
    return rows


# ------------------------------------------------- fused pointwise (1x1 conv) kernel

def _pw_kernel(relu_cols, cout, has_gate, has_res,
               x_ref, w_ref, s_ref, b_ref, *rest):
    idx = 0
    g_ref = None
    r_ref = None
    if has_gate:
        g_ref = rest[idx]; idx += 1
    if has_res:
        r_ref = rest[idx]; idx += 1
    o_ref = rest[idx]

    if has_gate:
        # SE channel gating fused into the conv3 input load (per-batch gate).
        xv = (x_ref[0].astype(jnp.float32) * g_ref[0]).astype(jnp.bfloat16)
    else:
        xv = x_ref[0]
    acc = jnp.dot(xv, w_ref[...], preferred_element_type=jnp.float32)
    y = acc * s_ref[...] + b_ref[...]
    if has_res:
        y = y + r_ref[0].astype(jnp.float32)        # residual add fused
    if relu_cols >= cout:
        y = jnp.maximum(y, 0.0)
    elif relu_cols > 0:
        # combined conv1+shortcut output: ReLU only the first `relu_cols` lanes
        lane = jax.lax.broadcasted_iota(jnp.int32, y.shape, 1)
        y = jnp.where(lane < relu_cols, jnp.maximum(y, 0.0), y)
    o_ref[0] = y.astype(o_ref.dtype)


def pointwise(x, w, scale, bias, *, relu_cols, gate=None, residual=None, row_cap=1024):
    """out = act((gate * x) @ w * scale + bias + residual), tiled over (batch, rows)."""
    B, M, cin = x.shape
    cout = w.shape[1]
    T = _pick_tile(M, row_cap)
    nt = M // T
    in_specs = [
        pl.BlockSpec((1, T, cin), lambda b, t: (b, t, 0)),
        pl.BlockSpec((cin, cout), lambda b, t: (0, 0)),
        pl.BlockSpec((1, cout), lambda b, t: (0, 0)),
        pl.BlockSpec((1, cout), lambda b, t: (0, 0)),
    ]
    args = [x, w, scale.reshape(1, cout), bias.reshape(1, cout)]
    if gate is not None:
        in_specs.append(pl.BlockSpec((1, 1, cin), lambda b, t: (b, 0, 0)))
        args.append(gate)
    if residual is not None:
        in_specs.append(pl.BlockSpec((1, T, cout), lambda b, t: (b, t, 0)))
        args.append(residual)
    kernel = functools.partial(_pw_kernel, relu_cols, cout,
                               gate is not None, residual is not None)
    return pl.pallas_call(
        kernel,
        out_shape=jax.ShapeDtypeStruct((B, M, cout), jnp.bfloat16),
        grid=(B, nt),
        in_specs=in_specs,
        out_specs=pl.BlockSpec((1, T, cout), lambda b, t: (b, t, 0)),
        compiler_params=pltpu.CompilerParams(
            dimension_semantics=("parallel", "parallel")),
    )(*args)


# -------------------------------- grouped dilated 3x3 conv as shifted block-diag matmuls

def _dconv_kernel(taps, cs, cout, wo, m, pad_lo, total_rows, cin_t, inv_hw, sc_offs,
                  x_ref, w_ref, s_ref, b_ref, col_ref, o_ref, pool_ref, *rest):
    if sc_offs is not None:
        res_ref, scr = rest
    else:
        (scr,) = rest

    # Build a zero-padded copy of the activation in VMEM scratch (no HBM im2col,
    # no padded HBM copy).  Halos implement the conv's zero padding.
    if pad_lo > 0:
        scr[0:pad_lo, :] = jnp.zeros((pad_lo, cin_t), jnp.bfloat16)
    tail = total_rows - pad_lo - m
    if tail > 0:
        scr[pad_lo + m:total_rows, :] = jnp.zeros((tail, cin_t), jnp.bfloat16)
    scr[pad_lo:pad_lo + m, :] = x_ref[0]

    col = col_ref[...]                               # (m, 1) column index within a row
    acc = jnp.zeros((m, cout), jnp.float32)
    for t, (shift, c0, lo, hi) in enumerate(taps):
        lhs = scr[pad_lo + shift:pad_lo + shift + m, c0:c0 + cs]
        contrib = jnp.dot(lhs, w_ref[t], preferred_element_type=jnp.float32)
        if lo > 0 or hi > 0:
            valid = jnp.logical_and(col >= lo, col < wo - hi)
            contrib = jnp.where(valid, contrib, 0.0)
        acc = acc + contrib

    y = jnp.maximum(acc * s_ref[...] + b_ref[...], 0.0)     # folded BN + ReLU
    o_ref[0] = y.astype(o_ref.dtype)
    # fused SE global average pool
    pool_ref[0] = jnp.sum(y, axis=0, keepdims=True) * inv_hw

    if sc_offs is not None:
        # fused shortcut extraction: mean over the listed channel slices of the input
        # (4 parity slices = 2x2 avg-pool for stride-2 blocks; 1 slice = pass-through).
        r = x_ref[0, :, sc_offs[0]:sc_offs[0] + cout].astype(jnp.float32)
        for off in sc_offs[1:]:
            r = r + x_ref[0, :, off:off + cout].astype(jnp.float32)
        res_ref[0] = (r * (1.0 / len(sc_offs))).astype(res_ref.dtype)


def dilated_group_conv(x, w_taps, scale, bias, taps, cs, cout, wo, sc_offs=None):
    """x: (B, M, Cin_total) bf16; w_taps: (T, cs, Cout) block-diagonal tap weights."""
    B, M, cin_t = x.shape
    T = w_taps.shape[0]
    min_s = min(t[0] for t in taps)
    max_s = max(t[0] for t in taps)
    pad_lo = _round_up(max(0, -min_s), 8)
    total = _round_up(pad_lo + M + max(0, max_s), 8)
    col = (jnp.arange(M, dtype=jnp.int32) % wo).reshape(M, 1)

    kernel = functools.partial(
        _dconv_kernel, tuple(taps), cs, cout, wo, M, pad_lo, total, cin_t,
        1.0 / M, tuple(sc_offs) if sc_offs is not None else None)

    out_shape = [jax.ShapeDtypeStruct((B, M, cout), jnp.bfloat16),
                 jax.ShapeDtypeStruct((B, 1, cout), jnp.float32)]
    out_specs = [pl.BlockSpec((1, M, cout), lambda b: (b, 0, 0)),
                 pl.BlockSpec((1, 1, cout), lambda b: (b, 0, 0))]
    if sc_offs is not None:
        out_shape.append(jax.ShapeDtypeStruct((B, M, cout), jnp.bfloat16))
        out_specs.append(pl.BlockSpec((1, M, cout), lambda b: (b, 0, 0)))

    res = pl.pallas_call(
        kernel,
        out_shape=tuple(out_shape),
        grid=(B,),
        in_specs=[
            pl.BlockSpec((1, M, cin_t), lambda b: (b, 0, 0)),
            pl.BlockSpec((T, cs, cout), lambda b: (0, 0, 0)),
            pl.BlockSpec((1, cout), lambda b: (0, 0)),
            pl.BlockSpec((1, cout), lambda b: (0, 0)),
            pl.BlockSpec((M, 1), lambda b: (0, 0)),
        ],
        out_specs=tuple(out_specs),
        scratch_shapes=[pltpu.VMEM((total, cin_t), jnp.bfloat16)],
        compiler_params=pltpu.CompilerParams(dimension_semantics=("parallel",)),
    )(x, w_taps, scale.reshape(1, cout), bias.reshape(1, cout), col)

    if sc_offs is not None:
        return res[0], res[1], res[2]
    return res[0], res[1], None


# ----------------------------------------------- SE bottleneck (single fused kernel)

def _se_kernel(p_ref, w1_ref, b1_ref, w2_ref, b2_ref, g_ref):
    h = jnp.dot(p_ref[...], w1_ref[...], preferred_element_type=jnp.float32) + b1_ref[...]
    h = jnp.maximum(h, 0.0)
    z = jnp.dot(h, w2_ref[...], preferred_element_type=jnp.float32) + b2_ref[...]
    g_ref[...] = jax.nn.sigmoid(z)


def se_gate(pooled, w1, b1, w2, b2):
    B, C = pooled.shape
    return pl.pallas_call(
        _se_kernel,
        out_shape=jax.ShapeDtypeStruct((B, C), jnp.float32),
    )(pooled, w1, b1.reshape(1, -1), w2, b2.reshape(1, -1))


# -------------------------------------------------------------- tap tables (static)

def _stride1_taps(slabs, width):
    """Flat-index shifts for a stride-1, per-slab-dilated 3x3 conv (padding=dilation)."""
    taps = []
    for d, c0, _ in slabs:
        for ky in range(3):
            for kx in range(3):
                shift = (ky - 1) * d * width + (kx - 1) * d
                lo = d if kx == 0 else 0
                hi = d if kx == 2 else 0
                taps.append((shift, c0, lo, hi))
    return taps


def _stride2_taps(chans_per_parity, wo):
    """Stride-2 / dilation-1 3x3 conv over the space-to-depth tensor
    (channel layout (py, px, c)): each original tap becomes a shifted slice."""
    taps = []
    for ky in range(3):
        dr = -1 if ky == 0 else 0
        py = (ky + 1) % 2
        for kx in range(3):
            dc = -1 if kx == 0 else 0
            px = (kx + 1) % 2
            shift = dr * wo + dc
            c0 = (py * 2 + px) * chans_per_parity
            lo = 1 if kx == 0 else 0
            taps.append((shift, c0, lo, 0))
    return taps


# ----------------------------------------------------------- parameter construction

class ParamGen:
    def __init__(self, seed=0):
        self._key = jax.random.PRNGKey(seed)
        self._i = 0

    def normal(self, shape, std=1.0):
        self._i += 1
        k = jax.random.fold_in(self._key, self._i)
        return std * jax.random.normal(k, shape, jnp.float32)


def make_folded_bn(pg, c):
    gamma = 1.0 + 0.1 * pg.normal((c,))
    beta = 0.1 * pg.normal((c,))
    running_mean = 0.1 * pg.normal((c,))
    running_var = 1.0 + 0.1 * jnp.abs(pg.normal((c,)))
    scale = gamma * jax.lax.rsqrt(running_var + 1e-5)
    bias = beta - running_mean * scale
    return scale, bias


def _build_conv2_weights(pg, slabs, gw, cout):
    """Per-(slab, tap) weights, zero-embedded block-diagonally so every tap matmul
    produces the full lane-dense Cout output."""
    std = (1.0 / (9.0 * gw)) ** 0.5
    ws = []
    for d, c0, csz in slabs:
        g0 = c0 // gw
        for ky in range(3):
            for kx in range(3):
                w = jnp.zeros((csz, cout), jnp.float32)
                for gi in range(csz // gw):
                    g = g0 + gi
                    blk = std * pg.normal((gw, gw))
                    w = w.at[gi * gw:(gi + 1) * gw, g * gw:(g + 1) * gw].set(blk)
                ws.append(w)
    return jnp.stack(ws).astype(jnp.bfloat16)


def make_dilation_block(pg, cin, cout, stride, dilations, gw, attention):
    assert attention == "se"  # TODO(synk): only the 'se' attention variant is implemented
    assert cout % gw == 0
    if len(dilations) == 1:
        slabs = [(int(dilations[0]), 0, cout)]
    else:
        assert cout % len(dilations) == 0
        per = cout // len(dilations)
        assert per % gw == 0
        slabs = [(int(d), i * per, per) for i, d in enumerate(dilations)]

    proj = (stride != 1) or (cin != cout)
    wse = max(cin // 4, 1)

    w1 = pg.normal((cin, cout), std=(1.0 / cin) ** 0.5)
    s1, b1 = make_folded_bn(pg, cout)
    if proj:
        # shortcut projection fused with conv1: one (cin, 2*cout) matmul
        wsc = pg.normal((cin, cout), std=(1.0 / cin) ** 0.5)
        ssc, bsc = make_folded_bn(pg, cout)
        w1 = jnp.concatenate([w1, wsc], axis=1)
        s1 = jnp.concatenate([s1, ssc])
        b1 = jnp.concatenate([b1, bsc])

    p = {
        "w1": w1.astype(jnp.bfloat16), "s1": s1, "b1": b1,
        "w2": _build_conv2_weights(pg, slabs, gw, cout),
        "s2b2": make_folded_bn(pg, cout),
        "fc1_w": pg.normal((cout, wse), std=(1.0 / cout) ** 0.5),
        "fc1_b": 0.1 * pg.normal((wse,)),
        "fc2_w": pg.normal((wse, cout), std=(1.0 / wse) ** 0.5),
        "fc2_b": 0.1 * pg.normal((cout,)),
        "w3": pg.normal((cout, cout), std=(1.0 / cout) ** 0.5).astype(jnp.bfloat16),
        "s3b3": make_folded_bn(pg, cout),
    }
    cfg = dict(cin=cin, cout=cout, stride=stride, gw=gw, slabs=slabs, proj=proj)
    return p, cfg


# ------------------------------------------------------------------ block forward

def dilation_block_forward(x, H, W, p, cfg):
    B = x.shape[0]
    C = cfg["cout"]
    stride = cfg["stride"]
    proj = cfg["proj"]

    # conv1 (1x1+BN+ReLU), with the projection shortcut conv fused when present.
    y1 = pointwise(x, p["w1"], p["s1"], p["b1"], relu_cols=C)

    if stride == 2:
        Ho, Wo = H // 2, W // 2
        Cw = y1.shape[-1]
        # space-to-depth (XLA glue): turns the stride-2 conv into shifted stride-1
        # matmuls and the shortcut 2x2 avg-pool into a channel mean inside the kernel.
        t = y1.reshape(B, Ho, 2, Wo, 2, Cw)
        t = jnp.transpose(t, (0, 1, 3, 2, 4, 5)).reshape(B, Ho * Wo, 4 * Cw)
        conv2_in = t
        taps = _stride2_taps(Cw, Wo)
        sc_offs = tuple(q * Cw + C for q in range(4))
    else:
        Ho, Wo = H, W
        conv2_in = y1
        taps = _stride1_taps(cfg["slabs"], W)
        sc_offs = (C,) if proj else None

    s2, b2 = p["s2b2"]
    cs = C // len(cfg["slabs"])
    y2, pooled, res = dilated_group_conv(conv2_in, p["w2"], s2, b2, taps, cs, C, Wo,
                                         sc_offs=sc_offs)
    if res is None:
        res = x  # identity shortcut (stride==1 and cin==cout)

    gate = se_gate(pooled.reshape(B, C), p["fc1_w"], p["fc1_b"], p["fc2_w"], p["fc2_b"])

    s3, b3 = p["s3b3"]
    out = pointwise(y2, p["w3"], s3, b3, relu_cols=C,
                    gate=gate.reshape(B, 1, C), residual=res)
    return out, Ho, Wo


# --------------------------------------------------------------------- RegSegBody

class RegSegBody:
    def __init__(self, cfg, seed=0):
        channels = cfg["channels"]
        gw = cfg["group_width"]
        attention = cfg["attention"]
        dilations = cfg["dilations"]
        self.out_channels = [channels[1], channels[2], channels[-1]]
        pg = ParamGen(seed)
        self.stage4 = [make_dilation_block(pg, channels[0], channels[1], 2, [1], gw, attention)]
        self.stage8 = [
            make_dilation_block(pg, channels[1], channels[2], 2, [1], gw, attention),
            make_dilation_block(pg, channels[2], channels[2], 1, [1], gw, attention),
            make_dilation_block(pg, channels[2], channels[2], 1, [1], gw, attention),
        ]
        st16 = [make_dilation_block(pg, channels[2], channels[3], 2, [1], gw, attention)]
        for d in dilations[:-1]:
            st16.append(make_dilation_block(pg, channels[3], channels[3], 1, d, gw, attention))
        st16.append(make_dilation_block(pg, channels[3], channels[4], 1, dilations[-1], gw, attention))
        self.stage16 = st16

    @staticmethod
    def _run_stage(x, H, W, stage):
        for p, cfg in stage:
            x, H, W = dilation_block_forward(x, H, W, p, cfg)
        return x, H, W

    def forward(self, x_nchw):
        B, _, H, W = x_nchw.shape
        assert H % 8 == 0 and W % 8 == 0  # even spatial dims at every downsampling stage
        # NCHW -> (B, H*W, C) channels-last, bf16 activations (f32 accumulation in-kernel)
        x = jnp.transpose(x_nchw, (0, 2, 3, 1)).reshape(B, H * W, -1).astype(jnp.bfloat16)
        x4, H4, W4 = self._run_stage(x, H, W, self.stage4)
        x8, H8, W8 = self._run_stage(x4, H4, W4, self.stage8)
        x16, H16, W16 = self._run_stage(x8, H8, W8, self.stage16)

        def to_nchw(t, h, w):
            return jnp.transpose(t.reshape(B, h, w, -1), (0, 3, 1, 2)).astype(jnp.float32)

        return {"4": to_nchw(x4, H4, W4),
                "8": to_nchw(x8, H8, W8),
                "16": to_nchw(x16, H16, W16)}

    def get_channels(self):
        return self.out_channels


if __name__ == "__main__":
    cfg = {
        "channels": [8, 16, 16, 24, 32],
        "group_width": 8,
        "attention": "se",
        "dilations": [[1], [1, 2]],
    }
    model = RegSegBody(cfg, seed=0)

    x = jax.random.normal(jax.random.PRNGKey(0), (2, 8, 16, 16), jnp.float32)  # NCHW input
    fwd = jax.jit(model.forward)
    out = fwd(x)
    jax.block_until_ready(out)

    assert out["4"].shape == (2, 16, 8, 8)
    assert out["8"].shape == (2, 16, 4, 4)
    assert out["16"].shape == (2, 32, 2, 2)
    print("KERNEL_OK")
</pallas_src>

<mosaic_0001>
module attributes {stable_mosaic.version = 11 : i64} {
  func.func @_pw_kernel(%arg0: i32, %arg1: i32, %arg2: memref<1x256x8xbf16, #tpu.memory_space<vmem>>, %arg3: memref<8x32xbf16, #tpu.memory_space<vmem>>, %arg4: memref<1x32xf32, #tpu.memory_space<vmem>>, %arg5: memref<1x32xf32, #tpu.memory_space<vmem>>, %arg6: memref<1x256x32xbf16, #tpu.memory_space<vmem>>) attributes {dimension_semantics = [#tpu.dimension_semantics<parallel>, #tpu.dimension_semantics<parallel>], iteration_bounds = array<i64: 2, 1>, scalar_prefetch = 0 : i64, scratch_operands = 0 : i64, tpu.core_type = #tpu.core_type<tc>, window_params = [{transform_indices = @transform_0, window_bounds = array<i64: 1, 256, 8>}, {pipeline_mode = #tpu.pipeline_mode<synchronous>, transform_indices = @transform_1, window_bounds = array<i64: 8, 32>}, {pipeline_mode = #tpu.pipeline_mode<synchronous>, transform_indices = @transform_2, window_bounds = array<i64: 1, 32>}, {pipeline_mode = #tpu.pipeline_mode<synchronous>, transform_indices = @transform_3, window_bounds = array<i64: 1, 32>}, {transform_indices = @transform_4, window_bounds = array<i64: 1, 256, 32>}]} {
    %c0 = arith.constant 0 : index
    %c0_0 = arith.constant 0 : index
    %c0_1 = arith.constant 0 : index
    %0 = vector.load %arg2[%c0, %c0_0, %c0_1] : memref<1x256x8xbf16, #tpu.memory_space<vmem>>, vector<1x256x8xbf16>
    %1 = vector.shape_cast %0 : vector<1x256x8xbf16> to vector<256x8xbf16>
    %c0_2 = arith.constant 0 : index
    %c0_3 = arith.constant 0 : index
    %2 = vector.load %arg3[%c0_2, %c0_3] : memref<8x32xbf16, #tpu.memory_space<vmem>>, vector<8x32xbf16>
    %cst = arith.constant dense<0.000000e+00> : vector<256x32xf32>
    %3 = tpu.matmul %1, %2, %cst {dimension_numbers = #tpu.dot_dimension_numbers<[1], [0], [0], [1], [0, 0, 1, 1], [], []>} : vector<256x8xbf16>, vector<8x32xbf16>, vector<256x32xf32> -> vector<256x32xf32>
    %c0_4 = arith.constant 0 : index
    %c0_5 = arith.constant 0 : index
    %4 = vector.load %arg4[%c0_4, %c0_5] : memref<1x32xf32, #tpu.memory_space<vmem>>, vector<1x32xf32>
    %5 = vector.broadcast %4 : vector<1x32xf32> to vector<256x32xf32>
    %6 = arith.mulf %3, %5 : vector<256x32xf32>
    %c0_6 = arith.constant 0 : index
    %c0_7 = arith.constant 0 : index
    %7 = vector.load %arg5[%c0_6, %c0_7] : memref<1x32xf32, #tpu.memory_space<vmem>>, vector<1x32xf32>
    %8 = vector.broadcast %7 : vector<1x32xf32> to vector<256x32xf32>
    %9 = arith.addf %6, %8 : vector<256x32xf32>
    %10 = tpu.iota {dimensions = array<i32: 1>} : vector<256x32xi32>
    %c16_i32 = arith.constant 16 : i32
    %11 = vector.broadcast %c16_i32 : i32 to vector<256x32xi32>
    %12 = arith.cmpi slt, %10, %11 : vector<256x32xi32>
    %cst_8 = arith.constant 0.000000e+00 : f32
    %13 = vector.broadcast %cst_8 : f32 to vector<256x32xf32>
    %14 = arith.maximumf %9, %13 : vector<256x32xf32>
    %15 = arith.select %12, %14, %9 : vector<256x32xi1>, vector<256x32xf32>
    %16 = arith.truncf %15 : vector<256x32xf32> to vector<256x32xbf16>
    %c0_9 = arith.constant 0 : index
    %c0_10 = arith.constant 0 : index
    %c0_11 = arith.constant 0 : index
    %17 = vector.load %arg6[%c0_9, %c0_10, %c0_11] : memref<1x256x32xbf16, #tpu.memory_space<vmem>>, vector<1x256x32xbf16>
    %18 = vector.shape_cast %17 : vector<1x256x32xbf16> to vector<256x32xbf16>
    %19 = vector.shape_cast %16 : vector<256x32xbf16> to vector<1x256x32xbf16>
    tpu.vector_store %arg6[%c0_9, %c0_10, %c0_11], %19 {strides = array<i32>} : memref<1x256x32xbf16, #tpu.memory_space<vmem>>, vector<1x256x32xbf16>,
    return
  }
  func.func @transform_0(%arg0: i32, %arg1: i32) -> (i32, i32, i32) {
    %c0_i32 = arith.constant 0 : i32
    %c0_i32_0 = arith.constant 0 : i32
    return %arg0, %arg1, %c0_i32 : i32, i32, i32
  }
  func.func @transform_1(%arg0: i32, %arg1: i32) -> (i32, i32) {
    %c0_i32 = arith.constant 0 : i32
    %c0_i32_0 = arith.constant 0 : i32
    %c0_i32_1 = arith.constant 0 : i32
    return %c0_i32, %c0_i32_0 : i32, i32
  }
  func.func @transform_2(%arg0: i32, %arg1: i32) -> (i32, i32) {
    %c0_i32 = arith.constant 0 : i32
    %c0_i32_0 = arith.constant 0 : i32
    %c0_i32_1 = arith.constant 0 : i32
    return %c0_i32, %c0_i32_0 : i32, i32
  }
  func.func @transform_3(%arg0: i32, %arg1: i32) -> (i32, i32) {
    %c0_i32 = arith.constant 0 : i32
    %c0_i32_0 = arith.constant 0 : i32
    %c0_i32_1 = arith.constant 0 : i32
    return %c0_i32, %c0_i32_0 : i32, i32
  }
  func.func @transform_4(%arg0: i32, %arg1: i32) -> (i32, i32, i32) {
    %c0_i32 = arith.constant 0 : i32
    %c0_i32_0 = arith.constant 0 : i32
    return %arg0, %arg1, %c0_i32 : i32, i32, i32
  }
}

module attributes {stable_mosaic.version = 11 : i64} {
  func.func @_dconv_kernel(%arg0: i32, %arg1: memref<1x64x128xbf16, #tpu.memory_space<vmem>>, %arg2: memref<9x16x16xbf16, #tpu.memory_space<vmem>>, %arg3: memref<1x16xf32, #tpu.memory_space<vmem>>, %arg4: memref<1x16xf32, #tpu.memory_space<vmem>>, %arg5: memref<64x1xi32, #tpu.memory_space<vmem>>, %arg6: memref<1x64x16xbf16, #tpu.memory_space<vmem>>, %arg7: memref<1x1x16xf32, #tpu.memory_space<vmem>>, %arg8: memref<1x64x16xbf16, #tpu.memory_space<vmem>>, %arg9: memref<80x128xbf16, #tpu.memory_space<vmem>>) attributes {dimension_semantics = [#tpu.dimension_semantics<parallel>], iteration_bounds = array<i64: 2>, scalar_prefetch = 0 : i64, scratch_operands = 1 : i64, tpu.core_type = #tpu.core_type<tc>, window_params = [{transform_indices = @transform_0, window_bounds = array<i64: 1, 64, 128>}, {pipeline_mode = #tpu.pipeline_mode<synchronous>, transform_indices = @transform_1, window_bounds = array<i64: 9, 16, 16>}, {pipeline_mode = #tpu.pipeline_mode<synchronous>, transform_indices = @transform_2, window_bounds = array<i64: 1, 16>}, {pipeline_mode = #tpu.pipeline_mode<synchronous>, transform_indices = @transform_3, window_bounds = array<i64: 1, 16>}, {pipeline_mode = #tpu.pipeline_mode<synchronous>, transform_indices = @transform_4, window_bounds = array<i64: 64, 1>}, {transform_indices = @transform_5, window_bounds = array<i64: 1, 64, 16>}, {transform_indices = @transform_6, window_bounds = array<i64: 1, 1, 16>}, {transform_indices = @transform_7, window_bounds = array<i64: 1, 64, 16>}]} {
    %cst = arith.constant 0.000000e+00 : bf16
    %0 = vector.broadcast %cst : bf16 to vector<16x128xbf16>
    %c0 = arith.constant 0 : index
    %c0_0 = arith.constant 0 : index
    %1 = vector.load %arg9[%c0, %c0_0] : memref<80x128xbf16, #tpu.memory_space<vmem>>, vector<16x128xbf16>
    tpu.vector_store %arg9[%c0, %c0_0], %0 {strides = array<i32>} : memref<80x128xbf16, #tpu.memory_space<vmem>>, vector<16x128xbf16>,
    %c0_1 = arith.constant 0 : index
    %c0_2 = arith.constant 0 : index
    %c0_3 = arith.constant 0 : index
    %2 = vector.load %arg1[%c0_1, %c0_2, %c0_3] : memref<1x64x128xbf16, #tpu.memory_space<vmem>>, vector<1x64x128xbf16>
    %3 = vector.shape_cast %2 : vector<1x64x128xbf16> to vector<64x128xbf16>
    %c16 = arith.constant 16 : index
    %c0_4 = arith.constant 0 : index
    %4 = vector.load %arg9[%c16, %c0_4] : memref<80x128xbf16, #tpu.memory_space<vmem>>, vector<64x128xbf16>
    tpu.vector_store %arg9[%c16, %c0_4], %3 {strides = array<i32>} : memref<80x128xbf16, #tpu.memory_space<vmem>>, vector<64x128xbf16>,
    %c0_5 = arith.constant 0 : index
    %c0_6 = arith.constant 0 : index
    %5 = vector.load %arg5[%c0_5, %c0_6] : memref<64x1xi32, #tpu.memory_space<vmem>>, vector<64x1xi32>
    %cst_7 = arith.constant 0.000000e+00 : f32
    %6 = vector.broadcast %cst_7 : f32 to vector<64x16xf32>
    %c7 = arith.constant 7 : index
    %c96 = arith.constant 96 : index
    %7 = vector.load %arg9[%c7, %c96] : memref<80x128xbf16, #tpu.memory_space<vmem>>, vector<64x16xbf16>
    %c0_8 = arith.constant 0 : index
    %c0_9 = arith.constant 0 : index
    %c0_10 = arith.constant 0 : index
    %8 = vector.load %arg2[%c0_8, %c0_9, %c0_10] : memref<9x16x16xbf16, #tpu.memory_space<vmem>>, vector<1x16x16xbf16>
    %9 = vector.shape_cast %8 : vector<1x16x16xbf16> to vector<16x16xbf16>
    %cst_11 = arith.constant dense<0.000000e+00> : vector<64x16xf32>
    %10 = tpu.matmul %7, %9, %cst_11 {dimension_numbers = #tpu.dot_dimension_numbers<[1], [0], [0], [1], [0, 0, 1, 1], [], []>} : vector<64x16xbf16>, vector<16x16xbf16>, vector<64x16xf32> -> vector<64x16xf32>
    %c1_i32 = arith.constant 1 : i32
    %11 = vector.broadcast %c1_i32 : i32 to vector<64x1xi32>
    %12 = arith.cmpi sge, %5, %11 : vector<64x1xi32>
    %c8_i32 = arith.constant 8 : i32
    %13 = vector.broadcast %c8_i32 : i32 to vector<64x1xi32>
    %14 = arith.cmpi slt, %5, %13 : vector<64x1xi32>
    %15 = arith.andi %12, %14 : vector<64x1xi1>
    %cst_12 = arith.constant 0.000000e+00 : f32
    %16 = vector.shape_cast %15 : vector<64x1xi1> to vector<64x1xi1>
    %17 = vector.broadcast %16 : vector<64x1xi1> to vector<64x16xi1>
    %18 = vector.broadcast %cst_12 : f32 to vector<64x16xf32>
    %19 = arith.select %17, %10, %18 : vector<64x16xi1>, vector<64x16xf32>
    %20 = arith.addf %6, %19 : vector<64x16xf32>
    %c8 = arith.constant 8 : index
    %c64 = arith.constant 64 : index
    %21 = vector.load %arg9[%c8, %c64] : memref<80x128xbf16, #tpu.memory_space<vmem>>, vector<64x16xbf16>
    %c1 = arith.constant 1 : index
    %c0_13 = arith.constant 0 : index
    %c0_14 = arith.constant 0 : index
    %22 = vector.load %arg2[%c1, %c0_13, %c0_14] : memref<9x16x16xbf16, #tpu.memory_space<vmem>>, vector<1x16x16xbf16>
    %23 = vector.shape_cast %22 : vector<1x16x16xbf16> to vector<16x16xbf16>
    %cst_15 = arith.constant dense<0.000000e+00> : vector<64x16xf32>
    %24 = tpu.matmul %21, %23, %cst_15 {dimension_numbers = #tpu.dot_dimension_numbers<[1], [0], [0], [1], [0, 0, 1, 1], [], []>} : vector<64x16xbf16>, vector<16x16xbf16>, vector<64x16xf32> -> vector<64x16xf32>
    %25 = arith.addf %20, %24 : vector<64x16xf32>
    %c8_16 = arith.constant 8 : index
    %c96_17 = arith.constant 96 : index
    %26 = vector.load %arg9[%c8_16, %c96_17] : memref<80x128xbf16, #tpu.memory_space<vmem>>, vector<64x16xbf16>
    %c2 = arith.constant 2 : index
    %c0_18 = arith.constant 0 : index
    %c0_19 = arith.constant 0 : index
    %27 = vector.load %arg2[%c2, %c0_18, %c0_19] : memref<9x16x16xbf16, #tpu.memory_space<vmem>>, vector<1x16x16xbf16>
    %28 = vector.shape_cast %27 : vector<1x16x16xbf16> to vector<16x16xbf16>
    %cst_20 = arith.constant dense<0.000000e+00> : vector<64x16xf32>
    %29 = tpu.matmul %26, %28, %cst_20 {dimension_numbers = #tpu.dot_dimension_numbers<[1], [0], [0], [1], [0, 0, 1, 1], [], []>} : vector<64x16xbf16>, vector<16x16xbf16>, vector<64x16xf32> -> vector<64x16xf32>
    %30 = arith.addf %25, %29 : vector<64x16xf32>
    %c15 = arith.constant 15 : index
    %c32 = arith.constant 32 : index
    %31 = vector.load %arg9[%c15, %c32] : memref<80x128xbf16, #tpu.memory_space<vmem>>, vector<64x16xbf16>
    %c3 = arith.constant 3 : index
    %c0_21 = arith.constant 0 : index
    %c0_22 = arith.constant 0 : index
    %32 = vector.load %arg2[%c3, %c0_21, %c0_22] : memref<9x16x16xbf16, #tpu.memory_space<vmem>>, vector<1x16x16xbf16>
    %33 = vector.shape_cast %32 : vector<1x16x16xbf16> to vector<16x16xbf16>
    %cst_23 = arith.constant dense<0.000000e+00> : vector<64x16xf32>
    %34 = tpu.matmul %31, %33, %cst_23 {dimension_numbers = #tpu.dot_dimension_numbers<[1], [0], [0], [1], [0, 0, 1, 1], [], []>} : vector<64x16xbf16>, vector<16x16xbf16>, vector<64x16xf32> -> vector<64x16xf32>
    %c1_i32_24 = arith.constant 1 : i32
    %35 = vector.broadcast %c1_i32_24 : i32 to vector<64x1xi32>
    %36 = arith.cmpi sge, %5, %35 : vector<64x1xi32>
    %c8_i32_25 = arith.constant 8 : i32
    %37 = vector.broadcast %c8_i32_25 : i32 to vector<64x1xi32>
    %38 = arith.cmpi slt, %5, %37 : vector<64x1xi32>
    %39 = arith.andi %36, %38 : vector<64x1xi1>
    %cst_26 = arith.constant 0.000000e+00 : f32
    %40 = vector.shape_cast %39 : vector<64x1xi1> to vector<64x1xi1>
    %41 = vector.broadcast %40 : vector<64x1xi1> to vector<64x16xi1>
    %42 = vector.broadcast %cst_26 : f32 to vector<64x16xf32>
    %43 = arith.select %41, %34, %42 : vector<64x16xi1>, vector<64x16xf32>
    %44 = arith.addf %30, %43 : vector<64x16xf32>
    %c16_27 = arith.constant 16 : index
    %c0_28 = arith.constant 0 : index
    %45 = vector.load %arg9[%c16_27, %c0_28] : memref<80x128xbf16, #tpu.memory_space<vmem>>, vector<64x16xbf16>
    %c4 = arith.constant 4 : index
    %c0_29 = arith.constant 0 : index
    %c0_30 = arith.constant 0 : index
    %46 = vector.load %arg2[%c4, %c0_29, %c0_30] : memref<9x16x16xbf16, #tpu.memory_space<vmem>>, vector<1x16x16xbf16>
    %47 = vector.shape_cast %46 : vector<1x16x16xbf16> to vector<16x16xbf16>
    %cst_31 = arith.constant dense<0.000000e+00> : vector<64x16xf32>
    %48 = tpu.matmul %45, %47, %cst_31 {dimension_numbers = #tpu.dot_dimension_numbers<[1], [0], [0], [1], [0, 0, 1, 1], [], []>} : vector<64x16xbf16>, vector<16x16xbf16>, vector<64x16xf32> -> vector<64x16xf32>
    %49 = arith.addf %44, %48 : vector<64x16xf32>
    %c16_32 = arith.constant 16 : index
    %c32_33 = arith.constant 32 : index
    %50 = vector.load %arg9[%c16_32, %c32_33] : memref<80x128xbf16, #tpu.memory_space<vmem>>, vector<64x16xbf16>
    %c5 = arith.constant 5 : index
    %c0_34 = arith.constant 0 : index
    %c0_35 = arith.constant 0 : index
    %51 = vector.load %arg2[%c5, %c0_34, %c0_35] : memref<9x16x16xbf16, #tpu.memory_space<vmem>>, vector<1x16x16xbf16>
    %52 = vector.shape_cast %51 : vector<1x16x16xbf16> to vector<16x16xbf16>
    %cst_36 = arith.constant dense<0.000000e+00> : vector<64x16xf32>
    %53 = tpu.matmul %50, %52, %cst_36 {dimension_numbers = #tpu.dot_dimension_numbers<[1], [0], [0], [1], [0, 0, 1, 1], [], []>} : vector<64x16xbf16>, vector<16x16xbf16>, vector<64x16xf32> -> vector<64x16xf32>
    %54 = arith.addf %49, %53 : vector<64x16xf32>
    %c15_37 = arith.constant 15 : index
    %c96_38 = arith.constant 96 : index
    %55 = vector.load %arg9[%c15_37, %c96_38] : memref<80x128xbf16, #tpu.memory_space<vmem>>, vector<64x16xbf16>
    %c6 = arith.constant 6 : index
    %c0_39 = arith.constant 0 : index
    %c0_40 = arith.constant 0 : index
    %56 = vector.load %arg2[%c6, %c0_39, %c0_40] : memref<9x16x16xbf16, #tpu.memory_space<vmem>>, vector<1x16x16xbf16>
    %57 = vector.shape_cast %56 : vector<1x16x16xbf16> to vector<16x16xbf16>
    %cst_41 = arith.constant dense<0.000000e+00> : vector<64x16xf32>
    %58 = tpu.matmul %55, %57, %cst_41 {dimension_numbers = #tpu.dot_dimension_numbers<[1], [0], [0], [1], [0, 0, 1, 1], [], []>} : vector<64x16xbf16>, vector<16x16xbf16>, vector<64x16xf32> -> vector<64x16xf32>
    %c1_i32_42 = arith.constant 1 : i32
    %59 = vector.broadcast %c1_i32_42 : i32 to vector<64x1xi32>
    %60 = arith.cmpi sge, %5, %59 : vector<64x1xi32>
    %c8_i32_43 = arith.constant 8 : i32
    %61 = vector.broadcast %c8_i32_43 : i32 to vector<64x1xi32>
    %62 = arith.cmpi slt, %5, %61 : vector<64x1xi32>
    %63 = arith.andi %60, %62 : vector<64x1xi1>
    %cst_44 = arith.constant 0.000000e+00 : f32
    %64 = vector.shape_cast %63 : vector<64x1xi1> to vector<64x1xi1>
    %65 = vector.broadcast %64 : vector<64x1xi1> to vector<64x16xi1>
    %66 = vector.broadcast %cst_44 : f32 to vector<64x16xf32>
    %67 = arith.select %65, %58, %66 : vector<64x16xi1>, vector<64x16xf32>
    %68 = arith.addf %54, %67 : vector<64x16xf32>
    %c16_45 = arith.constant 16 : index
    %c64_46 = arith.constant 64 : index
    %69 = vector.load %arg9[%c16_45, %c64_46] : memref<80x128xbf16, #tpu.memory_space<vmem>>, vector<64x16xbf16>
    %c7_47 = arith.constant 7 : index
    %c0_48 = arith.constant 0 : index
    %c0_49 = arith.constant 0 : index
    %70 = vector.load %arg2[%c7_47, %c0_48, %c0_49] : memref<9x16x16xbf16, #tpu.memory_space<vmem>>, vector<1x16x16xbf16>
    %71 = vector.shape_cast %70 : vector<1x16x16xbf16> to vector<16x16xbf16>
    %cst_50 = arith.constant dense<0.000000e+00> : vector<64x16xf32>
    %72 = tpu.matmul %69, %71, %cst_50 {dimension_numbers = #tpu.dot_dimension_numbers<[1], [0], [0], [1], [0, 0, 1, 1], [], []>} : vector<64x16xbf16>, vector<16x16xbf16>, vector<64x16xf32> -> vector<64x16xf32>
    %73 = arith.addf %68, %72 : vector<64x16xf32>
    %c16_51 = arith.constant 16 : index
    %c96_52 = arith.constant 96 : index
    %74 = vector.load %arg9[%c16_51, %c96_52] : memref<80x128xbf16, #tpu.memory_space<vmem>>, vector<64x16xbf16>
    %c8_53 = arith.constant 8 : index
    %c0_54 = arith.constant 0 : index
    %c0_55 = arith.constant 0 : index
    %75 = vector.load %arg2[%c8_53, %c0_54, %c0_55] : memref<9x16x16xbf16, #tpu.memory_space<vmem>>, vector<1x16x16xbf16>
    %76 = vector.shape_cast %75 : vector<1x16x16xbf16> to vector<16x16xbf16>
    %cst_56 = arith.constant dense<0.000000e+00> : vector<64x16xf32>
    %77 = tpu.matmul %74, %76, %cst_56 {dimension_numbers = #tpu.dot_dimension_numbers<[1], [0], [0], [1], [0, 0, 1, 1], [], []>} : vector<64x16xbf16>, vector<16x16xbf16>, vector<64x16xf32> -> vector<64x16xf32>
    %78 = arith.addf %73, %77 : vector<64x16xf32>
    %c0_57 = arith.constant 0 : index
    %c0_58 = arith.constant 0 : index
    %79 = vector.load %arg3[%c0_57, %c0_58] : memref<1x16xf32, #tpu.memory_space<vmem>>, vector<1x16xf32>
    %80 = vector.broadcast %79 : vector<1x16xf32> to vector<64x16xf32>
    %81 = arith.mulf %78, %80 : vector<64x16xf32>
    %c0_59 = arith.constant 0 : index
    %c0_60 = arith.constant 0 : index
    %82 = vector.load %arg4[%c0_59, %c0_60] : memref<1x16xf32, #tpu.memory_space<vmem>>, vector<1x16xf32>
    %83 = vector.broadcast %82 : vector<1x16xf32> to vector<64x16xf32>
    %84 = arith.addf %81, %83 : vector<64x16xf32>
    %cst_61 = arith.constant 0.000000e+00 : f32
    %85 = vector.broadcast %cst_61 : f32 to vector<64x16xf32>
    %86 = arith.maximumf %84, %85 : vector<64x16xf32>
    %87 = arith.truncf %86 : vector<64x16xf32> to vector<64x16xbf16>
    %c0_62 = arith.constant 0 : index
    %c0_63 = arith.constant 0 : index
    %c0_64 = arith.constant 0 : index
    %88 = vector.load %arg6[%c0_62, %c0_63, %c0_64] : memref<1x64x16xbf16, #tpu.memory_space<vmem>>, vector<1x64x16xbf16>
    %89 = vector.shape_cast %88 : vector<1x64x16xbf16> to vector<64x16xbf16>
    %90 = vector.shape_cast %87 : vector<64x16xbf16> to vector<1x64x16xbf16>
    tpu.vector_store %arg6[%c0_62, %c0_63, %c0_64], %90 {strides = array<i32>} : memref<1x64x16xbf16, #tpu.memory_space<vmem>>, vector<1x64x16xbf16>,
    %cst_65 = arith.constant dense<0.000000e+00> : vector<16xf32>
    %91 = vector.multi_reduction <add>, %86, %cst_65 [0] : vector<64x16xf32> to vector<16xf32>
    %92 = vector.shape_cast %91 : vector<16xf32> to vector<1x16xf32>
    %cst_66 = arith.constant 1.562500e-02 : f32
    %93 = vector.broadcast %cst_66 : f32 to vector<1x16xf32>
    %94 = arith.mulf %92, %93 : vector<1x16xf32>
    %c0_67 = arith.constant 0 : index
    %c0_68 = arith.constant 0 : index
    %c0_69 = arith.constant 0 : index
    %95 = vector.load %arg7[%c0_67, %c0_68, %c0_69] : memref<1x1x16xf32, #tpu.memory_space<vmem>>, vector<1x1x16xf32>
    %96 = vector.shape_cast %95 : vector<1x1x16xf32> to vector<1x16xf32>
    %97 = vector.shape_cast %94 : vector<1x16xf32> to vector<1x1x16xf32>
    tpu.vector_store %arg7[%c0_67, %c0_68, %c0_69], %97 {strides = array<i32>} : memref<1x1x16xf32, #tpu.memory_space<vmem>>, vector<1x1x16xf32>,
    %c0_70 = arith.constant 0 : index
    %c0_71 = arith.constant 0 : index
    %c16_72 = arith.constant 16 : index
    %98 = vector.load %arg1[%c0_70, %c0_71, %c16_72] : memref<1x64x128xbf16, #tpu.memory_space<vmem>>, vector<1x64x16xbf16>
    %99 = vector.shape_cast %98 : vector<1x64x16xbf16> to vector<64x16xbf16>
    %100 = arith.extf %99 : vector<64x16xbf16> to vector<64x16xf32>
    %c0_73 = arith.constant 0 : index
    %c0_74 = arith.constant 0 : index
    %c48 = arith.constant 48 : index
    %101 = vector.load %arg1[%c0_73, %c0_74, %c48] : memref<1x64x128xbf16, #tpu.memory_space<vmem>>, vector<1x64x16xbf16>
    %102 = vector.shape_cast %101 : vector<1x64x16xbf16> to vector<64x16xbf16>
    %103 = arith.extf %102 : vector<64x16xbf16> to vector<64x16xf32>
    %104 = arith.addf %100, %103 : vector<64x16xf32>
    %c0_75 = arith.constant 0 : index
    %c0_76 = arith.constant 0 : index
    %c80 = arith.constant 80 : index
    %105 = vector.load %arg1[%c0_75, %c0_76, %c80] : memref<1x64x128xbf16, #tpu.memory_space<vmem>>, vector<1x64x16xbf16>
    %106 = vector.shape_cast %105 : vector<1x64x16xbf16> to vector<64x16xbf16>
    %107 = arith.extf %106 : vector<64x16xbf16> to vector<64x16xf32>
    %108 = arith.addf %104, %107 : vector<64x16xf32>
    %c0_77 = arith.constant 0 : index
    %c0_78 = arith.constant 0 : index
    %c112 = arith.constant 112 : index
    %109 = vector.load %arg1[%c0_77, %c0_78, %c112] : memref<1x64x128xbf16, #tpu.memory_space<vmem>>, vector<1x64x16xbf16>
    %110 = vector.shape_cast %109 : vector<1x64x16xbf16> to vector<64x16xbf16>
    %111 = arith.extf %110 : vector<64x16xbf16> to vector<64x16xf32>
    %112 = arith.addf %108, %111 : vector<64x16xf32>
    %cst_79 = arith.constant 2.500000e-01 : f32
    %113 = vector.broadcast %cst_79 : f32 to vector<64x16xf32>
    %114 = arith.mulf %112, %113 : vector<64x16xf32>
    %115 = arith.truncf %114 : vector<64x16xf32> to vector<64x16xbf16>
    %c0_80 = arith.constant 0 : index
    %c0_81 = arith.constant 0 : index
    %c0_82 = arith.constant 0 : index
    %116 = vector.load %arg8[%c0_80, %c0_81, %c0_82] : memref<1x64x16xbf16, #tpu.memory_space<vmem>>, vector<1x64x16xbf16>
    %117 = vector.shape_cast %116 : vector<1x64x16xbf16> to vector<64x16xbf16>
    %118 = vector.shape_cast %115 : vector<64x16xbf16> to vector<1x64x16xbf16>
    tpu.vector_store %arg8[%c0_80, %c0_81, %c0_82], %118 {strides = array<i32>} : memref<1x64x16xbf16, #tpu.memory_space<vmem>>, vector<1x64x16xbf16>,
    return
  }
  func.func @transform_0(%arg0: i32) -> (i32, i32, i32) {
    %c0_i32 = arith.constant 0 : i32
    %c0_i32_0 = arith.constant 0 : i32
    %c0_i32_1 = arith.constant 0 : i32
    return %arg0, %c0_i32, %c0_i32_0 : i32, i32, i32
  }
  func.func @transform_1(%arg0: i32) -> (i32, i32, i32) {
    %c0_i32 = arith.constant 0 : i32
    %c0_i32_0 = arith.constant 0 : i32
    %c0_i32_1 = arith.constant 0 : i32
    %c0_i32_2 = arith.constant 0 : i32
    return %c0_i32, %c0_i32_0, %c0_i32_1 : i32, i32, i32
  }
  func.func @transform_2(%arg0: i32) -> (i32, i32) {
    %c0_i32 = arith.constant 0 : i32
    %c0_i32_0 = arith.constant 0 : i32
    %c0_i32_1 = arith.constant 0 : i32
    return %c0_i32, %c0_i32_0 : i32, i32
  }
  func.func @transform_3(%arg0: i32) -> (i32, i32) {
    %c0_i32 = arith.constant 0 : i32
    %c0_i32_0 = arith.constant 0 : i32
    %c0_i32_1 = arith.constant 0 : i32
    return %c0_i32, %c0_i32_0 : i32, i32
  }
  func.func @transform_4(%arg0: i32) -> (i32, i32) {
    %c0_i32 = arith.constant 0 : i32
    %c0_i32_0 = arith.constant 0 : i32
    %c0_i32_1 = arith.constant 0 : i32
    return %c0_i32, %c0_i32_0 : i32, i32
  }
  func.func @transform_5(%arg0: i32) -> (i32, i32, i32) {
    %c0_i32 = arith.constant 0 : i32
    %c0_i32_0 = arith.constant 0 : i32
    %c0_i32_1 = arith.constant 0 : i32
    return %arg0, %c0_i32, %c0_i32_0 : i32, i32, i32
  }
  func.func @transform_6(%arg0: i32) -> (i32, i32, i32) {
    %c0_i32 = arith.constant 0 : i32
    %c0_i32_0 = arith.constant 0 : i32
    %c0_i32_1 = arith.constant 0 : i32
    return %arg0, %c0_i32, %c0_i32_0 : i32, i32, i32
  }
  func.func @transform_7(%arg0: i32) -> (i32, i32, i32) {
    %c0_i32 = arith.constant 0 : i32
    %c0_i32_0 = arith.constant 0 : i32
    %c0_i32_1 = arith.constant 0 : i32
    return %arg0, %c0_i32, %c0_i32_0 : i32, i32, i32
  }
}

module attributes {stable_mosaic.version = 11 : i64} {
  func.func @_se_kernel(%arg0: memref<2x16xf32, #tpu.memory_space<vmem>>, %arg1: memref<16x2xf32, #tpu.memory_space<vmem>>, %arg2: memref<1x2xf32, #tpu.memory_space<vmem>>, %arg3: memref<2x16xf32, #tpu.memory_space<vmem>>, %arg4: memref<1x16xf32, #tpu.memory_space<vmem>>, %arg5: memref<2x16xf32, #tpu.memory_space<vmem>>) attributes {dimension_semantics = [], scalar_prefetch = 0 : i64, scratch_operands = 0 : i64, tpu.core_type = #tpu.core_type<tc>} {
    %c0 = arith.constant 0 : index
    %c0_0 = arith.constant 0 : index
    %0 = vector.load %arg0[%c0, %c0_0] : memref<2x16xf32, #tpu.memory_space<vmem>>, vector<2x16xf32>
    %c0_1 = arith.constant 0 : index
    %c0_2 = arith.constant 0 : index
    %1 = vector.load %arg1[%c0_1, %c0_2] : memref<16x2xf32, #tpu.memory_space<vmem>>, vector<16x2xf32>
    %cst = arith.constant dense<0.000000e+00> : vector<2x2xf32>
    %2 = tpu.matmul %0, %1, %cst {dimension_numbers = #tpu.dot_dimension_numbers<[1], [0], [0], [1], [0, 0, 1, 1], [], []>} : vector<2x16xf32>, vector<16x2xf32>, vector<2x2xf32> -> vector<2x2xf32>
    %c0_3 = arith.constant 0 : index
    %c0_4 = arith.constant 0 : index
    %3 = vector.load %arg2[%c0_3, %c0_4] : memref<1x2xf32, #tpu.memory_space<vmem>>, vector<1x2xf32>
    %4 = vector.broadcast %3 : vector<1x2xf32> to vector<2x2xf32>
    %5 = arith.addf %2, %4 : vector<2x2xf32>
    %cst_5 = arith.constant 0.000000e+00 : f32
    %6 = vector.broadcast %cst_5 : f32 to vector<2x2xf32>
    %7 = arith.maximumf %5, %6 : vector<2x2xf32>
    %c0_6 = arith.constant 0 : index
    %c0_7 = arith.constant 0 : index
    %8 = vector.load %arg3[%c0_6, %c0_7] : memref<2x16xf32, #tpu.memory_space<vmem>>, vector<2x16xf32>
    %cst_8 = arith.constant dense<0.000000e+00> : vector<2x16xf32>
    %9 = tpu.matmul %7, %8, %cst_8 {dimension_numbers = #tpu.dot_dimension_numbers<[1], [0], [0], [1], [0, 0, 1, 1], [], []>} : vector<2x2xf32>, vector<2x16xf32>, vector<2x16xf32> -> vector<2x16xf32>
    %c0_9 = arith.constant 0 : index
    %c0_10 = arith.constant 0 : index
    %10 = vector.load %arg4[%c0_9, %c0_10] : memref<1x16xf32, #tpu.memory_space<vmem>>, vector<1x16xf32>
    %11 = vector.broadcast %10 : vector<1x16xf32> to vector<2x16xf32>
    %12 = arith.addf %9, %11 : vector<2x16xf32>
    %13 = arith.negf %12 : vector<2x16xf32>
    %14 = math.exp %13 : vector<2x16xf32>
    %cst_11 = arith.constant 1.000000e+00 : f32
    %15 = vector.broadcast %cst_11 : f32 to vector<2x16xf32>
    %16 = arith.addf %15, %14 : vector<2x16xf32>
    %17 = arith.divf %15, %16 : vector<2x16xf32>
    %c0_12 = arith.constant 0 : index
    %c0_13 = arith.constant 0 : index
    %18 = vector.load %arg5[%c0_12, %c0_13] : memref<2x16xf32, #tpu.memory_space<vmem>>, vector<2x16xf32>
    tpu.vector_store %arg5[%c0_12, %c0_13], %17 {strides = array<i32>} : memref<2x16xf32, #tpu.memory_space<vmem>>, vector<2x16xf32>,
    return
  }
}

module attributes {stable_mosaic.version = 11 : i64} {
  func.func @_pw_kernel(%arg0: i32, %arg1: i32, %arg2: memref<1x64x16xbf16, #tpu.memory_space<vmem>>, %arg3: memref<16x16xbf16, #tpu.memory_space<vmem>>, %arg4: memref<1x16xf32, #tpu.memory_space<vmem>>, %arg5: memref<1x16xf32, #tpu.memory_space<vmem>>, %arg6: memref<1x1x16xf32, #tpu.memory_space<vmem>>, %arg7: memref<1x64x16xbf16, #tpu.memory_space<vmem>>, %arg8: memref<1x64x16xbf16, #tpu.memory_space<vmem>>) attributes {dimension_semantics = [#tpu.dimension_semantics<parallel>, #tpu.dimension_semantics<parallel>], iteration_bounds = array<i64: 2, 1>, scalar_prefetch = 0 : i64, scratch_operands = 0 : i64, tpu.core_type = #tpu.core_type<tc>, window_params = [{transform_indices = @transform_0, window_bounds = array<i64: 1, 64, 16>}, {pipeline_mode = #tpu.pipeline_mode<synchronous>, transform_indices = @transform_1, window_bounds = array<i64: 16, 16>}, {pipeline_mode = #tpu.pipeline_mode<synchronous>, transform_indices = @transform_2, window_bounds = array<i64: 1, 16>}, {pipeline_mode = #tpu.pipeline_mode<synchronous>, transform_indices = @transform_3, window_bounds = array<i64: 1, 16>}, {transform_indices = @transform_4, window_bounds = array<i64: 1, 1, 16>}, {transform_indices = @transform_5, window_bounds = array<i64: 1, 64, 16>}, {transform_indices = @transform_6, window_bounds = array<i64: 1, 64, 16>}]} {
    %c0 = arith.constant 0 : index
    %c0_0 = arith.constant 0 : index
    %c0_1 = arith.constant 0 : index
    %0 = vector.load %arg2[%c0, %c0_0, %c0_1] : memref<1x64x16xbf16, #tpu.memory_space<vmem>>, vector<1x64x16xbf16>
    %1 = vector.shape_cast %0 : vector<1x64x16xbf16> to vector<64x16xbf16>
    %2 = arith.extf %1 : vector<64x16xbf16> to vector<64x16xf32>
    %c0_2 = arith.constant 0 : index
    %c0_3 = arith.constant 0 : index
    %c0_4 = arith.constant 0 : index
    %3 = vector.load %arg6[%c0_2, %c0_3, %c0_4] : memref<1x1x16xf32, #tpu.memory_space<vmem>>, vector<1x1x16xf32>
    %4 = vector.shape_cast %3 : vector<1x1x16xf32> to vector<1x16xf32>
    %5 = vector.broadcast %4 : vector<1x16xf32> to vector<64x16xf32>
    %6 = arith.mulf %2, %5 : vector<64x16xf32>
    %7 = arith.truncf %6 : vector<64x16xf32> to vector<64x16xbf16>
    %c0_5 = arith.constant 0 : index
    %c0_6 = arith.constant 0 : index
    %8 = vector.load %arg3[%c0_5, %c0_6] : memref<16x16xbf16, #tpu.memory_space<vmem>>, vector<16x16xbf16>
    %cst = arith.constant dense<0.000000e+00> : vector<64x16xf32>
    %9 = tpu.matmul %7, %8, %cst {dimension_numbers = #tpu.dot_dimension_numbers<[1], [0], [0], [1], [0, 0, 1, 1], [], []>} : vector<64x16xbf16>, vector<16x16xbf16>, vector<64x16xf32> -> vector<64x16xf32>
    %c0_7 = arith.constant 0 : index
    %c0_8 = arith.constant 0 : index
    %10 = vector.load %arg4[%c0_7, %c0_8] : memref<1x16xf32, #tpu.memory_space<vmem>>, vector<1x16xf32>
    %11 = vector.broadcast %10 : vector<1x16xf32> to vector<64x16xf32>
    %12 = arith.mulf %9, %11 : vector<64x16xf32>
    %c0_9 = arith.constant 0 : index
    %c0_10 = arith.constant 0 : index
    %13 = vector.load %arg5[%c0_9, %c0_10] : memref<1x16xf32, #tpu.memory_space<vmem>>, vector<1x16xf32>
    %14 = vector.broadcast %13 : vector<1x16xf32> to vector<64x16xf32>
    %15 = arith.addf %12, %14 : vector<64x16xf32>
    %c0_11 = arith.constant 0 : index
    %c0_12 = arith.constant 0 : index
    %c0_13 = arith.constant 0 : index
    %16 = vector.load %arg7[%c0_11, %c0_12, %c0_13] : memref<1x64x16xbf16, #tpu.memory_space<vmem>>, vector<1x64x16xbf16>
    %17 = vector.shape_cast %16 : vector<1x64x16xbf16> to vector<64x16xbf16>
    %18 = arith.extf %17 : vector<64x16xbf16> to vector<64x16xf32>
    %19 = arith.addf %15, %18 : vector<64x16xf32>
    %cst_14 = arith.constant 0.000000e+00 : f32
    %20 = vector.broadcast %cst_14 : f32 to vector<64x16xf32>
    %21 = arith.maximumf %19, %20 : vector<64x16xf32>
    %22 = arith.truncf %21 : vector<64x16xf32> to vector<64x16xbf16>
    %c0_15 = arith.constant 0 : index
    %c0_16 = arith.constant 0 : index
    %c0_17 = arith.constant 0 : index
    %23 = vector.load %arg8[%c0_15, %c0_16, %c0_17] : memref<1x64x16xbf16, #tpu.memory_space<vmem>>, vector<1x64x16xbf16>
    %24 = vector.shape_cast %23 : vector<1x64x16xbf16> to vector<64x16xbf16>
    %25 = vector.shape_cast %22 : vector<64x16xbf16> to vector<1x64x16xbf16>
    tpu.vector_store %arg8[%c0_15, %c0_16, %c0_17], %25 {strides = array<i32>} : memref<1x64x16xbf16, #tpu.memory_space<vmem>>, vector<1x64x16xbf16>,
    return
  }
  func.func @transform_0(%arg0: i32, %arg1: i32) -> (i32, i32, i32) {
    %c0_i32 = arith.constant 0 : i32
    %c0_i32_0 = arith.constant 0 : i32
    return %arg0, %arg1, %c0_i32 : i32, i32, i32
  }
  func.func @transform_1(%arg0: i32, %arg1: i32) -> (i32, i32) {
    %c0_i32 = arith.constant 0 : i32
    %c0_i32_0 = arith.constant 0 : i32
    %c0_i32_1 = arith.constant 0 : i32
    return %c0_i32, %c0_i32_0 : i32, i32
  }
  func.func @transform_2(%arg0: i32, %arg1: i32) -> (i32, i32) {
    %c0_i32 = arith.constant 0 : i32
    %c0_i32_0 = arith.constant 0 : i32
    %c0_i32_1 = arith.constant 0 : i32
    return %c0_i32, %c0_i32_0 : i32, i32
  }
  func.func @transform_3(%arg0: i32, %arg1: i32) -> (i32, i32) {
    %c0_i32 = arith.constant 0 : i32
    %c0_i32_0 = arith.constant 0 : i32
    %c0_i32_1 = arith.constant 0 : i32
    return %c0_i32, %c0_i32_0 : i32, i32
  }
  func.func @transform_4(%arg0: i32, %arg1: i32) -> (i32, i32, i32) {
    %c0_i32 = arith.constant 0 : i32
    %c0_i32_0 = arith.constant 0 : i32
    %c0_i32_1 = arith.constant 0 : i32
    return %arg0, %c0_i32, %c0_i32_0 : i32, i32, i32
  }
  func.func @transform_5(%arg0: i32, %arg1: i32) -> (i32, i32, i32) {
    %c0_i32 = arith.constant 0 : i32
    %c0_i32_0 = arith.constant 0 : i32
    return %arg0, %arg1, %c0_i32 : i32, i32, i32
  }
  func.func @transform_6(%arg0: i32, %arg1: i32) -> (i32, i32, i32) {
    %c0_i32 = arith.constant 0 : i32
    %c0_i32_0 = arith.constant 0 : i32
    return %arg0, %arg1, %c0_i32 : i32, i32, i32
  }
}

module attributes {stable_mosaic.version = 11 : i64} {
  func.func @_pw_kernel(%arg0: i32, %arg1: i32, %arg2: memref<1x64x16xbf16, #tpu.memory_space<vmem>>, %arg3: memref<16x32xbf16, #tpu.memory_space<vmem>>, %arg4: memref<1x32xf32, #tpu.memory_space<vmem>>, %arg5: memref<1x32xf32, #tpu.memory_space<vmem>>, %arg6: memref<1x64x32xbf16, #tpu.memory_space<vmem>>) attributes {dimension_semantics = [#tpu.dimension_semantics<parallel>, #tpu.dimension_semantics<parallel>], iteration_bounds = array<i64: 2, 1>, scalar_prefetch = 0 : i64, scratch_operands = 0 : i64, tpu.core_type = #tpu.core_type<tc>, window_params = [{transform_indices = @transform_0, window_bounds = array<i64: 1, 64, 16>}, {pipeline_mode = #tpu.pipeline_mode<synchronous>, transform_indices = @transform_1, window_bounds = array<i64: 16, 32>}, {pipeline_mode = #tpu.pipeline_mode<synchronous>, transform_indices = @transform_2, window_bounds = array<i64: 1, 32>}, {pipeline_mode = #tpu.pipeline_mode<synchronous>, transform_indices = @transform_3, window_bounds = array<i64: 1, 32>}, {transform_indices = @transform_4, window_bounds = array<i64: 1, 64, 32>}]} {
    %c0 = arith.constant 0 : index
    %c0_0 = arith.constant 0 : index
    %c0_1 = arith.constant 0 : index
    %0 = vector.load %arg2[%c0, %c0_0, %c0_1] : memref<1x64x16xbf16, #tpu.memory_space<vmem>>, vector<1x64x16xbf16>
    %1 = vector.shape_cast %0 : vector<1x64x16xbf16> to vector<64x16xbf16>
    %c0_2 = arith.constant 0 : index
    %c0_3 = arith.constant 0 : index
    %2 = vector.load %arg3[%c0_2, %c0_3] : memref<16x32xbf16, #tpu.memory_space<vmem>>, vector<16x32xbf16>
    %cst = arith.constant dense<0.000000e+00> : vector<64x32xf32>
    %3 = tpu.matmul %1, %2, %cst {dimension_numbers = #tpu.dot_dimension_numbers<[1], [0], [0], [1], [0, 0, 1, 1], [], []>} : vector<64x16xbf16>, vector<16x32xbf16>, vector<64x32xf32> -> vector<64x32xf32>
    %c0_4 = arith.constant 0 : index
    %c0_5 = arith.constant 0 : index
    %4 = vector.load %arg4[%c0_4, %c0_5] : memref<1x32xf32, #tpu.memory_space<vmem>>, vector<1x32xf32>
    %5 = vector.broadcast %4 : vector<1x32xf32> to vector<64x32xf32>
    %6 = arith.mulf %3, %5 : vector<64x32xf32>
    %c0_6 = arith.constant 0 : index
    %c0_7 = arith.constant 0 : index
    %7 = vector.load %arg5[%c0_6, %c0_7] : memref<1x32xf32, #tpu.memory_space<vmem>>, vector<1x32xf32>
    %8 = vector.broadcast %7 : vector<1x32xf32> to vector<64x32xf32>
    %9 = arith.addf %6, %8 : vector<64x32xf32>
    %10 = tpu.iota {dimensions = array<i32: 1>} : vector<64x32xi32>
    %c16_i32 = arith.constant 16 : i32
    %11 = vector.broadcast %c16_i32 : i32 to vector<64x32xi32>
    %12 = arith.cmpi slt, %10, %11 : vector<64x32xi32>
    %cst_8 = arith.constant 0.000000e+00 : f32
    %13 = vector.broadcast %cst_8 : f32 to vector<64x32xf32>
    %14 = arith.maximumf %9, %13 : vector<64x32xf32>
    %15 = arith.select %12, %14, %9 : vector<64x32xi1>, vector<64x32xf32>
    %16 = arith.truncf %15 : vector<64x32xf32> to vector<64x32xbf16>
    %c0_9 = arith.constant 0 : index
    %c0_10 = arith.constant 0 : index
    %c0_11 = arith.constant 0 : index
    %17 = vector.load %arg6[%c0_9, %c0_10, %c0_11] : memref<1x64x32xbf16, #tpu.memory_space<vmem>>, vector<1x64x32xbf16>
    %18 = vector.shape_cast %17 : vector<1x64x32xbf16> to vector<64x32xbf16>
    %19 = vector.shape_cast %16 : vector<64x32xbf16> to vector<1x64x32xbf16>
    tpu.vector_store %arg6[%c0_9, %c0_10, %c0_11], %19 {strides = array<i32>} : memref<1x64x32xbf16, #tpu.memory_space<vmem>>, vector<1x64x32xbf16>,
    return
  }
  func.func @transform_0(%arg0: i32, %arg1: i32) -> (i32, i32, i32) {
    %c0_i32 = arith.constant 0 : i32
    %c0_i32_0 = arith.constant 0 : i32
    return %arg0, %arg1, %c0_i32 : i32, i32, i32
  }
  func.func @transform_1(%arg0: i32, %arg1: i32) -> (i32, i32) {
    %c0_i32 = arith.constant 0 : i32
    %c0_i32_0 = arith.constant 0 : i32
    %c0_i32_1 = arith.constant 0 : i32
    return %c0_i32, %c0_i32_0 : i32, i32
  }
  func.func @transform_2(%arg0: i32, %arg1: i32) -> (i32, i32) {
    %c0_i32 = arith.constant 0 : i32
    %c0_i32_0 = arith.constant 0 : i32
    %c0_i32_1 = arith.constant 0 : i32
    return %c0_i32, %c0_i32_0 : i32, i32
  }
  func.func @transform_3(%arg0: i32, %arg1: i32) -> (i32, i32) {
    %c0_i32 = arith.constant 0 : i32
    %c0_i32_0 = arith.constant 0 : i32
    %c0_i32_1 = arith.constant 0 : i32
    return %c0_i32, %c0_i32_0 : i32, i32
  }
  func.func @transform_4(%arg0: i32, %arg1: i32) -> (i32, i32, i32) {
    %c0_i32 = arith.constant 0 : i32
    %c0_i32_0 = arith.constant 0 : i32
    return %arg0, %arg1, %c0_i32 : i32, i32, i32
  }
}

module attributes {stable_mosaic.version = 11 : i64} {
  func.func @_dconv_kernel(%arg0: i32, %arg1: memref<1x16x128xbf16, #tpu.memory_space<vmem>>, %arg2: memref<9x16x16xbf16, #tpu.memory_space<vmem>>, %arg3: memref<1x16xf32, #tpu.memory_space<vmem>>, %arg4: memref<1x16xf32, #tpu.memory_space<vmem>>, %arg5: memref<16x1xi32, #tpu.memory_space<vmem>>, %arg6: memref<1x16x16xbf16, #tpu.memory_space<vmem>>, %arg7: memref<1x1x16xf32, #tpu.memory_space<vmem>>, %arg8: memref<1x16x16xbf16, #tpu.memory_space<vmem>>, %arg9: memref<24x128xbf16, #tpu.memory_space<vmem>>) attributes {dimension_semantics = [#tpu.dimension_semantics<parallel>], iteration_bounds = array<i64: 2>, scalar_prefetch = 0 : i64, scratch_operands = 1 : i64, tpu.core_type = #tpu.core_type<tc>, window_params = [{transform_indices = @transform_0, window_bounds = array<i64: 1, 16, 128>}, {pipeline_mode = #tpu.pipeline_mode<synchronous>, transform_indices = @transform_1, window_bounds = array<i64: 9, 16, 16>}, {pipeline_mode = #tpu.pipeline_mode<synchronous>, transform_indices = @transform_2, window_bounds = array<i64: 1, 16>}, {pipeline_mode = #tpu.pipeline_mode<synchronous>, transform_indices = @transform_3, window_bounds = array<i64: 1, 16>}, {pipeline_mode = #tpu.pipeline_mode<synchronous>, transform_indices = @transform_4, window_bounds = array<i64: 16, 1>}, {transform_indices = @transform_5, window_bounds = array<i64: 1, 16, 16>}, {transform_indices = @transform_6, window_bounds = array<i64: 1, 1, 16>}, {transform_indices = @transform_7, window_bounds = array<i64: 1, 16, 16>}]} {
    %cst = arith.constant 0.000000e+00 : bf16
    %0 = vector.broadcast %cst : bf16 to vector<8x128xbf16>
    %c0 = arith.constant 0 : index
    %c0_0 = arith.constant 0 : index
    %1 = vector.load %arg9[%c0, %c0_0] : memref<24x128xbf16, #tpu.memory_space<vmem>>, vector<8x128xbf16>
    tpu.vector_store %arg9[%c0, %c0_0], %0 {strides = array<i32>} : memref<24x128xbf16, #tpu.memory_space<vmem>>, vector<8x128xbf16>,
    %c0_1 = arith.constant 0 : index
    %c0_2 = arith.constant 0 : index
    %c0_3 = arith.constant 0 : index
    %2 = vector.load %arg1[%c0_1, %c0_2, %c0_3] : memref<1x16x128xbf16, #tpu.memory_space<vmem>>, vector<1x16x128xbf16>
    %3 = vector.shape_cast %2 : vector<1x16x128xbf16> to vector<16x128xbf16>
    %c8 = arith.constant 8 : index
    %c0_4 = arith.constant 0 : index
    %4 = vector.load %arg9[%c8, %c0_4] : memref<24x128xbf16, #tpu.memory_space<vmem>>, vector<16x128xbf16>
    tpu.vector_store %arg9[%c8, %c0_4], %3 {strides = array<i32>} : memref<24x128xbf16, #tpu.memory_space<vmem>>, vector<16x128xbf16>,
    %c0_5 = arith.constant 0 : index
    %c0_6 = arith.constant 0 : index
    %5 = vector.load %arg5[%c0_5, %c0_6] : memref<16x1xi32, #tpu.memory_space<vmem>>, vector<16x1xi32>
    %cst_7 = arith.constant 0.000000e+00 : f32
    %6 = vector.broadcast %cst_7 : f32 to vector<16x16xf32>
    %c3 = arith.constant 3 : index
    %c96 = arith.constant 96 : index
    %7 = vector.load %arg9[%c3, %c96] : memref<24x128xbf16, #tpu.memory_space<vmem>>, vector<16x16xbf16>
    %c0_8 = arith.constant 0 : index
    %c0_9 = arith.constant 0 : index
    %c0_10 = arith.constant 0 : index
    %8 = vector.load %arg2[%c0_8, %c0_9, %c0_10] : memref<9x16x16xbf16, #tpu.memory_space<vmem>>, vector<1x16x16xbf16>
    %9 = vector.shape_cast %8 : vector<1x16x16xbf16> to vector<16x16xbf16>
    %cst_11 = arith.constant dense<0.000000e+00> : vector<16x16xf32>
    %10 = tpu.matmul %7, %9, %cst_11 {dimension_numbers = #tpu.dot_dimension_numbers<[1], [0], [0], [1], [0, 0, 1, 1], [], []>} : vector<16x16xbf16>, vector<16x16xbf16>, vector<16x16xf32> -> vector<16x16xf32>
    %c1_i32 = arith.constant 1 : i32
    %11 = vector.broadcast %c1_i32 : i32 to vector<16x1xi32>
    %12 = arith.cmpi sge, %5, %11 : vector<16x1xi32>
    %c4_i32 = arith.constant 4 : i32
    %13 = vector.broadcast %c4_i32 : i32 to vector<16x1xi32>
    %14 = arith.cmpi slt, %5, %13 : vector<16x1xi32>
    %15 = arith.andi %12, %14 : vector<16x1xi1>
    %cst_12 = arith.constant 0.000000e+00 : f32
    %16 = vector.shape_cast %15 : vector<16x1xi1> to vector<16x1xi1>
    %17 = vector.broadcast %16 : vector<16x1xi1> to vector<16x16xi1>
    %18 = vector.broadcast %cst_12 : f32 to vector<16x16xf32>
    %19 = arith.select %17, %10, %18 : vector<16x16xi1>, vector<16x16xf32>
    %20 = arith.addf %6, %19 : vector<16x16xf32>
    %c4 = arith.constant 4 : index
    %c64 = arith.constant 64 : index
    %21 = vector.load %arg9[%c4, %c64] : memref<24x128xbf16, #tpu.memory_space<vmem>>, vector<16x16xbf16>
    %c1 = arith.constant 1 : index
    %c0_13 = arith.constant 0 : index
    %c0_14 = arith.constant 0 : index
    %22 = vector.load %arg2[%c1, %c0_13, %c0_14] : memref<9x16x16xbf16, #tpu.memory_space<vmem>>, vector<1x16x16xbf16>
    %23 = vector.shape_cast %22 : vector<1x16x16xbf16> to vector<16x16xbf16>
    %cst_15 = arith.constant dense<0.000000e+00> : vector<16x16xf32>
    %24 = tpu.matmul %21, %23, %cst_15 {dimension_numbers = #tpu.dot_dimension_numbers<[1], [0], [0], [1], [0, 0, 1, 1], [], []>} : vector<16x16xbf16>, vector<16x16xbf16>, vector<16x16xf32> -> vector<16x16xf32>
    %25 = arith.addf %20, %24 : vector<16x16xf32>
    %c4_16 = arith.constant 4 : index
    %c96_17 = arith.constant 96 : index
    %26 = vector.load %arg9[%c4_16, %c96_17] : memref<24x128xbf16, #tpu.memory_space<vmem>>, vector<16x16xbf16>
    %c2 = arith.constant 2 : index
    %c0_18 = arith.constant 0 : index
    %c0_19 = arith.constant 0 : index
    %27 = vector.load %arg2[%c2, %c0_18, %c0_19] : memref<9x16x16xbf16, #tpu.memory_space<vmem>>, vector<1x16x16xbf16>
    %28 = vector.shape_cast %27 : vector<1x16x16xbf16> to vector<16x16xbf16>
    %cst_20 = arith.constant dense<0.000000e+00> : vector<16x16xf32>
    %29 = tpu.matmul %26, %28, %cst_20 {dimension_numbers = #tpu.dot_dimension_numbers<[1], [0], [0], [1], [0, 0, 1, 1], [], []>} : vector<16x16xbf16>, vector<16x16xbf16>, vector<16x16xf32> -> vector<16x16xf32>
    %30 = arith.addf %25, %29 : vector<16x16xf32>
    %c7 = arith.constant 7 : index
    %c32 = arith.constant 32 : index
    %31 = vector.load %arg9[%c7, %c32] : memref<24x128xbf16, #tpu.memory_space<vmem>>, vector<16x16xbf16>
    %c3_21 = arith.constant 3 : index
    %c0_22 = arith.constant 0 : index
    %c0_23 = arith.constant 0 : index
    %32 = vector.load %arg2[%c3_21, %c0_22, %c0_23] : memref<9x16x16xbf16, #tpu.memory_space<vmem>>, vector<1x16x16xbf16>
    %33 = vector.shape_cast %32 : vector<1x16x16xbf16> to vector<16x16xbf16>
    %cst_24 = arith.constant dense<0.000000e+00> : vector<16x16xf32>
    %34 = tpu.matmul %31, %33, %cst_24 {dimension_numbers = #tpu.dot_dimension_numbers<[1], [0], [0], [1], [0, 0, 1, 1], [], []>} : vector<16x16xbf16>, vector<16x16xbf16>, vector<16x16xf32> -> vector<16x16xf32>
    %c1_i32_25 = arith.constant 1 : i32
    %35 = vector.broadcast %c1_i32_25 : i32 to vector<16x1xi32>
    %36 = arith.cmpi sge, %5, %35 : vector<16x1xi32>
    %c4_i32_26 = arith.constant 4 : i32
    %37 = vector.broadcast %c4_i32_26 : i32 to vector<16x1xi32>
    %38 = arith.cmpi slt, %5, %37 : vector<16x1xi32>
    %39 = arith.andi %36, %38 : vector<16x1xi1>
    %cst_27 = arith.constant 0.000000e+00 : f32
    %40 = vector.shape_cast %39 : vector<16x1xi1> to vector<16x1xi1>
    %41 = vector.broadcast %40 : vector<16x1xi1> to vector<16x16xi1>
    %42 = vector.broadcast %cst_27 : f32 to vector<16x16xf32>
    %43 = arith.select %41, %34, %42 : vector<16x16xi1>, vector<16x16xf32>
    %44 = arith.addf %30, %43 : vector<16x16xf32>
    %c8_28 = arith.constant 8 : index
    %c0_29 = arith.constant 0 : index
    %45 = vector.load %arg9[%c8_28, %c0_29] : memref<24x128xbf16, #tpu.memory_space<vmem>>, vector<16x16xbf16>
    %c4_30 = arith.constant 4 : index
    %c0_31 = arith.constant 0 : index
    %c0_32 = arith.constant 0 : index
    %46 = vector.load %arg2[%c4_30, %c0_31, %c0_32] : memref<9x16x16xbf16, #tpu.memory_space<vmem>>, vector<1x16x16xbf16>
    %47 = vector.shape_cast %46 : vector<1x16x16xbf16> to vector<16x16xbf16>
    %cst_33 = arith.constant dense<0.000000e+00> : vector<16x16xf32>
    %48 = tpu.matmul %45, %47, %cst_33 {dimension_numbers = #tpu.dot_dimension_numbers<[1], [0], [0], [1], [0, 0, 1, 1], [], []>} : vector<16x16xbf16>, vector<16x16xbf16>, vector<16x16xf32> -> vector<16x16xf32>
    %49 = arith.addf %44, %48 : vector<16x16xf32>
    %c8_34 = arith.constant 8 : index
    %c32_35 = arith.constant 32 : index
    %50 = vector.load %arg9[%c8_34, %c32_35] : memref<24x128xbf16, #tpu.memory_space<vmem>>, vector<16x16xbf16>
    %c5 = arith.constant 5 : index
    %c0_36 = arith.constant 0 : index
    %c0_37 = arith.constant 0 : index
    %51 = vector.load %arg2[%c5, %c0_36, %c0_37] : memref<9x16x16xbf16, #tpu.memory_space<vmem>>, vector<1x16x16xbf16>
    %52 = vector.shape_cast %51 : vector<1x16x16xbf16> to vector<16x16xbf16>
    %cst_38 = arith.constant dense<0.000000e+00> : vector<16x16xf32>
    %53 = tpu.matmul %50, %52, %cst_38 {dimension_numbers = #tpu.dot_dimension_numbers<[1], [0], [0], [1], [0, 0, 1, 1], [], []>} : vector<16x16xbf16>, vector<16x16xbf16>, vector<16x16xf32> -> vector<16x16xf32>
    %54 = arith.addf %49, %53 : vector<16x16xf32>
    %c7_39 = arith.constant 7 : index
    %c96_40 = arith.constant 96 : index
    %55 = vector.load %arg9[%c7_39, %c96_40] : memref<24x128xbf16, #tpu.memory_space<vmem>>, vector<16x16xbf16>
    %c6 = arith.constant 6 : index
    %c0_41 = arith.constant 0 : index
    %c0_42 = arith.constant 0 : index
    %56 = vector.load %arg2[%c6, %c0_41, %c0_42] : memref<9x16x16xbf16, #tpu.memory_space<vmem>>, vector<1x16x16xbf16>
    %57 = vector.shape_cast %56 : vector<1x16x16xbf16> to vector<16x16xbf16>
    %cst_43 = arith.constant dense<0.000000e+00> : vector<16x16xf32>
    %58 = tpu.matmul %55, %57, %cst_43 {dimension_numbers = #tpu.dot_dimension_numbers<[1], [0], [0], [1], [0, 0, 1, 1], [], []>} : vector<16x16xbf16>, vector<16x16xbf16>, vector<16x16xf32> -> vector<16x16xf32>
    %c1_i32_44 = arith.constant 1 : i32
    %59 = vector.broadcast %c1_i32_44 : i32 to vector<16x1xi32>
    %60 = arith.cmpi sge, %5, %59 : vector<16x1xi32>
    %c4_i32_45 = arith.constant 4 : i32
    %61 = vector.broadcast %c4_i32_45 : i32 to vector<16x1xi32>
    %62 = arith.cmpi slt, %5, %61 : vector<16x1xi32>
    %63 = arith.andi %60, %62 : vector<16x1xi1>
    %cst_46 = arith.constant 0.000000e+00 : f32
    %64 = vector.shape_cast %63 : vector<16x1xi1> to vector<16x1xi1>
    %65 = vector.broadcast %64 : vector<16x1xi1> to vector<16x16xi1>
    %66 = vector.broadcast %cst_46 : f32 to vector<16x16xf32>
    %67 = arith.select %65, %58, %66 : vector<16x16xi1>, vector<16x16xf32>
    %68 = arith.addf %54, %67 : vector<16x16xf32>
    %c8_47 = arith.constant 8 : index
    %c64_48 = arith.constant 64 : index
    %69 = vector.load %arg9[%c8_47, %c64_48] : memref<24x128xbf16, #tpu.memory_space<vmem>>, vector<16x16xbf16>
    %c7_49 = arith.constant 7 : index
    %c0_50 = arith.constant 0 : index
    %c0_51 = arith.constant 0 : index
    %70 = vector.load %arg2[%c7_49, %c0_50, %c0_51] : memref<9x16x16xbf16, #tpu.memory_space<vmem>>, vector<1x16x16xbf16>
    %71 = vector.shape_cast %70 : vector<1x16x16xbf16> to vector<16x16xbf16>
    %cst_52 = arith.constant dense<0.000000e+00> : vector<16x16xf32>
    %72 = tpu.matmul %69, %71, %cst_52 {dimension_numbers = #tpu.dot_dimension_numbers<[1], [0], [0], [1], [0, 0, 1, 1], [], []>} : vector<16x16xbf16>, vector<16x16xbf16>, vector<16x16xf32> -> vector<16x16xf32>
    %73 = arith.addf %68, %72 : vector<16x16xf32>
    %c8_53 = arith.constant 8 : index
    %c96_54 = arith.constant 96 : index
    %74 = vector.load %arg9[%c8_53, %c96_54] : memref<24x128xbf16, #tpu.memory_space<vmem>>, vector<16x16xbf16>
    %c8_55 = arith.constant 8 : index
    %c0_56 = arith.constant 0 : index
    %c0_57 = arith.constant 0 : index
    %75 = vector.load %arg2[%c8_55, %c0_56, %c0_57] : memref<9x16x16xbf16, #tpu.memory_space<vmem>>, vector<1x16x16xbf16>
    %76 = vector.shape_cast %75 : vector<1x16x16xbf16> to vector<16x16xbf16>
    %cst_58 = arith.constant dense<0.000000e+00> : vector<16x16xf32>
    %77 = tpu.matmul %74, %76, %cst_58 {dimension_numbers = #tpu.dot_dimension_numbers<[1], [0], [0], [1], [0, 0, 1, 1], [], []>} : vector<16x16xbf16>, vector<16x16xbf16>, vector<16x16xf32> -> vector<16x16xf32>
    %78 = arith.addf %73, %77 : vector<16x16xf32>
    %c0_59 = arith.constant 0 : index
    %c0_60 = arith.constant 0 : index
    %79 = vector.load %arg3[%c0_59, %c0_60] : memref<1x16xf32, #tpu.memory_space<vmem>>, vector<1x16xf32>
    %80 = vector.broadcast %79 : vector<1x16xf32> to vector<16x16xf32>
    %81 = arith.mulf %78, %80 : vector<16x16xf32>
    %c0_61 = arith.constant 0 : index
    %c0_62 = arith.constant 0 : index
    %82 = vector.load %arg4[%c0_61, %c0_62] : memref<1x16xf32, #tpu.memory_space<vmem>>, vector<1x16xf32>
    %83 = vector.broadcast %82 : vector<1x16xf32> to vector<16x16xf32>
    %84 = arith.addf %81, %83 : vector<16x16xf32>
    %cst_63 = arith.constant 0.000000e+00 : f32
    %85 = vector.broadcast %cst_63 : f32 to vector<16x16xf32>
    %86 = arith.maximumf %84, %85 : vector<16x16xf32>
    %87 = arith.truncf %86 : vector<16x16xf32> to vector<16x16xbf16>
    %c0_64 = arith.constant 0 : index
    %c0_65 = arith.constant 0 : index
    %c0_66 = arith.constant 0 : index
    %88 = vector.load %arg6[%c0_64, %c0_65, %c0_66] : memref<1x16x16xbf16, #tpu.memory_space<vmem>>, vector<1x16x16xbf16>
    %89 = vector.shape_cast %88 : vector<1x16x16xbf16> to vector<16x16xbf16>
    %90 = vector.shape_cast %87 : vector<16x16xbf16> to vector<1x16x16xbf16>
    tpu.vector_store %arg6[%c0_64, %c0_65, %c0_66], %90 {strides = array<i32>} : memref<1x16x16xbf16, #tpu.memory_space<vmem>>, vector<1x16x16xbf16>,
    %cst_67 = arith.constant dense<0.000000e+00> : vector<16xf32>
    %91 = vector.multi_reduction <add>, %86, %cst_67 [0] : vector<16x16xf32> to vector<16xf32>
    %92 = vector.shape_cast %91 : vector<16xf32> to vector<1x16xf32>
    %cst_68 = arith.constant 6.250000e-02 : f32
    %93 = vector.broadcast %cst_68 : f32 to vector<1x16xf32>
    %94 = arith.mulf %92, %93 : vector<1x16xf32>
    %c0_69 = arith.constant 0 : index
    %c0_70 = arith.constant 0 : index
    %c0_71 = arith.constant 0 : index
    %95 = vector.load %arg7[%c0_69, %c0_70, %c0_71] : memref<1x1x16xf32, #tpu.memory_space<vmem>>, vector<1x1x16xf32>
    %96 = vector.shape_cast %95 : vector<1x1x16xf32> to vector<1x16xf32>
    %97 = vector.shape_cast %94 : vector<1x16xf32> to vector<1x1x16xf32>
    tpu.vector_store %arg7[%c0_69, %c0_70, %c0_71], %97 {strides = array<i32>} : memref<1x1x16xf32, #tpu.memory_space<vmem>>, vector<1x1x16xf32>,
    %c0_72 = arith.constant 0 : index
    %c0_73 = arith.constant 0 : index
    %c16 = arith.constant 16 : index
    %98 = vector.load %arg1[%c0_72, %c0_73, %c16] : memref<1x16x128xbf16, #tpu.memory_space<vmem>>, vector<1x16x16xbf16>
    %99 = vector.shape_cast %98 : vector<1x16x16xbf16> to vector<16x16xbf16>
    %100 = arith.extf %99 : vector<16x16xbf16> to vector<16x16xf32>
    %c0_74 = arith.constant 0 : index
    %c0_75 = arith.constant 0 : index
    %c48 = arith.constant 48 : index
    %101 = vector.load %arg1[%c0_74, %c0_75, %c48] : memref<1x16x128xbf16, #tpu.memory_space<vmem>>, vector<1x16x16xbf16>
    %102 = vector.shape_cast %101 : vector<1x16x16xbf16> to vector<16x16xbf16>
    %103 = arith.extf %102 : vector<16x16xbf16> to vector<16x16xf32>
    %104 = arith.addf %100, %103 : vector<16x16xf32>
    %c0_76 = arith.constant 0 : index
    %c0_77 = arith.constant 0 : index
    %c80 = arith.constant 80 : index
    %105 = vector.load %arg1[%c0_76, %c0_77, %c80] : memref<1x16x128xbf16, #tpu.memory_space<vmem>>, vector<1x16x16xbf16>
    %106 = vector.shape_cast %105 : vector<1x16x16xbf16> to vector<16x16xbf16>
    %107 = arith.extf %106 : vector<16x16xbf16> to vector<16x16xf32>
    %108 = arith.addf %104, %107 : vector<16x16xf32>
    %c0_78 = arith.constant 0 : index
    %c0_79 = arith.constant 0 : index
    %c112 = arith.constant 112 : index
    %109 = vector.load %arg1[%c0_78, %c0_79, %c112] : memref<1x16x128xbf16, #tpu.memory_space<vmem>>, vector<1x16x16xbf16>
    %110 = vector.shape_cast %109 : vector<1x16x16xbf16> to vector<16x16xbf16>
    %111 = arith.extf %110 : vector<16x16xbf16> to vector<16x16xf32>
    %112 = arith.addf %108, %111 : vector<16x16xf32>
    %cst_80 = arith.constant 2.500000e-01 : f32
    %113 = vector.broadcast %cst_80 : f32 to vector<16x16xf32>
    %114 = arith.mulf %112, %113 : vector<16x16xf32>
    %115 = arith.truncf %114 : vector<16x16xf32> to vector<16x16xbf16>
    %c0_81 = arith.constant 0 : index
    %c0_82 = arith.constant 0 : index
    %c0_83 = arith.constant 0 : index
    %116 = vector.load %arg8[%c0_81, %c0_82, %c0_83] : memref<1x16x16xbf16, #tpu.memory_space<vmem>>, vector<1x16x16xbf16>
    %117 = vector.shape_cast %116 : vector<1x16x16xbf16> to vector<16x16xbf16>
    %118 = vector.shape_cast %115 : vector<16x16xbf16> to vector<1x16x16xbf16>
    tpu.vector_store %arg8[%c0_81, %c0_82, %c0_83], %118 {strides = array<i32>} : memref<1x16x16xbf16, #tpu.memory_space<vmem>>, vector<1x16x16xbf16>,
    return
  }
  func.func @transform_0(%arg0: i32) -> (i32, i32, i32) {
    %c0_i32 = arith.constant 0 : i32
    %c0_i32_0 = arith.constant 0 : i32
    %c0_i32_1 = arith.constant 0 : i32
    return %arg0, %c0_i32, %c0_i32_0 : i32, i32, i32
  }
  func.func @transform_1(%arg0: i32) -> (i32, i32, i32) {
    %c0_i32 = arith.constant 0 : i32
    %c0_i32_0 = arith.constant 0 : i32
    %c0_i32_1 = arith.constant 0 : i32
    %c0_i32_2 = arith.constant 0 : i32
    return %c0_i32, %c0_i32_0, %c0_i32_1 : i32, i32, i32
  }
  func.func @transform_2(%arg0: i32) -> (i32, i32) {
    %c0_i32 = arith.constant 0 : i32
    %c0_i32_0 = arith.constant 0 : i32
    %c0_i32_1 = arith.constant 0 : i32
    return %c0_i32, %c0_i32_0 : i32, i32
  }
  func.func @transform_3(%arg0: i32) -> (i32, i32) {
    %c0_i32 = arith.constant 0 : i32
    %c0_i32_0 = arith.constant 0 : i32
    %c0_i32_1 = arith.constant 0 : i32
    return %c0_i32, %c0_i32_0 : i32, i32
  }
  func.func @transform_4(%arg0: i32) -> (i32, i32) {
    %c0_i32 = arith.constant 0 : i32
    %c0_i32_0 = arith.constant 0 : i32
    %c0_i32_1 = arith.constant 0 : i32
    return %c0_i32, %c0_i32_0 : i32, i32
  }
  func.func @transform_5(%arg0: i32) -> (i32, i32, i32) {
    %c0_i32 = arith.constant 0 : i32
    %c0_i32_0 = arith.constant 0 : i32
    %c0_i32_1 = arith.constant 0 : i32
    return %arg0, %c0_i32, %c0_i32_0 : i32, i32, i32
  }
  func.func @transform_6(%arg0: i32) -> (i32, i32, i32) {
    %c0_i32 = arith.constant 0 : i32
    %c0_i32_0 = arith.constant 0 : i32
    %c0_i32_1 = arith.constant 0 : i32
    return %arg0, %c0_i32, %c0_i32_0 : i32, i32, i32
  }
  func.func @transform_7(%arg0: i32) -> (i32, i32, i32) {
    %c0_i32 = arith.constant 0 : i32
    %c0_i32_0 = arith.constant 0 : i32
    %c0_i32_1 = arith.constant 0 : i32
    return %arg0, %c0_i32, %c0_i32_0 : i32, i32, i32
  }
}

module attributes {stable_mosaic.version = 11 : i64} {
  func.func @_se_kernel(%arg0: memref<2x16xf32, #tpu.memory_space<vmem>>, %arg1: memref<16x4xf32, #tpu.memory_space<vmem>>, %arg2: memref<1x4xf32, #tpu.memory_space<vmem>>, %arg3: memref<4x16xf32, #tpu.memory_space<vmem>>, %arg4: memref<1x16xf32, #tpu.memory_space<vmem>>, %arg5: memref<2x16xf32, #tpu.memory_space<vmem>>) attributes {dimension_semantics = [], scalar_prefetch = 0 : i64, scratch_operands = 0 : i64, tpu.core_type = #tpu.core_type<tc>} {
    %c0 = arith.constant 0 : index
    %c0_0 = arith.constant 0 : index
    %0 = vector.load %arg0[%c0, %c0_0] : memref<2x16xf32, #tpu.memory_space<vmem>>, vector<2x16xf32>
    %c0_1 = arith.constant 0 : index
    %c0_2 = arith.constant 0 : index
    %1 = vector.load %arg1[%c0_1, %c0_2] : memref<16x4xf32, #tpu.memory_space<vmem>>, vector<16x4xf32>
    %cst = arith.constant dense<0.000000e+00> : vector<2x4xf32>
    %2 = tpu.matmul %0, %1, %cst {dimension_numbers = #tpu.dot_dimension_numbers<[1], [0], [0], [1], [0, 0, 1, 1], [], []>} : vector<2x16xf32>, vector<16x4xf32>, vector<2x4xf32> -> vector<2x4xf32>
    %c0_3 = arith.constant 0 : index
    %c0_4 = arith.constant 0 : index
    %3 = vector.load %arg2[%c0_3, %c0_4] : memref<1x4xf32, #tpu.memory_space<vmem>>, vector<1x4xf32>
    %4 = vector.broadcast %3 : vector<1x4xf32> to vector<2x4xf32>
    %5 = arith.addf %2, %4 : vector<2x4xf32>
    %cst_5 = arith.constant 0.000000e+00 : f32
    %6 = vector.broadcast %cst_5 : f32 to vector<2x4xf32>
    %7 = arith.maximumf %5, %6 : vector<2x4xf32>
    %c0_6 = arith.constant 0 : index
    %c0_7 = arith.constant 0 : index
    %8 = vector.load %arg3[%c0_6, %c0_7] : memref<4x16xf32, #tpu.memory_space<vmem>>, vector<4x16xf32>
    %cst_8 = arith.constant dense<0.000000e+00> : vector<2x16xf32>
    %9 = tpu.matmul %7, %8, %cst_8 {dimension_numbers = #tpu.dot_dimension_numbers<[1], [0], [0], [1], [0, 0, 1, 1], [], []>} : vector<2x4xf32>, vector<4x16xf32>, vector<2x16xf32> -> vector<2x16xf32>
    %c0_9 = arith.constant 0 : index
    %c0_10 = arith.constant 0 : index
    %10 = vector.load %arg4[%c0_9, %c0_10] : memref<1x16xf32, #tpu.memory_space<vmem>>, vector<1x16xf32>
    %11 = vector.broadcast %10 : vector<1x16xf32> to vector<2x16xf32>
    %12 = arith.addf %9, %11 : vector<2x16xf32>
    %13 = arith.negf %12 : vector<2x16xf32>
    %14 = math.exp %13 : vector<2x16xf32>
    %cst_11 = arith.constant 1.000000e+00 : f32
    %15 = vector.broadcast %cst_11 : f32 to vector<2x16xf32>
    %16 = arith.addf %15, %14 : vector<2x16xf32>
    %17 = arith.divf %15, %16 : vector<2x16xf32>
    %c0_12 = arith.constant 0 : index
    %c0_13 = arith.constant 0 : index
    %18 = vector.load %arg5[%c0_12, %c0_13] : memref<2x16xf32, #tpu.memory_space<vmem>>, vector<2x16xf32>
    tpu.vector_store %arg5[%c0_12, %c0_13], %17 {strides = array<i32>} : memref<2x16xf32, #tpu.memory_space<vmem>>, vector<2x16xf32>,
    return
  }
}

module attributes {stable_mosaic.version = 11 : i64} {
  func.func @_pw_kernel(%arg0: i32, %arg1: i32, %arg2: memref<1x16x16xbf16, #tpu.memory_space<vmem>>, %arg3: memref<16x16xbf16, #tpu.memory_space<vmem>>, %arg4: memref<1x16xf32, #tpu.memory_space<vmem>>, %arg5: memref<1x16xf32, #tpu.memory_space<vmem>>, %arg6: memref<1x16x16xbf16, #tpu.memory_space<vmem>>) attributes {dimension_semantics = [#tpu.dimension_semantics<parallel>, #tpu.dimension_semantics<parallel>], iteration_bounds = array<i64: 2, 1>, scalar_prefetch = 0 : i64, scratch_operands = 0 : i64, tpu.core_type = #tpu.core_type<tc>, window_params = [{transform_indices = @transform_0, window_bounds = array<i64: 1, 16, 16>}, {pipeline_mode = #tpu.pipeline_mode<synchronous>, transform_indices = @transform_1, window_bounds = array<i64: 16, 16>}, {pipeline_mode = #tpu.pipeline_mode<synchronous>, transform_indices = @transform_2, window_bounds = array<i64: 1, 16>}, {pipeline_mode = #tpu.pipeline_mode<synchronous>, transform_indices = @transform_3, window_bounds = array<i64: 1, 16>}, {transform_indices = @transform_4, window_bounds = array<i64: 1, 16, 16>}]} {
    %c0 = arith.constant 0 : index
    %c0_0 = arith.constant 0 : index
    %c0_1 = arith.constant 0 : index
    %0 = vector.load %arg2[%c0, %c0_0, %c0_1] : memref<1x16x16xbf16, #tpu.memory_space<vmem>>, vector<1x16x16xbf16>
    %1 = vector.shape_cast %0 : vector<1x16x16xbf16> to vector<16x16xbf16>
    %c0_2 = arith.constant 0 : index
    %c0_3 = arith.constant 0 : index
    %2 = vector.load %arg3[%c0_2, %c0_3] : memref<16x16xbf16, #tpu.memory_space<vmem>>, vector<16x16xbf16>
    %cst = arith.constant dense<0.000000e+00> : vector<16x16xf32>
    %3 = tpu.matmul %1, %2, %cst {dimension_numbers = #tpu.dot_dimension_numbers<[1], [0], [0], [1], [0, 0, 1, 1], [], []>} : vector<16x16xbf16>, vector<16x16xbf16>, vector<16x16xf32> -> vector<16x16xf32>
    %c0_4 = arith.constant 0 : index
    %c0_5 = arith.constant 0 : index
    %4 = vector.load %arg4[%c0_4, %c0_5] : memref<1x16xf32, #tpu.memory_space<vmem>>, vector<1x16xf32>
    %5 = vector.broadcast %4 : vector<1x16xf32> to vector<16x16xf32>
    %6 = arith.mulf %3, %5 : vector<16x16xf32>
    %c0_6 = arith.constant 0 : index
    %c0_7 = arith.constant 0 : index
    %7 = vector.load %arg5[%c0_6, %c0_7] : memref<1x16xf32, #tpu.memory_space<vmem>>, vector<1x16xf32>
    %8 = vector.broadcast %7 : vector<1x16xf32> to vector<16x16xf32>
    %9 = arith.addf %6, %8 : vector<16x16xf32>
    %cst_8 = arith.constant 0.000000e+00 : f32
    %10 = vector.broadcast %cst_8 : f32 to vector<16x16xf32>
    %11 = arith.maximumf %9, %10 : vector<16x16xf32>
    %12 = arith.truncf %11 : vector<16x16xf32> to vector<16x16xbf16>
    %c0_9 = arith.constant 0 : index
    %c0_10 = arith.constant 0 : index
    %c0_11 = arith.constant 0 : index
    %13 = vector.load %arg6[%c0_9, %c0_10, %c0_11] : memref<1x16x16xbf16, #tpu.memory_space<vmem>>, vector<1x16x16xbf16>
    %14 = vector.shape_cast %13 : vector<1x16x16xbf16> to vector<16x16xbf16>
    %15 = vector.shape_cast %12 : vector<16x16xbf16> to vector<1x16x16xbf16>
    tpu.vector_store %arg6[%c0_9, %c0_10, %c0_11], %15 {strides = array<i32>} : memref<1x16x16xbf16, #tpu.memory_space<vmem>>, vector<1x16x16xbf16>,
    return
  }
  func.func @transform_0(%arg0: i32, %arg1: i32) -> (i32, i32, i32) {
    %c0_i32 = arith.constant 0 : i32
    %c0_i32_0 = arith.constant 0 : i32
    return %arg0, %arg1, %c0_i32 : i32, i32, i32
  }
  func.func @transform_1(%arg0: i32, %arg1: i32) -> (i32, i32) {
    %c0_i32 = arith.constant 0 : i32
    %c0_i32_0 = arith.constant 0 : i32
    %c0_i32_1 = arith.constant 0 : i32
    return %c0_i32, %c0_i32_0 : i32, i32
  }
  func.func @transform_2(%arg0: i32, %arg1: i32) -> (i32, i32) {
    %c0_i32 = arith.constant 0 : i32
    %c0_i32_0 = arith.constant 0 : i32
    %c0_i32_1 = arith.constant 0 : i32
    return %c0_i32, %c0_i32_0 : i32, i32
  }
  func.func @transform_3(%arg0: i32, %arg1: i32) -> (i32, i32) {
    %c0_i32 = arith.constant 0 : i32
    %c0_i32_0 = arith.constant 0 : i32
    %c0_i32_1 = arith.constant 0 : i32
    return %c0_i32, %c0_i32_0 : i32, i32
  }
  func.func @transform_4(%arg0: i32, %arg1: i32) -> (i32, i32, i32) {
    %c0_i32 = arith.constant 0 : i32
    %c0_i32_0 = arith.constant 0 : i32
    return %arg0, %arg1, %c0_i32 : i32, i32, i32
  }
}

module attributes {stable_mosaic.version = 11 : i64} {
  func.func @_pw_kernel(%arg0: i32, %arg1: i32, %arg2: memref<1x16x16xbf16, #tpu.memory_space<vmem>>, %arg3: memref<16x16xbf16, #tpu.memory_space<vmem>>, %arg4: memref<1x16xf32, #tpu.memory_space<vmem>>, %arg5: memref<1x16xf32, #tpu.memory_space<vmem>>, %arg6: memref<1x1x16xf32, #tpu.memory_space<vmem>>, %arg7: memref<1x16x16xbf16, #tpu.memory_space<vmem>>, %arg8: memref<1x16x16xbf16, #tpu.memory_space<vmem>>) attributes {dimension_semantics = [#tpu.dimension_semantics<parallel>, #tpu.dimension_semantics<parallel>], iteration_bounds = array<i64: 2, 1>, scalar_prefetch = 0 : i64, scratch_operands = 0 : i64, tpu.core_type = #tpu.core_type<tc>, window_params = [{transform_indices = @transform_0, window_bounds = array<i64: 1, 16, 16>}, {pipeline_mode = #tpu.pipeline_mode<synchronous>, transform_indices = @transform_1, window_bounds = array<i64: 16, 16>}, {pipeline_mode = #tpu.pipeline_mode<synchronous>, transform_indices = @transform_2, window_bounds = array<i64: 1, 16>}, {pipeline_mode = #tpu.pipeline_mode<synchronous>, transform_indices = @transform_3, window_bounds = array<i64: 1, 16>}, {transform_indices = @transform_4, window_bounds = array<i64: 1, 1, 16>}, {transform_indices = @transform_5, window_bounds = array<i64: 1, 16, 16>}, {transform_indices = @transform_6, window_bounds = array<i64: 1, 16, 16>}]} {
    %c0 = arith.constant 0 : index
    %c0_0 = arith.constant 0 : index
    %c0_1 = arith.constant 0 : index
    %0 = vector.load %arg2[%c0, %c0_0, %c0_1] : memref<1x16x16xbf16, #tpu.memory_space<vmem>>, vector<1x16x16xbf16>
    %1 = vector.shape_cast %0 : vector<1x16x16xbf16> to vector<16x16xbf16>
    %2 = arith.extf %1 : vector<16x16xbf16> to vector<16x16xf32>
    %c0_2 = arith.constant 0 : index
    %c0_3 = arith.constant 0 : index
    %c0_4 = arith.constant 0 : index
    %3 = vector.load %arg6[%c0_2, %c0_3, %c0_4] : memref<1x1x16xf32, #tpu.memory_space<vmem>>, vector<1x1x16xf32>
    %4 = vector.shape_cast %3 : vector<1x1x16xf32> to vector<1x16xf32>
    %5 = vector.broadcast %4 : vector<1x16xf32> to vector<16x16xf32>
    %6 = arith.mulf %2, %5 : vector<16x16xf32>
    %7 = arith.truncf %6 : vector<16x16xf32> to vector<16x16xbf16>
    %c0_5 = arith.constant 0 : index
    %c0_6 = arith.constant 0 : index
    %8 = vector.load %arg3[%c0_5, %c0_6] : memref<16x16xbf16, #tpu.memory_space<vmem>>, vector<16x16xbf16>
    %cst = arith.constant dense<0.000000e+00> : vector<16x16xf32>
    %9 = tpu.matmul %7, %8, %cst {dimension_numbers = #tpu.dot_dimension_numbers<[1], [0], [0], [1], [0, 0, 1, 1], [], []>} : vector<16x16xbf16>, vector<16x16xbf16>, vector<16x16xf32> -> vector<16x16xf32>
    %c0_7 = arith.constant 0 : index
    %c0_8 = arith.constant 0 : index
    %10 = vector.load %arg4[%c0_7, %c0_8] : memref<1x16xf32, #tpu.memory_space<vmem>>, vector<1x16xf32>
    %11 = vector.broadcast %10 : vector<1x16xf32> to vector<16x16xf32>
    %12 = arith.mulf %9, %11 : vector<16x16xf32>
    %c0_9 = arith.constant 0 : index
    %c0_10 = arith.constant 0 : index
    %13 = vector.load %arg5[%c0_9, %c0_10] : memref<1x16xf32, #tpu.memory_space<vmem>>, vector<1x16xf32>
    %14 = vector.broadcast %13 : vector<1x16xf32> to vector<16x16xf32>
    %15 = arith.addf %12, %14 : vector<16x16xf32>
    %c0_11 = arith.constant 0 : index
    %c0_12 = arith.constant 0 : index
    %c0_13 = arith.constant 0 : index
    %16 = vector.load %arg7[%c0_11, %c0_12, %c0_13] : memref<1x16x16xbf16, #tpu.memory_space<vmem>>, vector<1x16x16xbf16>
    %17 = vector.shape_cast %16 : vector<1x16x16xbf16> to vector<16x16xbf16>
    %18 = arith.extf %17 : vector<16x16xbf16> to vector<16x16xf32>
    %19 = arith.addf %15, %18 : vector<16x16xf32>
    %cst_14 = arith.constant 0.000000e+00 : f32
    %20 = vector.broadcast %cst_14 : f32 to vector<16x16xf32>
    %21 = arith.maximumf %19, %20 : vector<16x16xf32>
    %22 = arith.truncf %21 : vector<16x16xf32> to vector<16x16xbf16>
    %c0_15 = arith.constant 0 : index
    %c0_16 = arith.constant 0 : index
    %c0_17 = arith.constant 0 : index
    %23 = vector.load %arg8[%c0_15, %c0_16, %c0_17] : memref<1x16x16xbf16, #tpu.memory_space<vmem>>, vector<1x16x16xbf16>
    %24 = vector.shape_cast %23 : vector<1x16x16xbf16> to vector<16x16xbf16>
    %25 = vector.shape_cast %22 : vector<16x16xbf16> to vector<1x16x16xbf16>
    tpu.vector_store %arg8[%c0_15, %c0_16, %c0_17], %25 {strides = array<i32>} : memref<1x16x16xbf16, #tpu.memory_space<vmem>>, vector<1x16x16xbf16>,
    return
  }
  func.func @transform_0(%arg0: i32, %arg1: i32) -> (i32, i32, i32) {
    %c0_i32 = arith.constant 0 : i32
    %c0_i32_0 = arith.constant 0 : i32
    return %arg0, %arg1, %c0_i32 : i32, i32, i32
  }
  func.func @transform_1(%arg0: i32, %arg1: i32) -> (i32, i32) {
    %c0_i32 = arith.constant 0 : i32
    %c0_i32_0 = arith.constant 0 : i32
    %c0_i32_1 = arith.constant 0 : i32
    return %c0_i32, %c0_i32_0 : i32, i32
  }
  func.func @transform_2(%arg0: i32, %arg1: i32) -> (i32, i32) {
    %c0_i32 = arith.constant 0 : i32
    %c0_i32_0 = arith.constant 0 : i32
    %c0_i32_1 = arith.constant 0 : i32
    return %c0_i32, %c0_i32_0 : i32, i32
  }
  func.func @transform_3(%arg0: i32, %arg1: i32) -> (i32, i32) {
    %c0_i32 = arith.constant 0 : i32
    %c0_i32_0 = arith.constant 0 : i32
    %c0_i32_1 = arith.constant 0 : i32
    return %c0_i32, %c0_i32_0 : i32, i32
  }
  func.func @transform_4(%arg0: i32, %arg1: i32) -> (i32, i32, i32) {
    %c0_i32 = arith.constant 0 : i32
    %c0_i32_0 = arith.constant 0 : i32
    %c0_i32_1 = arith.constant 0 : i32
    return %arg0, %c0_i32, %c0_i32_0 : i32, i32, i32
  }
  func.func @transform_5(%arg0: i32, %arg1: i32) -> (i32, i32, i32) {
    %c0_i32 = arith.constant 0 : i32
    %c0_i32_0 = arith.constant 0 : i32
    return %arg0, %arg1, %c0_i32 : i32, i32, i32
  }
  func.func @transform_6(%arg0: i32, %arg1: i32) -> (i32, i32, i32) {
    %c0_i32 = arith.constant 0 : i32
    %c0_i32_0 = arith.constant 0 : i32
    return %arg0, %arg1, %c0_i32 : i32, i32, i32
  }
}

module attributes {stable_mosaic.version = 11 : i64} {
  func.func @_pw_kernel(%arg0: i32, %arg1: i32, %arg2: memref<1x16x16xbf16, #tpu.memory_space<vmem>>, %arg3: memref<16x48xbf16, #tpu.memory_space<vmem>>, %arg4: memref<1x48xf32, #tpu.memory_space<vmem>>, %arg5: memref<1x48xf32, #tpu.memory_space<vmem>>, %arg6: memref<1x16x48xbf16, #tpu.memory_space<vmem>>) attributes {dimension_semantics = [#tpu.dimension_semantics<parallel>, #tpu.dimension_semantics<parallel>], iteration_bounds = array<i64: 2, 1>, scalar_prefetch = 0 : i64, scratch_operands = 0 : i64, tpu.core_type = #tpu.core_type<tc>, window_params = [{transform_indices = @transform_0, window_bounds = array<i64: 1, 16, 16>}, {pipeline_mode = #tpu.pipeline_mode<synchronous>, transform_indices = @transform_1, window_bounds = array<i64: 16, 48>}, {pipeline_mode = #tpu.pipeline_mode<synchronous>, transform_indices = @transform_2, window_bounds = array<i64: 1, 48>}, {pipeline_mode = #tpu.pipeline_mode<synchronous>, transform_indices = @transform_3, window_bounds = array<i64: 1, 48>}, {transform_indices = @transform_4, window_bounds = array<i64: 1, 16, 48>}]} {
    %c0 = arith.constant 0 : index
    %c0_0 = arith.constant 0 : index
    %c0_1 = arith.constant 0 : index
    %0 = vector.load %arg2[%c0, %c0_0, %c0_1] : memref<1x16x16xbf16, #tpu.memory_space<vmem>>, vector<1x16x16xbf16>
    %1 = vector.shape_cast %0 : vector<1x16x16xbf16> to vector<16x16xbf16>
    %c0_2 = arith.constant 0 : index
    %c0_3 = arith.constant 0 : index
    %2 = vector.load %arg3[%c0_2, %c0_3] : memref<16x48xbf16, #tpu.memory_space<vmem>>, vector<16x48xbf16>
    %cst = arith.constant dense<0.000000e+00> : vector<16x48xf32>
    %3 = tpu.matmul %1, %2, %cst {dimension_numbers = #tpu.dot_dimension_numbers<[1], [0], [0], [1], [0, 0, 1, 1], [], []>} : vector<16x16xbf16>, vector<16x48xbf16>, vector<16x48xf32> -> vector<16x48xf32>
    %c0_4 = arith.constant 0 : index
    %c0_5 = arith.constant 0 : index
    %4 = vector.load %arg4[%c0_4, %c0_5] : memref<1x48xf32, #tpu.memory_space<vmem>>, vector<1x48xf32>
    %5 = vector.broadcast %4 : vector<1x48xf32> to vector<16x48xf32>
    %6 = arith.mulf %3, %5 : vector<16x48xf32>
    %c0_6 = arith.constant 0 : index
    %c0_7 = arith.constant 0 : index
    %7 = vector.load %arg5[%c0_6, %c0_7] : memref<1x48xf32, #tpu.memory_space<vmem>>, vector<1x48xf32>
    %8 = vector.broadcast %7 : vector<1x48xf32> to vector<16x48xf32>
    %9 = arith.addf %6, %8 : vector<16x48xf32>
    %10 = tpu.iota {dimensions = array<i32: 1>} : vector<16x48xi32>
    %c24_i32 = arith.constant 24 : i32
    %11 = vector.broadcast %c24_i32 : i32 to vector<16x48xi32>
    %12 = arith.cmpi slt, %10, %11 : vector<16x48xi32>
    %cst_8 = arith.constant 0.000000e+00 : f32
    %13 = vector.broadcast %cst_8 : f32 to vector<16x48xf32>
    %14 = arith.maximumf %9, %13 : vector<16x48xf32>
    %15 = arith.select %12, %14, %9 : vector<16x48xi1>, vector<16x48xf32>
    %16 = arith.truncf %15 : vector<16x48xf32> to vector<16x48xbf16>
    %c0_9 = arith.constant 0 : index
    %c0_10 = arith.constant 0 : index
    %c0_11 = arith.constant 0 : index
    %17 = vector.load %arg6[%c0_9, %c0_10, %c0_11] : memref<1x16x48xbf16, #tpu.memory_space<vmem>>, vector<1x16x48xbf16>
    %18 = vector.shape_cast %17 : vector<1x16x48xbf16> to vector<16x48xbf16>
    %19 = vector.shape_cast %16 : vector<16x48xbf16> to vector<1x16x48xbf16>
    tpu.vector_store %arg6[%c0_9, %c0_10, %c0_11], %19 {strides = array<i32>} : memref<1x16x48xbf16, #tpu.memory_space<vmem>>, vector<1x16x48xbf16>,
    return
  }
  func.func @transform_0(%arg0: i32, %arg1: i32) -> (i32, i32, i32) {
    %c0_i32 = arith.constant 0 : i32
    %c0_i32_0 = arith.constant 0 : i32
    return %arg0, %arg1, %c0_i32 : i32, i32, i32
  }
  func.func @transform_1(%arg0: i32, %arg1: i32) -> (i32, i32) {
    %c0_i32 = arith.constant 0 : i32
    %c0_i32_0 = arith.constant 0 : i32
    %c0_i32_1 = arith.constant 0 : i32
    return %c0_i32, %c0_i32_0 : i32, i32
  }
  func.func @transform_2(%arg0: i32, %arg1: i32) -> (i32, i32) {
    %c0_i32 = arith.constant 0 : i32
    %c0_i32_0 = arith.constant 0 : i32
    %c0_i32_1 = arith.constant 0 : i32
    return %c0_i32, %c0_i32_0 : i32, i32
  }
  func.func @transform_3(%arg0: i32, %arg1: i32) -> (i32, i32) {
    %c0_i32 = arith.constant 0 : i32
    %c0_i32_0 = arith.constant 0 : i32
    %c0_i32_1 = arith.constant 0 : i32
    return %c0_i32, %c0_i32_0 : i32, i32
  }
  func.func @transform_4(%arg0: i32, %arg1: i32) -> (i32, i32, i32) {
    %c0_i32 = arith.constant 0 : i32
    %c0_i32_0 = arith.constant 0 : i32
    return %arg0, %arg1, %c0_i32 : i32, i32, i32
  }
}

module attributes {stable_mosaic.version = 11 : i64} {
  func.func @_dconv_kernel(%arg0: i32, %arg1: memref<1x16x16xbf16, #tpu.memory_space<vmem>>, %arg2: memref<9x16x16xbf16, #tpu.memory_space<vmem>>, %arg3: memref<1x16xf32, #tpu.memory_space<vmem>>, %arg4: memref<1x16xf32, #tpu.memory_space<vmem>>, %arg5: memref<16x1xi32, #tpu.memory_space<vmem>>, %arg6: memref<1x16x16xbf16, #tpu.memory_space<vmem>>, %arg7: memref<1x1x16xf32, #tpu.memory_space<vmem>>, %arg8: memref<32x16xbf16, #tpu.memory_space<vmem>>) attributes {dimension_semantics = [#tpu.dimension_semantics<parallel>], iteration_bounds = array<i64: 2>, scalar_prefetch = 0 : i64, scratch_operands = 1 : i64, tpu.core_type = #tpu.core_type<tc>, window_params = [{transform_indices = @transform_0, window_bounds = array<i64: 1, 16, 16>}, {pipeline_mode = #tpu.pipeline_mode<synchronous>, transform_indices = @transform_1, window_bounds = array<i64: 9, 16, 16>}, {pipeline_mode = #tpu.pipeline_mode<synchronous>, transform_indices = @transform_2, window_bounds = array<i64: 1, 16>}, {pipeline_mode = #tpu.pipeline_mode<synchronous>, transform_indices = @transform_3, window_bounds = array<i64: 1, 16>}, {pipeline_mode = #tpu.pipeline_mode<synchronous>, transform_indices = @transform_4, window_bounds = array<i64: 16, 1>}, {transform_indices = @transform_5, window_bounds = array<i64: 1, 16, 16>}, {transform_indices = @transform_6, window_bounds = array<i64: 1, 1, 16>}]} {
    %cst = arith.constant 0.000000e+00 : bf16
    %0 = vector.broadcast %cst : bf16 to vector<8x16xbf16>
    %c0 = arith.constant 0 : index
    %c0_0 = arith.constant 0 : index
    %1 = vector.load %arg8[%c0, %c0_0] : memref<32x16xbf16, #tpu.memory_space<vmem>>, vector<8x16xbf16>
    tpu.vector_store %arg8[%c0, %c0_0], %0 {strides = array<i32>} : memref<32x16xbf16, #tpu.memory_space<vmem>>, vector<8x16xbf16>,
    %cst_1 = arith.constant 0.000000e+00 : bf16
    %2 = vector.broadcast %cst_1 : bf16 to vector<8x16xbf16>
    %c24 = arith.constant 24 : index
    %c0_2 = arith.constant 0 : index
    %3 = vector.load %arg8[%c24, %c0_2] : memref<32x16xbf16, #tpu.memory_space<vmem>>, vector<8x16xbf16>
    tpu.vector_store %arg8[%c24, %c0_2], %2 {strides = array<i32>} : memref<32x16xbf16, #tpu.memory_space<vmem>>, vector<8x16xbf16>,
    %c0_3 = arith.constant 0 : index
    %c0_4 = arith.constant 0 : index
    %c0_5 = arith.constant 0 : index
    %4 = vector.load %arg1[%c0_3, %c0_4, %c0_5] : memref<1x16x16xbf16, #tpu.memory_space<vmem>>, vector<1x16x16xbf16>
    %5 = vector.shape_cast %4 : vector<1x16x16xbf16> to vector<16x16xbf16>
    %c8 = arith.constant 8 : index
    %c0_6 = arith.constant 0 : index
    %6 = vector.load %arg8[%c8, %c0_6] : memref<32x16xbf16, #tpu.memory_space<vmem>>, vector<16x16xbf16>
    tpu.vector_store %arg8[%c8, %c0_6], %5 {strides = array<i32>} : memref<32x16xbf16, #tpu.memory_space<vmem>>, vector<16x16xbf16>,
    %c0_7 = arith.constant 0 : index
    %c0_8 = arith.constant 0 : index
    %7 = vector.load %arg5[%c0_7, %c0_8] : memref<16x1xi32, #tpu.memory_space<vmem>>, vector<16x1xi32>
    %cst_9 = arith.constant 0.000000e+00 : f32
    %8 = vector.broadcast %cst_9 : f32 to vector<16x16xf32>
    %c3 = arith.constant 3 : index
    %c0_10 = arith.constant 0 : index
    %9 = vector.load %arg8[%c3, %c0_10] : memref<32x16xbf16, #tpu.memory_space<vmem>>, vector<16x16xbf16>
    %c0_11 = arith.constant 0 : index
    %c0_12 = arith.constant 0 : index
    %c0_13 = arith.constant 0 : index
    %10 = vector.load %arg2[%c0_11, %c0_12, %c0_13] : memref<9x16x16xbf16, #tpu.memory_space<vmem>>, vector<1x16x16xbf16>
    %11 = vector.shape_cast %10 : vector<1x16x16xbf16> to vector<16x16xbf16>
    %cst_14 = arith.constant dense<0.000000e+00> : vector<16x16xf32>
    %12 = tpu.matmul %9, %11, %cst_14 {dimension_numbers = #tpu.dot_dimension_numbers<[1], [0], [0], [1], [0, 0, 1, 1], [], []>} : vector<16x16xbf16>, vector<16x16xbf16>, vector<16x16xf32> -> vector<16x16xf32>
    %c1_i32 = arith.constant 1 : i32
    %13 = vector.broadcast %c1_i32 : i32 to vector<16x1xi32>
    %14 = arith.cmpi sge, %7, %13 : vector<16x1xi32>
    %c4_i32 = arith.constant 4 : i32
    %15 = vector.broadcast %c4_i32 : i32 to vector<16x1xi32>
    %16 = arith.cmpi slt, %7, %15 : vector<16x1xi32>
    %17 = arith.andi %14, %16 : vector<16x1xi1>
    %cst_15 = arith.constant 0.000000e+00 : f32
    %18 = vector.shape_cast %17 : vector<16x1xi1> to vector<16x1xi1>
    %19 = vector.broadcast %18 : vector<16x1xi1> to vector<16x16xi1>
    %20 = vector.broadcast %cst_15 : f32 to vector<16x16xf32>
    %21 = arith.select %19, %12, %20 : vector<16x16xi1>, vector<16x16xf32>
    %22 = arith.addf %8, %21 : vector<16x16xf32>
    %c4 = arith.constant 4 : index
    %c0_16 = arith.constant 0 : index
    %23 = vector.load %arg8[%c4, %c0_16] : memref<32x16xbf16, #tpu.memory_space<vmem>>, vector<16x16xbf16>
    %c1 = arith.constant 1 : index
    %c0_17 = arith.constant 0 : index
    %c0_18 = arith.constant 0 : index
    %24 = vector.load %arg2[%c1, %c0_17, %c0_18] : memref<9x16x16xbf16, #tpu.memory_space<vmem>>, vector<1x16x16xbf16>
    %25 = vector.shape_cast %24 : vector<1x16x16xbf16> to vector<16x16xbf16>
    %cst_19 = arith.constant dense<0.000000e+00> : vector<16x16xf32>
    %26 = tpu.matmul %23, %25, %cst_19 {dimension_numbers = #tpu.dot_dimension_numbers<[1], [0], [0], [1], [0, 0, 1, 1], [], []>} : vector<16x16xbf16>, vector<16x16xbf16>, vector<16x16xf32> -> vector<16x16xf32>
    %27 = arith.addf %22, %26 : vector<16x16xf32>
    %c5 = arith.constant 5 : index
    %c0_20 = arith.constant 0 : index
    %28 = vector.load %arg8[%c5, %c0_20] : memref<32x16xbf16, #tpu.memory_space<vmem>>, vector<16x16xbf16>
    %c2 = arith.constant 2 : index
    %c0_21 = arith.constant 0 : index
    %c0_22 = arith.constant 0 : index
    %29 = vector.load %arg2[%c2, %c0_21, %c0_22] : memref<9x16x16xbf16, #tpu.memory_space<vmem>>, vector<1x16x16xbf16>
    %30 = vector.shape_cast %29 : vector<1x16x16xbf16> to vector<16x16xbf16>
    %cst_23 = arith.constant dense<0.000000e+00> : vector<16x16xf32>
    %31 = tpu.matmul %28, %30, %cst_23 {dimension_numbers = #tpu.dot_dimension_numbers<[1], [0], [0], [1], [0, 0, 1, 1], [], []>} : vector<16x16xbf16>, vector<16x16xbf16>, vector<16x16xf32> -> vector<16x16xf32>
    %c0_i32 = arith.constant 0 : i32
    %32 = vector.broadcast %c0_i32 : i32 to vector<16x1xi32>
    %33 = arith.cmpi sge, %7, %32 : vector<16x1xi32>
    %c3_i32 = arith.constant 3 : i32
    %34 = vector.broadcast %c3_i32 : i32 to vector<16x1xi32>
    %35 = arith.cmpi slt, %7, %34 : vector<16x1xi32>
    %36 = arith.andi %33, %35 : vector<16x1xi1>
    %cst_24 = arith.constant 0.000000e+00 : f32
    %37 = vector.shape_cast %36 : vector<16x1xi1> to vector<16x1xi1>
    %38 = vector.broadcast %37 : vector<16x1xi1> to vector<16x16xi1>
    %39 = vector.broadcast %cst_24 : f32 to vector<16x16xf32>
    %40 = arith.select %38, %31, %39 : vector<16x16xi1>, vector<16x16xf32>
    %41 = arith.addf %27, %40 : vector<16x16xf32>
    %c7 = arith.constant 7 : index
    %c0_25 = arith.constant 0 : index
    %42 = vector.load %arg8[%c7, %c0_25] : memref<32x16xbf16, #tpu.memory_space<vmem>>, vector<16x16xbf16>
    %c3_26 = arith.constant 3 : index
    %c0_27 = arith.constant 0 : index
    %c0_28 = arith.constant 0 : index
    %43 = vector.load %arg2[%c3_26, %c0_27, %c0_28] : memref<9x16x16xbf16, #tpu.memory_space<vmem>>, vector<1x16x16xbf16>
    %44 = vector.shape_cast %43 : vector<1x16x16xbf16> to vector<16x16xbf16>
    %cst_29 = arith.constant dense<0.000000e+00> : vector<16x16xf32>
    %45 = tpu.matmul %42, %44, %cst_29 {dimension_numbers = #tpu.dot_dimension_numbers<[1], [0], [0], [1], [0, 0, 1, 1], [], []>} : vector<16x16xbf16>, vector<16x16xbf16>, vector<16x16xf32> -> vector<16x16xf32>
    %c1_i32_30 = arith.constant 1 : i32
    %46 = vector.broadcast %c1_i32_30 : i32 to vector<16x1xi32>
    %47 = arith.cmpi sge, %7, %46 : vector<16x1xi32>
    %c4_i32_31 = arith.constant 4 : i32
    %48 = vector.broadcast %c4_i32_31 : i32 to vector<16x1xi32>
    %49 = arith.cmpi slt, %7, %48 : vector<16x1xi32>
    %50 = arith.andi %47, %49 : vector<16x1xi1>
    %cst_32 = arith.constant 0.000000e+00 : f32
    %51 = vector.shape_cast %50 : vector<16x1xi1> to vector<16x1xi1>
    %52 = vector.broadcast %51 : vector<16x1xi1> to vector<16x16xi1>
    %53 = vector.broadcast %cst_32 : f32 to vector<16x16xf32>
    %54 = arith.select %52, %45, %53 : vector<16x16xi1>, vector<16x16xf32>
    %55 = arith.addf %41, %54 : vector<16x16xf32>
    %c8_33 = arith.constant 8 : index
    %c0_34 = arith.constant 0 : index
    %56 = vector.load %arg8[%c8_33, %c0_34] : memref<32x16xbf16, #tpu.memory_space<vmem>>, vector<16x16xbf16>
    %c4_35 = arith.constant 4 : index
    %c0_36 = arith.constant 0 : index
    %c0_37 = arith.constant 0 : index
    %57 = vector.load %arg2[%c4_35, %c0_36, %c0_37] : memref<9x16x16xbf16, #tpu.memory_space<vmem>>, vector<1x16x16xbf16>
    %58 = vector.shape_cast %57 : vector<1x16x16xbf16> to vector<16x16xbf16>
    %cst_38 = arith.constant dense<0.000000e+00> : vector<16x16xf32>
    %59 = tpu.matmul %56, %58, %cst_38 {dimension_numbers = #tpu.dot_dimension_numbers<[1], [0], [0], [1], [0, 0, 1, 1], [], []>} : vector<16x16xbf16>, vector<16x16xbf16>, vector<16x16xf32> -> vector<16x16xf32>
    %60 = arith.addf %55, %59 : vector<16x16xf32>
    %c9 = arith.constant 9 : index
    %c0_39 = arith.constant 0 : index
    %61 = vector.load %arg8[%c9, %c0_39] : memref<32x16xbf16, #tpu.memory_space<vmem>>, vector<16x16xbf16>
    %c5_40 = arith.constant 5 : index
    %c0_41 = arith.constant 0 : index
    %c0_42 = arith.constant 0 : index
    %62 = vector.load %arg2[%c5_40, %c0_41, %c0_42] : memref<9x16x16xbf16, #tpu.memory_space<vmem>>, vector<1x16x16xbf16>
    %63 = vector.shape_cast %62 : vector<1x16x16xbf16> to vector<16x16xbf16>
    %cst_43 = arith.constant dense<0.000000e+00> : vector<16x16xf32>
    %64 = tpu.matmul %61, %63, %cst_43 {dimension_numbers = #tpu.dot_dimension_numbers<[1], [0], [0], [1], [0, 0, 1, 1], [], []>} : vector<16x16xbf16>, vector<16x16xbf16>, vector<16x16xf32> -> vector<16x16xf32>
    %c0_i32_44 = arith.constant 0 : i32
    %65 = vector.broadcast %c0_i32_44 : i32 to vector<16x1xi32>
    %66 = arith.cmpi sge, %7, %65 : vector<16x1xi32>
    %c3_i32_45 = arith.constant 3 : i32
    %67 = vector.broadcast %c3_i32_45 : i32 to vector<16x1xi32>
    %68 = arith.cmpi slt, %7, %67 : vector<16x1xi32>
    %69 = arith.andi %66, %68 : vector<16x1xi1>
    %cst_46 = arith.constant 0.000000e+00 : f32
    %70 = vector.shape_cast %69 : vector<16x1xi1> to vector<16x1xi1>
    %71 = vector.broadcast %70 : vector<16x1xi1> to vector<16x16xi1>
    %72 = vector.broadcast %cst_46 : f32 to vector<16x16xf32>
    %73 = arith.select %71, %64, %72 : vector<16x16xi1>, vector<16x16xf32>
    %74 = arith.addf %60, %73 : vector<16x16xf32>
    %c11 = arith.constant 11 : index
    %c0_47 = arith.constant 0 : index
    %75 = vector.load %arg8[%c11, %c0_47] : memref<32x16xbf16, #tpu.memory_space<vmem>>, vector<16x16xbf16>
    %c6 = arith.constant 6 : index
    %c0_48 = arith.constant 0 : index
    %c0_49 = arith.constant 0 : index
    %76 = vector.load %arg2[%c6, %c0_48, %c0_49] : memref<9x16x16xbf16, #tpu.memory_space<vmem>>, vector<1x16x16xbf16>
    %77 = vector.shape_cast %76 : vector<1x16x16xbf16> to vector<16x16xbf16>
    %cst_50 = arith.constant dense<0.000000e+00> : vector<16x16xf32>
    %78 = tpu.matmul %75, %77, %cst_50 {dimension_numbers = #tpu.dot_dimension_numbers<[1], [0], [0], [1], [0, 0, 1, 1], [], []>} : vector<16x16xbf16>, vector<16x16xbf16>, vector<16x16xf32> -> vector<16x16xf32>
    %c1_i32_51 = arith.constant 1 : i32
    %79 = vector.broadcast %c1_i32_51 : i32 to vector<16x1xi32>
    %80 = arith.cmpi sge, %7, %79 : vector<16x1xi32>
    %c4_i32_52 = arith.constant 4 : i32
    %81 = vector.broadcast %c4_i32_52 : i32 to vector<16x1xi32>
    %82 = arith.cmpi slt, %7, %81 : vector<16x1xi32>
    %83 = arith.andi %80, %82 : vector<16x1xi1>
    %cst_53 = arith.constant 0.000000e+00 : f32
    %84 = vector.shape_cast %83 : vector<16x1xi1> to vector<16x1xi1>
    %85 = vector.broadcast %84 : vector<16x1xi1> to vector<16x16xi1>
    %86 = vector.broadcast %cst_53 : f32 to vector<16x16xf32>
    %87 = arith.select %85, %78, %86 : vector<16x16xi1>, vector<16x16xf32>
    %88 = arith.addf %74, %87 : vector<16x16xf32>
    %c12 = arith.constant 12 : index
    %c0_54 = arith.constant 0 : index
    %89 = vector.load %arg8[%c12, %c0_54] : memref<32x16xbf16, #tpu.memory_space<vmem>>, vector<16x16xbf16>
    %c7_55 = arith.constant 7 : index
    %c0_56 = arith.constant 0 : index
    %c0_57 = arith.constant 0 : index
    %90 = vector.load %arg2[%c7_55, %c0_56, %c0_57] : memref<9x16x16xbf16, #tpu.memory_space<vmem>>, vector<1x16x16xbf16>
    %91 = vector.shape_cast %90 : vector<1x16x16xbf16> to vector<16x16xbf16>
    %cst_58 = arith.constant dense<0.000000e+00> : vector<16x16xf32>
    %92 = tpu.matmul %89, %91, %cst_58 {dimension_numbers = #tpu.dot_dimension_numbers<[1], [0], [0], [1], [0, 0, 1, 1], [], []>} : vector<16x16xbf16>, vector<16x16xbf16>, vector<16x16xf32> -> vector<16x16xf32>
    %93 = arith.addf %88, %92 : vector<16x16xf32>
    %c13 = arith.constant 13 : index
    %c0_59 = arith.constant 0 : index
    %94 = vector.load %arg8[%c13, %c0_59] : memref<32x16xbf16, #tpu.memory_space<vmem>>, vector<16x16xbf16>
    %c8_60 = arith.constant 8 : index
    %c0_61 = arith.constant 0 : index
    %c0_62 = arith.constant 0 : index
    %95 = vector.load %arg2[%c8_60, %c0_61, %c0_62] : memref<9x16x16xbf16, #tpu.memory_space<vmem>>, vector<1x16x16xbf16>
    %96 = vector.shape_cast %95 : vector<1x16x16xbf16> to vector<16x16xbf16>
    %cst_63 = arith.constant dense<0.000000e+00> : vector<16x16xf32>
    %97 = tpu.matmul %94, %96, %cst_63 {dimension_numbers = #tpu.dot_dimension_numbers<[1], [0], [0], [1], [0, 0, 1, 1], [], []>} : vector<16x16xbf16>, vector<16x16xbf16>, vector<16x16xf32> -> vector<16x16xf32>
    %c0_i32_64 = arith.constant 0 : i32
    %98 = vector.broadcast %c0_i32_64 : i32 to vector<16x1xi32>
    %99 = arith.cmpi sge, %7, %98 : vector<16x1xi32>
    %c3_i32_65 = arith.constant 3 : i32
    %100 = vector.broadcast %c3_i32_65 : i32 to vector<16x1xi32>
    %101 = arith.cmpi slt, %7, %100 : vector<16x1xi32>
    %102 = arith.andi %99, %101 : vector<16x1xi1>
    %cst_66 = arith.constant 0.000000e+00 : f32
    %103 = vector.shape_cast %102 : vector<16x1xi1> to vector<16x1xi1>
    %104 = vector.broadcast %103 : vector<16x1xi1> to vector<16x16xi1>
    %105 = vector.broadcast %cst_66 : f32 to vector<16x16xf32>
    %106 = arith.select %104, %97, %105 : vector<16x16xi1>, vector<16x16xf32>
    %107 = arith.addf %93, %106 : vector<16x16xf32>
    %c0_67 = arith.constant 0 : index
    %c0_68 = arith.constant 0 : index
    %108 = vector.load %arg3[%c0_67, %c0_68] : memref<1x16xf32, #tpu.memory_space<vmem>>, vector<1x16xf32>
    %109 = vector.broadcast %108 : vector<1x16xf32> to vector<16x16xf32>
    %110 = arith.mulf %107, %109 : vector<16x16xf32>
    %c0_69 = arith.constant 0 : index
    %c0_70 = arith.constant 0 : index
    %111 = vector.load %arg4[%c0_69, %c0_70] : memref<1x16xf32, #tpu.memory_space<vmem>>, vector<1x16xf32>
    %112 = vector.broadcast %111 : vector<1x16xf32> to vector<16x16xf32>
    %113 = arith.addf %110, %112 : vector<16x16xf32>
    %cst_71 = arith.constant 0.000000e+00 : f32
    %114 = vector.broadcast %cst_71 : f32 to vector<16x16xf32>
    %115 = arith.maximumf %113, %114 : vector<16x16xf32>
    %116 = arith.truncf %115 : vector<16x16xf32> to vector<16x16xbf16>
    %c0_72 = arith.constant 0 : index
    %c0_73 = arith.constant 0 : index
    %c0_74 = arith.constant 0 : index
    %117 = vector.load %arg6[%c0_72, %c0_73, %c0_74] : memref<1x16x16xbf16, #tpu.memory_space<vmem>>, vector<1x16x16xbf16>
    %118 = vector.shape_cast %117 : vector<1x16x16xbf16> to vector<16x16xbf16>
    %119 = vector.shape_cast %116 : vector<16x16xbf16> to vector<1x16x16xbf16>
    tpu.vector_store %arg6[%c0_72, %c0_73, %c0_74], %119 {strides = array<i32>} : memref<1x16x16xbf16, #tpu.memory_space<vmem>>, vector<1x16x16xbf16>,
    %cst_75 = arith.constant dense<0.000000e+00> : vector<16xf32>
    %120 = vector.multi_reduction <add>, %115, %cst_75 [0] : vector<16x16xf32> to vector<16xf32>
    %121 = vector.shape_cast %120 : vector<16xf32> to vector<1x16xf32>
    %cst_76 = arith.constant 6.250000e-02 : f32
    %122 = vector.broadcast %cst_76 : f32 to vector<1x16xf32>
    %123 = arith.mulf %121, %122 : vector<1x16xf32>
    %c0_77 = arith.constant 0 : index
    %c0_78 = arith.constant 0 : index
    %c0_79 = arith.constant 0 : index
    %124 = vector.load %arg7[%c0_77, %c0_78, %c0_79] : memref<1x1x16xf32, #tpu.memory_space<vmem>>, vector<1x1x16xf32>
    %125 = vector.shape_cast %124 : vector<1x1x16xf32> to vector<1x16xf32>
    %126 = vector.shape_cast %123 : vector<1x16xf32> to vector<1x1x16xf32>
    tpu.vector_store %arg7[%c0_77, %c0_78, %c0_79], %126 {strides = array<i32>} : memref<1x1x16xf32, #tpu.memory_space<vmem>>, vector<1x1x16xf32>,
    return
  }
  func.func @transform_0(%arg0: i32) -> (i32, i32, i32) {
    %c0_i32 = arith.constant 0 : i32
    %c0_i32_0 = arith.constant 0 : i32
    %c0_i32_1 = arith.constant 0 : i32
    return %arg0, %c0_i32, %c0_i32_0 : i32, i32, i32
  }
  func.func @transform_1(%arg0: i32) -> (i32, i32, i32) {
    %c0_i32 = arith.constant 0 : i32
    %c0_i32_0 = arith.constant 0 : i32
    %c0_i32_1 = arith.constant 0 : i32
    %c0_i32_2 = arith.constant 0 : i32
    return %c0_i32, %c0_i32_0, %c0_i32_1 : i32, i32, i32
  }
  func.func @transform_2(%arg0: i32) -> (i32, i32) {
    %c0_i32 = arith.constant 0 : i32
    %c0_i32_0 = arith.constant 0 : i32
    %c0_i32_1 = arith.constant 0 : i32
    return %c0_i32, %c0_i32_0 : i32, i32
  }
  func.func @transform_3(%arg0: i32) -> (i32, i32) {
    %c0_i32 = arith.constant 0 : i32
    %c0_i32_0 = arith.constant 0 : i32
    %c0_i32_1 = arith.constant 0 : i32
    return %c0_i32, %c0_i32_0 : i32, i32
  }
  func.func @transform_4(%arg0: i32) -> (i32, i32) {
    %c0_i32 = arith.constant 0 : i32
    %c0_i32_0 = arith.constant 0 : i32
    %c0_i32_1 = arith.constant 0 : i32
    return %c0_i32, %c0_i32_0 : i32, i32
  }
  func.func @transform_5(%arg0: i32) -> (i32, i32, i32) {
    %c0_i32 = arith.constant 0 : i32
    %c0_i32_0 = arith.constant 0 : i32
    %c0_i32_1 = arith.constant 0 : i32
    return %arg0, %c0_i32, %c0_i32_0 : i32, i32, i32
  }
  func.func @transform_6(%arg0: i32) -> (i32, i32, i32) {
    %c0_i32 = arith.constant 0 : i32
    %c0_i32_0 = arith.constant 0 : i32
    %c0_i32_1 = arith.constant 0 : i32
    return %arg0, %c0_i32, %c0_i32_0 : i32, i32, i32
  }
}

module attributes {stable_mosaic.version = 11 : i64} {
  func.func @_dconv_kernel(%arg0: i32, %arg1: memref<1x4x192xbf16, #tpu.memory_space<vmem>>, %arg2: memref<9x24x24xbf16, #tpu.memory_space<vmem>>, %arg3: memref<1x24xf32, #tpu.memory_space<vmem>>, %arg4: memref<1x24xf32, #tpu.memory_space<vmem>>, %arg5: memref<4x1xi32, #tpu.memory_space<vmem>>, %arg6: memref<1x4x24xbf16, #tpu.memory_space<vmem>>, %arg7: memref<1x1x24xf32, #tpu.memory_space<vmem>>, %arg8: memref<1x4x24xbf16, #tpu.memory_space<vmem>>, %arg9: memref<16x192xbf16, #tpu.memory_space<vmem>>) attributes {dimension_semantics = [#tpu.dimension_semantics<parallel>], iteration_bounds = array<i64: 2>, scalar_prefetch = 0 : i64, scratch_operands = 1 : i64, tpu.core_type = #tpu.core_type<tc>, window_params = [{transform_indices = @transform_0, window_bounds = array<i64: 1, 4, 192>}, {pipeline_mode = #tpu.pipeline_mode<synchronous>, transform_indices = @transform_1, window_bounds = array<i64: 9, 24, 24>}, {pipeline_mode = #tpu.pipeline_mode<synchronous>, transform_indices = @transform_2, window_bounds = array<i64: 1, 24>}, {pipeline_mode = #tpu.pipeline_mode<synchronous>, transform_indices = @transform_3, window_bounds = array<i64: 1, 24>}, {pipeline_mode = #tpu.pipeline_mode<synchronous>, transform_indices = @transform_4, window_bounds = array<i64: 4, 1>}, {transform_indices = @transform_5, window_bounds = array<i64: 1, 4, 24>}, {transform_indices = @transform_6, window_bounds = array<i64: 1, 1, 24>}, {transform_indices = @transform_7, window_bounds = array<i64: 1, 4, 24>}]} {
    %cst = arith.constant 0.000000e+00 : bf16
    %0 = vector.broadcast %cst : bf16 to vector<8x192xbf16>
    %c0 = arith.constant 0 : index
    %c0_0 = arith.constant 0 : index
    %1 = vector.load %arg9[%c0, %c0_0] : memref<16x192xbf16, #tpu.memory_space<vmem>>, vector<8x192xbf16>
    tpu.vector_store %arg9[%c0, %c0_0], %0 {strides = array<i32>} : memref<16x192xbf16, #tpu.memory_space<vmem>>, vector<8x192xbf16>,
    %cst_1 = arith.constant 0.000000e+00 : bf16
    %2 = vector.broadcast %cst_1 : bf16 to vector<4x192xbf16>
    %c12 = arith.constant 12 : index
    %c0_2 = arith.constant 0 : index
    %3 = vector.load %arg9[%c12, %c0_2] : memref<16x192xbf16, #tpu.memory_space<vmem>>, vector<4x192xbf16>
    tpu.vector_store %arg9[%c12, %c0_2], %2 {strides = array<i32>} : memref<16x192xbf16, #tpu.memory_space<vmem>>, vector<4x192xbf16>,
    %c0_3 = arith.constant 0 : index
    %c0_4 = arith.constant 0 : index
    %c0_5 = arith.constant 0 : index
    %4 = vector.load %arg1[%c0_3, %c0_4, %c0_5] : memref<1x4x192xbf16, #tpu.memory_space<vmem>>, vector<1x4x192xbf16>
    %5 = vector.shape_cast %4 : vector<1x4x192xbf16> to vector<4x192xbf16>
    %c8 = arith.constant 8 : index
    %c0_6 = arith.constant 0 : index
    %6 = vector.load %arg9[%c8, %c0_6] : memref<16x192xbf16, #tpu.memory_space<vmem>>, vector<4x192xbf16>
    tpu.vector_store %arg9[%c8, %c0_6], %5 {strides = array<i32>} : memref<16x192xbf16, #tpu.memory_space<vmem>>, vector<4x192xbf16>,
    %c0_7 = arith.constant 0 : index
    %c0_8 = arith.constant 0 : index
    %7 = vector.load %arg5[%c0_7, %c0_8] : memref<4x1xi32, #tpu.memory_space<vmem>>, vector<4x1xi32>
    %cst_9 = arith.constant 0.000000e+00 : f32
    %8 = vector.broadcast %cst_9 : f32 to vector<4x24xf32>
    %c5 = arith.constant 5 : index
    %c144 = arith.constant 144 : index
    %9 = vector.load %arg9[%c5, %c144] : memref<16x192xbf16, #tpu.memory_space<vmem>>, vector<4x24xbf16>
    %c0_10 = arith.constant 0 : index
    %c0_11 = arith.constant 0 : index
    %c0_12 = arith.constant 0 : index
    %10 = vector.load %arg2[%c0_10, %c0_11, %c0_12] : memref<9x24x24xbf16, #tpu.memory_space<vmem>>, vector<1x24x24xbf16>
    %11 = vector.shape_cast %10 : vector<1x24x24xbf16> to vector<24x24xbf16>
    %cst_13 = arith.constant dense<0.000000e+00> : vector<4x24xf32>
    %12 = tpu.matmul %9, %11, %cst_13 {dimension_numbers = #tpu.dot_dimension_numbers<[1], [0], [0], [1], [0, 0, 1, 1], [], []>} : vector<4x24xbf16>, vector<24x24xbf16>, vector<4x24xf32> -> vector<4x24xf32>
    %c1_i32 = arith.constant 1 : i32
    %13 = vector.broadcast %c1_i32 : i32 to vector<4x1xi32>
    %14 = arith.cmpi sge, %7, %13 : vector<4x1xi32>
    %c2_i32 = arith.constant 2 : i32
    %15 = vector.broadcast %c2_i32 : i32 to vector<4x1xi32>
    %16 = arith.cmpi slt, %7, %15 : vector<4x1xi32>
    %17 = arith.andi %14, %16 : vector<4x1xi1>
    %cst_14 = arith.constant 0.000000e+00 : f32
    %18 = vector.shape_cast %17 : vector<4x1xi1> to vector<4x1xi1>
    %19 = vector.broadcast %18 : vector<4x1xi1> to vector<4x24xi1>
    %20 = vector.broadcast %cst_14 : f32 to vector<4x24xf32>
    %21 = arith.select %19, %12, %20 : vector<4x24xi1>, vector<4x24xf32>
    %22 = arith.addf %8, %21 : vector<4x24xf32>
    %c6 = arith.constant 6 : index
    %c96 = arith.constant 96 : index
    %23 = vector.load %arg9[%c6, %c96] : memref<16x192xbf16, #tpu.memory_space<vmem>>, vector<4x24xbf16>
    %c1 = arith.constant 1 : index
    %c0_15 = arith.constant 0 : index
    %c0_16 = arith.constant 0 : index
    %24 = vector.load %arg2[%c1, %c0_15, %c0_16] : memref<9x24x24xbf16, #tpu.memory_space<vmem>>, vector<1x24x24xbf16>
    %25 = vector.shape_cast %24 : vector<1x24x24xbf16> to vector<24x24xbf16>
    %cst_17 = arith.constant dense<0.000000e+00> : vector<4x24xf32>
    %26 = tpu.matmul %23, %25, %cst_17 {dimension_numbers = #tpu.dot_dimension_numbers<[1], [0], [0], [1], [0, 0, 1, 1], [], []>} : vector<4x24xbf16>, vector<24x24xbf16>, vector<4x24xf32> -> vector<4x24xf32>
    %27 = arith.addf %22, %26 : vector<4x24xf32>
    %c6_18 = arith.constant 6 : index
    %c144_19 = arith.constant 144 : index
    %28 = vector.load %arg9[%c6_18, %c144_19] : memref<16x192xbf16, #tpu.memory_space<vmem>>, vector<4x24xbf16>
    %c2 = arith.constant 2 : index
    %c0_20 = arith.constant 0 : index
    %c0_21 = arith.constant 0 : index
    %29 = vector.load %arg2[%c2, %c0_20, %c0_21] : memref<9x24x24xbf16, #tpu.memory_space<vmem>>, vector<1x24x24xbf16>
    %30 = vector.shape_cast %29 : vector<1x24x24xbf16> to vector<24x24xbf16>
    %cst_22 = arith.constant dense<0.000000e+00> : vector<4x24xf32>
    %31 = tpu.matmul %28, %30, %cst_22 {dimension_numbers = #tpu.dot_dimension_numbers<[1], [0], [0], [1], [0, 0, 1, 1], [], []>} : vector<4x24xbf16>, vector<24x24xbf16>, vector<4x24xf32> -> vector<4x24xf32>
    %32 = arith.addf %27, %31 : vector<4x24xf32>
    %c7 = arith.constant 7 : index
    %c48 = arith.constant 48 : index
    %33 = vector.load %arg9[%c7, %c48] : memref<16x192xbf16, #tpu.memory_space<vmem>>, vector<4x24xbf16>
    %c3 = arith.constant 3 : index
    %c0_23 = arith.constant 0 : index
    %c0_24 = arith.constant 0 : index
    %34 = vector.load %arg2[%c3, %c0_23, %c0_24] : memref<9x24x24xbf16, #tpu.memory_space<vmem>>, vector<1x24x24xbf16>
    %35 = vector.shape_cast %34 : vector<1x24x24xbf16> to vector<24x24xbf16>
    %cst_25 = arith.constant dense<0.000000e+00> : vector<4x24xf32>
    %36 = tpu.matmul %33, %35, %cst_25 {dimension_numbers = #tpu.dot_dimension_numbers<[1], [0], [0], [1], [0, 0, 1, 1], [], []>} : vector<4x24xbf16>, vector<24x24xbf16>, vector<4x24xf32> -> vector<4x24xf32>
    %c1_i32_26 = arith.constant 1 : i32
    %37 = vector.broadcast %c1_i32_26 : i32 to vector<4x1xi32>
    %38 = arith.cmpi sge, %7, %37 : vector<4x1xi32>
    %c2_i32_27 = arith.constant 2 : i32
    %39 = vector.broadcast %c2_i32_27 : i32 to vector<4x1xi32>
    %40 = arith.cmpi slt, %7, %39 : vector<4x1xi32>
    %41 = arith.andi %38, %40 : vector<4x1xi1>
    %cst_28 = arith.constant 0.000000e+00 : f32
    %42 = vector.shape_cast %41 : vector<4x1xi1> to vector<4x1xi1>
    %43 = vector.broadcast %42 : vector<4x1xi1> to vector<4x24xi1>
    %44 = vector.broadcast %cst_28 : f32 to vector<4x24xf32>
    %45 = arith.select %43, %36, %44 : vector<4x24xi1>, vector<4x24xf32>
    %46 = arith.addf %32, %45 : vector<4x24xf32>
    %c8_29 = arith.constant 8 : index
    %c0_30 = arith.constant 0 : index
    %47 = vector.load %arg9[%c8_29, %c0_30] : memref<16x192xbf16, #tpu.memory_space<vmem>>, vector<4x24xbf16>
    %c4 = arith.constant 4 : index
    %c0_31 = arith.constant 0 : index
    %c0_32 = arith.constant 0 : index
    %48 = vector.load %arg2[%c4, %c0_31, %c0_32] : memref<9x24x24xbf16, #tpu.memory_space<vmem>>, vector<1x24x24xbf16>
    %49 = vector.shape_cast %48 : vector<1x24x24xbf16> to vector<24x24xbf16>
    %cst_33 = arith.constant dense<0.000000e+00> : vector<4x24xf32>
    %50 = tpu.matmul %47, %49, %cst_33 {dimension_numbers = #tpu.dot_dimension_numbers<[1], [0], [0], [1], [0, 0, 1, 1], [], []>} : vector<4x24xbf16>, vector<24x24xbf16>, vector<4x24xf32> -> vector<4x24xf32>
    %51 = arith.addf %46, %50 : vector<4x24xf32>
    %c8_34 = arith.constant 8 : index
    %c48_35 = arith.constant 48 : index
    %52 = vector.load %arg9[%c8_34, %c48_35] : memref<16x192xbf16, #tpu.memory_space<vmem>>, vector<4x24xbf16>
    %c5_36 = arith.constant 5 : index
    %c0_37 = arith.constant 0 : index
    %c0_38 = arith.constant 0 : index
    %53 = vector.load %arg2[%c5_36, %c0_37, %c0_38] : memref<9x24x24xbf16, #tpu.memory_space<vmem>>, vector<1x24x24xbf16>
    %54 = vector.shape_cast %53 : vector<1x24x24xbf16> to vector<24x24xbf16>
    %cst_39 = arith.constant dense<0.000000e+00> : vector<4x24xf32>
    %55 = tpu.matmul %52, %54, %cst_39 {dimension_numbers = #tpu.dot_dimension_numbers<[1], [0], [0], [1], [0, 0, 1, 1], [], []>} : vector<4x24xbf16>, vector<24x24xbf16>, vector<4x24xf32> -> vector<4x24xf32>
    %56 = arith.addf %51, %55 : vector<4x24xf32>
    %c7_40 = arith.constant 7 : index
    %c144_41 = arith.constant 144 : index
    %57 = vector.load %arg9[%c7_40, %c144_41] : memref<16x192xbf16, #tpu.memory_space<vmem>>, vector<4x24xbf16>
    %c6_42 = arith.constant 6 : index
    %c0_43 = arith.constant 0 : index
    %c0_44 = arith.constant 0 : index
    %58 = vector.load %arg2[%c6_42, %c0_43, %c0_44] : memref<9x24x24xbf16, #tpu.memory_space<vmem>>, vector<1x24x24xbf16>
    %59 = vector.shape_cast %58 : vector<1x24x24xbf16> to vector<24x24xbf16>
    %cst_45 = arith.constant dense<0.000000e+00> : vector<4x24xf32>
    %60 = tpu.matmul %57, %59, %cst_45 {dimension_numbers = #tpu.dot_dimension_numbers<[1], [0], [0], [1], [0, 0, 1, 1], [], []>} : vector<4x24xbf16>, vector<24x24xbf16>, vector<4x24xf32> -> vector<4x24xf32>
    %c1_i32_46 = arith.constant 1 : i32
    %61 = vector.broadcast %c1_i32_46 : i32 to vector<4x1xi32>
    %62 = arith.cmpi sge, %7, %61 : vector<4x1xi32>
    %c2_i32_47 = arith.constant 2 : i32
    %63 = vector.broadcast %c2_i32_47 : i32 to vector<4x1xi32>
    %64 = arith.cmpi slt, %7, %63 : vector<4x1xi32>
    %65 = arith.andi %62, %64 : vector<4x1xi1>
    %cst_48 = arith.constant 0.000000e+00 : f32
    %66 = vector.shape_cast %65 : vector<4x1xi1> to vector<4x1xi1>
    %67 = vector.broadcast %66 : vector<4x1xi1> to vector<4x24xi1>
    %68 = vector.broadcast %cst_48 : f32 to vector<4x24xf32>
    %69 = arith.select %67, %60, %68 : vector<4x24xi1>, vector<4x24xf32>
    %70 = arith.addf %56, %69 : vector<4x24xf32>
    %c8_49 = arith.constant 8 : index
    %c96_50 = arith.constant 96 : index
    %71 = vector.load %arg9[%c8_49, %c96_50] : memref<16x192xbf16, #tpu.memory_space<vmem>>, vector<4x24xbf16>
    %c7_51 = arith.constant 7 : index
    %c0_52 = arith.constant 0 : index
    %c0_53 = arith.constant 0 : index
    %72 = vector.load %arg2[%c7_51, %c0_52, %c0_53] : memref<9x24x24xbf16, #tpu.memory_space<vmem>>, vector<1x24x24xbf16>
    %73 = vector.shape_cast %72 : vector<1x24x24xbf16> to vector<24x24xbf16>
    %cst_54 = arith.constant dense<0.000000e+00> : vector<4x24xf32>
    %74 = tpu.matmul %71, %73, %cst_54 {dimension_numbers = #tpu.dot_dimension_numbers<[1], [0], [0], [1], [0, 0, 1, 1], [], []>} : vector<4x24xbf16>, vector<24x24xbf16>, vector<4x24xf32> -> vector<4x24xf32>
    %75 = arith.addf %70, %74 : vector<4x24xf32>
    %c8_55 = arith.constant 8 : index
    %c144_56 = arith.constant 144 : index
    %76 = vector.load %arg9[%c8_55, %c144_56] : memref<16x192xbf16, #tpu.memory_space<vmem>>, vector<4x24xbf16>
    %c8_57 = arith.constant 8 : index
    %c0_58 = arith.constant 0 : index
    %c0_59 = arith.constant 0 : index
    %77 = vector.load %arg2[%c8_57, %c0_58, %c0_59] : memref<9x24x24xbf16, #tpu.memory_space<vmem>>, vector<1x24x24xbf16>
    %78 = vector.shape_cast %77 : vector<1x24x24xbf16> to vector<24x24xbf16>
    %cst_60 = arith.constant dense<0.000000e+00> : vector<4x24xf32>
    %79 = tpu.matmul %76, %78, %cst_60 {dimension_numbers = #tpu.dot_dimension_numbers<[1], [0], [0], [1], [0, 0, 1, 1], [], []>} : vector<4x24xbf16>, vector<24x24xbf16>, vector<4x24xf32> -> vector<4x24xf32>
    %80 = arith.addf %75, %79 : vector<4x24xf32>
    %c0_61 = arith.constant 0 : index
    %c0_62 = arith.constant 0 : index
    %81 = vector.load %arg3[%c0_61, %c0_62] : memref<1x24xf32, #tpu.memory_space<vmem>>, vector<1x24xf32>
    %82 = vector.broadcast %81 : vector<1x24xf32> to vector<4x24xf32>
    %83 = arith.mulf %80, %82 : vector<4x24xf32>
    %c0_63 = arith.constant 0 : index
    %c0_64 = arith.constant 0 : index
    %84 = vector.load %arg4[%c0_63, %c0_64] : memref<1x24xf32, #tpu.memory_space<vmem>>, vector<1x24xf32>
    %85 = vector.broadcast %84 : vector<1x24xf32> to vector<4x24xf32>
    %86 = arith.addf %83, %85 : vector<4x24xf32>
    %cst_65 = arith.constant 0.000000e+00 : f32
    %87 = vector.broadcast %cst_65 : f32 to vector<4x24xf32>
    %88 = arith.maximumf %86, %87 : vector<4x24xf32>
    %89 = arith.truncf %88 : vector<4x24xf32> to vector<4x24xbf16>
    %c0_66 = arith.constant 0 : index
    %c0_67 = arith.constant 0 : index
    %c0_68 = arith.constant 0 : index
    %90 = vector.load %arg6[%c0_66, %c0_67, %c0_68] : memref<1x4x24xbf16, #tpu.memory_space<vmem>>, vector<1x4x24xbf16>
    %91 = vector.shape_cast %90 : vector<1x4x24xbf16> to vector<4x24xbf16>
    %92 = vector.shape_cast %89 : vector<4x24xbf16> to vector<1x4x24xbf16>
    tpu.vector_store %arg6[%c0_66, %c0_67, %c0_68], %92 {strides = array<i32>} : memref<1x4x24xbf16, #tpu.memory_space<vmem>>, vector<1x4x24xbf16>,
    %cst_69 = arith.constant dense<0.000000e+00> : vector<24xf32>
    %93 = vector.multi_reduction <add>, %88, %cst_69 [0] : vector<4x24xf32> to vector<24xf32>
    %94 = vector.shape_cast %93 : vector<24xf32> to vector<1x24xf32>
    %cst_70 = arith.constant 2.500000e-01 : f32
    %95 = vector.broadcast %cst_70 : f32 to vector<1x24xf32>
    %96 = arith.mulf %94, %95 : vector<1x24xf32>
    %c0_71 = arith.constant 0 : index
    %c0_72 = arith.constant 0 : index
    %c0_73 = arith.constant 0 : index
    %97 = vector.load %arg7[%c0_71, %c0_72, %c0_73] : memref<1x1x24xf32, #tpu.memory_space<vmem>>, vector<1x1x24xf32>
    %98 = vector.shape_cast %97 : vector<1x1x24xf32> to vector<1x24xf32>
    %99 = vector.shape_cast %96 : vector<1x24xf32> to vector<1x1x24xf32>
    tpu.vector_store %arg7[%c0_71, %c0_72, %c0_73], %99 {strides = array<i32>} : memref<1x1x24xf32, #tpu.memory_space<vmem>>, vector<1x1x24xf32>,
    %c0_74 = arith.constant 0 : index
    %c0_75 = arith.constant 0 : index
    %c24 = arith.constant 24 : index
    %100 = vector.load %arg1[%c0_74, %c0_75, %c24] : memref<1x4x192xbf16, #tpu.memory_space<vmem>>, vector<1x4x24xbf16>
    %101 = vector.shape_cast %100 : vector<1x4x24xbf16> to vector<4x24xbf16>
    %102 = arith.extf %101 : vector<4x24xbf16> to vector<4x24xf32>
    %c0_76 = arith.constant 0 : index
    %c0_77 = arith.constant 0 : index
    %c72 = arith.constant 72 : index
    %103 = vector.load %arg1[%c0_76, %c0_77, %c72] : memref<1x4x192xbf16, #tpu.memory_space<vmem>>, vector<1x4x24xbf16>
    %104 = vector.shape_cast %103 : vector<1x4x24xbf16> to vector<4x24xbf16>
    %105 = arith.extf %104 : vector<4x24xbf16> to vector<4x24xf32>
    %106 = arith.addf %102, %105 : vector<4x24xf32>
    %c0_78 = arith.constant 0 : index
    %c0_79 = arith.constant 0 : index
    %c120 = arith.constant 120 : index
    %107 = vector.load %arg1[%c0_78, %c0_79, %c120] : memref<1x4x192xbf16, #tpu.memory_space<vmem>>, vector<1x4x24xbf16>
    %108 = vector.shape_cast %107 : vector<1x4x24xbf16> to vector<4x24xbf16>
    %109 = arith.extf %108 : vector<4x24xbf16> to vector<4x24xf32>
    %110 = arith.addf %106, %109 : vector<4x24xf32>
    %c0_80 = arith.constant 0 : index
    %c0_81 = arith.constant 0 : index
    %c168 = arith.constant 168 : index
    %111 = vector.load %arg1[%c0_80, %c0_81, %c168] : memref<1x4x192xbf16, #tpu.memory_space<vmem>>, vector<1x4x24xbf16>
    %112 = vector.shape_cast %111 : vector<1x4x24xbf16> to vector<4x24xbf16>
    %113 = arith.extf %112 : vector<4x24xbf16> to vector<4x24xf32>
    %114 = arith.addf %110, %113 : vector<4x24xf32>
    %cst_82 = arith.constant 2.500000e-01 : f32
    %115 = vector.broadcast %cst_82 : f32 to vector<4x24xf32>
    %116 = arith.mulf %114, %115 : vector<4x24xf32>
    %117 = arith.truncf %116 : vector<4x24xf32> to vector<4x24xbf16>
    %c0_83 = arith.constant 0 : index
    %c0_84 = arith.constant 0 : index
    %c0_85 = arith.constant 0 : index
    %118 = vector.load %arg8[%c0_83, %c0_84, %c0_85] : memref<1x4x24xbf16, #tpu.memory_space<vmem>>, vector<1x4x24xbf16>
    %119 = vector.shape_cast %118 : vector<1x4x24xbf16> to vector<4x24xbf16>
    %120 = vector.shape_cast %117 : vector<4x24xbf16> to vector<1x4x24xbf16>
    tpu.vector_store %arg8[%c0_83, %c0_84, %c0_85], %120 {strides = array<i32>} : memref<1x4x24xbf16, #tpu.memory_space<vmem>>, vector<1x4x24xbf16>,
    return
  }
  func.func @transform_0(%arg0: i32) -> (i32, i32, i32) {
    %c0_i32 = arith.constant 0 : i32
    %c0_i32_0 = arith.constant 0 : i32
    %c0_i32_1 = arith.constant 0 : i32
    return %arg0, %c0_i32, %c0_i32_0 : i32, i32, i32
  }
  func.func @transform_1(%arg0: i32) -> (i32, i32, i32) {
    %c0_i32 = arith.constant 0 : i32
    %c0_i32_0 = arith.constant 0 : i32
    %c0_i32_1 = arith.constant 0 : i32
    %c0_i32_2 = arith.constant 0 : i32
    return %c0_i32, %c0_i32_0, %c0_i32_1 : i32, i32, i32
  }
  func.func @transform_2(%arg0: i32) -> (i32, i32) {
    %c0_i32 = arith.constant 0 : i32
    %c0_i32_0 = arith.constant 0 : i32
    %c0_i32_1 = arith.constant 0 : i32
    return %c0_i32, %c0_i32_0 : i32, i32
  }
  func.func @transform_3(%arg0: i32) -> (i32, i32) {
    %c0_i32 = arith.constant 0 : i32
    %c0_i32_0 = arith.constant 0 : i32
    %c0_i32_1 = arith.constant 0 : i32
    return %c0_i32, %c0_i32_0 : i32, i32
  }
  func.func @transform_4(%arg0: i32) -> (i32, i32) {
    %c0_i32 = arith.constant 0 : i32
    %c0_i32_0 = arith.constant 0 : i32
    %c0_i32_1 = arith.constant 0 : i32
    return %c0_i32, %c0_i32_0 : i32, i32
  }
  func.func @transform_5(%arg0: i32) -> (i32, i32, i32) {
    %c0_i32 = arith.constant 0 : i32
    %c0_i32_0 = arith.constant 0 : i32
    %c0_i32_1 = arith.constant 0 : i32
    return %arg0, %c0_i32, %c0_i32_0 : i32, i32, i32
  }
  func.func @transform_6(%arg0: i32) -> (i32, i32, i32) {
    %c0_i32 = arith.constant 0 : i32
    %c0_i32_0 = arith.constant 0 : i32
    %c0_i32_1 = arith.constant 0 : i32
    return %arg0, %c0_i32, %c0_i32_0 : i32, i32, i32
  }
  func.func @transform_7(%arg0: i32) -> (i32, i32, i32) {
    %c0_i32 = arith.constant 0 : i32
    %c0_i32_0 = arith.constant 0 : i32
    %c0_i32_1 = arith.constant 0 : i32
    return %arg0, %c0_i32, %c0_i32_0 : i32, i32, i32
  }
}

module attributes {stable_mosaic.version = 11 : i64} {
  func.func @_se_kernel(%arg0: memref<2x24xf32, #tpu.memory_space<vmem>>, %arg1: memref<24x4xf32, #tpu.memory_space<vmem>>, %arg2: memref<1x4xf32, #tpu.memory_space<vmem>>, %arg3: memref<4x24xf32, #tpu.memory_space<vmem>>, %arg4: memref<1x24xf32, #tpu.memory_space<vmem>>, %arg5: memref<2x24xf32, #tpu.memory_space<vmem>>) attributes {dimension_semantics = [], scalar_prefetch = 0 : i64, scratch_operands = 0 : i64, tpu.core_type = #tpu.core_type<tc>} {
    %c0 = arith.constant 0 : index
    %c0_0 = arith.constant 0 : index
    %0 = vector.load %arg0[%c0, %c0_0] : memref<2x24xf32, #tpu.memory_space<vmem>>, vector<2x24xf32>
    %c0_1 = arith.constant 0 : index
    %c0_2 = arith.constant 0 : index
    %1 = vector.load %arg1[%c0_1, %c0_2] : memref<24x4xf32, #tpu.memory_space<vmem>>, vector<24x4xf32>
    %cst = arith.constant dense<0.000000e+00> : vector<2x4xf32>
    %2 = tpu.matmul %0, %1, %cst {dimension_numbers = #tpu.dot_dimension_numbers<[1], [0], [0], [1], [0, 0, 1, 1], [], []>} : vector<2x24xf32>, vector<24x4xf32>, vector<2x4xf32> -> vector<2x4xf32>
    %c0_3 = arith.constant 0 : index
    %c0_4 = arith.constant 0 : index
    %3 = vector.load %arg2[%c0_3, %c0_4] : memref<1x4xf32, #tpu.memory_space<vmem>>, vector<1x4xf32>
    %4 = vector.broadcast %3 : vector<1x4xf32> to vector<2x4xf32>
    %5 = arith.addf %2, %4 : vector<2x4xf32>
    %cst_5 = arith.constant 0.000000e+00 : f32
    %6 = vector.broadcast %cst_5 : f32 to vector<2x4xf32>
    %7 = arith.maximumf %5, %6 : vector<2x4xf32>
    %c0_6 = arith.constant 0 : index
    %c0_7 = arith.constant 0 : index
    %8 = vector.load %arg3[%c0_6, %c0_7] : memref<4x24xf32, #tpu.memory_space<vmem>>, vector<4x24xf32>
    %cst_8 = arith.constant dense<0.000000e+00> : vector<2x24xf32>
    %9 = tpu.matmul %7, %8, %cst_8 {dimension_numbers = #tpu.dot_dimension_numbers<[1], [0], [0], [1], [0, 0, 1, 1], [], []>} : vector<2x4xf32>, vector<4x24xf32>, vector<2x24xf32> -> vector<2x24xf32>
    %c0_9 = arith.constant 0 : index
    %c0_10 = arith.constant 0 : index
    %10 = vector.load %arg4[%c0_9, %c0_10] : memref<1x24xf32, #tpu.memory_space<vmem>>, vector<1x24xf32>
    %11 = vector.broadcast %10 : vector<1x24xf32> to vector<2x24xf32>
    %12 = arith.addf %9, %11 : vector<2x24xf32>
    %13 = arith.negf %12 : vector<2x24xf32>
    %14 = math.exp %13 : vector<2x24xf32>
    %cst_11 = arith.constant 1.000000e+00 : f32
    %15 = vector.broadcast %cst_11 : f32 to vector<2x24xf32>
    %16 = arith.addf %15, %14 : vector<2x24xf32>
    %17 = arith.divf %15, %16 : vector<2x24xf32>
    %c0_12 = arith.constant 0 : index
    %c0_13 = arith.constant 0 : index
    %18 = vector.load %arg5[%c0_12, %c0_13] : memref<2x24xf32, #tpu.memory_space<vmem>>, vector<2x24xf32>
    tpu.vector_store %arg5[%c0_12, %c0_13], %17 {strides = array<i32>} : memref<2x24xf32, #tpu.memory_space<vmem>>, vector<2x24xf32>,
    return
  }
}

module attributes {stable_mosaic.version = 11 : i64} {
  func.func @_pw_kernel(%arg0: i32, %arg1: i32, %arg2: memref<1x4x24xbf16, #tpu.memory_space<vmem>>, %arg3: memref<24x24xbf16, #tpu.memory_space<vmem>>, %arg4: memref<1x24xf32, #tpu.memory_space<vmem>>, %arg5: memref<1x24xf32, #tpu.memory_space<vmem>>, %arg6: memref<1x1x24xf32, #tpu.memory_space<vmem>>, %arg7: memref<1x4x24xbf16, #tpu.memory_space<vmem>>, %arg8: memref<1x4x24xbf16, #tpu.memory_space<vmem>>) attributes {dimension_semantics = [#tpu.dimension_semantics<parallel>, #tpu.dimension_semantics<parallel>], iteration_bounds = array<i64: 2, 1>, scalar_prefetch = 0 : i64, scratch_operands = 0 : i64, tpu.core_type = #tpu.core_type<tc>, window_params = [{transform_indices = @transform_0, window_bounds = array<i64: 1, 4, 24>}, {pipeline_mode = #tpu.pipeline_mode<synchronous>, transform_indices = @transform_1, window_bounds = array<i64: 24, 24>}, {pipeline_mode = #tpu.pipeline_mode<synchronous>, transform_indices = @transform_2, window_bounds = array<i64: 1, 24>}, {pipeline_mode = #tpu.pipeline_mode<synchronous>, transform_indices = @transform_3, window_bounds = array<i64: 1, 24>}, {transform_indices = @transform_4, window_bounds = array<i64: 1, 1, 24>}, {transform_indices = @transform_5, window_bounds = array<i64: 1, 4, 24>}, {transform_indices = @transform_6, window_bounds = array<i64: 1, 4, 24>}]} {
    %c0 = arith.constant 0 : index
    %c0_0 = arith.constant 0 : index
    %c0_1 = arith.constant 0 : index
    %0 = vector.load %arg2[%c0, %c0_0, %c0_1] : memref<1x4x24xbf16, #tpu.memory_space<vmem>>, vector<1x4x24xbf16>
    %1 = vector.shape_cast %0 : vector<1x4x24xbf16> to vector<4x24xbf16>
    %2 = arith.extf %1 : vector<4x24xbf16> to vector<4x24xf32>
    %c0_2 = arith.constant 0 : index
    %c0_3 = arith.constant 0 : index
    %c0_4 = arith.constant 0 : index
    %3 = vector.load %arg6[%c0_2, %c0_3, %c0_4] : memref<1x1x24xf32, #tpu.memory_space<vmem>>, vector<1x1x24xf32>
    %4 = vector.shape_cast %3 : vector<1x1x24xf32> to vector<1x24xf32>
    %5 = vector.broadcast %4 : vector<1x24xf32> to vector<4x24xf32>
    %6 = arith.mulf %2, %5 : vector<4x24xf32>
    %7 = arith.truncf %6 : vector<4x24xf32> to vector<4x24xbf16>
    %c0_5 = arith.constant 0 : index
    %c0_6 = arith.constant 0 : index
    %8 = vector.load %arg3[%c0_5, %c0_6] : memref<24x24xbf16, #tpu.memory_space<vmem>>, vector<24x24xbf16>
    %cst = arith.constant dense<0.000000e+00> : vector<4x24xf32>
    %9 = tpu.matmul %7, %8, %cst {dimension_numbers = #tpu.dot_dimension_numbers<[1], [0], [0], [1], [0, 0, 1, 1], [], []>} : vector<4x24xbf16>, vector<24x24xbf16>, vector<4x24xf32> -> vector<4x24xf32>
    %c0_7 = arith.constant 0 : index
    %c0_8 = arith.constant 0 : index
    %10 = vector.load %arg4[%c0_7, %c0_8] : memref<1x24xf32, #tpu.memory_space<vmem>>, vector<1x24xf32>
    %11 = vector.broadcast %10 : vector<1x24xf32> to vector<4x24xf32>
    %12 = arith.mulf %9, %11 : vector<4x24xf32>
    %c0_9 = arith.constant 0 : index
    %c0_10 = arith.constant 0 : index
    %13 = vector.load %arg5[%c0_9, %c0_10] : memref<1x24xf32, #tpu.memory_space<vmem>>, vector<1x24xf32>
    %14 = vector.broadcast %13 : vector<1x24xf32> to vector<4x24xf32>
    %15 = arith.addf %12, %14 : vector<4x24xf32>
    %c0_11 = arith.constant 0 : index
    %c0_12 = arith.constant 0 : index
    %c0_13 = arith.constant 0 : index
    %16 = vector.load %arg7[%c0_11, %c0_12, %c0_13] : memref<1x4x24xbf16, #tpu.memory_space<vmem>>, vector<1x4x24xbf16>
    %17 = vector.shape_cast %16 : vector<1x4x24xbf16> to vector<4x24xbf16>
    %18 = arith.extf %17 : vector<4x24xbf16> to vector<4x24xf32>
    %19 = arith.addf %15, %18 : vector<4x24xf32>
    %cst_14 = arith.constant 0.000000e+00 : f32
    %20 = vector.broadcast %cst_14 : f32 to vector<4x24xf32>
    %21 = arith.maximumf %19, %20 : vector<4x24xf32>
    %22 = arith.truncf %21 : vector<4x24xf32> to vector<4x24xbf16>
    %c0_15 = arith.constant 0 : index
    %c0_16 = arith.constant 0 : index
    %c0_17 = arith.constant 0 : index
    %23 = vector.load %arg8[%c0_15, %c0_16, %c0_17] : memref<1x4x24xbf16, #tpu.memory_space<vmem>>, vector<1x4x24xbf16>
    %24 = vector.shape_cast %23 : vector<1x4x24xbf16> to vector<4x24xbf16>
    %25 = vector.shape_cast %22 : vector<4x24xbf16> to vector<1x4x24xbf16>
    tpu.vector_store %arg8[%c0_15, %c0_16, %c0_17], %25 {strides = array<i32>} : memref<1x4x24xbf16, #tpu.memory_space<vmem>>, vector<1x4x24xbf16>,
    return
  }
  func.func @transform_0(%arg0: i32, %arg1: i32) -> (i32, i32, i32) {
    %c0_i32 = arith.constant 0 : i32
    %c0_i32_0 = arith.constant 0 : i32
    return %arg0, %arg1, %c0_i32 : i32, i32, i32
  }
  func.func @transform_1(%arg0: i32, %arg1: i32) -> (i32, i32) {
    %c0_i32 = arith.constant 0 : i32
    %c0_i32_0 = arith.constant 0 : i32
    %c0_i32_1 = arith.constant 0 : i32
    return %c0_i32, %c0_i32_0 : i32, i32
  }
  func.func @transform_2(%arg0: i32, %arg1: i32) -> (i32, i32) {
    %c0_i32 = arith.constant 0 : i32
    %c0_i32_0 = arith.constant 0 : i32
    %c0_i32_1 = arith.constant 0 : i32
    return %c0_i32, %c0_i32_0 : i32, i32
  }
  func.func @transform_3(%arg0: i32, %arg1: i32) -> (i32, i32) {
    %c0_i32 = arith.constant 0 : i32
    %c0_i32_0 = arith.constant 0 : i32
    %c0_i32_1 = arith.constant 0 : i32
    return %c0_i32, %c0_i32_0 : i32, i32
  }
  func.func @transform_4(%arg0: i32, %arg1: i32) -> (i32, i32, i32) {
    %c0_i32 = arith.constant 0 : i32
    %c0_i32_0 = arith.constant 0 : i32
    %c0_i32_1 = arith.constant 0 : i32
    return %arg0, %c0_i32, %c0_i32_0 : i32, i32, i32
  }
  func.func @transform_5(%arg0: i32, %arg1: i32) -> (i32, i32, i32) {
    %c0_i32 = arith.constant 0 : i32
    %c0_i32_0 = arith.constant 0 : i32
    return %arg0, %arg1, %c0_i32 : i32, i32, i32
  }
  func.func @transform_6(%arg0: i32, %arg1: i32) -> (i32, i32, i32) {
    %c0_i32 = arith.constant 0 : i32
    %c0_i32_0 = arith.constant 0 : i32
    return %arg0, %arg1, %c0_i32 : i32, i32, i32
  }
}

module attributes {stable_mosaic.version = 11 : i64} {
  func.func @_pw_kernel(%arg0: i32, %arg1: i32, %arg2: memref<1x4x24xbf16, #tpu.memory_space<vmem>>, %arg3: memref<24x24xbf16, #tpu.memory_space<vmem>>, %arg4: memref<1x24xf32, #tpu.memory_space<vmem>>, %arg5: memref<1x24xf32, #tpu.memory_space<vmem>>, %arg6: memref<1x4x24xbf16, #tpu.memory_space<vmem>>) attributes {dimension_semantics = [#tpu.dimension_semantics<parallel>, #tpu.dimension_semantics<parallel>], iteration_bounds = array<i64: 2, 1>, scalar_prefetch = 0 : i64, scratch_operands = 0 : i64, tpu.core_type = #tpu.core_type<tc>, window_params = [{transform_indices = @transform_0, window_bounds = array<i64: 1, 4, 24>}, {pipeline_mode = #tpu.pipeline_mode<synchronous>, transform_indices = @transform_1, window_bounds = array<i64: 24, 24>}, {pipeline_mode = #tpu.pipeline_mode<synchronous>, transform_indices = @transform_2, window_bounds = array<i64: 1, 24>}, {pipeline_mode = #tpu.pipeline_mode<synchronous>, transform_indices = @transform_3, window_bounds = array<i64: 1, 24>}, {transform_indices = @transform_4, window_bounds = array<i64: 1, 4, 24>}]} {
    %c0 = arith.constant 0 : index
    %c0_0 = arith.constant 0 : index
    %c0_1 = arith.constant 0 : index
    %0 = vector.load %arg2[%c0, %c0_0, %c0_1] : memref<1x4x24xbf16, #tpu.memory_space<vmem>>, vector<1x4x24xbf16>
    %1 = vector.shape_cast %0 : vector<1x4x24xbf16> to vector<4x24xbf16>
    %c0_2 = arith.constant 0 : index
    %c0_3 = arith.constant 0 : index
    %2 = vector.load %arg3[%c0_2, %c0_3] : memref<24x24xbf16, #tpu.memory_space<vmem>>, vector<24x24xbf16>
    %cst = arith.constant dense<0.000000e+00> : vector<4x24xf32>
    %3 = tpu.matmul %1, %2, %cst {dimension_numbers = #tpu.dot_dimension_numbers<[1], [0], [0], [1], [0, 0, 1, 1], [], []>} : vector<4x24xbf16>, vector<24x24xbf16>, vector<4x24xf32> -> vector<4x24xf32>
    %c0_4 = arith.constant 0 : index
    %c0_5 = arith.constant 0 : index
    %4 = vector.load %arg4[%c0_4, %c0_5] : memref<1x24xf32, #tpu.memory_space<vmem>>, vector<1x24xf32>
    %5 = vector.broadcast %4 : vector<1x24xf32> to vector<4x24xf32>
    %6 = arith.mulf %3, %5 : vector<4x24xf32>
    %c0_6 = arith.constant 0 : index
    %c0_7 = arith.constant 0 : index
    %7 = vector.load %arg5[%c0_6, %c0_7] : memref<1x24xf32, #tpu.memory_space<vmem>>, vector<1x24xf32>
    %8 = vector.broadcast %7 : vector<1x24xf32> to vector<4x24xf32>
    %9 = arith.addf %6, %8 : vector<4x24xf32>
    %cst_8 = arith.constant 0.000000e+00 : f32
    %10 = vector.broadcast %cst_8 : f32 to vector<4x24xf32>
    %11 = arith.maximumf %9, %10 : vector<4x24xf32>
    %12 = arith.truncf %11 : vector<4x24xf32> to vector<4x24xbf16>
    %c0_9 = arith.constant 0 : index
    %c0_10 = arith.constant 0 : index
    %c0_11 = arith.constant 0 : index
    %13 = vector.load %arg6[%c0_9, %c0_10, %c0_11] : memref<1x4x24xbf16, #tpu.memory_space<vmem>>, vector<1x4x24xbf16>
    %14 = vector.shape_cast %13 : vector<1x4x24xbf16> to vector<4x24xbf16>
    %15 = vector.shape_cast %12 : vector<4x24xbf16> to vector<1x4x24xbf16>
    tpu.vector_store %arg6[%c0_9, %c0_10, %c0_11], %15 {strides = array<i32>} : memref<1x4x24xbf16, #tpu.memory_space<vmem>>, vector<1x4x24xbf16>,
    return
  }
  func.func @transform_0(%arg0: i32, %arg1: i32) -> (i32, i32, i32) {
    %c0_i32 = arith.constant 0 : i32
    %c0_i32_0 = arith.constant 0 : i32
    return %arg0, %arg1, %c0_i32 : i32, i32, i32
  }
  func.func @transform_1(%arg0: i32, %arg1: i32) -> (i32, i32) {
    %c0_i32 = arith.constant 0 : i32
    %c0_i32_0 = arith.constant 0 : i32
    %c0_i32_1 = arith.constant 0 : i32
    return %c0_i32, %c0_i32_0 : i32, i32
  }
  func.func @transform_2(%arg0: i32, %arg1: i32) -> (i32, i32) {
    %c0_i32 = arith.constant 0 : i32
    %c0_i32_0 = arith.constant 0 : i32
    %c0_i32_1 = arith.constant 0 : i32
    return %c0_i32, %c0_i32_0 : i32, i32
  }
  func.func @transform_3(%arg0: i32, %arg1: i32) -> (i32, i32) {
    %c0_i32 = arith.constant 0 : i32
    %c0_i32_0 = arith.constant 0 : i32
    %c0_i32_1 = arith.constant 0 : i32
    return %c0_i32, %c0_i32_0 : i32, i32
  }
  func.func @transform_4(%arg0: i32, %arg1: i32) -> (i32, i32, i32) {
    %c0_i32 = arith.constant 0 : i32
    %c0_i32_0 = arith.constant 0 : i32
    return %arg0, %arg1, %c0_i32 : i32, i32, i32
  }
}

module attributes {stable_mosaic.version = 11 : i64} {
  func.func @_dconv_kernel(%arg0: i32, %arg1: memref<1x4x24xbf16, #tpu.memory_space<vmem>>, %arg2: memref<9x24x24xbf16, #tpu.memory_space<vmem>>, %arg3: memref<1x24xf32, #tpu.memory_space<vmem>>, %arg4: memref<1x24xf32, #tpu.memory_space<vmem>>, %arg5: memref<4x1xi32, #tpu.memory_space<vmem>>, %arg6: memref<1x4x24xbf16, #tpu.memory_space<vmem>>, %arg7: memref<1x1x24xf32, #tpu.memory_space<vmem>>, %arg8: memref<16x24xbf16, #tpu.memory_space<vmem>>) attributes {dimension_semantics = [#tpu.dimension_semantics<parallel>], iteration_bounds = array<i64: 2>, scalar_prefetch = 0 : i64, scratch_operands = 1 : i64, tpu.core_type = #tpu.core_type<tc>, window_params = [{transform_indices = @transform_0, window_bounds = array<i64: 1, 4, 24>}, {pipeline_mode = #tpu.pipeline_mode<synchronous>, transform_indices = @transform_1, window_bounds = array<i64: 9, 24, 24>}, {pipeline_mode = #tpu.pipeline_mode<synchronous>, transform_indices = @transform_2, window_bounds = array<i64: 1, 24>}, {pipeline_mode = #tpu.pipeline_mode<synchronous>, transform_indices = @transform_3, window_bounds = array<i64: 1, 24>}, {pipeline_mode = #tpu.pipeline_mode<synchronous>, transform_indices = @transform_4, window_bounds = array<i64: 4, 1>}, {transform_indices = @transform_5, window_bounds = array<i64: 1, 4, 24>}, {transform_indices = @transform_6, window_bounds = array<i64: 1, 1, 24>}]} {
    %cst = arith.constant 0.000000e+00 : bf16
    %0 = vector.broadcast %cst : bf16 to vector<8x24xbf16>
    %c0 = arith.constant 0 : index
    %c0_0 = arith.constant 0 : index
    %1 = vector.load %arg8[%c0, %c0_0] : memref<16x24xbf16, #tpu.memory_space<vmem>>, vector<8x24xbf16>
    tpu.vector_store %arg8[%c0, %c0_0], %0 {strides = array<i32>} : memref<16x24xbf16, #tpu.memory_space<vmem>>, vector<8x24xbf16>,
    %cst_1 = arith.constant 0.000000e+00 : bf16
    %2 = vector.broadcast %cst_1 : bf16 to vector<4x24xbf16>
    %c12 = arith.constant 12 : index
    %c0_2 = arith.constant 0 : index
    %3 = vector.load %arg8[%c12, %c0_2] : memref<16x24xbf16, #tpu.memory_space<vmem>>, vector<4x24xbf16>
    tpu.vector_store %arg8[%c12, %c0_2], %2 {strides = array<i32>} : memref<16x24xbf16, #tpu.memory_space<vmem>>, vector<4x24xbf16>,
    %c0_3 = arith.constant 0 : index
    %c0_4 = arith.constant 0 : index
    %c0_5 = arith.constant 0 : index
    %4 = vector.load %arg1[%c0_3, %c0_4, %c0_5] : memref<1x4x24xbf16, #tpu.memory_space<vmem>>, vector<1x4x24xbf16>
    %5 = vector.shape_cast %4 : vector<1x4x24xbf16> to vector<4x24xbf16>
    %c8 = arith.constant 8 : index
    %c0_6 = arith.constant 0 : index
    %6 = vector.load %arg8[%c8, %c0_6] : memref<16x24xbf16, #tpu.memory_space<vmem>>, vector<4x24xbf16>
    tpu.vector_store %arg8[%c8, %c0_6], %5 {strides = array<i32>} : memref<16x24xbf16, #tpu.memory_space<vmem>>, vector<4x24xbf16>,
    %c0_7 = arith.constant 0 : index
    %c0_8 = arith.constant 0 : index
    %7 = vector.load %arg5[%c0_7, %c0_8] : memref<4x1xi32, #tpu.memory_space<vmem>>, vector<4x1xi32>
    %cst_9 = arith.constant 0.000000e+00 : f32
    %8 = vector.broadcast %cst_9 : f32 to vector<4x24xf32>
    %c5 = arith.constant 5 : index
    %c0_10 = arith.constant 0 : index
    %9 = vector.load %arg8[%c5, %c0_10] : memref<16x24xbf16, #tpu.memory_space<vmem>>, vector<4x24xbf16>
    %c0_11 = arith.constant 0 : index
    %c0_12 = arith.constant 0 : index
    %c0_13 = arith.constant 0 : index
    %10 = vector.load %arg2[%c0_11, %c0_12, %c0_13] : memref<9x24x24xbf16, #tpu.memory_space<vmem>>, vector<1x24x24xbf16>
    %11 = vector.shape_cast %10 : vector<1x24x24xbf16> to vector<24x24xbf16>
    %cst_14 = arith.constant dense<0.000000e+00> : vector<4x24xf32>
    %12 = tpu.matmul %9, %11, %cst_14 {dimension_numbers = #tpu.dot_dimension_numbers<[1], [0], [0], [1], [0, 0, 1, 1], [], []>} : vector<4x24xbf16>, vector<24x24xbf16>, vector<4x24xf32> -> vector<4x24xf32>
    %c1_i32 = arith.constant 1 : i32
    %13 = vector.broadcast %c1_i32 : i32 to vector<4x1xi32>
    %14 = arith.cmpi sge, %7, %13 : vector<4x1xi32>
    %c2_i32 = arith.constant 2 : i32
    %15 = vector.broadcast %c2_i32 : i32 to vector<4x1xi32>
    %16 = arith.cmpi slt, %7, %15 : vector<4x1xi32>
    %17 = arith.andi %14, %16 : vector<4x1xi1>
    %cst_15 = arith.constant 0.000000e+00 : f32
    %18 = vector.shape_cast %17 : vector<4x1xi1> to vector<4x1xi1>
    %19 = vector.broadcast %18 : vector<4x1xi1> to vector<4x24xi1>
    %20 = vector.broadcast %cst_15 : f32 to vector<4x24xf32>
    %21 = arith.select %19, %12, %20 : vector<4x24xi1>, vector<4x24xf32>
    %22 = arith.addf %8, %21 : vector<4x24xf32>
    %c6 = arith.constant 6 : index
    %c0_16 = arith.constant 0 : index
    %23 = vector.load %arg8[%c6, %c0_16] : memref<16x24xbf16, #tpu.memory_space<vmem>>, vector<4x24xbf16>
    %c1 = arith.constant 1 : index
    %c0_17 = arith.constant 0 : index
    %c0_18 = arith.constant 0 : index
    %24 = vector.load %arg2[%c1, %c0_17, %c0_18] : memref<9x24x24xbf16, #tpu.memory_space<vmem>>, vector<1x24x24xbf16>
    %25 = vector.shape_cast %24 : vector<1x24x24xbf16> to vector<24x24xbf16>
    %cst_19 = arith.constant dense<0.000000e+00> : vector<4x24xf32>
    %26 = tpu.matmul %23, %25, %cst_19 {dimension_numbers = #tpu.dot_dimension_numbers<[1], [0], [0], [1], [0, 0, 1, 1], [], []>} : vector<4x24xbf16>, vector<24x24xbf16>, vector<4x24xf32> -> vector<4x24xf32>
    %27 = arith.addf %22, %26 : vector<4x24xf32>
    %c7 = arith.constant 7 : index
    %c0_20 = arith.constant 0 : index
    %28 = vector.load %arg8[%c7, %c0_20] : memref<16x24xbf16, #tpu.memory_space<vmem>>, vector<4x24xbf16>
    %c2 = arith.constant 2 : index
    %c0_21 = arith.constant 0 : index
    %c0_22 = arith.constant 0 : index
    %29 = vector.load %arg2[%c2, %c0_21, %c0_22] : memref<9x24x24xbf16, #tpu.memory_space<vmem>>, vector<1x24x24xbf16>
    %30 = vector.shape_cast %29 : vector<1x24x24xbf16> to vector<24x24xbf16>
    %cst_23 = arith.constant dense<0.000000e+00> : vector<4x24xf32>
    %31 = tpu.matmul %28, %30, %cst_23 {dimension_numbers = #tpu.dot_dimension_numbers<[1], [0], [0], [1], [0, 0, 1, 1], [], []>} : vector<4x24xbf16>, vector<24x24xbf16>, vector<4x24xf32> -> vector<4x24xf32>
    %c0_i32 = arith.constant 0 : i32
    %32 = vector.broadcast %c0_i32 : i32 to vector<4x1xi32>
    %33 = arith.cmpi sge, %7, %32 : vector<4x1xi32>
    %c1_i32_24 = arith.constant 1 : i32
    %34 = vector.broadcast %c1_i32_24 : i32 to vector<4x1xi32>
    %35 = arith.cmpi slt, %7, %34 : vector<4x1xi32>
    %36 = arith.andi %33, %35 : vector<4x1xi1>
    %cst_25 = arith.constant 0.000000e+00 : f32
    %37 = vector.shape_cast %36 : vector<4x1xi1> to vector<4x1xi1>
    %38 = vector.broadcast %37 : vector<4x1xi1> to vector<4x24xi1>
    %39 = vector.broadcast %cst_25 : f32 to vector<4x24xf32>
    %40 = arith.select %38, %31, %39 : vector<4x24xi1>, vector<4x24xf32>
    %41 = arith.addf %27, %40 : vector<4x24xf32>
    %c7_26 = arith.constant 7 : index
    %c0_27 = arith.constant 0 : index
    %42 = vector.load %arg8[%c7_26, %c0_27] : memref<16x24xbf16, #tpu.memory_space<vmem>>, vector<4x24xbf16>
    %c3 = arith.constant 3 : index
    %c0_28 = arith.constant 0 : index
    %c0_29 = arith.constant 0 : index
    %43 = vector.load %arg2[%c3, %c0_28, %c0_29] : memref<9x24x24xbf16, #tpu.memory_space<vmem>>, vector<1x24x24xbf16>
    %44 = vector.shape_cast %43 : vector<1x24x24xbf16> to vector<24x24xbf16>
    %cst_30 = arith.constant dense<0.000000e+00> : vector<4x24xf32>
    %45 = tpu.matmul %42, %44, %cst_30 {dimension_numbers = #tpu.dot_dimension_numbers<[1], [0], [0], [1], [0, 0, 1, 1], [], []>} : vector<4x24xbf16>, vector<24x24xbf16>, vector<4x24xf32> -> vector<4x24xf32>
    %c1_i32_31 = arith.constant 1 : i32
    %46 = vector.broadcast %c1_i32_31 : i32 to vector<4x1xi32>
    %47 = arith.cmpi sge, %7, %46 : vector<4x1xi32>
    %c2_i32_32 = arith.constant 2 : i32
    %48 = vector.broadcast %c2_i32_32 : i32 to vector<4x1xi32>
    %49 = arith.cmpi slt, %7, %48 : vector<4x1xi32>
    %50 = arith.andi %47, %49 : vector<4x1xi1>
    %cst_33 = arith.constant 0.000000e+00 : f32
    %51 = vector.shape_cast %50 : vector<4x1xi1> to vector<4x1xi1>
    %52 = vector.broadcast %51 : vector<4x1xi1> to vector<4x24xi1>
    %53 = vector.broadcast %cst_33 : f32 to vector<4x24xf32>
    %54 = arith.select %52, %45, %53 : vector<4x24xi1>, vector<4x24xf32>
    %55 = arith.addf %41, %54 : vector<4x24xf32>
    %c8_34 = arith.constant 8 : index
    %c0_35 = arith.constant 0 : index
    %56 = vector.load %arg8[%c8_34, %c0_35] : memref<16x24xbf16, #tpu.memory_space<vmem>>, vector<4x24xbf16>
    %c4 = arith.constant 4 : index
    %c0_36 = arith.constant 0 : index
    %c0_37 = arith.constant 0 : index
    %57 = vector.load %arg2[%c4, %c0_36, %c0_37] : memref<9x24x24xbf16, #tpu.memory_space<vmem>>, vector<1x24x24xbf16>
    %58 = vector.shape_cast %57 : vector<1x24x24xbf16> to vector<24x24xbf16>
    %cst_38 = arith.constant dense<0.000000e+00> : vector<4x24xf32>
    %59 = tpu.matmul %56, %58, %cst_38 {dimension_numbers = #tpu.dot_dimension_numbers<[1], [0], [0], [1], [0, 0, 1, 1], [], []>} : vector<4x24xbf16>, vector<24x24xbf16>, vector<4x24xf32> -> vector<4x24xf32>
    %60 = arith.addf %55, %59 : vector<4x24xf32>
    %c9 = arith.constant 9 : index
    %c0_39 = arith.constant 0 : index
    %61 = vector.load %arg8[%c9, %c0_39] : memref<16x24xbf16, #tpu.memory_space<vmem>>, vector<4x24xbf16>
    %c5_40 = arith.constant 5 : index
    %c0_41 = arith.constant 0 : index
    %c0_42 = arith.constant 0 : index
    %62 = vector.load %arg2[%c5_40, %c0_41, %c0_42] : memref<9x24x24xbf16, #tpu.memory_space<vmem>>, vector<1x24x24xbf16>
    %63 = vector.shape_cast %62 : vector<1x24x24xbf16> to vector<24x24xbf16>
    %cst_43 = arith.constant dense<0.000000e+00> : vector<4x24xf32>
    %64 = tpu.matmul %61, %63, %cst_43 {dimension_numbers = #tpu.dot_dimension_numbers<[1], [0], [0], [1], [0, 0, 1, 1], [], []>} : vector<4x24xbf16>, vector<24x24xbf16>, vector<4x24xf32> -> vector<4x24xf32>
    %c0_i32_44 = arith.constant 0 : i32
    %65 = vector.broadcast %c0_i32_44 : i32 to vector<4x1xi32>
    %66 = arith.cmpi sge, %7, %65 : vector<4x1xi32>
    %c1_i32_45 = arith.constant 1 : i32
    %67 = vector.broadcast %c1_i32_45 : i32 to vector<4x1xi32>
    %68 = arith.cmpi slt, %7, %67 : vector<4x1xi32>
    %69 = arith.andi %66, %68 : vector<4x1xi1>
    %cst_46 = arith.constant 0.000000e+00 : f32
    %70 = vector.shape_cast %69 : vector<4x1xi1> to vector<4x1xi1>
    %71 = vector.broadcast %70 : vector<4x1xi1> to vector<4x24xi1>
    %72 = vector.broadcast %cst_46 : f32 to vector<4x24xf32>
    %73 = arith.select %71, %64, %72 : vector<4x24xi1>, vector<4x24xf32>
    %74 = arith.addf %60, %73 : vector<4x24xf32>
    %c9_47 = arith.constant 9 : index
    %c0_48 = arith.constant 0 : index
    %75 = vector.load %arg8[%c9_47, %c0_48] : memref<16x24xbf16, #tpu.memory_space<vmem>>, vector<4x24xbf16>
    %c6_49 = arith.constant 6 : index
    %c0_50 = arith.constant 0 : index
    %c0_51 = arith.constant 0 : index
    %76 = vector.load %arg2[%c6_49, %c0_50, %c0_51] : memref<9x24x24xbf16, #tpu.memory_space<vmem>>, vector<1x24x24xbf16>
    %77 = vector.shape_cast %76 : vector<1x24x24xbf16> to vector<24x24xbf16>
    %cst_52 = arith.constant dense<0.000000e+00> : vector<4x24xf32>
    %78 = tpu.matmul %75, %77, %cst_52 {dimension_numbers = #tpu.dot_dimension_numbers<[1], [0], [0], [1], [0, 0, 1, 1], [], []>} : vector<4x24xbf16>, vector<24x24xbf16>, vector<4x24xf32> -> vector<4x24xf32>
    %c1_i32_53 = arith.constant 1 : i32
    %79 = vector.broadcast %c1_i32_53 : i32 to vector<4x1xi32>
    %80 = arith.cmpi sge, %7, %79 : vector<4x1xi32>
    %c2_i32_54 = arith.constant 2 : i32
    %81 = vector.broadcast %c2_i32_54 : i32 to vector<4x1xi32>
    %82 = arith.cmpi slt, %7, %81 : vector<4x1xi32>
    %83 = arith.andi %80, %82 : vector<4x1xi1>
    %cst_55 = arith.constant 0.000000e+00 : f32
    %84 = vector.shape_cast %83 : vector<4x1xi1> to vector<4x1xi1>
    %85 = vector.broadcast %84 : vector<4x1xi1> to vector<4x24xi1>
    %86 = vector.broadcast %cst_55 : f32 to vector<4x24xf32>
    %87 = arith.select %85, %78, %86 : vector<4x24xi1>, vector<4x24xf32>
    %88 = arith.addf %74, %87 : vector<4x24xf32>
    %c10 = arith.constant 10 : index
    %c0_56 = arith.constant 0 : index
    %89 = vector.load %arg8[%c10, %c0_56] : memref<16x24xbf16, #tpu.memory_space<vmem>>, vector<4x24xbf16>
    %c7_57 = arith.constant 7 : index
    %c0_58 = arith.constant 0 : index
    %c0_59 = arith.constant 0 : index
    %90 = vector.load %arg2[%c7_57, %c0_58, %c0_59] : memref<9x24x24xbf16, #tpu.memory_space<vmem>>, vector<1x24x24xbf16>
    %91 = vector.shape_cast %90 : vector<1x24x24xbf16> to vector<24x24xbf16>
    %cst_60 = arith.constant dense<0.000000e+00> : vector<4x24xf32>
    %92 = tpu.matmul %89, %91, %cst_60 {dimension_numbers = #tpu.dot_dimension_numbers<[1], [0], [0], [1], [0, 0, 1, 1], [], []>} : vector<4x24xbf16>, vector<24x24xbf16>, vector<4x24xf32> -> vector<4x24xf32>
    %93 = arith.addf %88, %92 : vector<4x24xf32>
    %c11 = arith.constant 11 : index
    %c0_61 = arith.constant 0 : index
    %94 = vector.load %arg8[%c11, %c0_61] : memref<16x24xbf16, #tpu.memory_space<vmem>>, vector<4x24xbf16>
    %c8_62 = arith.constant 8 : index
    %c0_63 = arith.constant 0 : index
    %c0_64 = arith.constant 0 : index
    %95 = vector.load %arg2[%c8_62, %c0_63, %c0_64] : memref<9x24x24xbf16, #tpu.memory_space<vmem>>, vector<1x24x24xbf16>
    %96 = vector.shape_cast %95 : vector<1x24x24xbf16> to vector<24x24xbf16>
    %cst_65 = arith.constant dense<0.000000e+00> : vector<4x24xf32>
    %97 = tpu.matmul %94, %96, %cst_65 {dimension_numbers = #tpu.dot_dimension_numbers<[1], [0], [0], [1], [0, 0, 1, 1], [], []>} : vector<4x24xbf16>, vector<24x24xbf16>, vector<4x24xf32> -> vector<4x24xf32>
    %c0_i32_66 = arith.constant 0 : i32
    %98 = vector.broadcast %c0_i32_66 : i32 to vector<4x1xi32>
    %99 = arith.cmpi sge, %7, %98 : vector<4x1xi32>
    %c1_i32_67 = arith.constant 1 : i32
    %100 = vector.broadcast %c1_i32_67 : i32 to vector<4x1xi32>
    %101 = arith.cmpi slt, %7, %100 : vector<4x1xi32>
    %102 = arith.andi %99, %101 : vector<4x1xi1>
    %cst_68 = arith.constant 0.000000e+00 : f32
    %103 = vector.shape_cast %102 : vector<4x1xi1> to vector<4x1xi1>
    %104 = vector.broadcast %103 : vector<4x1xi1> to vector<4x24xi1>
    %105 = vector.broadcast %cst_68 : f32 to vector<4x24xf32>
    %106 = arith.select %104, %97, %105 : vector<4x24xi1>, vector<4x24xf32>
    %107 = arith.addf %93, %106 : vector<4x24xf32>
    %c0_69 = arith.constant 0 : index
    %c0_70 = arith.constant 0 : index
    %108 = vector.load %arg3[%c0_69, %c0_70] : memref<1x24xf32, #tpu.memory_space<vmem>>, vector<1x24xf32>
    %109 = vector.broadcast %108 : vector<1x24xf32> to vector<4x24xf32>
    %110 = arith.mulf %107, %109 : vector<4x24xf32>
    %c0_71 = arith.constant 0 : index
    %c0_72 = arith.constant 0 : index
    %111 = vector.load %arg4[%c0_71, %c0_72] : memref<1x24xf32, #tpu.memory_space<vmem>>, vector<1x24xf32>
    %112 = vector.broadcast %111 : vector<1x24xf32> to vector<4x24xf32>
    %113 = arith.addf %110, %112 : vector<4x24xf32>
    %cst_73 = arith.constant 0.000000e+00 : f32
    %114 = vector.broadcast %cst_73 : f32 to vector<4x24xf32>
    %115 = arith.maximumf %113, %114 : vector<4x24xf32>
    %116 = arith.truncf %115 : vector<4x24xf32> to vector<4x24xbf16>
    %c0_74 = arith.constant 0 : index
    %c0_75 = arith.constant 0 : index
    %c0_76 = arith.constant 0 : index
    %117 = vector.load %arg6[%c0_74, %c0_75, %c0_76] : memref<1x4x24xbf16, #tpu.memory_space<vmem>>, vector<1x4x24xbf16>
    %118 = vector.shape_cast %117 : vector<1x4x24xbf16> to vector<4x24xbf16>
    %119 = vector.shape_cast %116 : vector<4x24xbf16> to vector<1x4x24xbf16>
    tpu.vector_store %arg6[%c0_74, %c0_75, %c0_76], %119 {strides = array<i32>} : memref<1x4x24xbf16, #tpu.memory_space<vmem>>, vector<1x4x24xbf16>,
    %cst_77 = arith.constant dense<0.000000e+00> : vector<24xf32>
    %120 = vector.multi_reduction <add>, %115, %cst_77 [0] : vector<4x24xf32> to vector<24xf32>
    %121 = vector.shape_cast %120 : vector<24xf32> to vector<1x24xf32>
    %cst_78 = arith.constant 2.500000e-01 : f32
    %122 = vector.broadcast %cst_78 : f32 to vector<1x24xf32>
    %123 = arith.mulf %121, %122 : vector<1x24xf32>
    %c0_79 = arith.constant 0 : index
    %c0_80 = arith.constant 0 : index
    %c0_81 = arith.constant 0 : index
    %124 = vector.load %arg7[%c0_79, %c0_80, %c0_81] : memref<1x1x24xf32, #tpu.memory_space<vmem>>, vector<1x1x24xf32>
    %125 = vector.shape_cast %124 : vector<1x1x24xf32> to vector<1x24xf32>
    %126 = vector.shape_cast %123 : vector<1x24xf32> to vector<1x1x24xf32>
    tpu.vector_store %arg7[%c0_79, %c0_80, %c0_81], %126 {strides = array<i32>} : memref<1x1x24xf32, #tpu.memory_space<vmem>>, vector<1x1x24xf32>,
    return
  }
  func.func @transform_0(%arg0: i32) -> (i32, i32, i32) {
    %c0_i32 = arith.constant 0 : i32
    %c0_i32_0 = arith.constant 0 : i32
    %c0_i32_1 = arith.constant 0 : i32
    return %arg0, %c0_i32, %c0_i32_0 : i32, i32, i32
  }
  func.func @transform_1(%arg0: i32) -> (i32, i32, i32) {
    %c0_i32 = arith.constant 0 : i32
    %c0_i32_0 = arith.constant 0 : i32
    %c0_i32_1 = arith.constant 0 : i32
    %c0_i32_2 = arith.constant 0 : i32
    return %c0_i32, %c0_i32_0, %c0_i32_1 : i32, i32, i32
  }
  func.func @transform_2(%arg0: i32) -> (i32, i32) {
    %c0_i32 = arith.constant 0 : i32
    %c0_i32_0 = arith.constant 0 : i32
    %c0_i32_1 = arith.constant 0 : i32
    return %c0_i32, %c0_i32_0 : i32, i32
  }
  func.func @transform_3(%arg0: i32) -> (i32, i32) {
    %c0_i32 = arith.constant 0 : i32
    %c0_i32_0 = arith.constant 0 : i32
    %c0_i32_1 = arith.constant 0 : i32
    return %c0_i32, %c0_i32_0 : i32, i32
  }
  func.func @transform_4(%arg0: i32) -> (i32, i32) {
    %c0_i32 = arith.constant 0 : i32
    %c0_i32_0 = arith.constant 0 : i32
    %c0_i32_1 = arith.constant 0 : i32
    return %c0_i32, %c0_i32_0 : i32, i32
  }
  func.func @transform_5(%arg0: i32) -> (i32, i32, i32) {
    %c0_i32 = arith.constant 0 : i32
    %c0_i32_0 = arith.constant 0 : i32
    %c0_i32_1 = arith.constant 0 : i32
    return %arg0, %c0_i32, %c0_i32_0 : i32, i32, i32
  }
  func.func @transform_6(%arg0: i32) -> (i32, i32, i32) {
    %c0_i32 = arith.constant 0 : i32
    %c0_i32_0 = arith.constant 0 : i32
    %c0_i32_1 = arith.constant 0 : i32
    return %arg0, %c0_i32, %c0_i32_0 : i32, i32, i32
  }
}

module attributes {stable_mosaic.version = 11 : i64} {
  func.func @_se_kernel(%arg0: memref<2x24xf32, #tpu.memory_space<vmem>>, %arg1: memref<24x6xf32, #tpu.memory_space<vmem>>, %arg2: memref<1x6xf32, #tpu.memory_space<vmem>>, %arg3: memref<6x24xf32, #tpu.memory_space<vmem>>, %arg4: memref<1x24xf32, #tpu.memory_space<vmem>>, %arg5: memref<2x24xf32, #tpu.memory_space<vmem>>) attributes {dimension_semantics = [], scalar_prefetch = 0 : i64, scratch_operands = 0 : i64, tpu.core_type = #tpu.core_type<tc>} {
    %c0 = arith.constant 0 : index
    %c0_0 = arith.constant 0 : index
    %0 = vector.load %arg0[%c0, %c0_0] : memref<2x24xf32, #tpu.memory_space<vmem>>, vector<2x24xf32>
    %c0_1 = arith.constant 0 : index
    %c0_2 = arith.constant 0 : index
    %1 = vector.load %arg1[%c0_1, %c0_2] : memref<24x6xf32, #tpu.memory_space<vmem>>, vector<24x6xf32>
    %cst = arith.constant dense<0.000000e+00> : vector<2x6xf32>
    %2 = tpu.matmul %0, %1, %cst {dimension_numbers = #tpu.dot_dimension_numbers<[1], [0], [0], [1], [0, 0, 1, 1], [], []>} : vector<2x24xf32>, vector<24x6xf32>, vector<2x6xf32> -> vector<2x6xf32>
    %c0_3 = arith.constant 0 : index
    %c0_4 = arith.constant 0 : index
    %3 = vector.load %arg2[%c0_3, %c0_4] : memref<1x6xf32, #tpu.memory_space<vmem>>, vector<1x6xf32>
    %4 = vector.broadcast %3 : vector<1x6xf32> to vector<2x6xf32>
    %5 = arith.addf %2, %4 : vector<2x6xf32>
    %cst_5 = arith.constant 0.000000e+00 : f32
    %6 = vector.broadcast %cst_5 : f32 to vector<2x6xf32>
    %7 = arith.maximumf %5, %6 : vector<2x6xf32>
    %c0_6 = arith.constant 0 : index
    %c0_7 = arith.constant 0 : index
    %8 = vector.load %arg3[%c0_6, %c0_7] : memref<6x24xf32, #tpu.memory_space<vmem>>, vector<6x24xf32>
    %cst_8 = arith.constant dense<0.000000e+00> : vector<2x24xf32>
    %9 = tpu.matmul %7, %8, %cst_8 {dimension_numbers = #tpu.dot_dimension_numbers<[1], [0], [0], [1], [0, 0, 1, 1], [], []>} : vector<2x6xf32>, vector<6x24xf32>, vector<2x24xf32> -> vector<2x24xf32>
    %c0_9 = arith.constant 0 : index
    %c0_10 = arith.constant 0 : index
    %10 = vector.load %arg4[%c0_9, %c0_10] : memref<1x24xf32, #tpu.memory_space<vmem>>, vector<1x24xf32>
    %11 = vector.broadcast %10 : vector<1x24xf32> to vector<2x24xf32>
    %12 = arith.addf %9, %11 : vector<2x24xf32>
    %13 = arith.negf %12 : vector<2x24xf32>
    %14 = math.exp %13 : vector<2x24xf32>
    %cst_11 = arith.constant 1.000000e+00 : f32
    %15 = vector.broadcast %cst_11 : f32 to vector<2x24xf32>
    %16 = arith.addf %15, %14 : vector<2x24xf32>
    %17 = arith.divf %15, %16 : vector<2x24xf32>
    %c0_12 = arith.constant 0 : index
    %c0_13 = arith.constant 0 : index
    %18 = vector.load %arg5[%c0_12, %c0_13] : memref<2x24xf32, #tpu.memory_space<vmem>>, vector<2x24xf32>
    tpu.vector_store %arg5[%c0_12, %c0_13], %17 {strides = array<i32>} : memref<2x24xf32, #tpu.memory_space<vmem>>, vector<2x24xf32>,
    return
  }
}

module attributes {stable_mosaic.version = 11 : i64} {
  func.func @_se_kernel(%arg0: memref<2x32xf32, #tpu.memory_space<vmem>>, %arg1: memref<32x6xf32, #tpu.memory_space<vmem>>, %arg2: memref<1x6xf32, #tpu.memory_space<vmem>>, %arg3: memref<6x32xf32, #tpu.memory_space<vmem>>, %arg4: memref<1x32xf32, #tpu.memory_space<vmem>>, %arg5: memref<2x32xf32, #tpu.memory_space<vmem>>) attributes {dimension_semantics = [], scalar_prefetch = 0 : i64, scratch_operands = 0 : i64, tpu.core_type = #tpu.core_type<tc>} {
    %c0 = arith.constant 0 : index
    %c0_0 = arith.constant 0 : index
    %0 = vector.load %arg0[%c0, %c0_0] : memref<2x32xf32, #tpu.memory_space<vmem>>, vector<2x32xf32>
    %c0_1 = arith.constant 0 : index
    %c0_2 = arith.constant 0 : index
    %1 = vector.load %arg1[%c0_1, %c0_2] : memref<32x6xf32, #tpu.memory_space<vmem>>, vector<32x6xf32>
    %cst = arith.constant dense<0.000000e+00> : vector<2x6xf32>
    %2 = tpu.matmul %0, %1, %cst {dimension_numbers = #tpu.dot_dimension_numbers<[1], [0], [0], [1], [0, 0, 1, 1], [], []>} : vector<2x32xf32>, vector<32x6xf32>, vector<2x6xf32> -> vector<2x6xf32>
    %c0_3 = arith.constant 0 : index
    %c0_4 = arith.constant 0 : index
    %3 = vector.load %arg2[%c0_3, %c0_4] : memref<1x6xf32, #tpu.memory_space<vmem>>, vector<1x6xf32>
    %4 = vector.broadcast %3 : vector<1x6xf32> to vector<2x6xf32>
    %5 = arith.addf %2, %4 : vector<2x6xf32>
    %cst_5 = arith.constant 0.000000e+00 : f32
    %6 = vector.broadcast %cst_5 : f32 to vector<2x6xf32>
    %7 = arith.maximumf %5, %6 : vector<2x6xf32>
    %c0_6 = arith.constant 0 : index
    %c0_7 = arith.constant 0 : index
    %8 = vector.load %arg3[%c0_6, %c0_7] : memref<6x32xf32, #tpu.memory_space<vmem>>, vector<6x32xf32>
    %cst_8 = arith.constant dense<0.000000e+00> : vector<2x32xf32>
    %9 = tpu.matmul %7, %8, %cst_8 {dimension_numbers = #tpu.dot_dimension_numbers<[1], [0], [0], [1], [0, 0, 1, 1], [], []>} : vector<2x6xf32>, vector<6x32xf32>, vector<2x32xf32> -> vector<2x32xf32>
    %c0_9 = arith.constant 0 : index
    %c0_10 = arith.constant 0 : index
    %10 = vector.load %arg4[%c0_9, %c0_10] : memref<1x32xf32, #tpu.memory_space<vmem>>, vector<1x32xf32>
    %11 = vector.broadcast %10 : vector<1x32xf32> to vector<2x32xf32>
    %12 = arith.addf %9, %11 : vector<2x32xf32>
    %13 = arith.negf %12 : vector<2x32xf32>
    %14 = math.exp %13 : vector<2x32xf32>
    %cst_11 = arith.constant 1.000000e+00 : f32
    %15 = vector.broadcast %cst_11 : f32 to vector<2x32xf32>
    %16 = arith.addf %15, %14 : vector<2x32xf32>
    %17 = arith.divf %15, %16 : vector<2x32xf32>
    %c0_12 = arith.constant 0 : index
    %c0_13 = arith.constant 0 : index
    %18 = vector.load %arg5[%c0_12, %c0_13] : memref<2x32xf32, #tpu.memory_space<vmem>>, vector<2x32xf32>
    tpu.vector_store %arg5[%c0_12, %c0_13], %17 {strides = array<i32>} : memref<2x32xf32, #tpu.memory_space<vmem>>, vector<2x32xf32>,
    return
  }
}

module attributes {stable_mosaic.version = 11 : i64} {
  func.func @_pw_kernel(%arg0: i32, %arg1: i32, %arg2: memref<1x4x24xbf16, #tpu.memory_space<vmem>>, %arg3: memref<24x64xbf16, #tpu.memory_space<vmem>>, %arg4: memref<1x64xf32, #tpu.memory_space<vmem>>, %arg5: memref<1x64xf32, #tpu.memory_space<vmem>>, %arg6: memref<1x4x64xbf16, #tpu.memory_space<vmem>>) attributes {dimension_semantics = [#tpu.dimension_semantics<parallel>, #tpu.dimension_semantics<parallel>], iteration_bounds = array<i64: 2, 1>, scalar_prefetch = 0 : i64, scratch_operands = 0 : i64, tpu.core_type = #tpu.core_type<tc>, window_params = [{transform_indices = @transform_0, window_bounds = array<i64: 1, 4, 24>}, {pipeline_mode = #tpu.pipeline_mode<synchronous>, transform_indices = @transform_1, window_bounds = array<i64: 24, 64>}, {pipeline_mode = #tpu.pipeline_mode<synchronous>, transform_indices = @transform_2, window_bounds = array<i64: 1, 64>}, {pipeline_mode = #tpu.pipeline_mode<synchronous>, transform_indices = @transform_3, window_bounds = array<i64: 1, 64>}, {transform_indices = @transform_4, window_bounds = array<i64: 1, 4, 64>}]} {
    %c0 = arith.constant 0 : index
    %c0_0 = arith.constant 0 : index
    %c0_1 = arith.constant 0 : index
    %0 = vector.load %arg2[%c0, %c0_0, %c0_1] : memref<1x4x24xbf16, #tpu.memory_space<vmem>>, vector<1x4x24xbf16>
    %1 = vector.shape_cast %0 : vector<1x4x24xbf16> to vector<4x24xbf16>
    %c0_2 = arith.constant 0 : index
    %c0_3 = arith.constant 0 : index
    %2 = vector.load %arg3[%c0_2, %c0_3] : memref<24x64xbf16, #tpu.memory_space<vmem>>, vector<24x64xbf16>
    %cst = arith.constant dense<0.000000e+00> : vector<4x64xf32>
    %3 = tpu.matmul %1, %2, %cst {dimension_numbers = #tpu.dot_dimension_numbers<[1], [0], [0], [1], [0, 0, 1, 1], [], []>} : vector<4x24xbf16>, vector<24x64xbf16>, vector<4x64xf32> -> vector<4x64xf32>
    %c0_4 = arith.constant 0 : index
    %c0_5 = arith.constant 0 : index
    %4 = vector.load %arg4[%c0_4, %c0_5] : memref<1x64xf32, #tpu.memory_space<vmem>>, vector<1x64xf32>
    %5 = vector.broadcast %4 : vector<1x64xf32> to vector<4x64xf32>
    %6 = arith.mulf %3, %5 : vector<4x64xf32>
    %c0_6 = arith.constant 0 : index
    %c0_7 = arith.constant 0 : index
    %7 = vector.load %arg5[%c0_6, %c0_7] : memref<1x64xf32, #tpu.memory_space<vmem>>, vector<1x64xf32>
    %8 = vector.broadcast %7 : vector<1x64xf32> to vector<4x64xf32>
    %9 = arith.addf %6, %8 : vector<4x64xf32>
    %10 = tpu.iota {dimensions = array<i32: 1>} : vector<4x64xi32>
    %c32_i32 = arith.constant 32 : i32
    %11 = vector.broadcast %c32_i32 : i32 to vector<4x64xi32>
    %12 = arith.cmpi slt, %10, %11 : vector<4x64xi32>
    %cst_8 = arith.constant 0.000000e+00 : f32
    %13 = vector.broadcast %cst_8 : f32 to vector<4x64xf32>
    %14 = arith.maximumf %9, %13 : vector<4x64xf32>
    %15 = arith.select %12, %14, %9 : vector<4x64xi1>, vector<4x64xf32>
    %16 = arith.truncf %15 : vector<4x64xf32> to vector<4x64xbf16>
    %c0_9 = arith.constant 0 : index
    %c0_10 = arith.constant 0 : index
    %c0_11 = arith.constant 0 : index
    %17 = vector.load %arg6[%c0_9, %c0_10, %c0_11] : memref<1x4x64xbf16, #tpu.memory_space<vmem>>, vector<1x4x64xbf16>
    %18 = vector.shape_cast %17 : vector<1x4x64xbf16> to vector<4x64xbf16>
    %19 = vector.shape_cast %16 : vector<4x64xbf16> to vector<1x4x64xbf16>
    tpu.vector_store %arg6[%c0_9, %c0_10, %c0_11], %19 {strides = array<i32>} : memref<1x4x64xbf16, #tpu.memory_space<vmem>>, vector<1x4x64xbf16>,
    return
  }
  func.func @transform_0(%arg0: i32, %arg1: i32) -> (i32, i32, i32) {
    %c0_i32 = arith.constant 0 : i32
    %c0_i32_0 = arith.constant 0 : i32
    return %arg0, %arg1, %c0_i32 : i32, i32, i32
  }
  func.func @transform_1(%arg0: i32, %arg1: i32) -> (i32, i32) {
    %c0_i32 = arith.constant 0 : i32
    %c0_i32_0 = arith.constant 0 : i32
    %c0_i32_1 = arith.constant 0 : i32
    return %c0_i32, %c0_i32_0 : i32, i32
  }
  func.func @transform_2(%arg0: i32, %arg1: i32) -> (i32, i32) {
    %c0_i32 = arith.constant 0 : i32
    %c0_i32_0 = arith.constant 0 : i32
    %c0_i32_1 = arith.constant 0 : i32
    return %c0_i32, %c0_i32_0 : i32, i32
  }
  func.func @transform_3(%arg0: i32, %arg1: i32) -> (i32, i32) {
    %c0_i32 = arith.constant 0 : i32
    %c0_i32_0 = arith.constant 0 : i32
    %c0_i32_1 = arith.constant 0 : i32
    return %c0_i32, %c0_i32_0 : i32, i32
  }
  func.func @transform_4(%arg0: i32, %arg1: i32) -> (i32, i32, i32) {
    %c0_i32 = arith.constant 0 : i32
    %c0_i32_0 = arith.constant 0 : i32
    return %arg0, %arg1, %c0_i32 : i32, i32, i32
  }
}

module attributes {stable_mosaic.version = 11 : i64} {
  func.func @_dconv_kernel(%arg0: i32, %arg1: memref<1x4x64xbf16, #tpu.memory_space<vmem>>, %arg2: memref<18x16x32xbf16, #tpu.memory_space<vmem>>, %arg3: memref<1x32xf32, #tpu.memory_space<vmem>>, %arg4: memref<1x32xf32, #tpu.memory_space<vmem>>, %arg5: memref<4x1xi32, #tpu.memory_space<vmem>>, %arg6: memref<1x4x32xbf16, #tpu.memory_space<vmem>>, %arg7: memref<1x1x32xf32, #tpu.memory_space<vmem>>, %arg8: memref<1x4x32xbf16, #tpu.memory_space<vmem>>, %arg9: memref<24x64xbf16, #tpu.memory_space<vmem>>) attributes {dimension_semantics = [#tpu.dimension_semantics<parallel>], iteration_bounds = array<i64: 2>, scalar_prefetch = 0 : i64, scratch_operands = 1 : i64, tpu.core_type = #tpu.core_type<tc>, window_params = [{transform_indices = @transform_0, window_bounds = array<i64: 1, 4, 64>}, {pipeline_mode = #tpu.pipeline_mode<synchronous>, transform_indices = @transform_1, window_bounds = array<i64: 18, 16, 32>}, {pipeline_mode = #tpu.pipeline_mode<synchronous>, transform_indices = @transform_2, window_bounds = array<i64: 1, 32>}, {pipeline_mode = #tpu.pipeline_mode<synchronous>, transform_indices = @transform_3, window_bounds = array<i64: 1, 32>}, {pipeline_mode = #tpu.pipeline_mode<synchronous>, transform_indices = @transform_4, window_bounds = array<i64: 4, 1>}, {transform_indices = @transform_5, window_bounds = array<i64: 1, 4, 32>}, {transform_indices = @transform_6, window_bounds = array<i64: 1, 1, 32>}, {transform_indices = @transform_7, window_bounds = array<i64: 1, 4, 32>}]} {
    %cst = arith.constant 0.000000e+00 : bf16
    %0 = vector.broadcast %cst : bf16 to vector<8x64xbf16>
    %c0 = arith.constant 0 : index
    %c0_0 = arith.constant 0 : index
    %1 = vector.load %arg9[%c0, %c0_0] : memref<24x64xbf16, #tpu.memory_space<vmem>>, vector<8x64xbf16>
    tpu.vector_store %arg9[%c0, %c0_0], %0 {strides = array<i32>} : memref<24x64xbf16, #tpu.memory_space<vmem>>, vector<8x64xbf16>,
    %cst_1 = arith.constant 0.000000e+00 : bf16
    %2 = vector.broadcast %cst_1 : bf16 to vector<12x64xbf16>
    %c12 = arith.constant 12 : index
    %c0_2 = arith.constant 0 : index
    %3 = vector.load %arg9[%c12, %c0_2] : memref<24x64xbf16, #tpu.memory_space<vmem>>, vector<12x64xbf16>
    tpu.vector_store %arg9[%c12, %c0_2], %2 {strides = array<i32>} : memref<24x64xbf16, #tpu.memory_space<vmem>>, vector<12x64xbf16>,
    %c0_3 = arith.constant 0 : index
    %c0_4 = arith.constant 0 : index
    %c0_5 = arith.constant 0 : index
    %4 = vector.load %arg1[%c0_3, %c0_4, %c0_5] : memref<1x4x64xbf16, #tpu.memory_space<vmem>>, vector<1x4x64xbf16>
    %5 = vector.shape_cast %4 : vector<1x4x64xbf16> to vector<4x64xbf16>
    %c8 = arith.constant 8 : index
    %c0_6 = arith.constant 0 : index
    %6 = vector.load %arg9[%c8, %c0_6] : memref<24x64xbf16, #tpu.memory_space<vmem>>, vector<4x64xbf16>
    tpu.vector_store %arg9[%c8, %c0_6], %5 {strides = array<i32>} : memref<24x64xbf16, #tpu.memory_space<vmem>>, vector<4x64xbf16>,
    %c0_7 = arith.constant 0 : index
    %c0_8 = arith.constant 0 : index
    %7 = vector.load %arg5[%c0_7, %c0_8] : memref<4x1xi32, #tpu.memory_space<vmem>>, vector<4x1xi32>
    %cst_9 = arith.constant 0.000000e+00 : f32
    %8 = vector.broadcast %cst_9 : f32 to vector<4x32xf32>
    %c5 = arith.constant 5 : index
    %c0_10 = arith.constant 0 : index
    %9 = vector.load %arg9[%c5, %c0_10] : memref<24x64xbf16, #tpu.memory_space<vmem>>, vector<4x16xbf16>
    %c0_11 = arith.constant 0 : index
    %c0_12 = arith.constant 0 : index
    %c0_13 = arith.constant 0 : index
    %10 = vector.load %arg2[%c0_11, %c0_12, %c0_13] : memref<18x16x32xbf16, #tpu.memory_space<vmem>>, vector<1x16x32xbf16>
    %11 = vector.shape_cast %10 : vector<1x16x32xbf16> to vector<16x32xbf16>
    %cst_14 = arith.constant dense<0.000000e+00> : vector<4x32xf32>
    %12 = tpu.matmul %9, %11, %cst_14 {dimension_numbers = #tpu.dot_dimension_numbers<[1], [0], [0], [1], [0, 0, 1, 1], [], []>} : vector<4x16xbf16>, vector<16x32xbf16>, vector<4x32xf32> -> vector<4x32xf32>
    %c1_i32 = arith.constant 1 : i32
    %13 = vector.broadcast %c1_i32 : i32 to vector<4x1xi32>
    %14 = arith.cmpi sge, %7, %13 : vector<4x1xi32>
    %c2_i32 = arith.constant 2 : i32
    %15 = vector.broadcast %c2_i32 : i32 to vector<4x1xi32>
    %16 = arith.cmpi slt, %7, %15 : vector<4x1xi32>
    %17 = arith.andi %14, %16 : vector<4x1xi1>
    %cst_15 = arith.constant 0.000000e+00 : f32
    %18 = vector.shape_cast %17 : vector<4x1xi1> to vector<4x1xi1>
    %19 = vector.broadcast %18 : vector<4x1xi1> to vector<4x32xi1>
    %20 = vector.broadcast %cst_15 : f32 to vector<4x32xf32>
    %21 = arith.select %19, %12, %20 : vector<4x32xi1>, vector<4x32xf32>
    %22 = arith.addf %8, %21 : vector<4x32xf32>
    %c6 = arith.constant 6 : index
    %c0_16 = arith.constant 0 : index
    %23 = vector.load %arg9[%c6, %c0_16] : memref<24x64xbf16, #tpu.memory_space<vmem>>, vector<4x16xbf16>
    %c1 = arith.constant 1 : index
    %c0_17 = arith.constant 0 : index
    %c0_18 = arith.constant 0 : index
    %24 = vector.load %arg2[%c1, %c0_17, %c0_18] : memref<18x16x32xbf16, #tpu.memory_space<vmem>>, vector<1x16x32xbf16>
    %25 = vector.shape_cast %24 : vector<1x16x32xbf16> to vector<16x32xbf16>
    %cst_19 = arith.constant dense<0.000000e+00> : vector<4x32xf32>
    %26 = tpu.matmul %23, %25, %cst_19 {dimension_numbers = #tpu.dot_dimension_numbers<[1], [0], [0], [1], [0, 0, 1, 1], [], []>} : vector<4x16xbf16>, vector<16x32xbf16>, vector<4x32xf32> -> vector<4x32xf32>
    %27 = arith.addf %22, %26 : vector<4x32xf32>
    %c7 = arith.constant 7 : index
    %c0_20 = arith.constant 0 : index
    %28 = vector.load %arg9[%c7, %c0_20] : memref<24x64xbf16, #tpu.memory_space<vmem>>, vector<4x16xbf16>
    %c2 = arith.constant 2 : index
    %c0_21 = arith.constant 0 : index
    %c0_22 = arith.constant 0 : index
    %29 = vector.load %arg2[%c2, %c0_21, %c0_22] : memref<18x16x32xbf16, #tpu.memory_space<vmem>>, vector<1x16x32xbf16>
    %30 = vector.shape_cast %29 : vector<1x16x32xbf16> to vector<16x32xbf16>
    %cst_23 = arith.constant dense<0.000000e+00> : vector<4x32xf32>
    %31 = tpu.matmul %28, %30, %cst_23 {dimension_numbers = #tpu.dot_dimension_numbers<[1], [0], [0], [1], [0, 0, 1, 1], [], []>} : vector<4x16xbf16>, vector<16x32xbf16>, vector<4x32xf32> -> vector<4x32xf32>
    %c0_i32 = arith.constant 0 : i32
    %32 = vector.broadcast %c0_i32 : i32 to vector<4x1xi32>
    %33 = arith.cmpi sge, %7, %32 : vector<4x1xi32>
    %c1_i32_24 = arith.constant 1 : i32
    %34 = vector.broadcast %c1_i32_24 : i32 to vector<4x1xi32>
    %35 = arith.cmpi slt, %7, %34 : vector<4x1xi32>
    %36 = arith.andi %33, %35 : vector<4x1xi1>
    %cst_25 = arith.constant 0.000000e+00 : f32
    %37 = vector.shape_cast %36 : vector<4x1xi1> to vector<4x1xi1>
    %38 = vector.broadcast %37 : vector<4x1xi1> to vector<4x32xi1>
    %39 = vector.broadcast %cst_25 : f32 to vector<4x32xf32>
    %40 = arith.select %38, %31, %39 : vector<4x32xi1>, vector<4x32xf32>
    %41 = arith.addf %27, %40 : vector<4x32xf32>
    %c7_26 = arith.constant 7 : index
    %c0_27 = arith.constant 0 : index
    %42 = vector.load %arg9[%c7_26, %c0_27] : memref<24x64xbf16, #tpu.memory_space<vmem>>, vector<4x16xbf16>
    %c3 = arith.constant 3 : index
    %c0_28 = arith.constant 0 : index
    %c0_29 = arith.constant 0 : index
    %43 = vector.load %arg2[%c3, %c0_28, %c0_29] : memref<18x16x32xbf16, #tpu.memory_space<vmem>>, vector<1x16x32xbf16>
    %44 = vector.shape_cast %43 : vector<1x16x32xbf16> to vector<16x32xbf16>
    %cst_30 = arith.constant dense<0.000000e+00> : vector<4x32xf32>
    %45 = tpu.matmul %42, %44, %cst_30 {dimension_numbers = #tpu.dot_dimension_numbers<[1], [0], [0], [1], [0, 0, 1, 1], [], []>} : vector<4x16xbf16>, vector<16x32xbf16>, vector<4x32xf32> -> vector<4x32xf32>
    %c1_i32_31 = arith.constant 1 : i32
    %46 = vector.broadcast %c1_i32_31 : i32 to vector<4x1xi32>
    %47 = arith.cmpi sge, %7, %46 : vector<4x1xi32>
    %c2_i32_32 = arith.constant 2 : i32
    %48 = vector.broadcast %c2_i32_32 : i32 to vector<4x1xi32>
    %49 = arith.cmpi slt, %7, %48 : vector<4x1xi32>
    %50 = arith.andi %47, %49 : vector<4x1xi1>
    %cst_33 = arith.constant 0.000000e+00 : f32
    %51 = vector.shape_cast %50 : vector<4x1xi1> to vector<4x1xi1>
    %52 = vector.broadcast %51 : vector<4x1xi1> to vector<4x32xi1>
    %53 = vector.broadcast %cst_33 : f32 to vector<4x32xf32>
    %54 = arith.select %52, %45, %53 : vector<4x32xi1>, vector<4x32xf32>
    %55 = arith.addf %41, %54 : vector<4x32xf32>
    %c8_34 = arith.constant 8 : index
    %c0_35 = arith.constant 0 : index
    %56 = vector.load %arg9[%c8_34, %c0_35] : memref<24x64xbf16, #tpu.memory_space<vmem>>, vector<4x16xbf16>
    %c4 = arith.constant 4 : index
    %c0_36 = arith.constant 0 : index
    %c0_37 = arith.constant 0 : index
    %57 = vector.load %arg2[%c4, %c0_36, %c0_37] : memref<18x16x32xbf16, #tpu.memory_space<vmem>>, vector<1x16x32xbf16>
    %58 = vector.shape_cast %57 : vector<1x16x32xbf16> to vector<16x32xbf16>
    %cst_38 = arith.constant dense<0.000000e+00> : vector<4x32xf32>
    %59 = tpu.matmul %56, %58, %cst_38 {dimension_numbers = #tpu.dot_dimension_numbers<[1], [0], [0], [1], [0, 0, 1, 1], [], []>} : vector<4x16xbf16>, vector<16x32xbf16>, vector<4x32xf32> -> vector<4x32xf32>
    %60 = arith.addf %55, %59 : vector<4x32xf32>
    %c9 = arith.constant 9 : index
    %c0_39 = arith.constant 0 : index
    %61 = vector.load %arg9[%c9, %c0_39] : memref<24x64xbf16, #tpu.memory_space<vmem>>, vector<4x16xbf16>
    %c5_40 = arith.constant 5 : index
    %c0_41 = arith.constant 0 : index
    %c0_42 = arith.constant 0 : index
    %62 = vector.load %arg2[%c5_40, %c0_41, %c0_42] : memref<18x16x32xbf16, #tpu.memory_space<vmem>>, vector<1x16x32xbf16>
    %63 = vector.shape_cast %62 : vector<1x16x32xbf16> to vector<16x32xbf16>
    %cst_43 = arith.constant dense<0.000000e+00> : vector<4x32xf32>
    %64 = tpu.matmul %61, %63, %cst_43 {dimension_numbers = #tpu.dot_dimension_numbers<[1], [0], [0], [1], [0, 0, 1, 1], [], []>} : vector<4x16xbf16>, vector<16x32xbf16>, vector<4x32xf32> -> vector<4x32xf32>
    %c0_i32_44 = arith.constant 0 : i32
    %65 = vector.broadcast %c0_i32_44 : i32 to vector<4x1xi32>
    %66 = arith.cmpi sge, %7, %65 : vector<4x1xi32>
    %c1_i32_45 = arith.constant 1 : i32
    %67 = vector.broadcast %c1_i32_45 : i32 to vector<4x1xi32>
    %68 = arith.cmpi slt, %7, %67 : vector<4x1xi32>
    %69 = arith.andi %66, %68 : vector<4x1xi1>
    %cst_46 = arith.constant 0.000000e+00 : f32
    %70 = vector.shape_cast %69 : vector<4x1xi1> to vector<4x1xi1>
    %71 = vector.broadcast %70 : vector<4x1xi1> to vector<4x32xi1>
    %72 = vector.broadcast %cst_46 : f32 to vector<4x32xf32>
    %73 = arith.select %71, %64, %72 : vector<4x32xi1>, vector<4x32xf32>
    %74 = arith.addf %60, %73 : vector<4x32xf32>
    %c9_47 = arith.constant 9 : index
    %c0_48 = arith.constant 0 : index
    %75 = vector.load %arg9[%c9_47, %c0_48] : memref<24x64xbf16, #tpu.memory_space<vmem>>, vector<4x16xbf16>
    %c6_49 = arith.constant 6 : index
    %c0_50 = arith.constant 0 : index
    %c0_51 = arith.constant 0 : index
    %76 = vector.load %arg2[%c6_49, %c0_50, %c0_51] : memref<18x16x32xbf16, #tpu.memory_space<vmem>>, vector<1x16x32xbf16>
    %77 = vector.shape_cast %76 : vector<1x16x32xbf16> to vector<16x32xbf16>
    %cst_52 = arith.constant dense<0.000000e+00> : vector<4x32xf32>
    %78 = tpu.matmul %75, %77, %cst_52 {dimension_numbers = #tpu.dot_dimension_numbers<[1], [0], [0], [1], [0, 0, 1, 1], [], []>} : vector<4x16xbf16>, vector<16x32xbf16>, vector<4x32xf32> -> vector<4x32xf32>
    %c1_i32_53 = arith.constant 1 : i32
    %79 = vector.broadcast %c1_i32_53 : i32 to vector<4x1xi32>
    %80 = arith.cmpi sge, %7, %79 : vector<4x1xi32>
    %c2_i32_54 = arith.constant 2 : i32
    %81 = vector.broadcast %c2_i32_54 : i32 to vector<4x1xi32>
    %82 = arith.cmpi slt, %7, %81 : vector<4x1xi32>
    %83 = arith.andi %80, %82 : vector<4x1xi1>
    %cst_55 = arith.constant 0.000000e+00 : f32
    %84 = vector.shape_cast %83 : vector<4x1xi1> to vector<4x1xi1>
    %85 = vector.broadcast %84 : vector<4x1xi1> to vector<4x32xi1>
    %86 = vector.broadcast %cst_55 : f32 to vector<4x32xf32>
    %87 = arith.select %85, %78, %86 : vector<4x32xi1>, vector<4x32xf32>
    %88 = arith.addf %74, %87 : vector<4x32xf32>
    %c10 = arith.constant 10 : index
    %c0_56 = arith.constant 0 : index
    %89 = vector.load %arg9[%c10, %c0_56] : memref<24x64xbf16, #tpu.memory_space<vmem>>, vector<4x16xbf16>
    %c7_57 = arith.constant 7 : index
    %c0_58 = arith.constant 0 : index
    %c0_59 = arith.constant 0 : index
    %90 = vector.load %arg2[%c7_57, %c0_58, %c0_59] : memref<18x16x32xbf16, #tpu.memory_space<vmem>>, vector<1x16x32xbf16>
    %91 = vector.shape_cast %90 : vector<1x16x32xbf16> to vector<16x32xbf16>
    %cst_60 = arith.constant dense<0.000000e+00> : vector<4x32xf32>
    %92 = tpu.matmul %89, %91, %cst_60 {dimension_numbers = #tpu.dot_dimension_numbers<[1], [0], [0], [1], [0, 0, 1, 1], [], []>} : vector<4x16xbf16>, vector<16x32xbf16>, vector<4x32xf32> -> vector<4x32xf32>
    %93 = arith.addf %88, %92 : vector<4x32xf32>
    %c11 = arith.constant 11 : index
    %c0_61 = arith.constant 0 : index
    %94 = vector.load %arg9[%c11, %c0_61] : memref<24x64xbf16, #tpu.memory_space<vmem>>, vector<4x16xbf16>
    %c8_62 = arith.constant 8 : index
    %c0_63 = arith.constant 0 : index
    %c0_64 = arith.constant 0 : index
    %95 = vector.load %arg2[%c8_62, %c0_63, %c0_64] : memref<18x16x32xbf16, #tpu.memory_space<vmem>>, vector<1x16x32xbf16>
    %96 = vector.shape_cast %95 : vector<1x16x32xbf16> to vector<16x32xbf16>
    %cst_65 = arith.constant dense<0.000000e+00> : vector<4x32xf32>
    %97 = tpu.matmul %94, %96, %cst_65 {dimension_numbers = #tpu.dot_dimension_numbers<[1], [0], [0], [1], [0, 0, 1, 1], [], []>} : vector<4x16xbf16>, vector<16x32xbf16>, vector<4x32xf32> -> vector<4x32xf32>
    %c0_i32_66 = arith.constant 0 : i32
    %98 = vector.broadcast %c0_i32_66 : i32 to vector<4x1xi32>
    %99 = arith.cmpi sge, %7, %98 : vector<4x1xi32>
    %c1_i32_67 = arith.constant 1 : i32
    %100 = vector.broadcast %c1_i32_67 : i32 to vector<4x1xi32>
    %101 = arith.cmpi slt, %7, %100 : vector<4x1xi32>
    %102 = arith.andi %99, %101 : vector<4x1xi1>
    %cst_68 = arith.constant 0.000000e+00 : f32
    %103 = vector.shape_cast %102 : vector<4x1xi1> to vector<4x1xi1>
    %104 = vector.broadcast %103 : vector<4x1xi1> to vector<4x32xi1>
    %105 = vector.broadcast %cst_68 : f32 to vector<4x32xf32>
    %106 = arith.select %104, %97, %105 : vector<4x32xi1>, vector<4x32xf32>
    %107 = arith.addf %93, %106 : vector<4x32xf32>
    %c2_69 = arith.constant 2 : index
    %c16 = arith.constant 16 : index
    %108 = vector.load %arg9[%c2_69, %c16] : memref<24x64xbf16, #tpu.memory_space<vmem>>, vector<4x16xbf16>
    %c9_70 = arith.constant 9 : index
    %c0_71 = arith.constant 0 : index
    %c0_72 = arith.constant 0 : index
    %109 = vector.load %arg2[%c9_70, %c0_71, %c0_72] : memref<18x16x32xbf16, #tpu.memory_space<vmem>>, vector<1x16x32xbf16>
    %110 = vector.shape_cast %109 : vector<1x16x32xbf16> to vector<16x32xbf16>
    %cst_73 = arith.constant dense<0.000000e+00> : vector<4x32xf32>
    %111 = tpu.matmul %108, %110, %cst_73 {dimension_numbers = #tpu.dot_dimension_numbers<[1], [0], [0], [1], [0, 0, 1, 1], [], []>} : vector<4x16xbf16>, vector<16x32xbf16>, vector<4x32xf32> -> vector<4x32xf32>
    %c2_i32_74 = arith.constant 2 : i32
    %112 = vector.broadcast %c2_i32_74 : i32 to vector<4x1xi32>
    %113 = arith.cmpi sge, %7, %112 : vector<4x1xi32>
    %c2_i32_75 = arith.constant 2 : i32
    %114 = vector.broadcast %c2_i32_75 : i32 to vector<4x1xi32>
    %115 = arith.cmpi slt, %7, %114 : vector<4x1xi32>
    %116 = arith.andi %113, %115 : vector<4x1xi1>
    %cst_76 = arith.constant 0.000000e+00 : f32
    %117 = vector.shape_cast %116 : vector<4x1xi1> to vector<4x1xi1>
    %118 = vector.broadcast %117 : vector<4x1xi1> to vector<4x32xi1>
    %119 = vector.broadcast %cst_76 : f32 to vector<4x32xf32>
    %120 = arith.select %118, %111, %119 : vector<4x32xi1>, vector<4x32xf32>
    %121 = arith.addf %107, %120 : vector<4x32xf32>
    %c4_77 = arith.constant 4 : index
    %c16_78 = arith.constant 16 : index
    %122 = vector.load %arg9[%c4_77, %c16_78] : memref<24x64xbf16, #tpu.memory_space<vmem>>, vector<4x16xbf16>
    %c10_79 = arith.constant 10 : index
    %c0_80 = arith.constant 0 : index
    %c0_81 = arith.constant 0 : index
    %123 = vector.load %arg2[%c10_79, %c0_80, %c0_81] : memref<18x16x32xbf16, #tpu.memory_space<vmem>>, vector<1x16x32xbf16>
    %124 = vector.shape_cast %123 : vector<1x16x32xbf16> to vector<16x32xbf16>
    %cst_82 = arith.constant dense<0.000000e+00> : vector<4x32xf32>
    %125 = tpu.matmul %122, %124, %cst_82 {dimension_numbers = #tpu.dot_dimension_numbers<[1], [0], [0], [1], [0, 0, 1, 1], [], []>} : vector<4x16xbf16>, vector<16x32xbf16>, vector<4x32xf32> -> vector<4x32xf32>
    %126 = arith.addf %121, %125 : vector<4x32xf32>
    %c6_83 = arith.constant 6 : index
    %c16_84 = arith.constant 16 : index
    %127 = vector.load %arg9[%c6_83, %c16_84] : memref<24x64xbf16, #tpu.memory_space<vmem>>, vector<4x16xbf16>
    %c11_85 = arith.constant 11 : index
    %c0_86 = arith.constant 0 : index
    %c0_87 = arith.constant 0 : index
    %128 = vector.load %arg2[%c11_85, %c0_86, %c0_87] : memref<18x16x32xbf16, #tpu.memory_space<vmem>>, vector<1x16x32xbf16>
    %129 = vector.shape_cast %128 : vector<1x16x32xbf16> to vector<16x32xbf16>
    %cst_88 = arith.constant dense<0.000000e+00> : vector<4x32xf32>
    %130 = tpu.matmul %127, %129, %cst_88 {dimension_numbers = #tpu.dot_dimension_numbers<[1], [0], [0], [1], [0, 0, 1, 1], [], []>} : vector<4x16xbf16>, vector<16x32xbf16>, vector<4x32xf32> -> vector<4x32xf32>
    %c0_i32_89 = arith.constant 0 : i32
    %131 = vector.broadcast %c0_i32_89 : i32 to vector<4x1xi32>
    %132 = arith.cmpi sge, %7, %131 : vector<4x1xi32>
    %c0_i32_90 = arith.constant 0 : i32
    %133 = vector.broadcast %c0_i32_90 : i32 to vector<4x1xi32>
    %134 = arith.cmpi slt, %7, %133 : vector<4x1xi32>
    %135 = arith.andi %132, %134 : vector<4x1xi1>
    %cst_91 = arith.constant 0.000000e+00 : f32
    %136 = vector.shape_cast %135 : vector<4x1xi1> to vector<4x1xi1>
    %137 = vector.broadcast %136 : vector<4x1xi1> to vector<4x32xi1>
    %138 = vector.broadcast %cst_91 : f32 to vector<4x32xf32>
    %139 = arith.select %137, %130, %138 : vector<4x32xi1>, vector<4x32xf32>
    %140 = arith.addf %126, %139 : vector<4x32xf32>
    %c6_92 = arith.constant 6 : index
    %c16_93 = arith.constant 16 : index
    %141 = vector.load %arg9[%c6_92, %c16_93] : memref<24x64xbf16, #tpu.memory_space<vmem>>, vector<4x16xbf16>
    %c12_94 = arith.constant 12 : index
    %c0_95 = arith.constant 0 : index
    %c0_96 = arith.constant 0 : index
    %142 = vector.load %arg2[%c12_94, %c0_95, %c0_96] : memref<18x16x32xbf16, #tpu.memory_space<vmem>>, vector<1x16x32xbf16>
    %143 = vector.shape_cast %142 : vector<1x16x32xbf16> to vector<16x32xbf16>
    %cst_97 = arith.constant dense<0.000000e+00> : vector<4x32xf32>
    %144 = tpu.matmul %141, %143, %cst_97 {dimension_numbers = #tpu.dot_dimension_numbers<[1], [0], [0], [1], [0, 0, 1, 1], [], []>} : vector<4x16xbf16>, vector<16x32xbf16>, vector<4x32xf32> -> vector<4x32xf32>
    %c2_i32_98 = arith.constant 2 : i32
    %145 = vector.broadcast %c2_i32_98 : i32 to vector<4x1xi32>
    %146 = arith.cmpi sge, %7, %145 : vector<4x1xi32>
    %c2_i32_99 = arith.constant 2 : i32
    %147 = vector.broadcast %c2_i32_99 : i32 to vector<4x1xi32>
    %148 = arith.cmpi slt, %7, %147 : vector<4x1xi32>
    %149 = arith.andi %146, %148 : vector<4x1xi1>
    %cst_100 = arith.constant 0.000000e+00 : f32
    %150 = vector.shape_cast %149 : vector<4x1xi1> to vector<4x1xi1>
    %151 = vector.broadcast %150 : vector<4x1xi1> to vector<4x32xi1>
    %152 = vector.broadcast %cst_100 : f32 to vector<4x32xf32>
    %153 = arith.select %151, %144, %152 : vector<4x32xi1>, vector<4x32xf32>
    %154 = arith.addf %140, %153 : vector<4x32xf32>
    %c8_101 = arith.constant 8 : index
    %c16_102 = arith.constant 16 : index
    %155 = vector.load %arg9[%c8_101, %c16_102] : memref<24x64xbf16, #tpu.memory_space<vmem>>, vector<4x16xbf16>
    %c13 = arith.constant 13 : index
    %c0_103 = arith.constant 0 : index
    %c0_104 = arith.constant 0 : index
    %156 = vector.load %arg2[%c13, %c0_103, %c0_104] : memref<18x16x32xbf16, #tpu.memory_space<vmem>>, vector<1x16x32xbf16>
    %157 = vector.shape_cast %156 : vector<1x16x32xbf16> to vector<16x32xbf16>
    %cst_105 = arith.constant dense<0.000000e+00> : vector<4x32xf32>
    %158 = tpu.matmul %155, %157, %cst_105 {dimension_numbers = #tpu.dot_dimension_numbers<[1], [0], [0], [1], [0, 0, 1, 1], [], []>} : vector<4x16xbf16>, vector<16x32xbf16>, vector<4x32xf32> -> vector<4x32xf32>
    %159 = arith.addf %154, %158 : vector<4x32xf32>
    %c10_106 = arith.constant 10 : index
    %c16_107 = arith.constant 16 : index
    %160 = vector.load %arg9[%c10_106, %c16_107] : memref<24x64xbf16, #tpu.memory_space<vmem>>, vector<4x16xbf16>
    %c14 = arith.constant 14 : index
    %c0_108 = arith.constant 0 : index
    %c0_109 = arith.constant 0 : index
    %161 = vector.load %arg2[%c14, %c0_108, %c0_109] : memref<18x16x32xbf16, #tpu.memory_space<vmem>>, vector<1x16x32xbf16>
    %162 = vector.shape_cast %161 : vector<1x16x32xbf16> to vector<16x32xbf16>
    %cst_110 = arith.constant dense<0.000000e+00> : vector<4x32xf32>
    %163 = tpu.matmul %160, %162, %cst_110 {dimension_numbers = #tpu.dot_dimension_numbers<[1], [0], [0], [1], [0, 0, 1, 1], [], []>} : vector<4x16xbf16>, vector<16x32xbf16>, vector<4x32xf32> -> vector<4x32xf32>
    %c0_i32_111 = arith.constant 0 : i32
    %164 = vector.broadcast %c0_i32_111 : i32 to vector<4x1xi32>
    %165 = arith.cmpi sge, %7, %164 : vector<4x1xi32>
    %c0_i32_112 = arith.constant 0 : i32
    %166 = vector.broadcast %c0_i32_112 : i32 to vector<4x1xi32>
    %167 = arith.cmpi slt, %7, %166 : vector<4x1xi32>
    %168 = arith.andi %165, %167 : vector<4x1xi1>
    %cst_113 = arith.constant 0.000000e+00 : f32
    %169 = vector.shape_cast %168 : vector<4x1xi1> to vector<4x1xi1>
    %170 = vector.broadcast %169 : vector<4x1xi1> to vector<4x32xi1>
    %171 = vector.broadcast %cst_113 : f32 to vector<4x32xf32>
    %172 = arith.select %170, %163, %171 : vector<4x32xi1>, vector<4x32xf32>
    %173 = arith.addf %159, %172 : vector<4x32xf32>
    %c10_114 = arith.constant 10 : index
    %c16_115 = arith.constant 16 : index
    %174 = vector.load %arg9[%c10_114, %c16_115] : memref<24x64xbf16, #tpu.memory_space<vmem>>, vector<4x16xbf16>
    %c15 = arith.constant 15 : index
    %c0_116 = arith.constant 0 : index
    %c0_117 = arith.constant 0 : index
    %175 = vector.load %arg2[%c15, %c0_116, %c0_117] : memref<18x16x32xbf16, #tpu.memory_space<vmem>>, vector<1x16x32xbf16>
    %176 = vector.shape_cast %175 : vector<1x16x32xbf16> to vector<16x32xbf16>
    %cst_118 = arith.constant dense<0.000000e+00> : vector<4x32xf32>
    %177 = tpu.matmul %174, %176, %cst_118 {dimension_numbers = #tpu.dot_dimension_numbers<[1], [0], [0], [1], [0, 0, 1, 1], [], []>} : vector<4x16xbf16>, vector<16x32xbf16>, vector<4x32xf32> -> vector<4x32xf32>
    %c2_i32_119 = arith.constant 2 : i32
    %178 = vector.broadcast %c2_i32_119 : i32 to vector<4x1xi32>
    %179 = arith.cmpi sge, %7, %178 : vector<4x1xi32>
    %c2_i32_120 = arith.constant 2 : i32
    %180 = vector.broadcast %c2_i32_120 : i32 to vector<4x1xi32>
    %181 = arith.cmpi slt, %7, %180 : vector<4x1xi32>
    %182 = arith.andi %179, %181 : vector<4x1xi1>
    %cst_121 = arith.constant 0.000000e+00 : f32
    %183 = vector.shape_cast %182 : vector<4x1xi1> to vector<4x1xi1>
    %184 = vector.broadcast %183 : vector<4x1xi1> to vector<4x32xi1>
    %185 = vector.broadcast %cst_121 : f32 to vector<4x32xf32>
    %186 = arith.select %184, %177, %185 : vector<4x32xi1>, vector<4x32xf32>
    %187 = arith.addf %173, %186 : vector<4x32xf32>
    %c12_122 = arith.constant 12 : index
    %c16_123 = arith.constant 16 : index
    %188 = vector.load %arg9[%c12_122, %c16_123] : memref<24x64xbf16, #tpu.memory_space<vmem>>, vector<4x16xbf16>
    %c16_124 = arith.constant 16 : index
    %c0_125 = arith.constant 0 : index
    %c0_126 = arith.constant 0 : index
    %189 = vector.load %arg2[%c16_124, %c0_125, %c0_126] : memref<18x16x32xbf16, #tpu.memory_space<vmem>>, vector<1x16x32xbf16>
    %190 = vector.shape_cast %189 : vector<1x16x32xbf16> to vector<16x32xbf16>
    %cst_127 = arith.constant dense<0.000000e+00> : vector<4x32xf32>
    %191 = tpu.matmul %188, %190, %cst_127 {dimension_numbers = #tpu.dot_dimension_numbers<[1], [0], [0], [1], [0, 0, 1, 1], [], []>} : vector<4x16xbf16>, vector<16x32xbf16>, vector<4x32xf32> -> vector<4x32xf32>
    %192 = arith.addf %187, %191 : vector<4x32xf32>
    %c14_128 = arith.constant 14 : index
    %c16_129 = arith.constant 16 : index
    %193 = vector.load %arg9[%c14_128, %c16_129] : memref<24x64xbf16, #tpu.memory_space<vmem>>, vector<4x16xbf16>
    %c17 = arith.constant 17 : index
    %c0_130 = arith.constant 0 : index
    %c0_131 = arith.constant 0 : index
    %194 = vector.load %arg2[%c17, %c0_130, %c0_131] : memref<18x16x32xbf16, #tpu.memory_space<vmem>>, vector<1x16x32xbf16>
    %195 = vector.shape_cast %194 : vector<1x16x32xbf16> to vector<16x32xbf16>
    %cst_132 = arith.constant dense<0.000000e+00> : vector<4x32xf32>
    %196 = tpu.matmul %193, %195, %cst_132 {dimension_numbers = #tpu.dot_dimension_numbers<[1], [0], [0], [1], [0, 0, 1, 1], [], []>} : vector<4x16xbf16>, vector<16x32xbf16>, vector<4x32xf32> -> vector<4x32xf32>
    %c0_i32_133 = arith.constant 0 : i32
    %197 = vector.broadcast %c0_i32_133 : i32 to vector<4x1xi32>
    %198 = arith.cmpi sge, %7, %197 : vector<4x1xi32>
    %c0_i32_134 = arith.constant 0 : i32
    %199 = vector.broadcast %c0_i32_134 : i32 to vector<4x1xi32>
    %200 = arith.cmpi slt, %7, %199 : vector<4x1xi32>
    %201 = arith.andi %198, %200 : vector<4x1xi1>
    %cst_135 = arith.constant 0.000000e+00 : f32
    %202 = vector.shape_cast %201 : vector<4x1xi1> to vector<4x1xi1>
    %203 = vector.broadcast %202 : vector<4x1xi1> to vector<4x32xi1>
    %204 = vector.broadcast %cst_135 : f32 to vector<4x32xf32>
    %205 = arith.select %203, %196, %204 : vector<4x32xi1>, vector<4x32xf32>
    %206 = arith.addf %192, %205 : vector<4x32xf32>
    %c0_136 = arith.constant 0 : index
    %c0_137 = arith.constant 0 : index
    %207 = vector.load %arg3[%c0_136, %c0_137] : memref<1x32xf32, #tpu.memory_space<vmem>>, vector<1x32xf32>
    %208 = vector.broadcast %207 : vector<1x32xf32> to vector<4x32xf32>
    %209 = arith.mulf %206, %208 : vector<4x32xf32>
    %c0_138 = arith.constant 0 : index
    %c0_139 = arith.constant 0 : index
    %210 = vector.load %arg4[%c0_138, %c0_139] : memref<1x32xf32, #tpu.memory_space<vmem>>, vector<1x32xf32>
    %211 = vector.broadcast %210 : vector<1x32xf32> to vector<4x32xf32>
    %212 = arith.addf %209, %211 : vector<4x32xf32>
    %cst_140 = arith.constant 0.000000e+00 : f32
    %213 = vector.broadcast %cst_140 : f32 to vector<4x32xf32>
    %214 = arith.maximumf %212, %213 : vector<4x32xf32>
    %215 = arith.truncf %214 : vector<4x32xf32> to vector<4x32xbf16>
    %c0_141 = arith.constant 0 : index
    %c0_142 = arith.constant 0 : index
    %c0_143 = arith.constant 0 : index
    %216 = vector.load %arg6[%c0_141, %c0_142, %c0_143] : memref<1x4x32xbf16, #tpu.memory_space<vmem>>, vector<1x4x32xbf16>
    %217 = vector.shape_cast %216 : vector<1x4x32xbf16> to vector<4x32xbf16>
    %218 = vector.shape_cast %215 : vector<4x32xbf16> to vector<1x4x32xbf16>
    tpu.vector_store %arg6[%c0_141, %c0_142, %c0_143], %218 {strides = array<i32>} : memref<1x4x32xbf16, #tpu.memory_space<vmem>>, vector<1x4x32xbf16>,
    %cst_144 = arith.constant dense<0.000000e+00> : vector<32xf32>
    %219 = vector.multi_reduction <add>, %214, %cst_144 [0] : vector<4x32xf32> to vector<32xf32>
    %220 = vector.shape_cast %219 : vector<32xf32> to vector<1x32xf32>
    %cst_145 = arith.constant 2.500000e-01 : f32
    %221 = vector.broadcast %cst_145 : f32 to vector<1x32xf32>
    %222 = arith.mulf %220, %221 : vector<1x32xf32>
    %c0_146 = arith.constant 0 : index
    %c0_147 = arith.constant 0 : index
    %c0_148 = arith.constant 0 : index
    %223 = vector.load %arg7[%c0_146, %c0_147, %c0_148] : memref<1x1x32xf32, #tpu.memory_space<vmem>>, vector<1x1x32xf32>
    %224 = vector.shape_cast %223 : vector<1x1x32xf32> to vector<1x32xf32>
    %225 = vector.shape_cast %222 : vector<1x32xf32> to vector<1x1x32xf32>
    tpu.vector_store %arg7[%c0_146, %c0_147, %c0_148], %225 {strides = array<i32>} : memref<1x1x32xf32, #tpu.memory_space<vmem>>, vector<1x1x32xf32>,
    %c0_149 = arith.constant 0 : index
    %c0_150 = arith.constant 0 : index
    %c32 = arith.constant 32 : index
    %226 = vector.load %arg1[%c0_149, %c0_150, %c32] : memref<1x4x64xbf16, #tpu.memory_space<vmem>>, vector<1x4x32xbf16>
    %227 = vector.shape_cast %226 : vector<1x4x32xbf16> to vector<4x32xbf16>
    %228 = arith.extf %227 : vector<4x32xbf16> to vector<4x32xf32>
    %cst_151 = arith.constant 1.000000e+00 : f32
    %229 = vector.broadcast %cst_151 : f32 to vector<4x32xf32>
    %230 = arith.mulf %228, %229 : vector<4x32xf32>
    %231 = arith.truncf %230 : vector<4x32xf32> to vector<4x32xbf16>
    %c0_152 = arith.constant 0 : index
    %c0_153 = arith.constant 0 : index
    %c0_154 = arith.constant 0 : index
    %232 = vector.load %arg8[%c0_152, %c0_153, %c0_154] : memref<1x4x32xbf16, #tpu.memory_space<vmem>>, vector<1x4x32xbf16>
    %233 = vector.shape_cast %232 : vector<1x4x32xbf16> to vector<4x32xbf16>
    %234 = vector.shape_cast %231 : vector<4x32xbf16> to vector<1x4x32xbf16>
    tpu.vector_store %arg8[%c0_152, %c0_153, %c0_154], %234 {strides = array<i32>} : memref<1x4x32xbf16, #tpu.memory_space<vmem>>, vector<1x4x32xbf16>,
    return
  }
  func.func @transform_0(%arg0: i32) -> (i32, i32, i32) {
    %c0_i32 = arith.constant 0 : i32
    %c0_i32_0 = arith.constant 0 : i32
    %c0_i32_1 = arith.constant 0 : i32
    return %arg0, %c0_i32, %c0_i32_0 : i32, i32, i32
  }
  func.func @transform_1(%arg0: i32) -> (i32, i32, i32) {
    %c0_i32 = arith.constant 0 : i32
    %c0_i32_0 = arith.constant 0 : i32
    %c0_i32_1 = arith.constant 0 : i32
    %c0_i32_2 = arith.constant 0 : i32
    return %c0_i32, %c0_i32_0, %c0_i32_1 : i32, i32, i32
  }
  func.func @transform_2(%arg0: i32) -> (i32, i32) {
    %c0_i32 = arith.constant 0 : i32
    %c0_i32_0 = arith.constant 0 : i32
    %c0_i32_1 = arith.constant 0 : i32
    return %c0_i32, %c0_i32_0 : i32, i32
  }
  func.func @transform_3(%arg0: i32) -> (i32, i32) {
    %c0_i32 = arith.constant 0 : i32
    %c0_i32_0 = arith.constant 0 : i32
    %c0_i32_1 = arith.constant 0 : i32
    return %c0_i32, %c0_i32_0 : i32, i32
  }
  func.func @transform_4(%arg0: i32) -> (i32, i32) {
    %c0_i32 = arith.constant 0 : i32
    %c0_i32_0 = arith.constant 0 : i32
    %c0_i32_1 = arith.constant 0 : i32
    return %c0_i32, %c0_i32_0 : i32, i32
  }
  func.func @transform_5(%arg0: i32) -> (i32, i32, i32) {
    %c0_i32 = arith.constant 0 : i32
    %c0_i32_0 = arith.constant 0 : i32
    %c0_i32_1 = arith.constant 0 : i32
    return %arg0, %c0_i32, %c0_i32_0 : i32, i32, i32
  }
  func.func @transform_6(%arg0: i32) -> (i32, i32, i32) {
    %c0_i32 = arith.constant 0 : i32
    %c0_i32_0 = arith.constant 0 : i32
    %c0_i32_1 = arith.constant 0 : i32
    return %arg0, %c0_i32, %c0_i32_0 : i32, i32, i32
  }
  func.func @transform_7(%arg0: i32) -> (i32, i32, i32) {
    %c0_i32 = arith.constant 0 : i32
    %c0_i32_0 = arith.constant 0 : i32
    %c0_i32_1 = arith.constant 0 : i32
    return %arg0, %c0_i32, %c0_i32_0 : i32, i32, i32
  }
}

module attributes {stable_mosaic.version = 11 : i64} {
  func.func @_pw_kernel(%arg0: i32, %arg1: i32, %arg2: memref<1x4x32xbf16, #tpu.memory_space<vmem>>, %arg3: memref<32x32xbf16, #tpu.memory_space<vmem>>, %arg4: memref<1x32xf32, #tpu.memory_space<vmem>>, %arg5: memref<1x32xf32, #tpu.memory_space<vmem>>, %arg6: memref<1x1x32xf32, #tpu.memory_space<vmem>>, %arg7: memref<1x4x32xbf16, #tpu.memory_space<vmem>>, %arg8: memref<1x4x32xbf16, #tpu.memory_space<vmem>>) attributes {dimension_semantics = [#tpu.dimension_semantics<parallel>, #tpu.dimension_semantics<parallel>], iteration_bounds = array<i64: 2, 1>, scalar_prefetch = 0 : i64, scratch_operands = 0 : i64, tpu.core_type = #tpu.core_type<tc>, window_params = [{transform_indices = @transform_0, window_bounds = array<i64: 1, 4, 32>}, {pipeline_mode = #tpu.pipeline_mode<synchronous>, transform_indices = @transform_1, window_bounds = array<i64: 32, 32>}, {pipeline_mode = #tpu.pipeline_mode<synchronous>, transform_indices = @transform_2, window_bounds = array<i64: 1, 32>}, {pipeline_mode = #tpu.pipeline_mode<synchronous>, transform_indices = @transform_3, window_bounds = array<i64: 1, 32>}, {transform_indices = @transform_4, window_bounds = array<i64: 1, 1, 32>}, {transform_indices = @transform_5, window_bounds = array<i64: 1, 4, 32>}, {transform_indices = @transform_6, window_bounds = array<i64: 1, 4, 32>}]} {
    %c0 = arith.constant 0 : index
    %c0_0 = arith.constant 0 : index
    %c0_1 = arith.constant 0 : index
    %0 = vector.load %arg2[%c0, %c0_0, %c0_1] : memref<1x4x32xbf16, #tpu.memory_space<vmem>>, vector<1x4x32xbf16>
    %1 = vector.shape_cast %0 : vector<1x4x32xbf16> to vector<4x32xbf16>
    %2 = arith.extf %1 : vector<4x32xbf16> to vector<4x32xf32>
    %c0_2 = arith.constant 0 : index
    %c0_3 = arith.constant 0 : index
    %c0_4 = arith.constant 0 : index
    %3 = vector.load %arg6[%c0_2, %c0_3, %c0_4] : memref<1x1x32xf32, #tpu.memory_space<vmem>>, vector<1x1x32xf32>
    %4 = vector.shape_cast %3 : vector<1x1x32xf32> to vector<1x32xf32>
    %5 = vector.broadcast %4 : vector<1x32xf32> to vector<4x32xf32>
    %6 = arith.mulf %2, %5 : vector<4x32xf32>
    %7 = arith.truncf %6 : vector<4x32xf32> to vector<4x32xbf16>
    %c0_5 = arith.constant 0 : index
    %c0_6 = arith.constant 0 : index
    %8 = vector.load %arg3[%c0_5, %c0_6] : memref<32x32xbf16, #tpu.memory_space<vmem>>, vector<32x32xbf16>
    %cst = arith.constant dense<0.000000e+00> : vector<4x32xf32>
    %9 = tpu.matmul %7, %8, %cst {dimension_numbers = #tpu.dot_dimension_numbers<[1], [0], [0], [1], [0, 0, 1, 1], [], []>} : vector<4x32xbf16>, vector<32x32xbf16>, vector<4x32xf32> -> vector<4x32xf32>
    %c0_7 = arith.constant 0 : index
    %c0_8 = arith.constant 0 : index
    %10 = vector.load %arg4[%c0_7, %c0_8] : memref<1x32xf32, #tpu.memory_space<vmem>>, vector<1x32xf32>
    %11 = vector.broadcast %10 : vector<1x32xf32> to vector<4x32xf32>
    %12 = arith.mulf %9, %11 : vector<4x32xf32>
    %c0_9 = arith.constant 0 : index
    %c0_10 = arith.constant 0 : index
    %13 = vector.load %arg5[%c0_9, %c0_10] : memref<1x32xf32, #tpu.memory_space<vmem>>, vector<1x32xf32>
    %14 = vector.broadcast %13 : vector<1x32xf32> to vector<4x32xf32>
    %15 = arith.addf %12, %14 : vector<4x32xf32>
    %c0_11 = arith.constant 0 : index
    %c0_12 = arith.constant 0 : index
    %c0_13 = arith.constant 0 : index
    %16 = vector.load %arg7[%c0_11, %c0_12, %c0_13] : memref<1x4x32xbf16, #tpu.memory_space<vmem>>, vector<1x4x32xbf16>
    %17 = vector.shape_cast %16 : vector<1x4x32xbf16> to vector<4x32xbf16>
    %18 = arith.extf %17 : vector<4x32xbf16> to vector<4x32xf32>
    %19 = arith.addf %15, %18 : vector<4x32xf32>
    %cst_14 = arith.constant 0.000000e+00 : f32
    %20 = vector.broadcast %cst_14 : f32 to vector<4x32xf32>
    %21 = arith.maximumf %19, %20 : vector<4x32xf32>
    %22 = arith.truncf %21 : vector<4x32xf32> to vector<4x32xbf16>
    %c0_15 = arith.constant 0 : index
    %c0_16 = arith.constant 0 : index
    %c0_17 = arith.constant 0 : index
    %23 = vector.load %arg8[%c0_15, %c0_16, %c0_17] : memref<1x4x32xbf16, #tpu.memory_space<vmem>>, vector<1x4x32xbf16>
    %24 = vector.shape_cast %23 : vector<1x4x32xbf16> to vector<4x32xbf16>
    %25 = vector.shape_cast %22 : vector<4x32xbf16> to vector<1x4x32xbf16>
    tpu.vector_store %arg8[%c0_15, %c0_16, %c0_17], %25 {strides = array<i32>} : memref<1x4x32xbf16, #tpu.memory_space<vmem>>, vector<1x4x32xbf16>,
    return
  }
  func.func @transform_0(%arg0: i32, %arg1: i32) -> (i32, i32, i32) {
    %c0_i32 = arith.constant 0 : i32
    %c0_i32_0 = arith.constant 0 : i32
    return %arg0, %arg1, %c0_i32 : i32, i32, i32
  }
  func.func @transform_1(%arg0: i32, %arg1: i32) -> (i32, i32) {
    %c0_i32 = arith.constant 0 : i32
    %c0_i32_0 = arith.constant 0 : i32
    %c0_i32_1 = arith.constant 0 : i32
    return %c0_i32, %c0_i32_0 : i32, i32
  }
  func.func @transform_2(%arg0: i32, %arg1: i32) -> (i32, i32) {
    %c0_i32 = arith.constant 0 : i32
    %c0_i32_0 = arith.constant 0 : i32
    %c0_i32_1 = arith.constant 0 : i32
    return %c0_i32, %c0_i32_0 : i32, i32
  }
  func.func @transform_3(%arg0: i32, %arg1: i32) -> (i32, i32) {
    %c0_i32 = arith.constant 0 : i32
    %c0_i32_0 = arith.constant 0 : i32
    %c0_i32_1 = arith.constant 0 : i32
    return %c0_i32, %c0_i32_0 : i32, i32
  }
  func.func @transform_4(%arg0: i32, %arg1: i32) -> (i32, i32, i32) {
    %c0_i32 = arith.constant 0 : i32
    %c0_i32_0 = arith.constant 0 : i32
    %c0_i32_1 = arith.constant 0 : i32
    return %arg0, %c0_i32, %c0_i32_0 : i32, i32, i32
  }
  func.func @transform_5(%arg0: i32, %arg1: i32) -> (i32, i32, i32) {
    %c0_i32 = arith.constant 0 : i32
    %c0_i32_0 = arith.constant 0 : i32
    return %arg0, %arg1, %c0_i32 : i32, i32, i32
  }
  func.func @transform_6(%arg0: i32, %arg1: i32) -> (i32, i32, i32) {
    %c0_i32 = arith.constant 0 : i32
    %c0_i32_0 = arith.constant 0 : i32
    return %arg0, %arg1, %c0_i32 : i32, i32, i32
  }
}

</mosaic_0001>

<bundles_post_ra>
// kernel: forward.30
= control target key start
LH: loop header
LB: loop body
LE: loop exit
PB: predicated region body
PF: predicated region fallthrough
CT: control target
= control target key end

     0   :  { %v236_v0 = vmov 0.0|0.0   ;;  %vm237_vm0 = vmmov 0   ;;  %v238_v3 = vmov 0.0   ;;  %vm30_vm1 = vcmask 130048   ;;  %s290_s1 = inlined_call_operand.vmem [shape: f32[16,2], index: 1, kind: input, shape index: {}]   ;;  %s291_s0 = inlined_call_operand.vmem [shape: f32[2,16], index: 0, kind: input, shape index: {}]   ;;  %s292_s3 = inlined_call_operand.vmem [shape: f32[2,16], index: 3, kind: input, shape index: {}]   ;;  %s293_s2 = inlined_call_operand.vmem [shape: f32[1,2], index: 2, kind: input, shape index: {}]   ;;  %s294_s4 = inlined_call_operand.vmem [shape: f32[1,16], index: 4, kind: input, shape index: {}]   ;;  %s295_s5 = inlined_call_operand.vmem [shape: f32[2,16], index: 5, kind: output, shape index: {}]  }
   0x1   :  { %226 = vmatprep.subr.bf16.mxu0 %v236_v0  ;;  %v21_v1 = vld [vmem:[%s290_s1] sm:$0xff]  ;;  %v22_v2 = vld [vmem:[%s290_s1 + $0x8] sm:$0xff]  ;;  %218 = vmatprep.mubr.msk.f32.mxu0 %vm237_vm0, %v238_v3  ;;  %vm117_vm2 = vcmask 1041408   ;;  %vm113_vm3 = vcmask 15360   ;;  %vm197_vm4 = vcmask 123904  }
   0x2   :  { %v227_v4 = vpack.c.bf16 %v22_v2, %v21_v1  ;;  %221 = vmatprep.subr.mxu1 %v238_v3  ;;  %223 = vmatprep.mubr.msk.f32.mxu1 %vm237_vm0, %v238_v3  ;;  %v20_v5 = vld [vmem:[%s291_s0] sm:$0x3] }
   0x3   :  { %v105_v6 = vld [vmem:[%s292_s3] sm:$0x3] }
   0x4   :  { %228 = vmatpush3.bf16.msra.mxu0 %v227_v4  ;;  %222 = vmatpush3.msk.msra.mxu1 %vm117_vm2, %v105_v6  ;;  %v203_v7 = vld [vmem:[%s293_s2] ss:$0 sm:$0xff] }
   0x5   :  { %v205_v12 = vld [vmem:[%s294_s4] ss:$0 sm:$0xff] }
   0x7   :  { %219 = vmatmul.mubr.msk.f32.vlgmr.msra.gmra.mrb[0].mxu0 %vm30_vm1, %v20_v5 }
  0xda   :  { %v100_v8 = vpop.f32.mrb[0].mxu0 }
  0xdb   :  { %v101_v9 = vadd.f32 %v203_v7, %v100_v8  ;;  %v220_v10 = vpop.f32.mrb[1].mxu0 }
  0xdd   :  { %v104_v11 = vmax.f32 %v101_v9, 0.0 }
  0xdf   :  { %224 = vmatmul.mubr.msk.f32.vlgmr.msra.gmra.mrb[0].mxu1 %vm113_vm3, %v104_v11 }
 0x1b2   :  { %v187_v13 = vpop.f32.mrb[0].mxu1 }
 0x1b3   :  { %v188_v14 = vadd.f32 %v205_v12, %v187_v13  ;;  %v225_v15 = vpop.f32.mrb[1].mxu1 }
 0x1b5   :  { %v208_v16 = vmul.f32 -1.442695, %v188_v14 }
 0x1b7   :  { %232 = vpow2.f32 %v208_v16 }
 0x1c1   :  { %v233_v17 = vpop.eup %232 }
 0x1c2   :  { %v194_v18 = vadd.f32 1.0, %v233_v17 }
 0x1c4   :  { %234 = vrcp.f32 %v194_v18 }
 0x1ce   :  { %v235_v19 = vpop.eup %234 }
 0x1cf   :  { %198 = vst.msk [vmem:[%s295_s5] sm:$0x3] %vm197_vm4, %v235_v19 }

// kernel: forward.28
= control target key start
LH: loop header
LB: loop body
LE: loop exit
PB: predicated region body
PF: predicated region fallthrough
CT: control target
= control target key end

     0   :  { %s1213_s15 = smov 0   ;;  %s1215_s16 = smov 0   ;;  %s1497_s0 = inlined_call_operand.vmem [shape: bf16[2,256,8], index: 0, kind: input, shape index: {}]   ;;  %s1498_s1 = inlined_call_operand.vmem [shape: bf16[8,32], index: 1, kind: input, shape index: {}]   ;;  %s1499_s2 = inlined_call_operand.vmem [shape: f32[1,32], index: 2, kind: input, shape index: {}]   ;;  %s1500_s3 = inlined_call_operand.vmem [shape: f32[1,32], index: 3, kind: input, shape index: {}]   ;;  %s1501_s4 = inlined_call_operand.vmem [shape: bf16[2,256,32], index: 4, kind: output, shape index: {}]  }
   0x1   :  { %s1217_s17 = smov 0  }
   0x2 LB: > { %s26_s18 = sadd.s32 1, %s1182_s16  ;;  %p962_p0 = scmp.ge.s32.totalorder %s1186_s17, 1  ;;  %s1186_s17 = sphi %s1217_s17, %s14_s17   ;;  %s1182_s16 = sphi %s1215_s16, %s1503_s16   ;;  %s1178_s15 = sphi %s1213_s15, %s1502_s15  }
   0x3   : > { %p28_p1 = scmp.ge.s32.totalorder %s26_s18, 2  ;;  %p183_p2 = scmp.lt.s32.totalorder %s1186_s17, 3 }
   0x5   : > { %s1505_s18 = smov (%p28_p1, %s26_s18), 0  ;;  %p184_p3 = pnand %p962_p0, %p183_p2 }
   0x6   : > { %v270_v0 = vld [vmem:[%s1498_s1] sm:$0xf] (!%p184_p3)  ;;  %vm400_vm0 = vcmask (!%p184_p3), 1043456   ;;  %p218_p4 = scmp.lt.s32.totalorder (!%p184_p3), %s1178_s15, 1  ;;  %vm351_vm1 = vcmask (!%p184_p3), 64512   ;;  %v643_v18 = vlaneseq (!%p184_p3)  ;;  %vm838_vm3 = vcmask (!%p184_p3), 257024  }
   0x7   : > { %187 = sbr.rel (%p184_p3) target bundleno = 280 (0x118), region = 36  ;;  %1122 = vmatprep.subr.msk.bf16.mxu0 (!%p184_p3), %vm400_vm0, %v270_v0  ;;  %1123 = vmatprep.subr.msk.bf16.mxu1 (!%p184_p3), %vm400_vm0, %v270_v0  ;;  %v402_v1 = vsel (!%p184_p3), %vm400_vm0, %v270_v0, 0  ;;  %v1279_v19 = vld [vmem:[%s1499_s2] ss:$0 sm:$0xff] (!%p184_p3) }
   0x8   : > { %1087 = vmatpush3.bf16.msra.mxu0 (!%p184_p3), %v402_v1  ;;  %1121 = vmatpush3.bf16.msra.mxu1 (!%p184_p3), %v402_v1  ;;  %v1281_v20 = vand.u32 (!%p184_p3), 127, %v643_v18  ;;  %v1286_v22 = vld [vmem:[%s1500_s3] ss:$0 sm:$0xff] (!%p184_p3) }
   0xa   : > { %vm645_vm2 = vcmp.lt.s32.totalorder (!%p184_p3), %v1281_v20, 16 }
   0xe   : > { %s1507_s15 = smov (!%p218_p4, %s1178_s15), 1 }
   0xf   : > { %s1035_s21 = sshll.u32 %s1507_s15, 7 }
  0x10   : > { %s1242_s24 = scalar_lea.vmem %s1497_s0, %s1035_s21  ;;  %s1309_s5 = scalar_lea.vmem %s1501_s4, %s1035_s21 }
  0x11   : > { %v1148_v2 = vld [vmem:[%s1242_s24] sm:$0xff]   ;;  %v1150_v4 = vld [vmem:[%s1242_s24 + $0x8] sm:$0xff]   ;;  %v1152_v6 = vld [vmem:[%s1242_s24 + $0x10] sm:$0xff]  }
  0x12   : > { %v1149_v3 = vld [vmem:[%s1242_s24 + $0x40] sm:$0xff]   ;;  %1088 = vmatprep.mubr.msk.bf16.mxu0 %vm351_vm1, %v1148_v2  ;;  %v1151_v5 = vld [vmem:[%s1242_s24 + $0x48] sm:$0xff]   ;;  %v1153_v7 = vld [vmem:[%s1242_s24 + $0x50] sm:$0xff]  }
  0x13   : > { %1104 = vmatprep.mubr.msk.bf16.mxu1 %vm351_vm1, %v1149_v3  ;;  %1089 = vmatmul.mubr.msk.bf16.vlgmr.msra.gmra.mrb[0].mxu0 %vm351_vm1, %v1150_v4  ;;  %v1154_v8 = vld [vmem:[%s1242_s24 + $0x18] sm:$0xff]   ;;  %v1156_v10 = vld [vmem:[%s1242_s24 + $0x20] sm:$0xff]   ;;  %v1158_v12 = vld [vmem:[%s1242_s24 + $0x28] sm:$0xff]  }
  0x14   : > { %1105 = vmatmul.mubr.msk.bf16.vlgmr.msra.gmra.mrb[0].mxu1 %vm351_vm1, %v1151_v5  ;;  %1092 = vmatprep.mubr.msk.bf16.mxu0 %vm351_vm1, %v1152_v6  ;;  %v1155_v9 = vld [vmem:[%s1242_s24 + $0x58] sm:$0xff]   ;;  %v1157_v11 = vld [vmem:[%s1242_s24 + $0x60] sm:$0xff]   ;;  %v1159_v13 = vld [vmem:[%s1242_s24 + $0x68] sm:$0xff]  }
  0x15   : > { %1108 = vmatprep.mubr.msk.bf16.mxu1 %vm351_vm1, %v1153_v7  ;;  %v1160_v14 = vld [vmem:[%s1242_s24 + $0x30] sm:$0xff]   ;;  %v1162_v16 = vld [vmem:[%s1242_s24 + $0x38] sm:$0xff]  }
  0x16   : > { %v1161_v15 = vld [vmem:[%s1242_s24 + $0x70] sm:$0xff]   ;;  %v1163_v17 = vld [vmem:[%s1242_s24 + $0x78] sm:$0xff]  }
  0x1b   : > { %1093 = vmatmul.mubr.msk.bf16.gmra.mrb[4].mxu0 %vm351_vm1, %v1154_v8 }
  0x1c   : > { %1109 = vmatmul.mubr.msk.bf16.gmra.mrb[4].mxu1 %vm351_vm1, %v1155_v9  ;;  %1096 = vmatprep.mubr.msk.bf16.mxu0 %vm351_vm1, %v1156_v10 }
  0x1d   : > { %1112 = vmatprep.mubr.msk.bf16.mxu1 %vm351_vm1, %v1157_v11 }
  0x23   : > { %1097 = vmatmul.mubr.msk.bf16.gmra.mrb[8].mxu0 %vm351_vm1, %v1158_v12 }
  0x24   : > { %1113 = vmatmul.mubr.msk.bf16.gmra.mrb[8].mxu1 %vm351_vm1, %v1159_v13  ;;  %1100 = vmatprep.mubr.msk.bf16.mxu0 %vm351_vm1, %v1160_v14 }
  0x25   : > { %1116 = vmatprep.mubr.msk.bf16.mxu1 %vm351_vm1, %v1161_v15 }
  0x2b   : > { %1101 = vmatmul.mubr.msk.bf16.gmra.mrb[12].mxu0 %vm351_vm1, %v1162_v16 }
  0x2c   : > { %1117 = vmatmul.mubr.msk.bf16.gmra.mrb[12].mxu1 %vm351_vm1, %v1163_v17 }
  0xe6   : > { %v1090_v21 = vpop.f32.mrb[0].mxu0 }
  0xe7   : > { %v574_v23 = vmul.f32 %v1090_v21, %v1279_v19  ;;  %v1106_v24 = vpop.f32.mrb[0].mxu1  ;;  %v438_v25 = vpop.f32.mrb[1].mxu0 }
  0xe8   : > { %v590_v26 = vmul.f32 %v1106_v24, %v1279_v19  ;;  %v572_v27 = vmul.f32 %v1279_v19, %v438_v25  ;;  %v502_v28 = vpop.f32.mrb[1].mxu1  ;;  %v1091_v29 = vpop.f32.mrb[2].mxu0 }
  0xe9   : > { %v613_v30 = vadd.f32 %v1286_v22, %v574_v23  ;;  %v588_v31 = vmul.f32 %v1279_v19, %v502_v28  ;;  %v575_v32 = vmul.f32 %v1091_v29, %v1279_v19  ;;  %v1107_v33 = vpop.f32.mrb[2].mxu1  ;;  %v441_v34 = vpop.f32.mrb[3].mxu0 }
  0xea   : > { %v629_v35 = vadd.f32 %v1286_v22, %v590_v26  ;;  %v611_v36 = vadd.f32 %v1286_v22, %v572_v27  ;;  %v591_v37 = vmul.f32 %v1107_v33, %v1279_v19  ;;  %v573_v38 = vmul.f32 %v1279_v19, %v441_v34  ;;  %v505_v39 = vpop.f32.mrb[3].mxu1 }
  0xeb   : > { %v648_v40 = vmax.f32 %v613_v30, 0.0  ;;  %v627_v41 = vadd.f32 %v1286_v22, %v588_v31  ;;  %v614_v42 = vadd.f32 %v1286_v22, %v575_v32  ;;  %v589_v43 = vmul.f32 %v1279_v19, %v505_v39 }
  0xec   : > { %v664_v44 = vmax.f32 %v629_v35, 0.0  ;;  %v646_v45 = vmax.f32 %v611_v36, 0.0  ;;  %v630_v46 = vadd.f32 %v1286_v22, %v591_v37  ;;  %v612_v47 = vadd.f32 %v1286_v22, %v573_v38 }
  0xed   : > { %v680_v48 = vsel %vm645_vm2, %v648_v40, %v613_v30  ;;  %v662_v49 = vmax.f32 %v627_v41, 0.0  ;;  %v649_v50 = vmax.f32 %v614_v42, 0.0  ;;  %v628_v51 = vadd.f32 %v1286_v22, %v589_v43 }
  0xee   : > { %v1039_v52 = vpack.c.bf16 %v680_v48, %v680_v48  ;;  %v696_v53 = vsel %vm645_vm2, %v664_v44, %v629_v35  ;;  %v678_v54 = vsel %vm645_vm2, %v646_v45, %v611_v36  ;;  %v665_v55 = vmax.f32 %v630_v46, 0.0  ;;  %v1094_v56 = vpop.f32.mrb[4].mxu0 }
  0xef   : > { %v1055_v57 = vpack.c.bf16 %v696_v53, %v696_v53  ;;  %v1037_v58 = vpack.c.bf16 %v678_v54, %v678_v54  ;;  %v694_v59 = vsel %vm645_vm2, %v662_v49, %v627_v41  ;;  %v681_v60 = vsel %vm645_vm2, %v649_v50, %v614_v42  ;;  %v1110_v61 = vpop.f32.mrb[4].mxu1  ;;  %v454_v62 = vpop.f32.mrb[5].mxu0 }
  0xf0   : > { %841 = vst.msk [vmem:[%s1309_s5 + $0x8] sm:$0xf] %vm838_vm3, %v1039_v52  ;;  %v1053_v63 = vpack.c.bf16 %v694_v59, %v694_v59  ;;  %v1040_v0 = vpack.c.bf16 %v681_v60, %v681_v60  ;;  %v697_v1 = vsel %vm645_vm2, %v665_v55, %v630_v46  ;;  %v647_v2 = vmax.f32 %v612_v47, 0.0  ;;  %v518_v3 = vpop.f32.mrb[5].mxu1  ;;  %v1095_v4 = vpop.f32.mrb[6].mxu0 }
  0xf1   : > { %857 = vst.msk [vmem:[%s1309_s5 + $0x48] sm:$0xf] %vm838_vm3, %v1055_v57  ;;  %839 = vst.msk [vmem:[%s1309_s5] sm:$0xf] %vm838_vm3, %v1037_v58  ;;  %v1056_v5 = vpack.c.bf16 %v697_v1, %v697_v1  ;;  %v663_v6 = vmax.f32 %v628_v51, 0.0  ;;  %v578_v7 = vmul.f32 %v1094_v56, %v1279_v19  ;;  %v594_v8 = vmul.f32 %v1110_v61, %v1279_v19  ;;  %v1111_v9 = vpop.f32.mrb[6].mxu1 }
  0xf2   : > { %v457_v10 = vpop.f32.mrb[7].mxu0  ;;  %855 = vst.msk [vmem:[%s1309_s5 + $0x40] sm:$0xf] %vm838_vm3, %v1053_v63  ;;  %842 = vst.msk [vmem:[%s1309_s5 + $0xc] sm:$0xf] %vm838_vm3, %v1040_v0  ;;  %v679_v11 = vsel %vm645_vm2, %v647_v2, %v612_v47  ;;  %v576_v12 = vmul.f32 %v1279_v19, %v454_v62  ;;  %v592_v13 = vmul.f32 %v1279_v19, %v518_v3  ;;  %v521_v15 = vpop.f32.mrb[7].mxu1 }
  0xf3   : > { %v579_v14 = vmul.f32 %v1095_v4, %v1279_v19  ;;  %858 = vst.msk [vmem:[%s1309_s5 + $0x4c] sm:$0xf] %vm838_vm3, %v1056_v5  ;;  %v1038_v16 = vpack.c.bf16 %v679_v11, %v679_v11  ;;  %v695_v17 = vsel %vm645_vm2, %v663_v6, %v628_v51  ;;  %v617_v18 = vadd.f32 %v1286_v22, %v578_v7 }
  0xf4   : > { %v633_v21 = vadd.f32 %v1286_v22, %v594_v8  ;;  %v1054_v23 = vpack.c.bf16 %v695_v17, %v695_v17  ;;  %v615_v24 = vadd.f32 %v1286_v22, %v576_v12  ;;  %v631_v25 = vadd.f32 %v1286_v22, %v592_v13 }
  0xf5   : > { %v618_v26 = vadd.f32 %v1286_v22, %v579_v14  ;;  %840 = vst.msk [vmem:[%s1309_s5 + $0x4] sm:$0xf] %vm838_vm3, %v1038_v16  ;;  %v652_v27 = vmax.f32 %v617_v18, 0.0  ;;  %v595_v29 = vmul.f32 %v1111_v9, %v1279_v19  ;;  %v577_v30 = vmul.f32 %v1279_v19, %v457_v10 }
  0xf6   : > { %v668_v28 = vmax.f32 %v633_v21, 0.0  ;;  %856 = vst.msk [vmem:[%s1309_s5 + $0x44] sm:$0xf] %vm838_vm3, %v1054_v23  ;;  %v650_v31 = vmax.f32 %v615_v24, 0.0  ;;  %v666_v32 = vmax.f32 %v631_v25, 0.0  ;;  %v593_v34 = vmul.f32 %v1279_v19, %v521_v15  ;;  %v1098_v35 = vpop.f32.mrb[8].mxu0 }
  0xf7   : > { %v653_v33 = vmax.f32 %v618_v26, 0.0  ;;  %v684_v36 = vsel %vm645_vm2, %v652_v27, %v617_v18  ;;  %v634_v38 = vadd.f32 %v1286_v22, %v595_v29  ;;  %v616_v39 = vadd.f32 %v1286_v22, %v577_v30  ;;  %v1114_v40 = vpop.f32.mrb[8].mxu1  ;;  %v470_v41 = vpop.f32.mrb[9].mxu0 }
  0xf8   : > { %v700_v37 = vsel %vm645_vm2, %v668_v28, %v633_v21  ;;  %v1043_v42 = vpack.c.bf16 %v684_v36, %v684_v36  ;;  %v682_v44 = vsel %vm645_vm2, %v650_v31, %v615_v24  ;;  %v698_v45 = vsel %vm645_vm2, %v666_v32, %v631_v25  ;;  %v534_v46 = vpop.f32.mrb[9].mxu1  ;;  %v1099_v47 = vpop.f32.mrb[10].mxu0 }
  0xf9   : > { %v1059_v43 = vpack.c.bf16 %v700_v37, %v700_v37  ;;  %v1041_v48 = vpack.c.bf16 %v682_v44, %v682_v44  ;;  %v1057_v49 = vpack.c.bf16 %v698_v45, %v698_v45  ;;  %v685_v50 = vsel %vm645_vm2, %v653_v33, %v618_v26  ;;  %v1115_v52 = vpop.f32.mrb[10].mxu1  ;;  %v473_v53 = vpop.f32.mrb[11].mxu0 }
  0xfa   : > { %v669_v51 = vmax.f32 %v634_v38, 0.0  ;;  %845 = vst.msk [vmem:[%s1309_s5 + $0x18] sm:$0xf] %vm838_vm3, %v1043_v42  ;;  %v1044_v54 = vpack.c.bf16 %v685_v50, %v685_v50  ;;  %v651_v55 = vmax.f32 %v616_v39, 0.0  ;;  %v632_v56 = vadd.f32 %v1286_v22, %v593_v34  ;;  %v537_v58 = vpop.f32.mrb[11].mxu1 }
  0xfb   : > { %861 = vst.msk [vmem:[%s1309_s5 + $0x58] sm:$0xf] %vm838_vm3, %v1059_v43  ;;  %v582_v57 = vmul.f32 %v1098_v35, %v1279_v19  ;;  %843 = vst.msk [vmem:[%s1309_s5 + $0x10] sm:$0xf] %vm838_vm3, %v1041_v48  ;;  %v598_v60 = vmul.f32 %v1114_v40, %v1279_v19  ;;  %v580_v61 = vmul.f32 %v1279_v19, %v470_v41 }
  0xfc   : > { %859 = vst.msk [vmem:[%s1309_s5 + $0x50] sm:$0xf] %vm838_vm3, %v1057_v49  ;;  %v701_v59 = vsel %vm645_vm2, %v669_v51, %v634_v38  ;;  %v596_v62 = vmul.f32 %v1279_v19, %v534_v46  ;;  %846 = vst.msk [vmem:[%s1309_s5 + $0x1c] sm:$0xf] %vm838_vm3, %v1044_v54  ;;  %v683_v0 = vsel %vm645_vm2, %v651_v55, %v616_v39  ;;  %v667_v1 = vmax.f32 %v632_v56, 0.0 }
  0xfd   : > { %v1060_v63 = vpack.c.bf16 %v701_v59, %v701_v59  ;;  %v621_v2 = vadd.f32 %v1286_v22, %v582_v57  ;;  %v1042_v3 = vpack.c.bf16 %v683_v0, %v683_v0  ;;  %v637_v4 = vadd.f32 %v1286_v22, %v598_v60 }
  0xfe   : > { %v619_v5 = vadd.f32 %v1286_v22, %v580_v61  ;;  %v635_v6 = vadd.f32 %v1286_v22, %v596_v62  ;;  %v699_v7 = vsel %vm645_vm2, %v667_v1, %v632_v56  ;;  %v583_v9 = vmul.f32 %v1099_v47, %v1279_v19  ;;  %v1102_v11 = vpop.f32.mrb[12].mxu0 }
  0xff   : > { %862 = vst.msk [vmem:[%s1309_s5 + $0x5c] sm:$0xf] %vm838_vm3, %v1060_v63  ;;  %v656_v8 = vmax.f32 %v621_v2, 0.0  ;;  %v599_v10 = vmul.f32 %v1115_v52, %v1279_v19  ;;  %844 = vst.msk [vmem:[%s1309_s5 + $0x14] sm:$0xf] %vm838_vm3, %v1042_v3  ;;  %v1058_v12 = vpack.c.bf16 %v699_v7, %v699_v7  ;;  %v672_v13 = vmax.f32 %v637_v4, 0.0 }
 0x100   : > { %v654_v14 = vmax.f32 %v619_v5, 0.0  ;;  %v670_v15 = vmax.f32 %v635_v6, 0.0  ;;  %v1118_v16 = vpop.f32.mrb[12].mxu1  ;;  %v486_v17 = vpop.f32.mrb[13].mxu0  ;;  %v622_v21 = vadd.f32 %v1286_v22, %v583_v9  ;;  %v581_v24 = vmul.f32 %v1279_v19, %v473_v53 }
 0x101   : > { %v688_v18 = vsel %vm645_vm2, %v656_v8, %v621_v2  ;;  %v638_v23 = vadd.f32 %v1286_v22, %v599_v10  ;;  %v550_v25 = vpop.f32.mrb[13].mxu1  ;;  %v1103_v26 = vpop.f32.mrb[14].mxu0  ;;  %860 = vst.msk [vmem:[%s1309_s5 + $0x54] sm:$0xf] %vm838_vm3, %v1058_v12  ;;  %v704_v28 = vsel %vm645_vm2, %v672_v13, %v637_v4  ;;  %v597_v40 = vmul.f32 %v1279_v19, %v537_v58 }
 0x102   : > { %v1047_v27 = vpack.c.bf16 %v688_v18, %v688_v18  ;;  %v686_v29 = vsel %vm645_vm2, %v654_v14, %v619_v5  ;;  %v702_v30 = vsel %vm645_vm2, %v670_v15, %v635_v6  ;;  %v1119_v31 = vpop.f32.mrb[14].mxu1  ;;  %v489_v32 = vpop.f32.mrb[15].mxu0  ;;  %v1063_v33 = vpack.c.bf16 %v704_v28, %v704_v28 }
 0x103   : > { %v1045_v34 = vpack.c.bf16 %v686_v29, %v686_v29  ;;  %v1061_v35 = vpack.c.bf16 %v702_v30, %v702_v30  ;;  %v657_v36 = vmax.f32 %v622_v21, 0.0  ;;  %v553_v37 = vpop.f32.mrb[15].mxu1  ;;  %v673_v38 = vmax.f32 %v638_v23, 0.0 }
 0x104   : > { %849 = vst.msk [vmem:[%s1309_s5 + $0x28] sm:$0xf] %vm838_vm3, %v1047_v27  ;;  %v620_v39 = vadd.f32 %v1286_v22, %v581_v24  ;;  %v586_v41 = vmul.f32 %v1102_v11, %v1279_v19  ;;  %865 = vst.msk [vmem:[%s1309_s5 + $0x68] sm:$0xf] %vm838_vm3, %v1063_v33  ;;  %v602_v43 = vmul.f32 %v1118_v16, %v1279_v19 }
 0x105   : > { %847 = vst.msk [vmem:[%s1309_s5 + $0x20] sm:$0xf] %vm838_vm3, %v1045_v34  ;;  %863 = vst.msk [vmem:[%s1309_s5 + $0x60] sm:$0xf] %vm838_vm3, %v1061_v35  ;;  %v689_v42 = vsel %vm645_vm2, %v657_v36, %v622_v21  ;;  %v584_v44 = vmul.f32 %v1279_v19, %v486_v17  ;;  %v600_v45 = vmul.f32 %v1279_v19, %v550_v25 }
 0x106   : > { %v1048_v46 = vpack.c.bf16 %v689_v42, %v689_v42  ;;  %v705_v47 = vsel %vm645_vm2, %v673_v38, %v638_v23  ;;  %v655_v48 = vmax.f32 %v620_v39, 0.0  ;;  %v636_v49 = vadd.f32 %v1286_v22, %v597_v40 }
 0x107   : > { %v1064_v50 = vpack.c.bf16 %v705_v47, %v705_v47  ;;  %v625_v51 = vadd.f32 %v1286_v22, %v586_v41  ;;  %v641_v52 = vadd.f32 %v1286_v22, %v602_v43  ;;  %v623_v53 = vadd.f32 %v1286_v22, %v584_v44 }
 0x108   : > { %850 = vst.msk [vmem:[%s1309_s5 + $0x2c] sm:$0xf] %vm838_vm3, %v1048_v46  ;;  %v687_v54 = vsel %vm645_vm2, %v655_v48, %v620_v39  ;;  %v671_v55 = vmax.f32 %v636_v49, 0.0  ;;  %v639_v56 = vadd.f32 %v1286_v22, %v600_v45  ;;  %v587_v57 = vmul.f32 %v1103_v26, %v1279_v19 }
 0x109   : > { %866 = vst.msk [vmem:[%s1309_s5 + $0x6c] sm:$0xf] %vm838_vm3, %v1064_v50  ;;  %v1046_v58 = vpack.c.bf16 %v687_v54, %v687_v54  ;;  %v660_v59 = vmax.f32 %v625_v51, 0.0  ;;  %v676_v60 = vmax.f32 %v641_v52, 0.0  ;;  %v658_v61 = vmax.f32 %v623_v53, 0.0 }
 0x10a   : > { %v703_v62 = vsel %vm645_vm2, %v671_v55, %v636_v49  ;;  %v674_v63 = vmax.f32 %v639_v56, 0.0  ;;  %v626_v0 = vadd.f32 %v1286_v22, %v587_v57  ;;  %v603_v1 = vmul.f32 %v1119_v31, %v1279_v19 }
 0x10b   : > { %848 = vst.msk [vmem:[%s1309_s5 + $0x24] sm:$0xf] %vm838_vm3, %v1046_v58  ;;  %v1062_v2 = vpack.c.bf16 %v703_v62, %v703_v62  ;;  %v692_v3 = vsel %vm645_vm2, %v660_v59, %v625_v51  ;;  %v708_v4 = vsel %vm645_vm2, %v676_v60, %v641_v52  ;;  %v690_v5 = vsel %vm645_vm2, %v658_v61, %v623_v53 }
 0x10c   : > { %v1051_v6 = vpack.c.bf16 %v692_v3, %v692_v3  ;;  %v1067_v7 = vpack.c.bf16 %v708_v4, %v708_v4  ;;  %v1049_v8 = vpack.c.bf16 %v690_v5, %v690_v5  ;;  %v706_v9 = vsel %vm645_vm2, %v674_v63, %v639_v56 }
 0x10d   : > { %864 = vst.msk [vmem:[%s1309_s5 + $0x64] sm:$0xf] %vm838_vm3, %v1062_v2  ;;  %v1065_v10 = vpack.c.bf16 %v706_v9, %v706_v9  ;;  %v661_v11 = vmax.f32 %v626_v0, 0.0  ;;  %v642_v12 = vadd.f32 %v1286_v22, %v603_v1  ;;  %v585_v13 = vmul.f32 %v1279_v19, %v489_v32 }
 0x10e   : > { %853 = vst.msk [vmem:[%s1309_s5 + $0x38] sm:$0xf] %vm838_vm3, %v1051_v6  ;;  %869 = vst.msk [vmem:[%s1309_s5 + $0x78] sm:$0xf] %vm838_vm3, %v1067_v7  ;;  %v601_v14 = vmul.f32 %v1279_v19, %v553_v37 }
 0x10f   : > { %851 = vst.msk [vmem:[%s1309_s5 + $0x30] sm:$0xf] %vm838_vm3, %v1049_v8  ;;  %867 = vst.msk [vmem:[%s1309_s5 + $0x70] sm:$0xf] %vm838_vm3, %v1065_v10  ;;  %v693_v15 = vsel %vm645_vm2, %v661_v11, %v626_v0  ;;  %v677_v16 = vmax.f32 %v642_v12, 0.0  ;;  %v624_v17 = vadd.f32 %v1286_v22, %v585_v13 }
 0x110   : > { %v1052_v18 = vpack.c.bf16 %v693_v15, %v693_v15  ;;  %v640_v21 = vadd.f32 %v1286_v22, %v601_v14 }
 0x111   : > { %v709_v23 = vsel %vm645_vm2, %v677_v16, %v642_v12  ;;  %v659_v24 = vmax.f32 %v624_v17, 0.0 }
 0x112   : > { %854 = vst.msk [vmem:[%s1309_s5 + $0x3c] sm:$0xf] %vm838_vm3, %v1052_v18  ;;  %v1068_v19 = vpack.c.bf16 %v709_v23, %v709_v23  ;;  %v675_v25 = vmax.f32 %v640_v21, 0.0 }
 0x113   : > { %v691_v26 = vsel %vm645_vm2, %v659_v24, %v624_v17 }
 0x114   : > { %870 = vst.msk [vmem:[%s1309_s5 + $0x7c] sm:$0xf] %vm838_vm3, %v1068_v19  ;;  %v1050_v27 = vpack.c.bf16 %v691_v26, %v691_v26  ;;  %v707_v28 = vsel %vm645_vm2, %v675_v25, %v640_v21 }
 0x115   : > { %v1066_v29 = vpack.c.bf16 %v707_v28, %v707_v28 }
 0x116   : > { %852 = vst.msk [vmem:[%s1309_s5 + $0x34] sm:$0xf] %vm838_vm3, %v1050_v27 }
 0x117   : > { %868 = vst.msk [vmem:[%s1309_s5 + $0x74] sm:$0xf] %vm838_vm3, %v1066_v29 }
 0x118 PF: > { %s14_s17 = sadd.s32 1, %s1186_s17   ;;  %s1502_s15 = smov %s1182_s16 }
 0x119   : > { %p11_p5 = scmp.ge.s32.totalorder %s14_s17, 4   ;;  %s1503_s16 = smov %s1505_s18 }
 0x11b   :  { %13 = sbr.rel (!%p11_p5) target bundleno = 2 (0x2), region = 66 }

// kernel: forward.29
= control target key start
LH: loop header
LB: loop body
LE: loop exit
PB: predicated region body
PF: predicated region fallthrough
CT: control target
= control target key end

     0   :  { %s2331_s24 = smov 0   ;;  %s2772_s0 = inlined_call_operand.vmem [shape: bf16[2,64,128], index: 0, kind: input, shape index: {}]   ;;  %s2773_s1 = inlined_call_operand.vmem [shape: bf16[9,16,16], index: 1, kind: input, shape index: {}]   ;;  %s2774_s2 = inlined_call_operand.vmem [shape: f32[1,16], index: 2, kind: input, shape index: {}]   ;;  %s2775_s3 = inlined_call_operand.vmem [shape: f32[1,16], index: 3, kind: input, shape index: {}]   ;;  %s2776_s4 = inlined_call_operand.vmem [shape: s32[64,1], index: 4, kind: input, shape index: {}]   ;;  %s2777_s5 = inlined_call_operand.vmem [shape: bf16[2,64,16], index: 5, kind: output, shape index: {0}]   ;;  %s2778_s6 = inlined_call_operand.vmem [shape: f32[2,1,16], index: 6, kind: output, shape index: {1}]   ;;  %s2779_s7 = inlined_call_operand.vmem [shape: bf16[2,64,16], index: 7, kind: output, shape index: {2}]  }
   0x1 LB: > { %s1831_s25 = sadd.s32 4294967295, %s2284_s24   ;;  %p1835_p0 = scmp.ge.s32.totalorder %s2284_s24, 1  ;;  %s2284_s24 = sphi %s2331_s24, %s18_s24  }
   0x2   : > { %p242_p1 = scmp.lt.s32.totalorder %s2284_s24, 3 }
   0x4   : > { %p243_p2 = pnand %p1835_p0, %p242_p1 }
   0x5   : > { %p282_p3 = scmp.lt.s32.totalorder (!%p243_p2), %s1831_s25, 1  ;;  %v2286_v0 = vmov (!%p243_p2), 0   ;;  %v2347_v1 = vld [vmem:[%s2773_s1 + $0x10] sm:$0xff] (!%p243_p2)   ;;  %v2246_v2 = vld [vmem:[%s2773_s1] sm:$0xff] (!%p243_p2)   ;;  %vm579_vm0 = vcmask (!%p243_p2), 1043456   ;;  %v2386_v17 = vld [vmem:[%s2773_s1 + $0x8] sm:$0xff] (!%p243_p2)  }
   0x6   : > { %246 = sbr.rel (%p243_p2) target bundleno = 459 (0x1cb), region = 40  ;;  %301 = vst [vmem:[#allocation2] sm:$0xff] (!%p243_p2), %v2286_v0  ;;  %2240 = vset.pattern.permute.xlu1 (!%p243_p2), %v2286_v0  ;;  %2239 = vset.pattern.permute.xlu0 (!%p243_p2), %v2286_v0  ;;  %s2287_s13 = smov (!%p243_p2), 32   ;;  %v2397_v24 = vld [vmem:[%s2773_s1 + $0x20] sm:$0xff] (!%p243_p2)   ;;  %vm353_vm1 = vsmask.f32 (!%p243_p2), 4352 }
   0x7   : > { %2100 = vmatprep.subr.bf16.mxu1 (!%p243_p2), %v2347_v1  ;;  %2010 = vmatprep.subr.bf16.mxu0 (!%p243_p2), %v2246_v2  ;;  %s2288_s16 = smov (!%p243_p2), 64   ;;  %s2289_s17 = smov (!%p243_p2), 96   ;;  %vm795_vm2 = vsmask.f32 (!%p243_p2), 256 }
   0x8   : > { %2101 = vmatpush3.bf16.msra.mxu1 (!%p243_p2), %v2347_v1  ;;  %2011 = vmatpush3.bf16.msra.mxu0 (!%p243_p2), %v2246_v2  ;;  %s2290_s26 = smov (!%p243_p2), 112  }
   0x9   : > { %2020 = vmatprep.subr.bf16.mxu0 (!%p243_p2), %v2386_v17  ;;  %2050 = vmatprep.subr.bf16.mxu1 (!%p243_p2), %v2397_v24 }
   0xd   : > { %s2781_s25 = smov (!%p282_p3, %s1831_s25), 1  ;;  %v346_v9 = vld [vmem:[#allocation2] sm:$0xf8] }
   0xe   : > { %s2353_s30 = sshll.u32 %s2781_s25, 5  ;;  %v355_v14 = vshrl.u32 %v346_v9, 16  ;;  %v358_v15 = vshll.u32 %v346_v9, 16  ;;  %v570_v42 = vld [vmem:[#allocation2] sm:$0xf0] }
   0xf   : > { %s2360_s10 = scalar_lea.vmem %s2772_s0, %s2353_s30  ;;  %v580_v46 = vrot.slane %v570_v42, 4  ;;  %v790_v50 = vld [vmem:[#allocation2] sm:$0x80]  ;;  %s299_s29 = scalar_lea.vmem %s2779_s7, %s2353_s30 }
  0x10   : > { %v2364_v3 = vld [vmem:[%s2360_s10 + $0x8] sm:$0xff]   ;;  %v2367_v4 = vld [vmem:[%s2360_s10 + $0x10] sm:$0xff]   ;;  %v2370_v5 = vld [vmem:[%s2360_s10 + $0x18] sm:$0xff]   ;;  %v357_v22 = vrot.slane %v355_v14, 3  ;;  %v360_v23 = vrot.slane %v358_v15, 4  ;;  %v797_v52 = vshrl.u32 %v790_v50, 16  ;;  %s2725_s14 = scalar_lea.vmem %s2777_s5, %s2353_s30 }
  0x11   : > { %v583_v6 = vrot.slane %v2364_v3, 4  ;;  %v585_v7 = vrot.slane %v2367_v4, 4  ;;  %337 = vst [vmem:[#allocation2 + $0x20] sm:$0xff] %v2370_v5  ;;  %v2376_v8 = vld [vmem:[%s2360_s10] sm:$0xff]   ;;  %v372_v10 = vshrl.u32 %v2364_v3, 16  ;;  %v375_v11 = vshll.u32 %v2364_v3, 16 }
  0x12   : > { %v381_v12 = vshrl.u32 %v2367_v4, 16  ;;  %v384_v16 = vshll.u32 %v2367_v4, 16  ;;  %v363_v18 = vshrl.u32 %v2376_v8, 16  ;;  %v366_v19 = vshll.u32 %v2376_v8, 16  ;;  %v2462_v9 = vld [vmem:[%s2360_s10 + $0x8] sm:$0xff]   ;;  %v2474_v15 = vld [vmem:[%s2360_s10 + $0x18] sm:$0xff]  }
  0x13   : > { %v586_v13 = vsel %vm579_vm0, %v583_v6, %v585_v7  ;;  %v374_v20 = vrot.slane %v372_v10, 3  ;;  %v377_v21 = vrot.slane %v375_v11, 4  ;;  %v361_v27 = vor.u32 %v360_v23, %v357_v22 }
  0x14   : > { %695 = vrot.lane.b32.xlu1 %v586_v13, %s2287_s13  ;;  %v365_v25 = vrot.slane %v363_v18, 3  ;;  %v368_v26 = vrot.slane %v366_v19, 4  ;;  %v383_v30 = vrot.slane %v381_v12, 3  ;;  %v386_v31 = vrot.slane %v384_v16, 4 }
  0x15   : > { %v378_v29 = vor.u32 %v377_v21, %v374_v20  ;;  %v581_v44 = vrot.slane %v2376_v8, 4  ;;  %v803_v51 = vrot.slane %v372_v10, 7  ;;  %v800_v53 = vrot.slane %v363_v18, 7  ;;  %v2465_v10 = vld [vmem:[%s2360_s10] sm:$0xff]  }
  0x16   : > { %v369_v28 = vor.u32 %v368_v26, %v365_v25  ;;  %v387_v39 = vor.u32 %v386_v31, %v383_v30  ;;  %v810_v55 = vshrl.u32 %v2370_v5, 16  ;;  %v799_v56 = vrot.slane %v797_v52, 7  ;;  %v341_v30 = vld [vmem:[%s2776_s4 + $0x18] sm:$0xff]  ;;  %v342_v31 = vld [vmem:[%s2776_s4 + $0x20] sm:$0xff] }
  0x17   : > { %v584_v48 = vsel %vm579_vm0, %v581_v44, %v583_v6  ;;  %v582_v49 = vsel %vm579_vm0, %v580_v46, %v581_v44  ;;  %v804_v54 = vor.u32 %v803_v51, %v375_v11  ;;  %v801_v57 = vor.u32 %v800_v53, %v366_v19 }
  0x18   : > { %v350_v32 = vld [vmem:[#allocation2 + $0x20] sm:$0xf]  ;;  %v370_v34 = vsel %vm353_vm1, %v361_v27, %v369_v28  ;;  %v379_v38 = vsel %vm353_vm1, %v369_v28, %v378_v29  ;;  %v388_v45 = vsel %vm353_vm1, %v378_v29, %v387_v39  ;;  %v812_v59 = vrot.slane %v810_v55, 7  ;;  %v339_v27 = vld [vmem:[%s2776_s4 + $0x8] sm:$0xff]  ;;  %v340_v29 = vld [vmem:[%s2776_s4 + $0x10] sm:$0xff] }
  0x19   : > { %v587_v33 = vrot.slane %v350_v32, 4  ;;  %v390_v35 = vshrl.u32 %v350_v32, 16  ;;  %398 = vrot.lane.b32.xlu0 %v370_v34, %s2287_s13  ;;  %v393_v36 = vshll.u32 %v350_v32, 16  ;;  %v805_v58 = vsel %vm795_vm2, %v800_v53, %v804_v54  ;;  %v338_v28 = vld [vmem:[%s2776_s4] sm:$0xff] }
  0x1a   : > { %v813_v60 = vshll.u32 %v2370_v5, 16  ;;  %v802_v61 = vsel %vm795_vm2, %v799_v56, %v801_v57  ;;  %v806_v62 = vrot.slane %v381_v12, 7  ;;  %v1952_v11 = vunpack.c.l.bf16 %v2462_v9 }
  0x1b   : > { %v588_v37 = vsel %vm579_vm0, %v585_v7, %v587_v33  ;;  %v392_v40 = vrot.slane %v390_v35, 3  ;;  %v395_v41 = vrot.slane %v393_v36, 4  ;;  %v1953_v12 = vunpack.c.h.bf16 %v2462_v9  ;;  %v343_v33 = vld [vmem:[%s2776_s4 + $0x28] sm:$0xff]  ;;  %v344_v35 = vld [vmem:[%s2776_s4 + $0x30] sm:$0xff] }
  0x1c   : > { %697 = vrot.lane.b32.xlu1 %v588_v37, %s2287_s13  ;;  %v815_v63 = vor.u32 %v813_v60, %v812_v59  ;;  %v807_v2 = vor.u32 %v806_v62, %v384_v16  ;;  %v1949_v14 = vunpack.c.h.bf16 %v2465_v10  ;;  %v2477_v16 = vld [vmem:[%s2360_s10 + $0x10] sm:$0xff]   ;;  %v1960_v19 = vunpack.c.l.bf16 %v2474_v15 }
  0x1d   : > { %400 = vrot.lane.b32.xlu0 %v379_v38, %s2287_s13  ;;  %v396_v43 = vor.u32 %v395_v41, %v392_v40  ;;  %v2184_v18 = vpack.i.bf16 %v1953_v12, %v1952_v11  ;;  %v1961_v20 = vunpack.c.h.bf16 %v2474_v15  ;;  %v1956_v22 = vunpack.c.l.bf16 %v2477_v16 }
  0x1e   : > { %v816_v6 = vsel %vm795_vm2, %v806_v62, %v815_v63  ;;  %v808_v7 = vsel %vm795_vm2, %v803_v51, %v807_v2  ;;  %v1957_v23 = vunpack.c.h.bf16 %v2477_v16  ;;  %vm491_vm3 = vcmp.ge.s32.totalorder %v339_v27, 1 }
  0x1f   : > { %v397_v47 = vsel %vm353_vm1, %v387_v39, %v396_v43  ;;  %v2194_v25 = vpack.i.bf16 %v1961_v20, %v1960_v19  ;;  %vm499_vm4 = vcmp.lt.s32.totalorder %v339_v27, 8  ;;  %vm490_vm5 = vcmp.ge.s32.totalorder %v338_v28, 1 }
  0x20   : > { %404 = vrot.lane.b32.xlu1 %v397_v47, %s2287_s13  ;;  %v2189_v26 = vpack.i.bf16 %v1957_v23, %v1956_v22  ;;  %vm498_vm6 = vcmp.lt.s32.totalorder %v338_v28, 8  ;;  %vm507_vm7 = vmand %vm491_vm3, %vm499_vm4  ;;  %vm492_vm9 = vcmp.ge.s32.totalorder %v340_v29, 1  ;;  %vm500_vm10 = vcmp.lt.s32.totalorder %v340_v29, 8 }
  0x21   : > { %402 = vrot.lane.b32.xlu0 %v388_v45, %s2287_s13  ;;  %vm506_vm8 = vmand %vm490_vm5, %vm498_vm6  ;;  %vm493_vm11 = vcmp.ge.s32.totalorder %v341_v30, 1  ;;  %vm501_vm12 = vcmp.lt.s32.totalorder %v341_v30, 8  ;;  %v515_v32 = vsel %vm507_vm7, 1, %v2286_v0  ;;  %vm494_vm15 = vcmp.ge.s32.totalorder %v342_v31, 1  ;;  %v2249_v45 = vld [vmem:[%s2773_s1 + $0x28] sm:$0xff]  }
  0x22   : > { %v514_v34 = vsel %vm506_vm8, 1, %v2286_v0  ;;  %vm508_vm13 = vmand %vm492_vm9, %vm500_vm10  ;;  %vm502_vm0 = vcmp.lt.s32.totalorder %v342_v31, 8  ;;  %vm495_vm1 = vcmp.ge.s32.totalorder %v343_v33, 1  ;;  %vm503_vm2 = vcmp.lt.s32.totalorder %v343_v33, 8 }
  0x23   : > { %vm509_vm14 = vmand %vm493_vm11, %vm501_vm12  ;;  %v516_v36 = vsel %vm508_vm13, 1, %v2286_v0  ;;  %vm496_vm5 = vcmp.ge.s32.totalorder %v344_v35, 1  ;;  %vm504_vm6 = vcmp.lt.s32.totalorder %v344_v35, 8  ;;  %vm412_vm11 = vcmask 130048  }
  0x24   : > { %591 = vrot.lane.b32.xlu1 %v584_v48, %s2288_s16  ;;  %v517_v38 = vsel %vm509_vm14, 1, %v2286_v0  ;;  %vm510_vm3 = vmand %vm494_vm15, %vm502_vm0  ;;  %vm1501_vm12 = vcmask 125952  }
  0x25   : > { %589 = vrot.lane.b32.xlu0 %v582_v49, %s2288_s16  ;;  %vm511_vm4 = vmand %vm495_vm1, %vm503_vm2  ;;  %v518_v39 = vsel %vm510_vm3, 1, %v2286_v0 }
  0x26   : > { %v519_v40 = vsel %vm511_vm4, 1, %v2286_v0  ;;  %vm512_vm9 = vmand %vm496_vm5, %vm504_vm6  ;;  %vm1532_vm5 = vcmask 122880  }
  0x27   : > { %v520_v41 = vsel %vm512_vm9, 1, %v2286_v0 }
  0x28   : > { %595 = vrot.lane.b32.xlu1 %v588_v37, %s2288_s16  ;;  %v345_v37 = vld [vmem:[%s2776_s4 + $0x38] sm:$0xff] }
  0x29   : > { %593 = vrot.lane.b32.xlu0 %v586_v13, %s2288_s16  ;;  %v1948_v13 = vunpack.c.l.bf16 %v2465_v10  ;;  %vm497_vm7 = vcmp.ge.s32.totalorder %v345_v37, 1  ;;  %vm505_vm8 = vcmp.lt.s32.totalorder %v345_v37, 8 }
  0x2a   : > { %vm513_vm10 = vmand %vm497_vm7, %vm505_vm8 }
  0x2b   : > { %v2179_v21 = vpack.i.bf16 %v1949_v14, %v1948_v13  ;;  %v521_v42 = vsel %vm513_vm10, 1, %v2286_v0 }
  0x2c   : > { %1020 = vrot.lane.b32.xlu1 %v2364_v3, %s2289_s17 }
  0x2d   : > { %1018 = vrot.lane.b32.xlu0 %v2376_v8, %s2289_s17 }
  0x30   : > { %693 = vrot.lane.b32.xlu1 %v584_v48, %s2287_s13 }
  0x31   : > { %691 = vrot.lane.b32.xlu0 %v582_v49, %s2287_s13  ;;  %v2250_v49 = vld [vmem:[%s2773_s1 + $0x38] sm:$0xff]  }
  0x34   : > { %1024 = vrot.lane.b32.xlu1 %v2370_v5, %s2289_s17 }
  0x35   : > { %1022 = vrot.lane.b32.xlu0 %v2367_v4, %s2289_s17 }
  0x38   : > { %819 = vrot.lane.b32.xlu1 %v805_v58, %s2289_s17 }
  0x39   : > { %817 = vrot.lane.b32.xlu0 %v802_v61, %s2289_s17 }
  0x3c   : > { %1232 = vrot.lane.b32.xlu1 %v2364_v3, %s2288_s16 }
  0x3d   : > { %1230 = vrot.lane.b32.xlu0 %v2376_v8, %s2288_s16 }
  0x40   : > { %823 = vrot.lane.b32.xlu1 %v816_v6, %s2289_s17 }
  0x41   : > { %821 = vrot.lane.b32.xlu0 %v808_v7, %s2289_s17 }
  0x44   : > { %1236 = vrot.lane.b32.xlu1 %v2370_v5, %s2288_s16 }
  0x45   : > { %1234 = vrot.lane.b32.xlu0 %v2367_v4, %s2288_s16 }
  0x48   : > { %1122 = vrot.lane.b32.xlu1 %v805_v58, %s2287_s13  ;;  %v2252_v58 = vld [vmem:[%s2773_s1 + $0x30] sm:$0xff]  }
  0x49   : > { %1120 = vrot.lane.b32.xlu0 %v802_v61, %s2287_s13 }
  0x4c   : > { %1334 = vrot.lane.b32.xlu1 %v2364_v3, %s2287_s13 }
  0x4d   : > { %1332 = vrot.lane.b32.xlu0 %v2376_v8, %s2287_s13 }
  0x50   : > { %1126 = vrot.lane.b32.xlu1 %v816_v6, %s2287_s13 }
  0x51   : > { %1124 = vrot.lane.b32.xlu0 %v808_v7, %s2287_s13 }
  0x54   : > { %1338 = vrot.lane.b32.xlu1 %v2370_v5, %s2287_s13 }
  0x55   : > { %1336 = vrot.lane.b32.xlu0 %v2367_v4, %s2287_s13 }
  0x58   : > { %2185 = vrot.lane.b32.xlu1 %v2184_v18, %s2289_s17 }
  0x59   : > { %2180 = vrot.lane.b32.xlu0 %v2179_v21, %s2289_s17 }
  0x5c   : > { %2195 = vrot.lane.b32.xlu1 %v2194_v25, %s2289_s17 }
  0x5d   : > { %2190 = vrot.lane.b32.xlu0 %v2189_v26, %s2289_s17 }
  0x60   : > { %2205 = vrot.lane.b32.xlu1 %v2184_v18, %s2288_s16 }
  0x61   : > { %2200 = vrot.lane.b32.xlu0 %v2179_v21, %s2288_s16 }
  0x64   : > { %2215 = vrot.lane.b32.xlu1 %v2194_v25, %s2288_s16 }
  0x65   : > { %2210 = vrot.lane.b32.xlu0 %v2189_v26, %s2288_s16  ;;  %s294_s16 = scalar_lea.vmem %s2778_s6, %s2781_s25 }
  0x68   : > { %2225 = vrot.lane.b32.xlu1 %v2184_v18, %s2287_s13 }
  0x69   : > { %2220 = vrot.lane.b32.xlu0 %v2179_v21, %s2287_s13 }
  0x6c   : > { %2235 = vrot.lane.b32.xlu1 %v2194_v25, %s2287_s13 }
  0x6d   : > { %2230 = vrot.lane.b32.xlu0 %v2189_v26, %s2287_s13 }
  0x70   : > { %526 = vperm.xlu1 %2240, %v515_v32  }
  0x71   : > { %523 = vperm.xlu0 %2239, %v514_v34  }
  0x74   : > { %529 = vperm.xlu1 %2240, %v516_v36  }
  0x75   : > { %532 = vperm.xlu0 %2239, %v517_v38  }
  0x78   : > { %535 = vperm.xlu1 %2240, %v518_v39  }
  0x79   : > { %538 = vperm.xlu0 %2239, %v519_v40  }
  0x7c   : > { %541 = vperm.xlu1 %2240, %v520_v41  }
  0x7d   : > { %544 = vperm.xlu0 %2239, %v521_v42  }
  0x86   : > { %v696_v43 = vpop.permute.xlu1 %695 }
  0x87   : > { %2036 = vmatprep.mubr.msk.bf16.mxu1 %vm412_vm11, %v696_v43 }
  0x8b   : > { %v399_v44 = vpop.permute.xlu0 %398 }
  0x8c   : > { %2012 = vmatprep.mubr.msk.bf16.mxu0 %vm412_vm11, %v399_v44 }
  0x8e   : > { %v698_v46 = vpop.permute.xlu1 %697 }
  0x8f   : > { %2037 = vmatmul.mubr.msk.bf16.vlgmr.msra.gmra.mrb[0].mxu1 %vm412_vm11, %v698_v46  ;;  %v401_v47 = vpop.permute.xlu0 %400 }
  0x90   : > { %2051 = vmatpush3.bf16.msra.mxu1 %v2397_v24  ;;  %2052 = vmatprep.mubr.msk.bf16.mxu1 %vm412_vm11, %v2376_v8 }
  0x91   : > { %2013 = vmatmul.mubr.msk.bf16.vlgmr.msra.gmra.mrb[0].mxu0 %vm412_vm11, %v401_v47  ;;  %2060 = vmatprep.subr.bf16.mxu1 %v2249_v45 }
  0x92   : > { %2021 = vmatpush3.bf16.msra.mxu0 %v2386_v17  ;;  %v405_v0 = vpop.permute.xlu1 %404 }
  0x93   : > { %2030 = vmatprep.subr.bf16.mxu0 %v2347_v1  ;;  %v403_v48 = vpop.permute.xlu0 %402 }
  0x94   : > { %2016 = vmatprep.mubr.msk.bf16.mxu0 %vm412_vm11, %v403_v48 }
  0x96   : > { %v592_v24 = vpop.permute.xlu1 %591 }
  0x97   : > { %2053 = vmatmul.mubr.msk.bf16.vlgmr.msra.gmra.mrb[4].mxu1 %vm412_vm11, %v2364_v3  ;;  %v590_v8 = vpop.permute.xlu0 %589  ;;  %v2251_v3 = vld [vmem:[%s2773_s1 + $0x18] sm:$0xff]  }
  0x98   : > { %2056 = vmatprep.mubr.msk.bf16.mxu1 %vm412_vm11, %v2367_v4  ;;  %2061 = vmatpush3.bf16.msra.mxu1 %v2249_v45 }
  0x99   : > { %2017 = vmatmul.mubr.msk.bf16.gmra.mrb[4].mxu0 %vm412_vm11, %v405_v0  ;;  %2080 = vmatprep.subr.bf16.mxu1 %v2250_v49 }
  0x9a   : > { %2022 = vmatprep.mubr.msk.bf16.mxu0 %vm412_vm11, %v590_v8  ;;  %v596_v17 = vpop.permute.xlu1 %595 }
  0x9b   : > { %v594_v50 = vpop.permute.xlu0 %593 }
  0x9e   : > { %v1021_v51 = vpop.permute.xlu1 %1020 }
  0x9f   : > { %2057 = vmatmul.mubr.msk.bf16.gmra.mrb[0].mxu1 %vm412_vm11, %v2370_v5  ;;  %v1019_v52 = vpop.permute.xlu0 %1018  ;;  %v2253_v5 = vld [vmem:[%s2773_s1 + $0x40] sm:$0xff]  }
  0xa0   : > { %2062 = vmatprep.mubr.msk.bf16.mxu1 %vm412_vm11, %v1019_v52 }
  0xa1   : > { %2023 = vmatmul.mubr.msk.bf16.vlgmr.msra.gmra.mrb[8].mxu0 %vm412_vm11, %v592_v24 }
  0xa2   : > { %2031 = vmatpush3.bf16.msra.mxu0 %v2347_v1  ;;  %2026 = vmatprep.mubr.msk.bf16.mxu0 %vm412_vm11, %v594_v50  ;;  %v694_v4 = vpop.permute.xlu1 %693 }
  0xa3   : > { %2040 = vmatprep.subr.bf16.mxu0 %v2251_v3  ;;  %v692_v53 = vpop.permute.xlu0 %691 }
  0xa6   : > { %v1025_v54 = vpop.permute.xlu1 %1024 }
  0xa7   : > { %2063 = vmatmul.mubr.msk.bf16.vlgmr.msra.gmra.mrb[4].mxu1 %vm412_vm11, %v1021_v51  ;;  %v1023_v55 = vpop.permute.xlu0 %1022 }
  0xa8   : > { %2081 = vmatpush3.bf16.msra.mxu1 %v2250_v49  ;;  %2066 = vmatprep.mubr.msk.bf16.mxu1 %vm412_vm11, %v1023_v55 }
  0xa9   : > { %2027 = vmatmul.mubr.msk.bf16.gmra.mrb[12].mxu0 %vm412_vm11, %v596_v17  ;;  %2090 = vmatprep.subr.bf16.mxu1 %v2253_v5 }
  0xaa   : > { %2032 = vmatprep.mubr.msk.bf16.mxu0 %vm412_vm11, %v692_v53  ;;  %v820_v1 = vpop.permute.xlu1 %819 }
  0xab   : > { %v818_v56 = vpop.permute.xlu0 %817 }
  0xae   : > { %v1233_v57 = vpop.permute.xlu1 %1232 }
  0xaf   : > { %2067 = vmatmul.mubr.msk.bf16.gmra.mrb[0].mxu1 %vm412_vm11, %v1025_v54  ;;  %v1231_v59 = vpop.permute.xlu0 %1230 }
  0xb0   : > { %2082 = vmatprep.mubr.msk.bf16.mxu1 %vm412_vm11, %v1231_v59 }
  0xb1   : > { %2033 = vmatmul.mubr.msk.bf16.vlgmr.msra.gmra.mrb[8].mxu0 %vm412_vm11, %v694_v4 }
  0xb2   : > { %2041 = vmatpush3.bf16.msra.mxu0 %v2251_v3  ;;  %2042 = vmatprep.mubr.msk.bf16.mxu0 %vm412_vm11, %v818_v56  ;;  %v824_v60 = vpop.permute.xlu1 %823 }
  0xb3   : > { %2070 = vmatprep.subr.bf16.mxu0 %v2252_v58  ;;  %v822_v61 = vpop.permute.xlu0 %821 }
  0xb6   : > { %v1237_v62 = vpop.permute.xlu1 %1236 }
  0xb7   : > { %2083 = vmatmul.mubr.msk.bf16.vlgmr.msra.gmra.mrb[4].mxu1 %vm412_vm11, %v1233_v57  ;;  %v1235_v63 = vpop.permute.xlu0 %1234 }
  0xb8   : > { %2091 = vmatpush3.bf16.msra.mxu1 %v2253_v5  ;;  %2086 = vmatprep.mubr.msk.bf16.mxu1 %vm412_vm11, %v1235_v63 }
  0xb9   : > { %2043 = vmatmul.mubr.msk.bf16.vlgmr.msra.gmra.mrb[16].mxu0 %vm412_vm11, %v820_v1 }
  0xba   : > { %2071 = vmatpush3.bf16.msra.mxu0 %v2252_v58  ;;  %2046 = vmatprep.mubr.msk.bf16.mxu0 %vm412_vm11, %v822_v61  ;;  %v1123_v2 = vpop.permute.xlu1 %1122 }
  0xbb   : > { %v1121_v6 = vpop.permute.xlu0 %1120 }
  0xbe   : > { %v1335_v7 = vpop.permute.xlu1 %1334 }
  0xbf   : > { %2087 = vmatmul.mubr.msk.bf16.gmra.mrb[0].mxu1 %vm412_vm11, %v1237_v62  ;;  %v1333_v18 = vpop.permute.xlu0 %1332 }
  0xc0   : > { %2092 = vmatprep.mubr.msk.bf16.mxu1 %vm412_vm11, %v1333_v18 }
  0xc1   : > { %2047 = vmatmul.mubr.msk.bf16.gmra.mrb[20].mxu0 %vm412_vm11, %v824_v60 }
  0xc2   : > { %2072 = vmatprep.mubr.msk.bf16.mxu0 %vm412_vm11, %v1121_v6  ;;  %v1127_v21 = vpop.permute.xlu1 %1126 }
  0xc3   : > { %v1125_v25 = vpop.permute.xlu0 %1124 }
  0xc6   : > { %v1339_v26 = vpop.permute.xlu1 %1338 }
  0xc7   : > { %2093 = vmatmul.mubr.msk.bf16.vlgmr.msra.gmra.mrb[4].mxu1 %vm412_vm11, %v1335_v7  ;;  %v1337_v27 = vpop.permute.xlu0 %1336 }
  0xc8   : > { %2096 = vmatprep.mubr.msk.bf16.mxu1 %vm412_vm11, %v1337_v27 }
  0xc9   : > { %2073 = vmatmul.mubr.msk.bf16.vlgmr.msra.gmra.mrb[24].mxu0 %vm412_vm11, %v1123_v2 }
  0xca   : > { %2076 = vmatprep.mubr.msk.bf16.mxu0 %vm412_vm11, %v1125_v25  ;;  %v2186_v28 = vpop.permute.xlu1 %2185 }
  0xcb   : > { %v2181_v29 = vpop.permute.xlu0 %2180  ;;  %v2254_v34 = vadd.high.f32.bf16 %v1953_v12, %v2186_v28  ;;  %v2255_v35 = vadd.low.f32.bf16 %v1952_v11, %v2186_v28 }
  0xcc   : > { %v2256_v36 = vadd.high.f32.bf16 %v1949_v14, %v2181_v29  ;;  %v2257_v37 = vadd.low.f32.bf16 %v1948_v13, %v2181_v29 }
  0xce   : > { %v2196_v30 = vpop.permute.xlu1 %2195 }
  0xcf   : > { %2097 = vmatmul.mubr.msk.bf16.gmra.mrb[0].mxu1 %vm412_vm11, %v1339_v26  ;;  %v2191_v31 = vpop.permute.xlu0 %2190  ;;  %v2260_v12 = vadd.high.f32.bf16 %v1961_v20, %v2196_v30  ;;  %v2261_v9 = vadd.low.f32.bf16 %v1960_v19, %v2196_v30 }
  0xd0   : > { %v2258_v40 = vadd.high.f32.bf16 %v1957_v23, %v2191_v31  ;;  %v2259_v41 = vadd.low.f32.bf16 %v1956_v22, %v2191_v31 }
  0xd1   : > { %2077 = vmatmul.mubr.msk.bf16.gmra.mrb[28].mxu0 %vm412_vm11, %v1127_v21 }
  0xd2   : > { %v2206_v32 = vpop.permute.xlu1 %2205 }
  0xd3   : > { %v2201_v33 = vpop.permute.xlu0 %2200  ;;  %v2262_v11 = vadd.low.f32.bf16 %v2255_v35, %v2206_v32  ;;  %v2263_v42 = vadd.high.f32.bf16 %v2254_v34, %v2206_v32 }
  0xd4   : > { %v2264_v14 = vadd.low.f32.bf16 %v2257_v37, %v2201_v33  ;;  %v2265_v43 = vadd.high.f32.bf16 %v2256_v36, %v2201_v33 }
  0xd6   : > { %v2216_v38 = vpop.permute.xlu1 %2215 }
  0xd7   : > { %v2211_v39 = vpop.permute.xlu0 %2210  ;;  %v2266_v44 = vadd.low.f32.bf16 %v2261_v9, %v2216_v38  ;;  %v2267_v45 = vadd.high.f32.bf16 %v2260_v12, %v2216_v38 }
  0xd8   : > { %v2270_v23 = vadd.low.f32.bf16 %v2259_v41, %v2211_v39  ;;  %v2271_v0 = vadd.high.f32.bf16 %v2258_v40, %v2211_v39 }
  0xda   : > { %v2226_v10 = vpop.permute.xlu1 %2225 }
  0xdb   : > { %v2221_v13 = vpop.permute.xlu0 %2220  ;;  %v2268_v46 = vadd.low.f32.bf16 %v2262_v11, %v2226_v10  ;;  %v2269_v47 = vadd.high.f32.bf16 %v2263_v42, %v2226_v10 }
  0xdc   : > { %v2272_v16 = vadd.low.f32.bf16 %v2264_v14, %v2221_v13  ;;  %v2273_v22 = vadd.high.f32.bf16 %v2265_v43, %v2221_v13 }
  0xdd   : > { %v1656_v49 = vmul.f32 0.25, %v2268_v46  ;;  %v1657_v20 = vmul.f32 0.25, %v2269_v47 }
  0xde   : > { %v2236_v48 = vpop.permute.xlu1 %2235  ;;  %v1654_v15 = vmul.f32 0.25, %v2272_v16  ;;  %v1655_v19 = vmul.f32 0.25, %v2273_v22 }
  0xdf   : > { %v2231_v24 = vpop.permute.xlu0 %2230  ;;  %v2276_v3 = vadd.low.f32.bf16 %v2266_v44, %v2236_v48  ;;  %v2277_v52 = vadd.high.f32.bf16 %v2267_v45, %v2236_v48  ;;  %v1941_v5 = vpack.c.bf16 %v1657_v20, %v1657_v20  ;;  %v1940_v54 = vpack.c.bf16 %v1656_v49, %v1656_v49 }
  0xe0   : > { %v2274_v8 = vadd.low.f32.bf16 %v2270_v23, %v2231_v24  ;;  %v2275_v17 = vadd.high.f32.bf16 %v2271_v0, %v2231_v24  ;;  %v1939_v50 = vpack.c.bf16 %v1655_v19, %v1655_v19  ;;  %v1938_v51 = vpack.c.bf16 %v1654_v15, %v1654_v15 }
  0xe1   : > { %v1660_v55 = vmul.f32 0.25, %v2276_v3  ;;  %v1661_v1 = vmul.f32 0.25, %v2277_v52 }
  0xe2   : > { %v1658_v4 = vmul.f32 0.25, %v2274_v8  ;;  %v1659_v53 = vmul.f32 0.25, %v2275_v17  ;;  %1688 = vrot.lane.b32.xlu0 %v1939_v50, %s2290_s26  ;;  %1686 = vrot.lane.b32.xlu1 %v1938_v51, %s2290_s26 }
  0xe3   : > { %v1945_v58 = vpack.c.bf16 %v1661_v1, %v1661_v1  ;;  %v1944_v59 = vpack.c.bf16 %v1660_v55, %v1660_v55 }
  0xe4   : > { %v1943_v56 = vpack.c.bf16 %v1659_v53, %v1659_v53  ;;  %v1942_v57 = vpack.c.bf16 %v1658_v4, %v1658_v4 }
  0xe6   : > { %1692 = vrot.lane.b32.xlu0 %v1941_v5, %s2290_s26  ;;  %1690 = vrot.lane.b32.xlu1 %v1940_v54, %s2290_s26 }
  0xea   : > { %1696 = vrot.lane.b32.xlu0 %v1943_v56, %s2290_s26  ;;  %1694 = vrot.lane.b32.xlu1 %v1942_v57, %s2290_s26 }
  0xee   : > { %1700 = vrot.lane.b32.xlu0 %v1945_v58, %s2290_s26  ;;  %1698 = vrot.lane.b32.xlu1 %v1944_v59, %s2290_s26 }
  0xef   : > { %v2622_v60 = vpop.permute.xlu1 %526 }
  0xf0   : > { %v2624_v61 = vpop.permute.xlu0 %523  ;;  %vm547_vm0 = vcmp.eq.s32.totalorder %v2622_v60, 1 }
  0xf1   : > { %vm546_vm14 = vcmp.eq.s32.totalorder %v2624_v61, 1  ;;  %v2708_v61 = vld [vmem:[%s2775_s3] ss:$0 sm:$0xff] }
  0xf3   : > { %v2626_v62 = vpop.permute.xlu1 %529 }
  0xf4   : > { %v2628_v63 = vpop.permute.xlu0 %532  ;;  %vm548_vm13 = vcmp.eq.s32.totalorder %v2626_v62, 1 }
  0xf5   : > { %vm549_vm15 = vcmp.eq.s32.totalorder %v2628_v63, 1 }
  0xf7   : > { %v2630_v2 = vpop.permute.xlu1 %535 }
  0xf8   : > { %v2632_v6 = vpop.permute.xlu0 %538  ;;  %vm550_vm1 = vcmp.eq.s32.totalorder %v2630_v2, 1 }
  0xf9   : > { %vm551_vm2 = vcmp.eq.s32.totalorder %v2632_v6, 1 }
  0xfb   : > { %v2634_v7 = vpop.permute.xlu1 %541 }
  0xfc   : > { %v2636_v18 = vpop.permute.xlu0 %544  ;;  %vm552_vm3 = vcmp.eq.s32.totalorder %v2634_v7, 1 }
  0xfd   : > { %vm553_vm4 = vcmp.eq.s32.totalorder %v2636_v18, 1 }
 0x154   : > { %v1689_v21 = vpop.permute.xlu0 %1688  ;;  %v1687_v25 = vpop.permute.xlu1 %1686 }
 0x155   : > { %1711 = vst.msk [vmem:[%s299_s29 + $0x4] sm:$0xf] %vm1501_vm12, %v1689_v21  ;;  %1710 = vst.msk [vmem:[%s299_s29] sm:$0xf] %vm1501_vm12, %v1687_v25 }
 0x158   : > { %v1693_v26 = vpop.permute.xlu0 %1692  ;;  %v1691_v27 = vpop.permute.xlu1 %1690 }
 0x159   : > { %1713 = vst.msk [vmem:[%s299_s29 + $0xc] sm:$0xf] %vm1501_vm12, %v1693_v26  ;;  %1712 = vst.msk [vmem:[%s299_s29 + $0x8] sm:$0xf] %vm1501_vm12, %v1691_v27 }
 0x15c   : > { %v1697_v28 = vpop.permute.xlu0 %1696  ;;  %v1695_v29 = vpop.permute.xlu1 %1694 }
 0x15d   : > { %1715 = vst.msk [vmem:[%s299_s29 + $0x14] sm:$0xf] %vm1501_vm12, %v1697_v28  ;;  %1714 = vst.msk [vmem:[%s299_s29 + $0x10] sm:$0xf] %vm1501_vm12, %v1695_v29 }
 0x160   : > { %v1701_v30 = vpop.permute.xlu0 %1700  ;;  %v1699_v31 = vpop.permute.xlu1 %1698 }
 0x161   : > { %1717 = vst.msk [vmem:[%s299_s29 + $0x1c] sm:$0xf] %vm1501_vm12, %v1701_v30  ;;  %1716 = vst.msk [vmem:[%s299_s29 + $0x18] sm:$0xf] %vm1501_vm12, %v1699_v31 }
 0x164   : > { %v2014_v32 = vpop.f32.mrb[0].mxu0 }
 0x165   : > { %v556_v33 = vsel %vm548_vm13, %v2014_v32, 0.0  ;;  %v459_v34 = vpop.f32.mrb[1].mxu0 }
 0x166   : > { %v554_v35 = vsel %vm546_vm14, %v459_v34, 0.0  ;;  %v2015_v36 = vpop.f32.mrb[2].mxu0 }
 0x167   : > { %v557_v37 = vsel %vm549_vm15, %v2015_v36, 0.0  ;;  %v462_v38 = vpop.f32.mrb[3].mxu0 }
 0x168   : > { %v555_v39 = vsel %vm547_vm0, %v462_v38, 0.0 }
 0x16c   : > { %v2018_v40 = vpop.f32.mrb[4].mxu0 }
 0x16d   : > { %v475_v41 = vpop.f32.mrb[5].mxu0  ;;  %v560_v14 = vsel %vm552_vm3, %v2018_v40, 0.0 }
 0x16e   : > { %v558_v12 = vsel %vm550_vm1, %v475_v41, 0.0  ;;  %v2019_v9 = vpop.f32.mrb[6].mxu0 }
 0x16f   : > { %v478_v11 = vpop.f32.mrb[7].mxu0  ;;  %v561_v44 = vsel %vm553_vm4, %v2019_v9, 0.0 }
 0x170   : > { %v559_v42 = vsel %vm551_vm2, %v478_v11, 0.0 }
 0x17c   : > { %v2028_v43 = vpop.f32.mrb[12].mxu0 }
 0x17d   : > { %v686_v10 = vadd.f32 %v2028_v43, %v560_v14  ;;  %v665_v13 = vpop.f32.mrb[13].mxu0 }
 0x17e   : > { %v684_v45 = vadd.f32 %v665_v13, %v558_v12  ;;  %v2029_v46 = vpop.f32.mrb[14].mxu0  ;;  %v2699_v12 = vld [vmem:[%s2774_s2] ss:$0 sm:$0xff] }
 0x17f   : > { %v687_v47 = vadd.f32 %v2029_v46, %v561_v44  ;;  %v668_v23 = vpop.f32.mrb[15].mxu0 }
 0x180   : > { %v685_v0 = vadd.f32 %v668_v23, %v559_v42 }
 0x184   : > { %v2034_v16 = vpop.f32.mrb[8].mxu0 }
 0x185   : > { %v2102_v22 = vadd.f32 %v2034_v16, %v556_v33  ;;  %v751_v48 = vpop.f32.mrb[9].mxu0 }
 0x186   : > { %v2106_v49 = vadd.f32 %v751_v48, %v554_v35  ;;  %v2035_v20 = vpop.f32.mrb[10].mxu0 }
 0x187   : > { %v2110_v24 = vadd.f32 %v2035_v20, %v557_v37  ;;  %v754_v15 = vpop.f32.mrb[11].mxu0 }
 0x188   : > { %v2114_v19 = vadd.f32 %v754_v15, %v555_v39 }
 0x18c   : > { %v2044_v8 = vpop.f32.mrb[16].mxu0 }
 0x18d   : > { %v910_v17 = vsel %vm548_vm13, %v2044_v8, 0.0  ;;  %v877_v50 = vpop.f32.mrb[17].mxu0 }
 0x18e   : > { %v2103_v51 = vadd.f32 %v2102_v22, %v910_v17  ;;  %v908_v3 = vsel %vm546_vm14, %v877_v50, 0.0  ;;  %v2045_v52 = vpop.f32.mrb[18].mxu0 }
 0x18f   : > { %v2107_v4 = vadd.f32 %v2106_v49, %v908_v3  ;;  %v911_v53 = vsel %vm549_vm15, %v2045_v52, 0.0  ;;  %v880_v5 = vpop.f32.mrb[19].mxu0 }
 0x190   : > { %v2111_v54 = vadd.f32 %v2110_v24, %v911_v53  ;;  %v909_v55 = vsel %vm547_vm0, %v880_v5, 0.0 }
 0x191   : > { %v2115_v1 = vadd.f32 %v2114_v19, %v909_v55 }
 0x194   : > { %v2048_v56 = vpop.f32.mrb[20].mxu0 }
 0x195   : > { %v914_v57 = vsel %vm552_vm3, %v2048_v56, 0.0  ;;  %v893_v58 = vpop.f32.mrb[21].mxu0 }
 0x196   : > { %v2119_v59 = vadd.f32 %v914_v57, %v686_v10  ;;  %v912_v21 = vsel %vm550_vm1, %v893_v58, 0.0  ;;  %v2049_v25 = vpop.f32.mrb[22].mxu0 }
 0x197   : > { %v2123_v26 = vadd.f32 %v912_v21, %v684_v45  ;;  %v915_v27 = vsel %vm553_vm4, %v2049_v25, 0.0  ;;  %v896_v28 = vpop.f32.mrb[23].mxu0 }
 0x198   : > { %v2127_v29 = vadd.f32 %v915_v27, %v687_v47  ;;  %v913_v30 = vsel %vm551_vm2, %v896_v28, 0.0 }
 0x199   : > { %v2690_v31 = vadd.f32 %v913_v30, %v685_v0 }
 0x19a   : > { %v2094_v32 = vpop.f32.mrb[4].mxu1 }
 0x19b   : > { %v1392_v33 = vpop.f32.mrb[5].mxu1 }
 0x19c   : > { %v2095_v34 = vpop.f32.mrb[6].mxu1  ;;  %v2074_v35 = vpop.f32.mrb[24].mxu0 }
 0x19d   : > { %v1395_v36 = vpop.f32.mrb[7].mxu1  ;;  %v1213_v37 = vsel %vm548_vm13, %v2074_v35, 0.0  ;;  %v1180_v38 = vpop.f32.mrb[25].mxu0 }
 0x19e   : > { %v2104_v39 = vadd.f32 %v2103_v51, %v1213_v37  ;;  %v1211_v40 = vsel %vm546_vm14, %v1180_v38, 0.0  ;;  %v2075_v41 = vpop.f32.mrb[26].mxu0 }
 0x19f   : > { %v2108_v9 = vadd.f32 %v2107_v4, %v1211_v40  ;;  %v1214_v11 = vsel %vm549_vm15, %v2075_v41, 0.0  ;;  %v1183_v42 = vpop.f32.mrb[27].mxu0 }
 0x1a0   : > { %v2105_v14 = vadd.f32 %v2104_v39, %v2094_v32  ;;  %v2112_v43 = vadd.f32 %v2111_v54, %v1214_v11  ;;  %v1212_v62 = vsel %vm547_vm0, %v1183_v42, 0.0 }
 0x1a1   : > { %v2109_v10 = vadd.f32 %v2108_v9, %v1392_v33  ;;  %v2116_v13 = vadd.f32 %v2115_v1, %v1212_v62 }
 0x1a2   : > { %v1440_v44 = vmul.f32 %v2105_v14, %v2699_v12  ;;  %v2113_v45 = vadd.f32 %v2112_v43, %v2095_v34  ;;  %v2098_v46 = vpop.f32.mrb[0].mxu1 }
 0x1a3   : > { %v1438_v63 = vmul.f32 %v2109_v10, %v2699_v12  ;;  %v2117_v47 = vadd.f32 %v2116_v13, %v1395_v36  ;;  %v1408_v23 = vpop.f32.mrb[1].mxu1 }
 0x1a4   : > { %v1455_v0 = vadd.f32 %v2708_v61, %v1440_v44  ;;  %v1441_v60 = vmul.f32 %v2113_v45, %v2699_v12  ;;  %v2099_v16 = vpop.f32.mrb[2].mxu1  ;;  %v2078_v22 = vpop.f32.mrb[28].mxu0 }
 0x1a5   : > { %v1453_v48 = vadd.f32 %v2708_v61, %v1438_v63  ;;  %v1439_v49 = vmul.f32 %v2117_v47, %v2699_v12  ;;  %v1411_v20 = vpop.f32.mrb[3].mxu1  ;;  %v1217_v24 = vsel %vm552_vm3, %v2078_v22, 0.0  ;;  %v1196_v15 = vpop.f32.mrb[29].mxu0 }
 0x1a6   : > { %v1463_v19 = vmax.f32 %v1455_v0, 0.0  ;;  %v1456_v8 = vadd.f32 %v2708_v61, %v1441_v60  ;;  %v2120_v17 = vadd.f32 %v2119_v59, %v1217_v24  ;;  %v1215_v50 = vsel %vm550_vm1, %v1196_v15, 0.0  ;;  %v2079_v51 = vpop.f32.mrb[30].mxu0 }
 0x1a7   : > { %v1461_v3 = vmax.f32 %v1453_v48, 0.0  ;;  %v1454_v7 = vadd.f32 %v2708_v61, %v1439_v49  ;;  %v2124_v52 = vadd.f32 %v2123_v26, %v1215_v50  ;;  %v1218_v4 = vsel %vm553_vm4, %v2079_v51, 0.0  ;;  %v1199_v53 = vpop.f32.mrb[31].mxu0 }
 0x1a8   : > { %v1932_v5 = vpack.c.bf16 %v1463_v19, %v1463_v19  ;;  %v1464_v2 = vmax.f32 %v1456_v8, 0.0  ;;  %v2121_v54 = vadd.f32 %v2120_v17, %v2098_v46  ;;  %v2128_v21 = vadd.f32 %v2127_v29, %v1218_v4 }
 0x1a9   : > { %v1930_v55 = vpack.c.bf16 %v1461_v3, %v1461_v3  ;;  %v1462_v1 = vmax.f32 %v1454_v7, 0.0  ;;  %v2125_v56 = vadd.f32 %v2124_v52, %v1408_v23  ;;  %v1510_v57 = vsel %vm412_vm11, %v1461_v3, 0.0 }
 0x1aa   : > { %1504 = vst.msk [vmem:[%s2725_s14 + $0x8] sm:$0xf] %vm1501_vm12, %v1932_v5  ;;  %v1933_v58 = vpack.c.bf16 %v1464_v2, %v1464_v2  ;;  %v1444_v59 = vmul.f32 %v2121_v54, %v2699_v12  ;;  %v1216_v27 = vsel %vm551_vm2, %v1199_v53, 0.0  ;;  %v2129_v32 = vadd.f32 %v2128_v21, %v2099_v16 }
 0x1ab   : > { %1502 = vst.msk [vmem:[%s2725_s14] sm:$0xf] %vm1501_vm12, %v1930_v55  ;;  %v1931_v18 = vpack.c.bf16 %v1462_v1, %v1462_v1  ;;  %v1511_v25 = vsel %vm412_vm11, %v1462_v1, 0.0  ;;  %v1442_v26 = vmul.f32 %v2125_v56, %v2699_v12  ;;  %v2132_v33 = vadd.f32 %v2690_v31, %v1216_v27 }
 0x1ac   : > { %1505 = vst.msk [vmem:[%s2725_s14 + $0xc] sm:$0xf] %vm1501_vm12, %v1933_v58  ;;  %v1512_v28 = vadd.f32 %v1511_v25, %v1510_v57  ;;  %v1459_v30 = vadd.f32 %v2708_v61, %v1444_v59  ;;  %v1513_v29 = vsel %vm412_vm11, %v1463_v19, 0.0  ;;  %v1445_v6 = vmul.f32 %v2129_v32, %v2699_v12 }
 0x1ad   : > { %1503 = vst.msk [vmem:[%s2725_s14 + $0x4] sm:$0xf] %vm1501_vm12, %v1931_v18  ;;  %v1457_v34 = vadd.f32 %v2708_v61, %v1442_v26  ;;  %v2133_v37 = vadd.f32 %v2132_v33, %v1411_v20  ;;  %v1515_v38 = vsel %vm412_vm11, %v1464_v2, 0.0 }
 0x1ae   : > { %v1514_v35 = vadd.f32 %v1513_v29, %v1512_v28  ;;  %v1467_v36 = vmax.f32 %v1459_v30, 0.0  ;;  %v1460_v31 = vadd.f32 %v2708_v61, %v1445_v6 }
 0x1af   : > { %v1465_v39 = vmax.f32 %v1457_v34, 0.0  ;;  %v1443_v42 = vmul.f32 %v2133_v37, %v2699_v12 }
 0x1b0   : > { %v1936_v40 = vpack.c.bf16 %v1467_v36, %v1467_v36  ;;  %v1516_v41 = vadd.f32 %v1515_v38, %v1514_v35  ;;  %v1468_v43 = vmax.f32 %v1460_v31, 0.0  ;;  %v1521_v63 = vsel %vm412_vm11, %v1467_v36, 0.0 }
 0x1b1   : > { %v1934_v9 = vpack.c.bf16 %v1465_v39, %v1465_v39  ;;  %v1517_v11 = vsel %vm412_vm11, %v1465_v39, 0.0  ;;  %v1458_v62 = vadd.f32 %v2708_v61, %v1443_v42 }
 0x1b2   : > { %1508 = vst.msk [vmem:[%s2725_s14 + $0x18] sm:$0xf] %vm1501_vm12, %v1936_v40  ;;  %v1518_v14 = vadd.f32 %v1517_v11, %v1516_v41  ;;  %v1937_v10 = vpack.c.bf16 %v1468_v43, %v1468_v43  ;;  %v1523_v47 = vsel %vm412_vm11, %v1468_v43, 0.0 }
 0x1b3   : > { %1506 = vst.msk [vmem:[%s2725_s14 + $0x10] sm:$0xf] %vm1501_vm12, %v1934_v9  ;;  %v1466_v13 = vmax.f32 %v1458_v62, 0.0 }
 0x1b4   : > { %1509 = vst.msk [vmem:[%s2725_s14 + $0x1c] sm:$0xf] %vm1501_vm12, %v1937_v10 }
 0x1b5   : > { %v1935_v44 = vpack.c.bf16 %v1466_v13, %v1466_v13  ;;  %v1519_v45 = vsel %vm412_vm11, %v1466_v13, 0.0 }
 0x1b6   : > { %v1520_v46 = vadd.f32 %v1519_v45, %v1518_v14 }
 0x1b7   : > { %1507 = vst.msk [vmem:[%s2725_s14 + $0x14] sm:$0xf] %vm1501_vm12, %v1935_v44 }
 0x1b8   : > { %v1522_v12 = vadd.f32 %v1521_v63, %v1520_v46 }
 0x1ba   : > { %v1524_v23 = vadd.f32 %v1523_v47, %v1522_v12 }
 0x1bc   : > { %v1525_v0 = vrot.slane %v1524_v23, 4 }
 0x1be   : > { %v1526_v60 = vadd.f32 %v1525_v0, %v1524_v23 }
 0x1c0   : > { %v1527_v61 = vrot.slane %v1526_v60, 2 }
 0x1c2   : > { %v1528_v16 = vadd.f32 %v1527_v61, %v1526_v60 }
 0x1c4   : > { %v1529_v22 = vrot.slane %v1528_v16, 1 }
 0x1c6   : > { %v1530_v48 = vadd.f32 %v1529_v22, %v1528_v16 }
 0x1c8   : > { %v1531_v49 = vmul.f32 0.015625, %v1530_v48 }
 0x1ca   : > { %1533 = vst.msk [vmem:[%s294_s16] sm:$0x1] %vm1532_vm5, %v1531_v49 }
 0x1cb PF: > { %s18_s24 = sadd.s32 1, %s2284_s24  }
 0x1cc   : > { %p15_p4 = scmp.ge.s32.totalorder %s18_s24, 4  }
 0x1ce   :  { %17 = sbr.rel (!%p15_p4) target bundleno = 1 (0x1), region = 102 }

// kernel: forward.31
= control target key start
LH: loop header
LB: loop body
LE: loop exit
PB: predicated region body
PF: predicated region fallthrough
CT: control target
= control target key end

     0   :  { %s859_s21 = smov 0   ;;  %s861_s22 = smov 0   ;;  %s924_s0 = inlined_call_operand.vmem [shape: bf16[2,64,16], index: 0, kind: input, shape index: {}]   ;;  %s925_s1 = inlined_call_operand.vmem [shape: bf16[16,16], index: 1, kind: input, shape index: {}]   ;;  %s926_s2 = inlined_call_operand.vmem [shape: f32[1,16], index: 2, kind: input, shape index: {}]   ;;  %s927_s3 = inlined_call_operand.vmem [shape: f32[1,16], index: 3, kind: input, shape index: {}]   ;;  %s928_s4 = inlined_call_operand.vmem [shape: f32[2,1,16], index: 4, kind: input, shape index: {}]   ;;  %s929_s5 = inlined_call_operand.vmem [shape: bf16[2,64,16], index: 5, kind: input, shape index: {}]   ;;  %s930_s6 = inlined_call_operand.vmem [shape: bf16[2,64,16], index: 6, kind: output, shape index: {}]  }
   0x1   :  { %s863_s23 = smov 0  }
   0x2 LB: > { %s28_s24 = sadd.s32 1, %s818_s22  ;;  %p684_p0 = scmp.ge.s32.totalorder %s822_s23, 1  ;;  %s822_s23 = sphi %s863_s23, %s16_s23   ;;  %s818_s22 = sphi %s861_s22, %s932_s22   ;;  %s814_s21 = sphi %s859_s21, %s931_s21  }
   0x3   : > { %p30_p1 = scmp.ge.s32.totalorder %s28_s24, 2  ;;  %p258_p2 = scmp.lt.s32.totalorder %s822_s23, 3 }
   0x5   : > { %s934_s24 = smov (%p30_p1, %s28_s24), 0  ;;  %p259_p3 = pnand %p684_p0, %p258_p2 }
   0x6   : > { %v799_v0 = vld [vmem:[%s925_s1] sm:$0xff] (!%p259_p3)   ;;  %p309_p4 = scmp.lt.s32.totalorder (!%p259_p3), %s814_s21, 1  ;;  %vm385_vm0 = vcmask (!%p259_p3), 130048   ;;  %vm557_vm1 = vcmask (!%p259_p3), 125952  }
   0x7   : > { %262 = sbr.rel (%p259_p3) target bundleno = 251 (0xfb), region = 44  ;;  %763 = vmatprep.subr.bf16.mxu0 (!%p259_p3), %v799_v0  ;;  %773 = vmatprep.subr.bf16.mxu1 (!%p259_p3), %v799_v0  ;;  %v697_v30 = vld [vmem:[%s926_s2] ss:$0 sm:$0xff] (!%p259_p3) }
   0x8   : > { %764 = vmatpush3.bf16.msra.mxu0 (!%p259_p3), %v799_v0  ;;  %774 = vmatpush3.bf16.msra.mxu1 (!%p259_p3), %v799_v0  ;;  %v698_v33 = vld [vmem:[%s927_s3] ss:$0 sm:$0xff] (!%p259_p3) }
   0xe   : > { %s936_s21 = smov (!%p309_p4, %s814_s21), 1 }
   0xf   : > { %s880_s27 = sshll.u32 %s936_s21, 5  ;;  %s320_s30 = scalar_lea.vmem %s928_s4, %s936_s21 }
  0x10   : > { %s316_s9 = scalar_lea.vmem %s924_s0, %s880_s27  ;;  %v691_v1 = vld [vmem:[%s320_s30] ss:$0 sm:$0xff]  ;;  %s329_s12 = scalar_lea.vmem %s929_s5, %s880_s27 }
  0x11   : > { %v721_v2 = vld [vmem:[%s316_s9] sm:$0xff]   ;;  %v753_v3 = vld [vmem:[%s316_s9 + $0x10] sm:$0xff]   ;;  %v752_v4 = vld [vmem:[%s316_s9 + $0x8] sm:$0xff]   ;;  %s339_s19 = scalar_lea.vmem %s930_s6, %s880_s27 }
  0x12   : > { %v722_v5 = vunpack.c.l.bf16 %v721_v2  ;;  %v723_v6 = vunpack.c.h.bf16 %v721_v2  ;;  %v730_v7 = vunpack.c.l.bf16 %v753_v3  ;;  %v731_v8 = vunpack.c.h.bf16 %v753_v3  ;;  %v754_v9 = vld [vmem:[%s316_s9 + $0x18] sm:$0xff]   ;;  %v755_v26 = vld [vmem:[%s329_s12 + $0x8] sm:$0xff]   ;;  %v737_v28 = vld [vmem:[%s329_s12] sm:$0xff]  }
  0x13   : > { %v726_v10 = vunpack.c.l.bf16 %v752_v4  ;;  %v727_v11 = vunpack.c.h.bf16 %v752_v4  ;;  %v734_v12 = vunpack.c.l.bf16 %v754_v9  ;;  %v735_v13 = vunpack.c.h.bf16 %v754_v9  ;;  %v757_v27 = vld [vmem:[%s329_s12 + $0x18] sm:$0xff]   ;;  %v756_v29 = vld [vmem:[%s329_s12 + $0x10] sm:$0xff]  }
  0x14   : > { %v365_v14 = vmul.f32 %v722_v5, %v691_v1  ;;  %v366_v15 = vmul.f32 %v723_v6, %v691_v1  ;;  %v369_v16 = vmul.f32 %v730_v7, %v691_v1  ;;  %v370_v17 = vmul.f32 %v731_v8, %v691_v1 }
  0x15   : > { %v367_v18 = vmul.f32 %v726_v10, %v691_v1  ;;  %v368_v19 = vmul.f32 %v727_v11, %v691_v1  ;;  %v371_v20 = vmul.f32 %v734_v12, %v691_v1  ;;  %v372_v21 = vmul.f32 %v735_v13, %v691_v1 }
  0x16   : > { %v373_v22 = vpack.c.bf16 %v366_v15, %v365_v14  ;;  %v375_v23 = vpack.c.bf16 %v370_v17, %v369_v16  ;;  %v742_v31 = vunpack.c.l.bf16 %v755_v26  ;;  %v750_v35 = vunpack.c.l.bf16 %v757_v27 }
  0x17   : > { %v374_v24 = vpack.c.bf16 %v368_v19, %v367_v18  ;;  %v376_v25 = vpack.c.bf16 %v372_v21, %v371_v20  ;;  %v738_v36 = vunpack.c.l.bf16 %v737_v28  ;;  %v746_v37 = vunpack.c.l.bf16 %v756_v29 }
  0x18   : > { %765 = vmatprep.mubr.msk.bf16.mxu0 %vm385_vm0, %v373_v22  ;;  %769 = vmatprep.mubr.msk.bf16.mxu1 %vm385_vm0, %v375_v23  ;;  %v743_v38 = vunpack.c.h.bf16 %v755_v26  ;;  %v751_v43 = vunpack.c.h.bf16 %v757_v27  ;;  %v739_v44 = vunpack.c.h.bf16 %v737_v28  ;;  %v747_v49 = vunpack.c.h.bf16 %v756_v29 }
  0x19   : > { %766 = vmatmul.mubr.msk.bf16.vlgmr.msra.gmra.mrb[0].mxu0 %vm385_vm0, %v374_v24  ;;  %770 = vmatmul.mubr.msk.bf16.vlgmr.msra.gmra.mrb[0].mxu1 %vm385_vm0, %v376_v25 }
  0xec   : > { %v767_v32 = vpop.f32.mrb[0].mxu0  ;;  %v771_v34 = vpop.f32.mrb[0].mxu1 }
  0xed   : > { %v472_v39 = vmul.f32 %v767_v32, %v697_v30  ;;  %v476_v40 = vmul.f32 %v771_v34, %v697_v30  ;;  %v432_v41 = vpop.f32.mrb[1].mxu0  ;;  %v448_v42 = vpop.f32.mrb[1].mxu1 }
  0xee   : > { %v470_v45 = vmul.f32 %v697_v30, %v432_v41  ;;  %v474_v46 = vmul.f32 %v697_v30, %v448_v42  ;;  %v768_v47 = vpop.f32.mrb[2].mxu0  ;;  %v772_v48 = vpop.f32.mrb[2].mxu1 }
  0xef   : > { %v487_v50 = vadd.f32 %v698_v33, %v472_v39  ;;  %v491_v51 = vadd.f32 %v698_v33, %v476_v40  ;;  %v473_v52 = vmul.f32 %v768_v47, %v697_v30  ;;  %v477_v53 = vmul.f32 %v772_v48, %v697_v30  ;;  %v435_v54 = vpop.f32.mrb[3].mxu0  ;;  %v451_v55 = vpop.f32.mrb[3].mxu1 }
  0xf0   : > { %v485_v56 = vadd.f32 %v698_v33, %v470_v45  ;;  %v489_v57 = vadd.f32 %v698_v33, %v474_v46  ;;  %v471_v58 = vmul.f32 %v697_v30, %v435_v54  ;;  %v475_v59 = vmul.f32 %v697_v30, %v451_v55 }
  0xf1   : > { %v511_v60 = vadd.f32 %v742_v31, %v487_v50  ;;  %v515_v61 = vadd.f32 %v750_v35, %v491_v51  ;;  %v488_v62 = vadd.f32 %v698_v33, %v473_v52  ;;  %v492_v63 = vadd.f32 %v698_v33, %v477_v53 }
  0xf2   : > { %v509_v0 = vadd.f32 %v738_v36, %v485_v56  ;;  %v513_v1 = vadd.f32 %v746_v37, %v489_v57  ;;  %v486_v2 = vadd.f32 %v698_v33, %v471_v58  ;;  %v490_v3 = vadd.f32 %v698_v33, %v475_v59 }
  0xf3   : > { %v519_v4 = vmax.f32 %v511_v60, 0.0  ;;  %v523_v5 = vmax.f32 %v515_v61, 0.0  ;;  %v512_v6 = vadd.f32 %v743_v38, %v488_v62  ;;  %v516_v7 = vadd.f32 %v751_v43, %v492_v63 }
  0xf4   : > { %v517_v8 = vmax.f32 %v509_v0, 0.0  ;;  %v521_v9 = vmax.f32 %v513_v1, 0.0  ;;  %v510_v10 = vadd.f32 %v739_v44, %v486_v2  ;;  %v514_v11 = vadd.f32 %v747_v49, %v490_v3 }
  0xf5   : > { %v714_v12 = vpack.c.bf16 %v519_v4, %v519_v4  ;;  %v718_v13 = vpack.c.bf16 %v523_v5, %v523_v5  ;;  %v520_v14 = vmax.f32 %v512_v6, 0.0  ;;  %v524_v15 = vmax.f32 %v516_v7, 0.0 }
  0xf6   : > { %v712_v16 = vpack.c.bf16 %v517_v8, %v517_v8  ;;  %v716_v17 = vpack.c.bf16 %v521_v9, %v521_v9  ;;  %v518_v18 = vmax.f32 %v510_v10, 0.0  ;;  %v522_v19 = vmax.f32 %v514_v11, 0.0 }
  0xf7   : > { %560 = vst.msk [vmem:[%s339_s19 + $0x8] sm:$0xf] %vm557_vm1, %v714_v12  ;;  %564 = vst.msk [vmem:[%s339_s19 + $0x18] sm:$0xf] %vm557_vm1, %v718_v13  ;;  %v715_v20 = vpack.c.bf16 %v520_v14, %v520_v14  ;;  %v719_v21 = vpack.c.bf16 %v524_v15, %v524_v15 }
  0xf8   : > { %558 = vst.msk [vmem:[%s339_s19] sm:$0xf] %vm557_vm1, %v712_v16  ;;  %562 = vst.msk [vmem:[%s339_s19 + $0x10] sm:$0xf] %vm557_vm1, %v716_v17  ;;  %v713_v22 = vpack.c.bf16 %v518_v18, %v518_v18  ;;  %v717_v23 = vpack.c.bf16 %v522_v19, %v522_v19 }
  0xf9   : > { %561 = vst.msk [vmem:[%s339_s19 + $0xc] sm:$0xf] %vm557_vm1, %v715_v20  ;;  %565 = vst.msk [vmem:[%s339_s19 + $0x1c] sm:$0xf] %vm557_vm1, %v719_v21 }
  0xfa   : > { %559 = vst.msk [vmem:[%s339_s19 + $0x4] sm:$0xf] %vm557_vm1, %v713_v22  ;;  %563 = vst.msk [vmem:[%s339_s19 + $0x14] sm:$0xf] %vm557_vm1, %v717_v23 }
  0xfb PF: > { %s16_s23 = sadd.s32 1, %s822_s23   ;;  %s931_s21 = smov %s818_s22 }
  0xfc   : > { %p13_p5 = scmp.ge.s32.totalorder %s16_s23, 4   ;;  %s932_s22 = smov %s934_s24 }
  0xfe   :  { %15 = sbr.rel (!%p13_p5) target bundleno = 2 (0x2), region = 80 }

// kernel: forward.32
= control target key start
LH: loop header
LB: loop body
LE: loop exit
PB: predicated region body
PF: predicated region fallthrough
CT: control target
= control target key end

     0   :  { %s664_s15 = smov 0   ;;  %s666_s16 = smov 0   ;;  %s729_s0 = inlined_call_operand.vmem [shape: bf16[2,64,16], index: 0, kind: input, shape index: {}]   ;;  %s730_s1 = inlined_call_operand.vmem [shape: bf16[16,32], index: 1, kind: input, shape index: {}]   ;;  %s731_s2 = inlined_call_operand.vmem [shape: f32[1,32], index: 2, kind: input, shape index: {}]   ;;  %s732_s3 = inlined_call_operand.vmem [shape: f32[1,32], index: 3, kind: input, shape index: {}]   ;;  %s733_s4 = inlined_call_operand.vmem [shape: bf16[2,64,32], index: 4, kind: output, shape index: {}]  }
   0x1   :  { %s668_s17 = smov 0  }
   0x2 LB: > { %s26_s18 = sadd.s32 1, %s633_s16  ;;  %p533_p0 = scmp.ge.s32.totalorder %s637_s17, 1  ;;  %s637_s17 = sphi %s668_s17, %s14_s17   ;;  %s633_s16 = sphi %s666_s16, %s735_s16   ;;  %s629_s15 = sphi %s664_s15, %s734_s15  }
   0x3   : > { %p28_p1 = scmp.ge.s32.totalorder %s26_s18, 2  ;;  %p183_p2 = scmp.lt.s32.totalorder %s637_s17, 3 }
   0x5   : > { %s737_s18 = smov (%p28_p1, %s26_s18), 0  ;;  %p184_p3 = pnand %p533_p0, %p183_p2 }
   0x6   : > { %v610_v0 = vld [vmem:[%s730_s1] sm:$0xff] (!%p184_p3)   ;;  %p218_p4 = scmp.lt.s32.totalorder (!%p184_p3), %s629_s15, 1  ;;  %vm274_vm0 = vcmask (!%p184_p3), 130048   ;;  %v382_v5 = vlaneseq (!%p184_p3)  ;;  %vm433_vm2 = vcmask (!%p184_p3), 257024  }
   0x7   : > { %187 = sbr.rel (%p184_p3) target bundleno = 246 (0xf6), region = 36  ;;  %574 = vmatprep.subr.bf16.mxu0 (!%p184_p3), %v610_v0  ;;  %584 = vmatprep.subr.bf16.mxu1 (!%p184_p3), %v610_v0  ;;  %v547_v6 = vld [vmem:[%s731_s2] ss:$0 sm:$0xff] (!%p184_p3) }
   0x8   : > { %575 = vmatpush3.bf16.msra.mxu0 (!%p184_p3), %v610_v0  ;;  %585 = vmatpush3.bf16.msra.mxu1 (!%p184_p3), %v610_v0  ;;  %v383_v7 = vand.u32 (!%p184_p3), 127, %v382_v5  ;;  %v548_v9 = vld [vmem:[%s732_s3] ss:$0 sm:$0xff] (!%p184_p3) }
   0xa   : > { %vm384_vm1 = vcmp.lt.s32.totalorder (!%p184_p3), %v383_v7, 16 }
   0xe   : > { %s739_s15 = smov (!%p218_p4, %s629_s15), 1 }
   0xf   : > { %s559_s21 = sshll.u32 %s739_s15, 5 }
  0x10   : > { %s225_s24 = scalar_lea.vmem %s729_s0, %s559_s21  ;;  %s235_s5 = scalar_lea.vmem %s733_s4, %s559_s21 }
  0x11   : > { %v611_v1 = vld [vmem:[%s225_s24] sm:$0xff]   ;;  %v612_v2 = vld [vmem:[%s225_s24 + $0x10] sm:$0xff]   ;;  %v613_v3 = vld [vmem:[%s225_s24 + $0x8] sm:$0xff]  }
  0x12   : > { %576 = vmatprep.mubr.msk.bf16.mxu0 %vm274_vm0, %v611_v1  ;;  %580 = vmatprep.mubr.msk.bf16.mxu1 %vm274_vm0, %v612_v2  ;;  %v614_v4 = vld [vmem:[%s225_s24 + $0x18] sm:$0xff]  }
  0x13   : > { %577 = vmatmul.mubr.msk.bf16.vlgmr.msra.gmra.mrb[0].mxu0 %vm274_vm0, %v613_v3  ;;  %581 = vmatmul.mubr.msk.bf16.vlgmr.msra.gmra.mrb[0].mxu1 %vm274_vm0, %v614_v4 }
  0xe6   : > { %v578_v8 = vpop.f32.mrb[0].mxu0  ;;  %v582_v11 = vpop.f32.mrb[0].mxu1 }
  0xe7   : > { %v361_v10 = vmul.f32 %v578_v8, %v547_v6  ;;  %v321_v12 = vpop.f32.mrb[1].mxu0  ;;  %v365_v13 = vmul.f32 %v582_v11, %v547_v6  ;;  %v337_v15 = vpop.f32.mrb[1].mxu1 }
  0xe8   : > { %v359_v14 = vmul.f32 %v547_v6, %v321_v12  ;;  %v579_v16 = vpop.f32.mrb[2].mxu0  ;;  %v363_v18 = vmul.f32 %v547_v6, %v337_v15  ;;  %v583_v20 = vpop.f32.mrb[2].mxu1 }
  0xe9   : > { %v376_v17 = vadd.f32 %v548_v9, %v361_v10  ;;  %v362_v19 = vmul.f32 %v579_v16, %v547_v6  ;;  %v324_v21 = vpop.f32.mrb[3].mxu0  ;;  %v380_v22 = vadd.f32 %v548_v9, %v365_v13  ;;  %v366_v24 = vmul.f32 %v583_v20, %v547_v6  ;;  %v340_v26 = vpop.f32.mrb[3].mxu1 }
  0xea   : > { %v374_v23 = vadd.f32 %v548_v9, %v359_v14  ;;  %v360_v25 = vmul.f32 %v547_v6, %v324_v21  ;;  %v378_v28 = vadd.f32 %v548_v9, %v363_v18  ;;  %v364_v30 = vmul.f32 %v547_v6, %v340_v26 }
  0xeb   : > { %v387_v27 = vmax.f32 %v376_v17, 0.0  ;;  %v377_v29 = vadd.f32 %v548_v9, %v362_v19  ;;  %v391_v31 = vmax.f32 %v380_v22, 0.0  ;;  %v381_v33 = vadd.f32 %v548_v9, %v366_v24 }
  0xec   : > { %v385_v32 = vmax.f32 %v374_v23, 0.0  ;;  %v375_v34 = vadd.f32 %v548_v9, %v360_v25  ;;  %v389_v36 = vmax.f32 %v378_v28, 0.0  ;;  %v379_v38 = vadd.f32 %v548_v9, %v364_v30 }
  0xed   : > { %v395_v35 = vsel %vm384_vm1, %v387_v27, %v376_v17  ;;  %v388_v37 = vmax.f32 %v377_v29, 0.0  ;;  %v399_v40 = vsel %vm384_vm1, %v391_v31, %v380_v22  ;;  %v392_v42 = vmax.f32 %v381_v33, 0.0 }
  0xee   : > { %v563_v39 = vpack.c.bf16 %v395_v35, %v395_v35  ;;  %v393_v41 = vsel %vm384_vm1, %v385_v32, %v374_v23  ;;  %v567_v43 = vpack.c.bf16 %v399_v40, %v399_v40  ;;  %v397_v45 = vsel %vm384_vm1, %v389_v36, %v378_v28 }
  0xef   : > { %v561_v44 = vpack.c.bf16 %v393_v41, %v393_v41  ;;  %v396_v46 = vsel %vm384_vm1, %v388_v37, %v377_v29  ;;  %v565_v47 = vpack.c.bf16 %v397_v45, %v397_v45  ;;  %v400_v49 = vsel %vm384_vm1, %v392_v42, %v381_v33 }
  0xf0   : > { %436 = vst.msk [vmem:[%s235_s5 + $0x8] sm:$0xf] %vm433_vm2, %v563_v39  ;;  %v564_v48 = vpack.c.bf16 %v396_v46, %v396_v46  ;;  %v386_v50 = vmax.f32 %v375_v34, 0.0  ;;  %440 = vst.msk [vmem:[%s235_s5 + $0x18] sm:$0xf] %vm433_vm2, %v567_v43  ;;  %v568_v51 = vpack.c.bf16 %v400_v49, %v400_v49  ;;  %v390_v52 = vmax.f32 %v379_v38, 0.0 }
  0xf1   : > { %434 = vst.msk [vmem:[%s235_s5] sm:$0xf] %vm433_vm2, %v561_v44  ;;  %438 = vst.msk [vmem:[%s235_s5 + $0x10] sm:$0xf] %vm433_vm2, %v565_v47 }
  0xf2   : > { %437 = vst.msk [vmem:[%s235_s5 + $0xc] sm:$0xf] %vm433_vm2, %v564_v48  ;;  %v394_v53 = vsel %vm384_vm1, %v386_v50, %v375_v34  ;;  %441 = vst.msk [vmem:[%s235_s5 + $0x1c] sm:$0xf] %vm433_vm2, %v568_v51  ;;  %v398_v55 = vsel %vm384_vm1, %v390_v52, %v379_v38 }
  0xf3   : > { %v562_v54 = vpack.c.bf16 %v394_v53, %v394_v53  ;;  %v566_v56 = vpack.c.bf16 %v398_v55, %v398_v55 }
  0xf5   : > { %435 = vst.msk [vmem:[%s235_s5 + $0x4] sm:$0xf] %vm433_vm2, %v562_v54  ;;  %439 = vst.msk [vmem:[%s235_s5 + $0x14] sm:$0xf] %vm433_vm2, %v566_v56 }
  0xf6 PF: > { %s14_s17 = sadd.s32 1, %s637_s17   ;;  %s734_s15 = smov %s633_s16 }
  0xf7   : > { %p11_p5 = scmp.ge.s32.totalorder %s14_s17, 4   ;;  %s735_s16 = smov %s737_s18 }
  0xf9   :  { %13 = sbr.rel (!%p11_p5) target bundleno = 2 (0x2), region = 66 }

// kernel: forward.34
= control target key start
LH: loop header
LB: loop body
LE: loop exit
PB: predicated region body
PF: predicated region fallthrough
CT: control target
= control target key end

     0   :  { %v236_v0 = vmov 0.0|0.0   ;;  %vm237_vm0 = vmmov 0   ;;  %v238_v3 = vmov 0.0   ;;  %vm30_vm1 = vcmask 130048   ;;  %s290_s1 = inlined_call_operand.vmem [shape: f32[16,4], index: 1, kind: input, shape index: {}]   ;;  %s291_s0 = inlined_call_operand.vmem [shape: f32[2,16], index: 0, kind: input, shape index: {}]   ;;  %s292_s3 = inlined_call_operand.vmem [shape: f32[4,16], index: 3, kind: input, shape index: {}]   ;;  %s293_s2 = inlined_call_operand.vmem [shape: f32[1,4], index: 2, kind: input, shape index: {}]   ;;  %s294_s4 = inlined_call_operand.vmem [shape: f32[1,16], index: 4, kind: input, shape index: {}]   ;;  %s295_s5 = inlined_call_operand.vmem [shape: f32[2,16], index: 5, kind: output, shape index: {}]  }
   0x1   :  { %226 = vmatprep.subr.bf16.mxu0 %v236_v0  ;;  %v21_v1 = vld [vmem:[%s290_s1] sm:$0xff]  ;;  %v22_v2 = vld [vmem:[%s290_s1 + $0x8] sm:$0xff]  ;;  %218 = vmatprep.mubr.msk.f32.mxu0 %vm237_vm0, %v238_v3  ;;  %vm117_vm2 = vcmask 1043456   ;;  %vm113_vm3 = vcmask 31744   ;;  %vm197_vm4 = vcmask 123904  }
   0x2   :  { %v227_v4 = vpack.c.bf16 %v22_v2, %v21_v1  ;;  %221 = vmatprep.subr.mxu1 %v238_v3  ;;  %223 = vmatprep.mubr.msk.f32.mxu1 %vm237_vm0, %v238_v3  ;;  %v20_v5 = vld [vmem:[%s291_s0] sm:$0x3] }
   0x3   :  { %v105_v6 = vld [vmem:[%s292_s3] sm:$0xf] }
   0x4   :  { %228 = vmatpush3.bf16.msra.mxu0 %v227_v4  ;;  %222 = vmatpush3.msk.msra.mxu1 %vm117_vm2, %v105_v6  ;;  %v203_v7 = vld [vmem:[%s293_s2] ss:$0 sm:$0xff] }
   0x5   :  { %v205_v12 = vld [vmem:[%s294_s4] ss:$0 sm:$0xff] }
   0x7   :  { %219 = vmatmul.mubr.msk.f32.vlgmr.msra.gmra.mrb[0].mxu0 %vm30_vm1, %v20_v5 }
  0xda   :  { %v100_v8 = vpop.f32.mrb[0].mxu0 }
  0xdb   :  { %v101_v9 = vadd.f32 %v203_v7, %v100_v8  ;;  %v220_v10 = vpop.f32.mrb[1].mxu0 }
  0xdd   :  { %v104_v11 = vmax.f32 %v101_v9, 0.0 }
  0xdf   :  { %224 = vmatmul.mubr.msk.f32.vlgmr.msra.gmra.mrb[0].mxu1 %vm113_vm3, %v104_v11 }
 0x1b2   :  { %v187_v13 = vpop.f32.mrb[0].mxu1 }
 0x1b3   :  { %v188_v14 = vadd.f32 %v205_v12, %v187_v13  ;;  %v225_v15 = vpop.f32.mrb[1].mxu1 }
 0x1b5   :  { %v208_v16 = vmul.f32 -1.442695, %v188_v14 }
 0x1b7   :  { %232 = vpow2.f32 %v208_v16 }
 0x1c1   :  { %v233_v17 = vpop.eup %232 }
 0x1c2   :  { %v194_v18 = vadd.f32 1.0, %v233_v17 }
 0x1c4   :  { %234 = vrcp.f32 %v194_v18 }
 0x1ce   :  { %v235_v19 = vpop.eup %234 }
 0x1cf   :  { %198 = vst.msk [vmem:[%s295_s5] sm:$0x3] %vm197_vm4, %v235_v19 }

// kernel: forward.36
= control target key start
LH: loop header
LB: loop body
LE: loop exit
PB: predicated region body
PF: predicated region fallthrough
CT: control target
= control target key end

     0   :  { %s525_s15 = smov 0   ;;  %s527_s16 = smov 0   ;;  %s567_s0 = inlined_call_operand.vmem [shape: bf16[2,16,16], index: 0, kind: input, shape index: {}]   ;;  %s568_s1 = inlined_call_operand.vmem [shape: bf16[16,16], index: 1, kind: input, shape index: {}]   ;;  %s569_s2 = inlined_call_operand.vmem [shape: f32[1,16], index: 2, kind: input, shape index: {}]   ;;  %s570_s3 = inlined_call_operand.vmem [shape: f32[1,16], index: 3, kind: input, shape index: {}]   ;;  %s571_s4 = inlined_call_operand.vmem [shape: bf16[2,16,16], index: 4, kind: output, shape index: {}]  }
   0x1   :  { %s529_s17 = smov 0  }
   0x2 LB: > { %s26_s18 = sadd.s32 1, %s492_s16  ;;  %p420_p0 = scmp.ge.s32.totalorder %s496_s17, 1  ;;  %s496_s17 = sphi %s529_s17, %s14_s17   ;;  %s492_s16 = sphi %s527_s16, %s573_s16   ;;  %s488_s15 = sphi %s525_s15, %s572_s15  }
   0x3   : > { %p28_p1 = scmp.ge.s32.totalorder %s26_s18, 2  ;;  %p183_p2 = scmp.lt.s32.totalorder %s496_s17, 3 }
   0x5   : > { %s575_s18 = smov (%p28_p1, %s26_s18), 0  ;;  %p184_p3 = pnand %p420_p0, %p183_p2 }
   0x6   : > { %v472_v0 = vld [vmem:[%s568_s1] sm:$0xff] (!%p184_p3)   ;;  %v498_v1 = vmov (!%p184_p3), 0.0   ;;  %p218_p4 = scmp.lt.s32.totalorder (!%p184_p3), %s488_s15, 1  ;;  %vm499_vm0 = vmmov (!%p184_p3), 0   ;;  %vm253_vm1 = vcmask (!%p184_p3), 130048   ;;  %vm326_vm2 = vcmask (!%p184_p3), 125952  }
   0x7   : > { %187 = sbr.rel (%p184_p3) target bundleno = 241 (0xf1), region = 36  ;;  %440 = vmatprep.subr.bf16.mxu0 (!%p184_p3), %v498_v1  ;;  %442 = vmatprep.mubr.msk.bf16.mxu0 (!%p184_p3), %vm499_vm0, %v498_v1  ;;  %v428_v3 = vld [vmem:[%s569_s2] ss:$0 sm:$0xff] (!%p184_p3) }
   0x8   : > { %441 = vmatpush3.bf16.msra.mxu0 (!%p184_p3), %v472_v0  ;;  %v429_v5 = vld [vmem:[%s570_s3] ss:$0 sm:$0xff] (!%p184_p3) }
   0xe   : > { %s577_s15 = smov (!%p218_p4, %s488_s15), 1 }
   0xf   : > { %s434_s21 = sshll.u32 %s577_s15, 3 }
  0x10   : > { %s225_s24 = scalar_lea.vmem %s567_s0, %s434_s21  ;;  %s235_s5 = scalar_lea.vmem %s571_s4, %s434_s21 }
  0x11   : > { %v473_v2 = vld [vmem:[%s225_s24] sm:$0xff]  }
  0x12   : > { %443 = vmatmul.mubr.msk.bf16.vlgmr.msra.gmra.mrb[0].mxu0 %vm253_vm1, %v473_v2 }
  0xe5   : > { %v291_v4 = vpop.f32.mrb[0].mxu0 }
  0xe6   : > { %v305_v6 = vmul.f32 %v428_v3, %v291_v4  ;;  %v444_v7 = vpop.f32.mrb[1].mxu0 }
  0xe7   : > { %v294_v8 = vpop.f32.mrb[2].mxu0 }
  0xe8   : > { %v314_v9 = vadd.f32 %v429_v5, %v305_v6  ;;  %v306_v10 = vmul.f32 %v428_v3, %v294_v8  ;;  %v445_v11 = vpop.f32.mrb[3].mxu0 }
  0xea   : > { %v316_v12 = vmax.f32 %v314_v9, 0.0  ;;  %v315_v13 = vadd.f32 %v429_v5, %v306_v10 }
  0xec   : > { %v436_v14 = vpack.c.bf16 %v316_v12, %v316_v12  ;;  %v317_v15 = vmax.f32 %v315_v13, 0.0 }
  0xee   : > { %327 = vst.msk [vmem:[%s235_s5] sm:$0xf] %vm326_vm2, %v436_v14  ;;  %v437_v16 = vpack.c.bf16 %v317_v15, %v317_v15 }
  0xf0   : > { %328 = vst.msk [vmem:[%s235_s5 + $0x4] sm:$0xf] %vm326_vm2, %v437_v16 }
  0xf1 PF: > { %s14_s17 = sadd.s32 1, %s496_s17   ;;  %s572_s15 = smov %s492_s16 }
  0xf2   : > { %p11_p5 = scmp.ge.s32.totalorder %s14_s17, 4   ;;  %s573_s16 = smov %s575_s18 }
  0xf4   :  { %13 = sbr.rel (!%p11_p5) target bundleno = 2 (0x2), region = 66 }

// kernel: forward.33
= control target key start
LH: loop header
LB: loop body
LE: loop exit
PB: predicated region body
PF: predicated region fallthrough
CT: control target
= control target key end

     0   :  { %s1381_s24 = smov 0   ;;  %s1523_s0 = inlined_call_operand.vmem [shape: bf16[2,16,128], index: 0, kind: input, shape index: {}]   ;;  %s1524_s1 = inlined_call_operand.vmem [shape: bf16[9,16,16], index: 1, kind: input, shape index: {}]   ;;  %s1525_s2 = inlined_call_operand.vmem [shape: f32[1,16], index: 2, kind: input, shape index: {}]   ;;  %s1526_s3 = inlined_call_operand.vmem [shape: f32[1,16], index: 3, kind: input, shape index: {}]   ;;  %s1527_s4 = inlined_call_operand.vmem [shape: s32[16,1], index: 4, kind: input, shape index: {}]   ;;  %s1528_s5 = inlined_call_operand.vmem [shape: bf16[2,16,16], index: 5, kind: output, shape index: {0}]   ;;  %s1529_s6 = inlined_call_operand.vmem [shape: f32[2,1,16], index: 6, kind: output, shape index: {1}]   ;;  %s1530_s7 = inlined_call_operand.vmem [shape: bf16[2,16,16], index: 7, kind: output, shape index: {2}]  }
   0x1 LB: > { %s1107_s25 = sadd.s32 4294967295, %s1332_s24   ;;  %p1111_p0 = scmp.ge.s32.totalorder %s1332_s24, 1  ;;  %s1332_s24 = sphi %s1381_s24, %s18_s24  }
   0x2   : > { %p242_p1 = scmp.lt.s32.totalorder %s1332_s24, 3 }
   0x4   : > { %p243_p2 = pnand %p1111_p0, %p242_p1 }
   0x5   : > { %p282_p3 = scmp.lt.s32.totalorder (!%p243_p2), %s1107_s25, 1  ;;  %v1334_v0 = vmov (!%p243_p2), 0   ;;  %v1311_v1 = vld [vmem:[%s1524_s1 + $0x10] sm:$0xff] (!%p243_p2)   ;;  %v1335_v2 = vmov (!%p243_p2), 0.0   ;;  %vm1336_vm0 = vmmov (!%p243_p2), 0   ;;  %v1313_v4 = vld [vmem:[%s1524_s1] sm:$0xff] (!%p243_p2)  }
   0x6   : > { %246 = sbr.rel (%p243_p2) target bundleno = 433 (0x1b1), region = 40  ;;  %301 = vst [vmem:[#allocation2] sm:$0xf] (!%p243_p2), %v1334_v0  ;;  %1304 = vset.pattern.permute.xlu0 (!%p243_p2), %v1334_v0  ;;  %1303 = vset.pattern.permute.xlu1 (!%p243_p2), %v1334_v0  ;;  %vm419_vm1 = vcmask (!%p243_p2), 1045504   ;;  %s1337_s11 = smov (!%p243_p2), 96   ;;  %v306_v45 = vld [vmem:[%s1527_s4] sm:$0xff] (!%p243_p2) }
   0x7   : > { %1207 = vmatprep.subr.bf16.mxu1 (!%p243_p2), %v1335_v2  ;;  %1195 = vmatprep.subr.bf16.mxu0 (!%p243_p2), %v1335_v2  ;;  %s1338_s12 = smov (!%p243_p2), 32   ;;  %vm321_vm2 = vsmask.f32 (!%p243_p2), 6400  ;;  %s1339_s13 = smov (!%p243_p2), 64   ;;  %vm545_vm3 = vsmask.f32 (!%p243_p2), 4352 }
   0x8   : > { %1208 = vmatpush3.bf16.msra.mxu1 (!%p243_p2), %v1311_v1  ;;  %1209 = vmatprep.mubr.msk.bf16.mxu1 (!%p243_p2), %vm1336_vm0, %v1335_v2  ;;  %v307_v46 = vld [vmem:[%s1527_s4 + $0x8] sm:$0xff] (!%p243_p2)  ;;  %vm392_vm4 = vcmp.ge.s32.totalorder (!%p243_p2), %v306_v45, 1  ;;  %vm394_vm5 = vcmp.lt.s32.totalorder (!%p243_p2), %v306_v45, 4  ;;  %vm347_vm10 = vcmask (!%p243_p2), 130048   ;;  %v1312_v49 = vld [vmem:[%s1524_s1 + $0x20] sm:$0xff] (!%p243_p2)   ;;  %v1316_v56 = vld [vmem:[%s1524_s1 + $0x18] sm:$0xff] (!%p243_p2)  }
   0x9   : > { %1219 = vmatprep.subr.bf16.mxu1 (!%p243_p2), %v1335_v2  ;;  %1197 = vmatprep.mubr.msk.bf16.mxu0 (!%p243_p2), %vm1336_vm0, %v1335_v2  ;;  %vm393_vm6 = vcmp.ge.s32.totalorder (!%p243_p2), %v307_v46, 1  ;;  %vm395_vm7 = vcmp.lt.s32.totalorder (!%p243_p2), %v307_v46, 4  ;;  %vm396_vm8 = vmand (!%p243_p2), %vm392_vm4, %vm394_vm5  ;;  %v1314_v51 = vld [vmem:[%s1524_s1 + $0x8] sm:$0xff] (!%p243_p2)   ;;  %v1318_v59 = vld [vmem:[%s1524_s1 + $0x30] sm:$0xff] (!%p243_p2)   ;;  %vm933_vm11 = vcmask (!%p243_p2), 125952   ;;  %vm946_vm14 = vcmask (!%p243_p2), 122880  }
   0xa   : > { %1196 = vmatpush3.bf16.msra.mxu0 (!%p243_p2), %v1313_v4  ;;  %v398_v47 = vsel (!%p243_p2), %vm396_vm8, 1, %v1334_v0  ;;  %vm397_vm9 = vmand (!%p243_p2), %vm393_vm6, %vm395_vm7  ;;  %v1315_v54 = vld [vmem:[%s1524_s1 + $0x28] sm:$0xff] (!%p243_p2)   ;;  %v1317_v61 = vld [vmem:[%s1524_s1 + $0x38] sm:$0xff] (!%p243_p2)  }
   0xb   : > { %1201 = vmatprep.subr.bf16.mxu0 (!%p243_p2), %v1335_v2  ;;  %v399_v48 = vsel (!%p243_p2), %vm397_vm9, 1, %v1334_v0  ;;  %v1158_v46 = vld [vmem:[%s1525_s2] ss:$0 sm:$0xff] (!%p243_p2) }
   0xd   : > { %s1532_s25 = smov (!%p282_p3, %s1107_s25), 1  ;;  %v412_v5 = vld [vmem:[#allocation2] sm:$0xc] }
   0xe   : > { %s1402_s28 = sshll.u32 %s1532_s25, 3  ;;  %v308_v6 = vld [vmem:[#allocation2] sm:$0xe]  ;;  %s294_s26 = scalar_lea.vmem %s1529_s6, %s1532_s25 }
   0xf   : > { %s1411_s8 = scalar_lea.vmem %s1523_s0, %s1402_s28  ;;  %v534_v7 = vld [vmem:[#allocation2] sm:$0x8]  ;;  %s299_s15 = scalar_lea.vmem %s1530_s7, %s1402_s28 }
  0x10   : > { %v302_v3 = vld [vmem:[%s1411_s8] sm:$0xff]   ;;  %s291_s22 = scalar_lea.vmem %s1528_s5, %s1402_s28 }
  0x11   : > { %304 = vst [vmem:[#allocation2 + $0x4] sm:$0xff] %v302_v3   ;;  %v1174_v41 = vld [vmem:[%s1411_s8] sm:$0xff]  }
  0x12   : > { %v1175_v42 = vunpack.c.l.bf16 %v1174_v41  ;;  %v1176_v43 = vunpack.c.h.bf16 %v1174_v41 }
  0x14   : > { %v1288_v44 = vpack.i.bf16 %v1176_v43, %v1175_v42 }
  0x18   : > { %v309_v8 = vld [vmem:[#allocation2 + $0x4] sm:$0xf]  ;;  %v535_v9 = vld [vmem:[#allocation2 + $0x8] sm:$0xf] }
  0x19   : > { %v1305_v10 = vld [vmem:[#allocation2 + $0x8] ss:$0 sps:$4 sm:$0x33]   ;;  %v1124_v11 = vcombine.low %v412_v5, %v309_v8  ;;  %v1118_v12 = vcombine.low %v308_v6, %v309_v8  ;;  %v1134_v13 = vcombine.low %v535_v9, %v535_v9  ;;  %v1418_v14 = vcombine.low %v309_v8, %v535_v9  ;;  %v1319_v9 = vld [vmem:[%s1524_s1 + $0x40] sm:$0xff]  }
  0x1a   : > { %v1133_v15 = vcombine.low %v534_v7, %v309_v8  ;;  %v421_v17 = vrot.slane %v1305_v10, 2  ;;  %v331_v20 = vshrl.u32 %v1305_v10, 16  ;;  %v334_v21 = vshll.u32 %v1305_v10, 16 }
  0x1b   : > { %v420_v16 = vrot.slane %v1124_v11, 2  ;;  %v323_v18 = vshrl.u32 %v1118_v12, 16  ;;  %v326_v19 = vshll.u32 %v1118_v12, 16  ;;  %678 = vrot.lane.b32.xlu1 %v1418_v14, %s1337_s11  ;;  %v555_v27 = vshrl.u32 %v1134_v13, 16 }
  0x1c   : > { %v547_v22 = vshrl.u32 %v1133_v15, 16  ;;  %v550_v23 = vshll.u32 %v1133_v15, 16  ;;  %v333_v28 = vrot.slane %v331_v20, 1  ;;  %v336_v29 = vrot.slane %v334_v21, 2 }
  0x1d   : > { %v422_v24 = vsel %vm419_vm1, %v420_v16, %v421_v17  ;;  %v325_v25 = vrot.slane %v323_v18, 1  ;;  %v328_v26 = vrot.slane %v326_v19, 2  ;;  %v557_v33 = vrot.slane %v555_v27, 3 }
  0x1e   : > { %480 = vrot.lane.b32.xlu0 %v422_v24, %s1338_s12  ;;  %v549_v30 = vrot.slane %v547_v22, 3  ;;  %v552_v31 = vrot.slane %v550_v23, 4  ;;  %v558_v34 = vshll.u32 %v1134_v13, 16  ;;  %v337_v35 = vor.u32 %v336_v29, %v333_v28 }
  0x1f   : > { %v329_v32 = vor.u32 %v328_v26, %v325_v25  ;;  %423 = vrot.lane.b32.xlu1 %v422_v24, %s1339_s13 }
  0x20   : > { %v553_v36 = vor.u32 %v552_v31, %v549_v30  ;;  %v560_v37 = vrot.slane %v558_v34, 4 }
  0x21   : > { %v338_v38 = vsel %vm321_vm2, %v329_v32, %v337_v35 }
  0x22   : > { %339 = vrot.lane.b32.xlu0 %v338_v38, %s1338_s12  ;;  %v561_v39 = vor.u32 %v560_v37, %v557_v33 }
  0x24   : > { %v562_v40 = vsel %vm545_vm3, %v553_v36, %v561_v39 }
  0x25   : > { %563 = vrot.lane.b32.xlu1 %v562_v40, %s1337_s11 }
  0x26   : > { %794 = vrot.lane.b32.xlu0 %v1418_v14, %s1339_s13 }
  0x29   : > { %851 = vrot.lane.b32.xlu1 %v1418_v14, %s1338_s12 }
  0x2a   : > { %735 = vrot.lane.b32.xlu0 %v562_v40, %s1338_s12 }
  0x2d   : > { %1294 = vrot.lane.b32.xlu1 %v1288_v44, %s1339_s13 }
  0x2e   : > { %1289 = vrot.lane.b32.xlu0 %v1288_v44, %s1337_s11 }
  0x31   : > { %401 = vperm.xlu1 %1303, %v398_v47  }
  0x32   : > { %1299 = vrot.lane.b32.xlu0 %v1288_v44, %s1338_s12  ;;  %s1340_s12 = smov 112  }
  0x36   : > { %404 = vperm.xlu0 %1304, %v399_v48  }
  0x8d   : > { %v679_v53 = vpop.permute.xlu1 %678 }
  0x90   : > { %v481_v50 = vpop.permute.xlu0 %480 }
  0x91   : > { %1210 = vmatmul.mubr.msk.bf16.vlgmr.msra.gmra.mrb[0].mxu1 %vm347_vm10, %v481_v50  ;;  %v424_v55 = vpop.permute.xlu1 %423 }
  0x92   : > { %1220 = vmatpush3.bf16.msra.mxu1 %v1312_v49  ;;  %1221 = vmatprep.mubr.msk.bf16.mxu1 %vm1336_vm0, %v1335_v2  ;;  %v1159_v49 = vld [vmem:[%s1526_s3] ss:$0 sm:$0xff] }
  0x93   : > { %1225 = vmatprep.subr.bf16.mxu1 %v1335_v2 }
  0x94   : > { %v340_v52 = vpop.permute.xlu0 %339 }
  0x95   : > { %1198 = vmatmul.mubr.msk.bf16.vlgmr.msra.gmra.mrb[0].mxu0 %vm347_vm10, %v340_v52 }
  0x96   : > { %1202 = vmatpush3.bf16.msra.mxu0 %v1314_v51  ;;  %1203 = vmatprep.mubr.msk.bf16.mxu0 %vm1336_vm0, %v1335_v2 }
  0x97   : > { %1213 = vmatprep.subr.bf16.mxu0 %v1335_v2  ;;  %v564_v58 = vpop.permute.xlu1 %563 }
  0x98   : > { %v795_v57 = vpop.permute.xlu0 %794 }
  0x9b   : > { %v852_v62 = vpop.permute.xlu1 %851 }
  0x9c   : > { %v736_v60 = vpop.permute.xlu0 %735 }
  0x9d   : > { %1222 = vmatmul.mubr.msk.bf16.vlgmr.msra.gmra.mrb[0].mxu1 %vm347_vm10, %v1418_v14  ;;  %1204 = vmatmul.mubr.msk.bf16.vlgmr.msra.gmra.mrb[4].mxu0 %vm347_vm10, %v424_v55 }
  0x9e   : > { %1226 = vmatpush3.bf16.msra.mxu1 %v1315_v54  ;;  %1214 = vmatpush3.bf16.msra.mxu0 %v1316_v56 }
  0x9f   : > { %1215 = vmatprep.mubr.msk.bf16.mxu0 %vm1336_vm0, %v1335_v2  ;;  %1227 = vmatprep.mubr.msk.bf16.mxu1 %vm1336_vm0, %v1335_v2  ;;  %v1295_v0 = vpop.permute.xlu1 %1294 }
  0xa0   : > { %1237 = vmatprep.subr.bf16.mxu1 %v1335_v2  ;;  %1231 = vmatprep.subr.bf16.mxu0 %v1335_v2  ;;  %v1290_v63 = vpop.permute.xlu0 %1289 }
  0xa1   : > { %v1320_v1 = vadd.high.f32.bf16 %v1176_v43, %v1290_v63  ;;  %v1321_v3 = vadd.low.f32.bf16 %v1175_v42, %v1290_v63 }
  0xa3   : > { %v1322_v5 = vadd.low.f32.bf16 %v1321_v3, %v1295_v0  ;;  %v1323_v6 = vadd.high.f32.bf16 %v1320_v1, %v1295_v0 }
  0xa4   : > { %v1300_v4 = vpop.permute.xlu0 %1299 }
  0xa5   : > { %1216 = vmatmul.mubr.msk.bf16.vlgmr.msra.gmra.mrb[8].mxu0 %vm347_vm10, %v564_v58  ;;  %v1324_v7 = vadd.low.f32.bf16 %v1322_v5, %v1300_v4  ;;  %v1325_v8 = vadd.high.f32.bf16 %v1323_v6, %v1300_v4 }
  0xa6   : > { %1232 = vmatpush3.bf16.msra.mxu0 %v1318_v59  ;;  %1233 = vmatprep.mubr.msk.bf16.mxu0 %vm1336_vm0, %v1335_v2 }
  0xa7   : > { %v978_v10 = vmul.f32 0.25, %v1324_v7  ;;  %v979_v11 = vmul.f32 0.25, %v1325_v8 }
  0xa9   : > { %1228 = vmatmul.mubr.msk.bf16.vlgmr.msra.gmra.mrb[0].mxu1 %vm347_vm10, %v679_v53  ;;  %v1171_v12 = vpack.c.bf16 %v978_v10, %v978_v10  ;;  %v1172_v13 = vpack.c.bf16 %v979_v11, %v979_v11 }
  0xaa   : > { %1238 = vmatpush3.bf16.msra.mxu1 %v1317_v61  ;;  %1239 = vmatprep.mubr.msk.bf16.mxu1 %vm1336_vm0, %v1335_v2 }
  0xab   : > { %1243 = vmatprep.subr.bf16.mxu1 %v1335_v2  ;;  %986 = vrot.lane.b32.xlu1 %v1171_v12, %s1340_s12 }
  0xad   : > { %1234 = vmatmul.mubr.msk.bf16.vlgmr.msra.gmra.mrb[12].mxu0 %vm347_vm10, %v736_v60 }
  0xaf   : > { %988 = vrot.lane.b32.xlu1 %v1172_v13, %s1340_s12 }
  0xb0   : > { %v402_v14 = vpop.permute.xlu1 %401 }
  0xb1   : > { %vm406_vm12 = vcmp.eq.s32.totalorder %v402_v14, 1 }
  0xb5   : > { %1240 = vmatmul.mubr.msk.bf16.vlgmr.msra.gmra.mrb[0].mxu1 %vm347_vm10, %v795_v57  ;;  %v405_v20 = vpop.permute.xlu0 %404 }
  0xb6   : > { %1244 = vmatpush3.bf16.msra.mxu1 %v1319_v9  ;;  %1245 = vmatprep.mubr.msk.bf16.mxu1 %vm1336_vm0, %v1335_v2  ;;  %vm407_vm13 = vcmp.eq.s32.totalorder %v405_v20, 1 }
  0xc1   : > { %1246 = vmatmul.mubr.msk.bf16.vlgmr.msra.gmra.mrb[0].mxu1 %vm347_vm10, %v852_v62 }
 0x11d   : > { %v987_v15 = vpop.permute.xlu1 %986 }
 0x11e   : > { %992 = vst.msk [vmem:[%s299_s15] sm:$0xf] %vm933_vm11, %v987_v15 }
 0x121   : > { %v989_v16 = vpop.permute.xlu1 %988 }
 0x122   : > { %993 = vst.msk [vmem:[%s299_s15 + $0x4] sm:$0xf] %vm933_vm11, %v989_v16 }
 0x168   : > { %v385_v2 = vpop.f32.mrb[0].mxu0 }
 0x169   : > { %v1199_v17 = vpop.f32.mrb[1].mxu0  ;;  %v408_v18 = vsel %vm406_vm12, %v385_v2, 0.0 }
 0x16a   : > { %v388_v19 = vpop.f32.mrb[2].mxu0 }
 0x16b   : > { %v1200_v21 = vpop.f32.mrb[3].mxu0  ;;  %v409_v23 = vsel %vm407_vm13, %v388_v19, 0.0 }
 0x170   : > { %v468_v22 = vpop.f32.mrb[4].mxu0 }
 0x171   : > { %v1205_v24 = vpop.f32.mrb[5].mxu0  ;;  %v475_v25 = vadd.f32 %v468_v22, %v408_v18 }
 0x172   : > { %v471_v26 = vpop.f32.mrb[6].mxu0 }
 0x173   : > { %v1206_v27 = vpop.f32.mrb[7].mxu0  ;;  %v476_v28 = vadd.f32 %v471_v26, %v409_v23 }
 0x178   : > { %v608_v29 = vpop.f32.mrb[8].mxu0 }
 0x179   : > { %v615_v30 = vsel %vm406_vm12, %v608_v29, 0.0  ;;  %v1217_v31 = vpop.f32.mrb[9].mxu0 }
 0x17a   : > { %v1250_v32 = vadd.f32 %v615_v30, %v475_v25  ;;  %v611_v33 = vpop.f32.mrb[10].mxu0 }
 0x17b   : > { %v616_v34 = vsel %vm407_vm13, %v611_v33, 0.0  ;;  %v1218_v35 = vpop.f32.mrb[11].mxu0 }
 0x17c   : > { %v1254_v36 = vadd.f32 %v616_v34, %v476_v28 }
 0x180   : > { %v780_v37 = vpop.f32.mrb[12].mxu0 }
 0x181   : > { %v787_v38 = vsel %vm406_vm12, %v780_v37, 0.0  ;;  %v1235_v39 = vpop.f32.mrb[13].mxu0 }
 0x182   : > { %v1251_v40 = vadd.f32 %v1250_v32, %v787_v38  ;;  %v783_v41 = vpop.f32.mrb[14].mxu0 }
 0x183   : > { %v788_v42 = vsel %vm407_vm13, %v783_v41, 0.0  ;;  %v1236_v43 = vpop.f32.mrb[15].mxu0 }
 0x184   : > { %v1255_v44 = vadd.f32 %v1254_v36, %v788_v42 }
 0x194   : > { %v896_v45 = vpop.f32.mrb[0].mxu1 }
 0x195   : > { %v1252_v47 = vadd.f32 %v1251_v40, %v896_v45  ;;  %v1247_v48 = vpop.f32.mrb[1].mxu1 }
 0x196   : > { %v899_v50 = vpop.f32.mrb[2].mxu1 }
 0x197   : > { %v912_v51 = vmul.f32 %v1252_v47, %v1158_v46  ;;  %v1256_v52 = vadd.f32 %v1255_v44, %v899_v50  ;;  %v1248_v53 = vpop.f32.mrb[3].mxu1 }
 0x199   : > { %v921_v54 = vadd.f32 %v1159_v49, %v912_v51  ;;  %v913_v55 = vmul.f32 %v1256_v52, %v1158_v46 }
 0x19b   : > { %v923_v56 = vmax.f32 %v921_v54, 0.0  ;;  %v922_v57 = vadd.f32 %v1159_v49, %v913_v55 }
 0x19d   : > { %v1169_v58 = vpack.c.bf16 %v923_v56, %v923_v56  ;;  %v924_v59 = vmax.f32 %v922_v57, 0.0  ;;  %v936_v60 = vsel %vm347_vm10, %v923_v56, 0.0 }
 0x19f   : > { %v1170_v61 = vpack.c.bf16 %v924_v59, %v924_v59  ;;  %v937_v62 = vsel %vm347_vm10, %v924_v59, 0.0  ;;  %934 = vst.msk [vmem:[%s291_s22] sm:$0xf] %vm933_vm11, %v1169_v58 }
 0x1a0   : > { %v938_v63 = vadd.f32 %v937_v62, %v936_v60 }
 0x1a1   : > { %935 = vst.msk [vmem:[%s291_s22 + $0x4] sm:$0xf] %vm933_vm11, %v1170_v61 }
 0x1a2   : > { %v939_v0 = vrot.slane %v938_v63, 4 }
 0x1a4   : > { %v940_v1 = vadd.f32 %v939_v0, %v938_v63 }
 0x1a6   : > { %v941_v3 = vrot.slane %v940_v1, 2 }
 0x1a8   : > { %v942_v4 = vadd.f32 %v941_v3, %v940_v1 }
 0x1aa   : > { %v943_v5 = vrot.slane %v942_v4, 1 }
 0x1ac   : > { %v944_v6 = vadd.f32 %v943_v5, %v942_v4 }
 0x1ae   : > { %v945_v7 = vmul.f32 0.0625, %v944_v6 }
 0x1b0   : > { %947 = vst.msk [vmem:[%s294_s26] sm:$0x1] %vm946_vm14, %v945_v7 }
 0x1b1 PF: > { %s18_s24 = sadd.s32 1, %s1332_s24  }
 0x1b2   : > { %p15_p4 = scmp.ge.s32.totalorder %s18_s24, 4  }
 0x1b4   :  { %17 = sbr.rel (!%p15_p4) target bundleno = 1 (0x1), region = 102 }

// kernel: forward.35
= control target key start
LH: loop header
LB: loop body
LE: loop exit
PB: predicated region body
PF: predicated region fallthrough
CT: control target
= control target key end

     0   :  { %s689_s21 = smov 0   ;;  %s691_s22 = smov 0   ;;  %s742_s0 = inlined_call_operand.vmem [shape: bf16[2,16,16], index: 0, kind: input, shape index: {}]   ;;  %s743_s1 = inlined_call_operand.vmem [shape: bf16[16,16], index: 1, kind: input, shape index: {}]   ;;  %s744_s2 = inlined_call_operand.vmem [shape: f32[1,16], index: 2, kind: input, shape index: {}]   ;;  %s745_s3 = inlined_call_operand.vmem [shape: f32[1,16], index: 3, kind: input, shape index: {}]   ;;  %s746_s4 = inlined_call_operand.vmem [shape: f32[2,1,16], index: 4, kind: input, shape index: {}]   ;;  %s747_s5 = inlined_call_operand.vmem [shape: bf16[2,16,16], index: 5, kind: input, shape index: {}]   ;;  %s748_s6 = inlined_call_operand.vmem [shape: bf16[2,16,16], index: 6, kind: output, shape index: {}]  }
   0x1   :  { %s693_s23 = smov 0  }
   0x2 LB: > { %s28_s24 = sadd.s32 1, %s646_s22  ;;  %p564_p0 = scmp.ge.s32.totalorder %s650_s23, 1  ;;  %s650_s23 = sphi %s693_s23, %s16_s23   ;;  %s646_s22 = sphi %s691_s22, %s750_s22   ;;  %s642_s21 = sphi %s689_s21, %s749_s21  }
   0x3   : > { %p30_p1 = scmp.ge.s32.totalorder %s28_s24, 2  ;;  %p258_p2 = scmp.lt.s32.totalorder %s650_s23, 3 }
   0x5   : > { %s752_s24 = smov (%p30_p1, %s28_s24), 0  ;;  %p259_p3 = pnand %p564_p0, %p258_p2 }
   0x6   : > { %v627_v0 = vld [vmem:[%s743_s1] sm:$0xff] (!%p259_p3)   ;;  %v652_v1 = vmov (!%p259_p3), 0.0   ;;  %p309_p4 = scmp.lt.s32.totalorder (!%p259_p3), %s642_s21, 1  ;;  %vm653_vm0 = vmmov (!%p259_p3), 0   ;;  %vm364_vm1 = vcmask (!%p259_p3), 130048   ;;  %vm443_vm2 = vcmask (!%p259_p3), 125952  }
   0x7   : > { %262 = sbr.rel (%p259_p3) target bundleno = 249 (0xf9), region = 44  ;;  %595 = vmatprep.subr.bf16.mxu0 (!%p259_p3), %v652_v1  ;;  %597 = vmatprep.mubr.msk.bf16.mxu0 (!%p259_p3), %vm653_vm0, %v652_v1  ;;  %v574_v9 = vld [vmem:[%s744_s2] ss:$0 sm:$0xff] (!%p259_p3) }
   0x8   : > { %596 = vmatpush3.bf16.msra.mxu0 (!%p259_p3), %v627_v0  ;;  %v575_v12 = vld [vmem:[%s745_s3] ss:$0 sm:$0xff] (!%p259_p3) }
   0xe   : > { %s754_s21 = smov (!%p309_p4, %s642_s21), 1 }
   0xf   : > { %s710_s27 = sshll.u32 %s754_s21, 3  ;;  %s320_s30 = scalar_lea.vmem %s746_s4, %s754_s21 }
  0x10   : > { %s316_s9 = scalar_lea.vmem %s742_s0, %s710_s27  ;;  %v571_v3 = vld [vmem:[%s320_s30] ss:$0 sm:$0xff]  ;;  %s329_s12 = scalar_lea.vmem %s747_s5, %s710_s27 }
  0x11   : > { %v586_v2 = vld [vmem:[%s316_s9] sm:$0xff]   ;;  %s339_s19 = scalar_lea.vmem %s748_s6, %s710_s27 }
  0x12   : > { %v587_v4 = vunpack.c.l.bf16 %v586_v2  ;;  %v588_v5 = vunpack.c.h.bf16 %v586_v2  ;;  %v590_v10 = vld [vmem:[%s329_s12] sm:$0xff]  }
  0x13   : > { %v591_v14 = vunpack.c.l.bf16 %v590_v10  ;;  %v592_v19 = vunpack.c.h.bf16 %v590_v10 }
  0x14   : > { %v353_v6 = vmul.f32 %v587_v4, %v571_v3  ;;  %v354_v7 = vmul.f32 %v588_v5, %v571_v3 }
  0x16   : > { %v355_v8 = vpack.c.bf16 %v354_v7, %v353_v6 }
  0x18   : > { %598 = vmatmul.mubr.msk.bf16.vlgmr.msra.gmra.mrb[0].mxu0 %vm364_vm1, %v355_v8 }
  0xeb   : > { %v402_v11 = vpop.f32.mrb[0].mxu0 }
  0xec   : > { %v416_v13 = vmul.f32 %v574_v9, %v402_v11  ;;  %v599_v15 = vpop.f32.mrb[1].mxu0 }
  0xed   : > { %v405_v16 = vpop.f32.mrb[2].mxu0 }
  0xee   : > { %v425_v17 = vadd.f32 %v575_v12, %v416_v13  ;;  %v417_v18 = vmul.f32 %v574_v9, %v405_v16  ;;  %v600_v20 = vpop.f32.mrb[3].mxu0 }
  0xf0   : > { %v431_v21 = vadd.f32 %v591_v14, %v425_v17  ;;  %v426_v22 = vadd.f32 %v575_v12, %v417_v18 }
  0xf2   : > { %v433_v23 = vmax.f32 %v431_v21, 0.0  ;;  %v432_v24 = vadd.f32 %v592_v19, %v426_v22 }
  0xf4   : > { %v583_v25 = vpack.c.bf16 %v433_v23, %v433_v23  ;;  %v434_v26 = vmax.f32 %v432_v24, 0.0 }
  0xf6   : > { %444 = vst.msk [vmem:[%s339_s19] sm:$0xf] %vm443_vm2, %v583_v25  ;;  %v584_v27 = vpack.c.bf16 %v434_v26, %v434_v26 }
  0xf8   : > { %445 = vst.msk [vmem:[%s339_s19 + $0x4] sm:$0xf] %vm443_vm2, %v584_v27 }
  0xf9 PF: > { %s16_s23 = sadd.s32 1, %s650_s23   ;;  %s749_s21 = smov %s646_s22 }
  0xfa   : > { %p13_p5 = scmp.ge.s32.totalorder %s16_s23, 4   ;;  %s750_s22 = smov %s752_s24 }
  0xfc   :  { %15 = sbr.rel (!%p13_p5) target bundleno = 2 (0x2), region = 80 }

// kernel: forward.44
= control target key start
LH: loop header
LB: loop body
LE: loop exit
PB: predicated region body
PF: predicated region fallthrough
CT: control target
= control target key end

     0   :  { %s530_s15 = smov 0   ;;  %s532_s16 = smov 0   ;;  %s572_s0 = inlined_call_operand.vmem [shape: bf16[2,16,16], index: 0, kind: input, shape index: {}]   ;;  %s573_s1 = inlined_call_operand.vmem [shape: bf16[16,48], index: 1, kind: input, shape index: {}]   ;;  %s574_s2 = inlined_call_operand.vmem [shape: f32[1,48], index: 2, kind: input, shape index: {}]   ;;  %s575_s3 = inlined_call_operand.vmem [shape: f32[1,48], index: 3, kind: input, shape index: {}]   ;;  %s576_s4 = inlined_call_operand.vmem [shape: bf16[2,16,48], index: 4, kind: output, shape index: {}]  }
   0x1   :  { %s534_s17 = smov 0  }
   0x2 LB: > { %s26_s18 = sadd.s32 1, %s497_s16  ;;  %p425_p0 = scmp.ge.s32.totalorder %s501_s17, 1  ;;  %s501_s17 = sphi %s534_s17, %s14_s17   ;;  %s497_s16 = sphi %s532_s16, %s578_s16   ;;  %s493_s15 = sphi %s530_s15, %s577_s15  }
   0x3   : > { %p28_p1 = scmp.ge.s32.totalorder %s26_s18, 2  ;;  %p183_p2 = scmp.lt.s32.totalorder %s501_s17, 3 }
   0x5   : > { %s580_s18 = smov (%p28_p1, %s26_s18), 0  ;;  %p184_p3 = pnand %p425_p0, %p183_p2 }
   0x6   : > { %v477_v0 = vld [vmem:[%s573_s1] sm:$0xff] (!%p184_p3)   ;;  %v503_v1 = vmov (!%p184_p3), 0.0   ;;  %p218_p4 = scmp.lt.s32.totalorder (!%p184_p3), %s493_s15, 1  ;;  %vm504_vm0 = vmmov (!%p184_p3), 0   ;;  %vm253_vm1 = vcmask (!%p184_p3), 130048   ;;  %v316_v3 = vlaneseq (!%p184_p3) }
   0x7   : > { %187 = sbr.rel (%p184_p3) target bundleno = 242 (0xf2), region = 36  ;;  %445 = vmatprep.subr.bf16.mxu0 (!%p184_p3), %v503_v1  ;;  %447 = vmatprep.mubr.msk.bf16.mxu0 (!%p184_p3), %vm504_vm0, %v503_v1  ;;  %v433_v4 = vld [vmem:[%s574_s2] ss:$0 sm:$0xff] (!%p184_p3)  ;;  %vm331_vm3 = vcmask (!%p184_p3), 388096  }
   0x8   : > { %446 = vmatpush3.bf16.msra.mxu0 (!%p184_p3), %v477_v0  ;;  %v434_v6 = vld [vmem:[%s575_s3] ss:$0 sm:$0xff] (!%p184_p3)  ;;  %v317_v7 = vand.u32 (!%p184_p3), 127, %v316_v3 }
   0xa   : > { %vm318_vm2 = vcmp.lt.s32.totalorder (!%p184_p3), %v317_v7, 24 }
   0xe   : > { %s582_s15 = smov (!%p218_p4, %s493_s15), 1 }
   0xf   : > { %s439_s21 = sshll.u32 %s582_s15, 3 }
  0x10   : > { %s225_s24 = scalar_lea.vmem %s572_s0, %s439_s21  ;;  %s235_s5 = scalar_lea.vmem %s576_s4, %s439_s21 }
  0x11   : > { %v478_v2 = vld [vmem:[%s225_s24] sm:$0xff]  }
  0x12   : > { %448 = vmatmul.mubr.msk.bf16.vlgmr.msra.gmra.mrb[0].mxu0 %vm253_vm1, %v478_v2 }
  0xe5   : > { %v291_v5 = vpop.f32.mrb[0].mxu0 }
  0xe6   : > { %v305_v8 = vmul.f32 %v433_v4, %v291_v5  ;;  %v449_v9 = vpop.f32.mrb[1].mxu0 }
  0xe7   : > { %v294_v10 = vpop.f32.mrb[2].mxu0 }
  0xe8   : > { %v314_v11 = vadd.f32 %v434_v6, %v305_v8  ;;  %v306_v12 = vmul.f32 %v433_v4, %v294_v10  ;;  %v450_v13 = vpop.f32.mrb[3].mxu0 }
  0xea   : > { %v319_v14 = vmax.f32 %v314_v11, 0.0  ;;  %v315_v15 = vadd.f32 %v434_v6, %v306_v12 }
  0xec   : > { %v321_v16 = vsel %vm318_vm2, %v319_v14, %v314_v11  ;;  %v320_v17 = vmax.f32 %v315_v15, 0.0 }
  0xed   : > { %v441_v18 = vpack.c.bf16 %v321_v16, %v321_v16 }
  0xee   : > { %v322_v19 = vsel %vm318_vm2, %v320_v17, %v315_v15 }
  0xef   : > { %332 = vst.msk [vmem:[%s235_s5] sm:$0xf] %vm331_vm3, %v441_v18  ;;  %v442_v20 = vpack.c.bf16 %v322_v19, %v322_v19 }
  0xf1   : > { %333 = vst.msk [vmem:[%s235_s5 + $0x4] sm:$0xf] %vm331_vm3, %v442_v20 }
  0xf2 PF: > { %s14_s17 = sadd.s32 1, %s501_s17   ;;  %s577_s15 = smov %s497_s16 }
  0xf3   : > { %p11_p5 = scmp.ge.s32.totalorder %s14_s17, 4   ;;  %s578_s16 = smov %s580_s18 }
  0xf5   :  { %13 = sbr.rel (!%p11_p5) target bundleno = 2 (0x2), region = 66 }

// kernel: forward.37
= control target key start
LH: loop header
LB: loop body
LE: loop exit
PB: predicated region body
PF: predicated region fallthrough
CT: control target
= control target key end

     0   :  { %s1276_s21 = smov 0   ;;  %s1430_s0 = inlined_call_operand.vmem [shape: bf16[2,16,16], index: 0, kind: input, shape index: {}]   ;;  %s1431_s1 = inlined_call_operand.vmem [shape: bf16[9,16,16], index: 1, kind: input, shape index: {}]   ;;  %s1432_s2 = inlined_call_operand.vmem [shape: f32[1,16], index: 2, kind: input, shape index: {}]   ;;  %s1433_s3 = inlined_call_operand.vmem [shape: f32[1,16], index: 3, kind: input, shape index: {}]   ;;  %s1434_s4 = inlined_call_operand.vmem [shape: s32[16,1], index: 4, kind: input, shape index: {}]   ;;  %s1435_s5 = inlined_call_operand.vmem [shape: bf16[2,16,16], index: 5, kind: output, shape index: {0}]   ;;  %s1436_s6 = inlined_call_operand.vmem [shape: f32[2,1,16], index: 6, kind: output, shape index: {1}]  }
   0x1 LB: > { %s1079_s22 = sadd.s32 4294967295, %s1236_s21   ;;  %p1083_p0 = scmp.ge.s32.totalorder %s1236_s21, 1  ;;  %s1236_s21 = sphi %s1276_s21, %s17_s21  }
   0x2   : > { %p215_p1 = scmp.lt.s32.totalorder %s1236_s21, 3 }
   0x4   : > { %p216_p2 = pnand %p1083_p0, %p215_p1 }
   0x5   : > { %v1219_v0 = vld [vmem:[%s1431_s1] sm:$0xff] (!%p216_p2)   ;;  %v1238_v1 = vmov (!%p216_p2), 0.0   ;;  %v1220_v2 = vld [vmem:[%s1431_s1 + $0x8] sm:$0xff] (!%p216_p2)   ;;  %vm1239_vm0 = vmmov (!%p216_p2), 0   ;;  %p248_p3 = scmp.lt.s32.totalorder (!%p216_p2), %s1079_s22, 1  ;;  %vm262_vm1 = vcmask (!%p216_p2), 125952  }
   0x6   : > { %219 = sbr.rel (%p216_p2) target bundleno = 306 (0x132), region = 40  ;;  %1152 = vmatprep.subr.bf16.mxu0 (!%p216_p2), %v1238_v1  ;;  %1158 = vmatprep.subr.bf16.mxu1 (!%p216_p2), %v1238_v1  ;;  %vm264_vm2 = vcmask (!%p216_p2), 130052   ;;  %v1240_v3 = vmov (!%p216_p2), 0   ;;  %v1315_v6 = vld [vmem:[%s1434_s4] sm:$0xff] (!%p216_p2)  ;;  %v1322_v7 = vld [vmem:[%s1434_s4 + $0x8] sm:$0xff] (!%p216_p2)  ;;  %vm308_vm10 = vcmask (!%p216_p2), 130048  }
   0x7   : > { %1153 = vmatpush3.bf16.msra.mxu0 (!%p216_p2), %v1219_v0  ;;  %1154 = vmatprep.mubr.msk.bf16.mxu0 (!%p216_p2), %vm1239_vm0, %v1238_v1  ;;  %263 = vst.msk [vmem:[#allocation2] sm:$0xf] (!%p216_p2), %vm262_vm1, %v1240_v3  ;;  %vm353_vm3 = vcmp.ge.s32.totalorder (!%p216_p2), %v1315_v6, 1  ;;  %vm355_vm4 = vcmp.lt.s32.totalorder (!%p216_p2), %v1315_v6, 4  ;;  %vm354_vm6 = vcmp.ge.s32.totalorder (!%p216_p2), %v1322_v7, 1  ;;  %vm356_vm7 = vcmp.lt.s32.totalorder (!%p216_p2), %v1322_v7, 4 }
   0x8   : > { %1159 = vmatpush3.bf16.msra.mxu1 (!%p216_p2), %v1220_v2  ;;  %1160 = vmatprep.mubr.msk.bf16.mxu1 (!%p216_p2), %vm1239_vm0, %v1238_v1  ;;  %265 = vst.msk [vmem:[#allocation2 + $0x8] sm:$0xf0] (!%p216_p2), %vm264_vm2, %v1240_v3  ;;  %vm357_vm5 = vmand (!%p216_p2), %vm353_vm3, %vm355_vm4  ;;  %vm284_vm9 = vsmask.f32 (!%p216_p2), 6400  ;;  %vm379_vm11 = vcmask (!%p216_p2), 1045504   ;;  %v1224_v12 = vld [vmem:[%s1431_s1 + $0x18] sm:$0xff] (!%p216_p2)  }
   0x9   : > { %1164 = vmatprep.subr.bf16.mxu0 (!%p216_p2), %v1238_v1  ;;  %1170 = vmatprep.subr.bf16.mxu1 (!%p216_p2), %v1238_v1  ;;  %v359_v8 = vsel (!%p216_p2), %vm357_vm5, 1, %v1240_v3  ;;  %vm358_vm8 = vmand (!%p216_p2), %vm354_vm6, %vm356_vm7  ;;  %v1223_v37 = vld [vmem:[%s1431_s1 + $0x10] sm:$0xff] (!%p216_p2)   ;;  %vm532_vm12 = vsmask.f32 (!%p216_p2), 4352  ;;  %vm439_vm13 = vsmask.f32 (!%p216_p2), 5376 }
   0xa   : > { %1217 = vset.pattern.permute.xlu0 (!%p216_p2), %v1240_v3  ;;  %1218 = vset.pattern.permute.xlu1 (!%p216_p2), %v1240_v3  ;;  %v360_v9 = vsel (!%p216_p2), %vm358_vm8, 1, %v1240_v3  ;;  %v1226_v58 = vld [vmem:[%s1431_s1 + $0x28] sm:$0xff] (!%p216_p2)   ;;  %vm507_vm14 = vcmp.ge.s32.totalorder (!%p216_p2), %v1315_v6, 0  ;;  %vm509_vm15 = vcmp.lt.s32.totalorder (!%p216_p2), %v1315_v6, 3  ;;  %v1225_v2 = vld [vmem:[%s1431_s1 + $0x20] sm:$0xff] (!%p216_p2)   ;;  %vm508_vm3 = vcmp.ge.s32.totalorder (!%p216_p2), %v1322_v7, 0 }
   0xb   : > { %362 = vperm.xlu0 (!%p216_p2), %1217, %v359_v8   ;;  %vm510_vm4 = vcmp.lt.s32.totalorder (!%p216_p2), %v1322_v7, 3  ;;  %vm670_vm5 = vsmask.f32 (!%p216_p2), 3328  ;;  %vm610_vm7 = vcmask (!%p216_p2), 1043456   ;;  %vm825_vm8 = vcmask (!%p216_p2), 1041408  }
   0xc   : > { %vm512_vm6 = vmand (!%p216_p2), %vm508_vm3, %vm510_vm4 }
   0xd   : > { %s1438_s22 = smov (!%p248_p3, %s1079_s22), 1 }
   0xe   : > { %s1130_s27 = sshll.u32 %s1438_s22, 3  ;;  %s260_s12 = scalar_lea.vmem %s1436_s6, %s1438_s22 }
   0xf   : > { %s252_s30 = scalar_lea.vmem %s1430_s0, %s1130_s27  ;;  %365 = vperm.xlu0 %1217, %v360_v9   ;;  %s257_s10 = scalar_lea.vmem %s1435_s5, %s1130_s27 }
  0x10   : > { %v1221_v4 = vld [vmem:[%s252_s30] ss:$0 sps:$4 sm:$0xff]   ;;  %v1222_v5 = vld [vmem:[%s252_s30 + $0x4] ss:$0 sps:$4 sm:$0xff]  }
  0x11   : > { %276 = vst.msk [vmem:[#allocation2] sm:$0xf0] %vm264_vm2, %v1221_v4  ;;  %vm511_vm2 = vmand %vm507_vm14, %vm509_vm15  ;;  %vm997_vm15 = vcmask 122880  }
  0x12   : > { %277 = vst.msk [vmem:[#allocation2 + $0x8] sm:$0xf] %vm262_vm1, %v1222_v5 }
  0x18   : > { %v280_v10 = vld [vmem:[#allocation2] sm:$0xfe] }
  0x19   : > { %v373_v11 = vld [vmem:[#allocation2] sm:$0xfc]  ;;  %v281_v14 = vld [vmem:[#allocation2 + $0x8] sm:$0x3]  ;;  %v286_v15 = vshrl.u32 %v280_v10, 16  ;;  %v289_v16 = vshll.u32 %v280_v10, 16 }
  0x1a   : > { %v527_v13 = vld [vmem:[#allocation2] sm:$0xf8]  ;;  %v380_v17 = vrot.slane %v373_v11, 2  ;;  %v441_v18 = vshrl.u32 %v373_v11, 16  ;;  %v294_v19 = vshrl.u32 %v281_v14, 16  ;;  %v297_v20 = vshll.u32 %v281_v14, 16 }
  0x1b   : > { %v381_v21 = vrot.slane %v281_v14, 2  ;;  %v444_v22 = vshll.u32 %v373_v11, 16  ;;  %v435_v23 = vld [vmem:[#allocation2 + $0x8] sm:$0x7]  ;;  %v288_v24 = vrot.slane %v286_v15, 1  ;;  %v291_v25 = vrot.slane %v289_v16, 2 }
  0x1c   : > { %v449_v26 = vshrl.u32 %v435_v23, 16  ;;  %v1331_v27 = vld [vmem:[#allocation2 + $0x8] sm:$0xf]  ;;  %v296_v28 = vrot.slane %v294_v19, 1  ;;  %v299_v29 = vrot.slane %v297_v20, 2  ;;  %v443_v31 = vrot.slane %v441_v18, 2 }
  0x1d   : > { %v382_v30 = vsel %vm379_vm11, %v380_v17, %v381_v21  ;;  %v292_v32 = vor.u32 %v291_v25, %v288_v24  ;;  %v446_v33 = vrot.slane %v444_v22, 3  ;;  %v452_v34 = vshll.u32 %v435_v23, 16  ;;  %v1341_v41 = vld [vmem:[#allocation2] sm:$0xf0]  ;;  %v666_v45 = vld [vmem:[#allocation2 + $0x8] sm:$0x1f] }
  0x1e   : > { %1161 = vmatmul.mubr.msk.bf16.vlgmr.msra.gmra.mrb[0].mxu1 %vm308_vm10, %v382_v30  ;;  %v534_v35 = vshrl.u32 %v527_v13, 16  ;;  %v300_v36 = vor.u32 %v299_v29, %v296_v28  ;;  %v451_v38 = vrot.slane %v449_v26, 2  ;;  %v537_v39 = vshll.u32 %v527_v13, 16  ;;  %v742_v4 = vld [vmem:[#allocation2] sm:$0xe0]  ;;  %v1228_v16 = vld [vmem:[%s1431_s1 + $0x38] sm:$0xff]  }
  0x1f   : > { %1171 = vmatpush3.bf16.msra.mxu1 %v1224_v12  ;;  %1172 = vmatprep.mubr.msk.bf16.mxu1 %vm1239_vm0, %v1238_v1  ;;  %v542_v40 = vshrl.u32 %v1331_v27, 16  ;;  %v454_v42 = vrot.slane %v452_v34, 3  ;;  %v545_v44 = vshll.u32 %v1331_v27, 16  ;;  %v447_v49 = vor.u32 %v446_v33, %v443_v31  ;;  %v743_v9 = vld [vmem:[#allocation2 + $0x8] sm:$0x3f]  ;;  %v1227_v22 = vld [vmem:[%s1431_s1 + $0x30] sm:$0xff]  }
  0x20   : > { %v536_v43 = vrot.slane %v534_v35, 3  ;;  %1182 = vmatprep.subr.bf16.mxu1 %v1238_v1  ;;  %v301_v46 = vsel %vm284_vm9, %v292_v32, %v300_v36  ;;  %v539_v47 = vrot.slane %v537_v39, 4  ;;  %v672_v51 = vshrl.u32 %v1341_v41, 16  ;;  %v819_v17 = vld [vmem:[#allocation2] sm:$0xc0] }
  0x21   : > { %v544_v48 = vrot.slane %v542_v40, 3  ;;  %1155 = vmatmul.mubr.msk.bf16.vlgmr.msra.gmra.mrb[0].mxu0 %vm308_vm10, %v301_v46  ;;  %v547_v50 = vrot.slane %v545_v44, 4  ;;  %v675_v52 = vshll.u32 %v1341_v41, 16  ;;  %v455_v53 = vor.u32 %v454_v42, %v451_v38  ;;  %v1229_v36 = vld [vmem:[%s1431_s1 + $0x40] sm:$0xff]  }
  0x22   : > { %1165 = vmatpush3.bf16.msra.mxu0 %v1223_v37  ;;  %1166 = vmatprep.mubr.msk.bf16.mxu0 %vm1239_vm0, %v1238_v1  ;;  %v540_v54 = vor.u32 %v539_v47, %v536_v43  ;;  %v680_v55 = vshrl.u32 %v666_v45, 16  ;;  %v683_v56 = vshll.u32 %v666_v45, 16  ;;  %v674_v59 = vrot.slane %v672_v51, 4 }
  0x23   : > { %1176 = vmatprep.subr.bf16.mxu0 %v1238_v1  ;;  %v548_v57 = vor.u32 %v547_v50, %v544_v48  ;;  %v677_v60 = vrot.slane %v675_v52, 5  ;;  %v456_v0 = vsel %vm439_vm13, %v447_v49, %v455_v53  ;;  %v611_v6 = vrot.slane %v1341_v41, 4 }
  0x24   : > { %v682_v61 = vrot.slane %v680_v55, 4  ;;  %v685_v62 = vrot.slane %v683_v56, 5  ;;  %v749_v10 = vshrl.u32 %v742_v4, 16  ;;  %v752_v11 = vshll.u32 %v742_v4, 16 }
  0x25   : > { %v549_v63 = vsel %vm532_vm12, %v540_v54, %v548_v57  ;;  %v678_v5 = vor.u32 %v677_v60, %v674_v59  ;;  %v612_v12 = vrot.slane %v1331_v27, 4  ;;  %v757_v13 = vshrl.u32 %v743_v9, 16  ;;  %v881_v27 = vld [vmem:[#allocation2 + $0x8] sm:$0x7f] }
  0x26   : > { %1173 = vmatmul.mubr.msk.bf16.vlgmr.msra.gmra.mrb[4].mxu1 %vm308_vm10, %v549_v63  ;;  %v686_v8 = vor.u32 %v685_v62, %v682_v61  ;;  %v760_v14 = vshll.u32 %v743_v9, 16  ;;  %v513_v15 = vsel %vm511_vm2, 1, %v1240_v3  ;;  %v751_v18 = vrot.slane %v749_v10, 5 }
  0x27   : > { %1183 = vmatpush3.bf16.msra.mxu1 %v1226_v58  ;;  %1184 = vmatprep.mubr.msk.bf16.mxu1 %vm1239_vm0, %v1238_v1  ;;  %v754_v19 = vrot.slane %v752_v11, 6  ;;  %v514_v20 = vsel %vm512_vm6, 1, %v1240_v3  ;;  %v613_v21 = vsel %vm610_vm7, %v611_v6, %v612_v12  ;;  %v759_v23 = vrot.slane %v757_v13, 5 }
  0x28   : > { %1194 = vmatprep.subr.bf16.mxu1 %v1238_v1  ;;  %v687_v7 = vsel %vm670_vm5, %v678_v5, %v686_v8  ;;  %516 = vperm.xlu1 %1218, %v513_v15   ;;  %v762_v24 = vrot.slane %v760_v14, 6  ;;  %v826_v25 = vrot.slane %v819_v17, 6  ;;  %v827_v26 = vrot.slane %v743_v9, 6 }
  0x29   : > { %1167 = vmatmul.mubr.msk.bf16.vlgmr.msra.gmra.mrb[4].mxu0 %vm308_vm10, %v456_v0  ;;  %v755_v3 = vor.u32 %v754_v19, %v751_v18  ;;  %v887_v28 = vshrl.u32 %v819_v17, 16  ;;  %v890_v30 = vshll.u32 %v819_v17, 16  ;;  %v895_v31 = vshrl.u32 %v881_v27, 16 }
  0x2a   : > { %1177 = vmatpush3.bf16.msra.mxu0 %v1225_v2  ;;  %1178 = vmatprep.mubr.msk.bf16.mxu0 %vm1239_vm0, %v1238_v1  ;;  %v763_v29 = vor.u32 %v762_v24, %v759_v23  ;;  %v898_v32 = vshll.u32 %v881_v27, 16  ;;  %vm747_vm9 = vsmask.f32 2304  ;;  %v828_v33 = vsel %vm825_vm8, %v826_v25, %v827_v26 }
  0x2b   : > { %1188 = vmatprep.subr.bf16.mxu0 %v1238_v1  ;;  %v889_v34 = vrot.slane %v887_v28, 6  ;;  %v892_v37 = vrot.slane %v890_v30, 7  ;;  %v897_v38 = vrot.slane %v895_v31, 6  ;;  %vm885_vm11 = vsmask.f32 1280 }
  0x2c   : > { %519 = vperm.xlu1 %1218, %v514_v20   ;;  %v764_v35 = vsel %vm747_vm9, %v755_v3, %v763_v29  ;;  %v900_v39 = vrot.slane %v898_v32, 7 }
  0x2d   : > { %v893_v40 = vor.u32 %v892_v37, %v889_v34 }
  0x2e   : > { %1185 = vmatmul.mubr.msk.bf16.vlgmr.msra.gmra.mrb[8].mxu1 %vm308_vm10, %v687_v7  ;;  %v901_v41 = vor.u32 %v900_v39, %v897_v38 }
  0x2f   : > { %1195 = vmatpush3.bf16.msra.mxu1 %v1228_v16  ;;  %1196 = vmatprep.mubr.msk.bf16.mxu1 %vm1239_vm0, %v1238_v1 }
  0x30   : > { %v902_v42 = vsel %vm885_vm11, %v893_v40, %v901_v41  ;;  %v1124_v41 = vld [vmem:[%s1432_s2] ss:$0 sm:$0xff] }
  0x31   : > { %1179 = vmatmul.mubr.msk.bf16.vlgmr.msra.gmra.mrb[8].mxu0 %vm308_vm10, %v613_v21 }
  0x32   : > { %1189 = vmatpush3.bf16.msra.mxu0 %v1227_v22  ;;  %1190 = vmatprep.mubr.msk.bf16.mxu0 %vm1239_vm0, %v1238_v1 }
  0x33   : > { %1200 = vmatprep.subr.bf16.mxu0 %v1238_v1 }
  0x36   : > { %1197 = vmatmul.mubr.msk.bf16.vlgmr.msra.gmra.mrb[12].mxu1 %vm308_vm10, %v828_v33 }
  0x39   : > { %1191 = vmatmul.mubr.msk.bf16.vlgmr.msra.gmra.mrb[12].mxu0 %vm308_vm10, %v764_v35 }
  0x3a   : > { %1201 = vmatpush3.bf16.msra.mxu0 %v1229_v36  ;;  %1202 = vmatprep.mubr.msk.bf16.mxu0 %vm1239_vm0, %v1238_v1 }
  0x41   : > { %1203 = vmatmul.mubr.msk.bf16.vlgmr.msra.gmra.mrb[16].mxu0 %vm308_vm10, %v902_v42 }
  0x8a   : > { %v363_v43 = vpop.permute.xlu0 %362 }
  0x8b   : > { %vm367_vm12 = vcmp.eq.s32.totalorder %v363_v43, 1 }
  0x8e   : > { %v366_v45 = vpop.permute.xlu0 %365 }
  0x8f   : > { %vm368_vm13 = vcmp.eq.s32.totalorder %v366_v45, 1  ;;  %v1125_v45 = vld [vmem:[%s1433_s3] ss:$0 sm:$0xff] }
  0xa7   : > { %v517_v48 = vpop.permute.xlu1 %516 }
  0xa8   : > { %vm521_vm0 = vcmp.eq.s32.totalorder %v517_v48, 1 }
  0xab   : > { %v520_v57 = vpop.permute.xlu1 %519 }
  0xac   : > { %vm522_vm14 = vcmp.eq.s32.totalorder %v520_v57, 1 }
  0xf1   : > { %v426_v44 = vpop.f32.mrb[0].mxu1 }
  0xf2   : > { %v1162_v46 = vpop.f32.mrb[1].mxu1 }
  0xf3   : > { %v429_v47 = vpop.f32.mrb[2].mxu1 }
  0xf4   : > { %v1163_v49 = vpop.f32.mrb[3].mxu1  ;;  %v346_v50 = vpop.f32.mrb[0].mxu0 }
  0xf5   : > { %v369_v51 = vsel %vm367_vm12, %v346_v50, 0.0  ;;  %v1156_v52 = vpop.f32.mrb[1].mxu0 }
  0xf6   : > { %v433_v1 = vadd.f32 %v426_v44, %v369_v51  ;;  %v349_v53 = vpop.f32.mrb[2].mxu0 }
  0xf7   : > { %v370_v54 = vsel %vm368_vm13, %v349_v53, 0.0  ;;  %v1157_v55 = vpop.f32.mrb[3].mxu0 }
  0xf8   : > { %v434_v56 = vadd.f32 %v429_v47, %v370_v54 }
  0xf9   : > { %v593_v58 = vpop.f32.mrb[4].mxu1 }
  0xfa   : > { %v1174_v59 = vpop.f32.mrb[5].mxu1  ;;  %v600_v2 = vsel %vm367_vm12, %v593_v58, 0.0 }
  0xfb   : > { %v596_v60 = vpop.f32.mrb[6].mxu1 }
  0xfc   : > { %v500_v61 = vpop.f32.mrb[4].mxu0  ;;  %v1175_v62 = vpop.f32.mrb[7].mxu1  ;;  %v601_v6 = vsel %vm368_vm13, %v596_v60, 0.0 }
  0xfd   : > { %v523_v63 = vsel %vm521_vm0, %v500_v61, 0.0  ;;  %v1168_v0 = vpop.f32.mrb[5].mxu0 }
  0xfe   : > { %v525_v4 = vadd.f32 %v523_v63, %v433_v1  ;;  %v503_v5 = vpop.f32.mrb[6].mxu0 }
  0xff   : > { %v524_v8 = vsel %vm522_vm14, %v503_v5, 0.0  ;;  %v1169_v9 = vpop.f32.mrb[7].mxu0 }
 0x100   : > { %v526_v10 = vadd.f32 %v524_v8, %v434_v56  ;;  %v602_v11 = vadd.f32 %v600_v2, %v525_v4 }
 0x101   : > { %v731_v12 = vpop.f32.mrb[8].mxu1 }
 0x102   : > { %v603_v13 = vadd.f32 %v601_v6, %v526_v10  ;;  %v1186_v14 = vpop.f32.mrb[9].mxu1  ;;  %v738_v16 = vsel %vm521_vm0, %v731_v12, 0.0 }
 0x103   : > { %v734_v15 = vpop.f32.mrb[10].mxu1 }
 0x104   : > { %v657_v7 = vpop.f32.mrb[8].mxu0  ;;  %v1187_v17 = vpop.f32.mrb[11].mxu1  ;;  %v739_v21 = vsel %vm522_vm14, %v734_v15, 0.0 }
 0x105   : > { %v664_v18 = vadd.f32 %v657_v7, %v602_v11  ;;  %v1180_v19 = vpop.f32.mrb[9].mxu0 }
 0x106   : > { %v660_v20 = vpop.f32.mrb[10].mxu0 }
 0x107   : > { %v740_v22 = vadd.f32 %v738_v16, %v664_v18  ;;  %v665_v23 = vadd.f32 %v660_v20, %v603_v13  ;;  %v1181_v24 = vpop.f32.mrb[11].mxu0 }
 0x109   : > { %v741_v25 = vadd.f32 %v739_v21, %v665_v23  ;;  %v872_v26 = vpop.f32.mrb[12].mxu1 }
 0x10a   : > { %v1198_v27 = vpop.f32.mrb[13].mxu1 }
 0x10b   : > { %v875_v3 = vpop.f32.mrb[14].mxu1 }
 0x10c   : > { %v808_v28 = vpop.f32.mrb[12].mxu0  ;;  %v1199_v29 = vpop.f32.mrb[15].mxu1 }
 0x10d   : > { %v815_v30 = vsel %vm367_vm12, %v808_v28, 0.0  ;;  %v1192_v31 = vpop.f32.mrb[13].mxu0 }
 0x10e   : > { %v817_v32 = vadd.f32 %v815_v30, %v740_v22  ;;  %v811_v33 = vpop.f32.mrb[14].mxu0 }
 0x10f   : > { %v816_v34 = vsel %vm368_vm13, %v811_v33, 0.0  ;;  %v1193_v35 = vpop.f32.mrb[15].mxu0 }
 0x110   : > { %v818_v36 = vadd.f32 %v816_v34, %v741_v25  ;;  %v879_v37 = vadd.f32 %v872_v26, %v817_v32 }
 0x112   : > { %v880_v38 = vadd.f32 %v875_v3, %v818_v36 }
 0x114   : > { %v946_v39 = vpop.f32.mrb[16].mxu0 }
 0x115   : > { %v953_v40 = vsel %vm521_vm0, %v946_v39, 0.0  ;;  %v1204_v42 = vpop.f32.mrb[17].mxu0 }
 0x116   : > { %v955_v43 = vadd.f32 %v953_v40, %v879_v37  ;;  %v949_v44 = vpop.f32.mrb[18].mxu0 }
 0x117   : > { %v954_v46 = vsel %vm522_vm14, %v949_v44, 0.0  ;;  %v1205_v47 = vpop.f32.mrb[19].mxu0 }
 0x118   : > { %v964_v49 = vmul.f32 %v1124_v41, %v955_v43  ;;  %v956_v50 = vadd.f32 %v954_v46, %v880_v38 }
 0x11a   : > { %v973_v51 = vadd.f32 %v1125_v45, %v964_v49  ;;  %v965_v52 = vmul.f32 %v1124_v41, %v956_v50 }
 0x11c   : > { %v975_v48 = vmax.f32 %v973_v51, 0.0  ;;  %v974_v1 = vadd.f32 %v1125_v45, %v965_v52 }
 0x11e   : > { %v1132_v53 = vpack.c.bf16 %v975_v48, %v975_v48  ;;  %v976_v54 = vmax.f32 %v974_v1, 0.0  ;;  %v987_v55 = vsel %vm308_vm10, %v975_v48, 0.0 }
 0x120   : > { %985 = vst.msk [vmem:[%s257_s10] sm:$0xf] %vm262_vm1, %v1132_v53  ;;  %v1133_v56 = vpack.c.bf16 %v976_v54, %v976_v54  ;;  %v988_v57 = vsel %vm308_vm10, %v976_v54, 0.0 }
 0x121   : > { %v989_v58 = vadd.f32 %v988_v57, %v987_v55 }
 0x122   : > { %986 = vst.msk [vmem:[%s257_s10 + $0x4] sm:$0xf] %vm262_vm1, %v1133_v56 }
 0x123   : > { %v990_v59 = vrot.slane %v989_v58, 4 }
 0x125   : > { %v991_v60 = vadd.f32 %v990_v59, %v989_v58 }
 0x127   : > { %v992_v61 = vrot.slane %v991_v60, 2 }
 0x129   : > { %v993_v62 = vadd.f32 %v992_v61, %v991_v60 }
 0x12b   : > { %v994_v63 = vrot.slane %v993_v62, 1 }
 0x12d   : > { %v995_v0 = vadd.f32 %v994_v63, %v993_v62 }
 0x12f   : > { %v996_v2 = vmul.f32 0.0625, %v995_v0 }
 0x131   : > { %998 = vst.msk [vmem:[%s260_s12] sm:$0x1] %vm997_vm15, %v996_v2 }
 0x132 PF: > { %s17_s21 = sadd.s32 1, %s1236_s21  }
 0x133   : > { %p14_p4 = scmp.ge.s32.totalorder %s17_s21, 4  }
 0x135   :  { %16 = sbr.rel (!%p14_p4) target bundleno = 1 (0x1), region = 90 }

// kernel: forward.46
= control target key start
LH: loop header
LB: loop body
LE: loop exit
PB: predicated region body
PF: predicated region fallthrough
CT: control target
= control target key end

     0   :  { %v240_v0 = vmov 0.0|0.0   ;;  %vm241_vm0 = vmmov 0   ;;  %v242_v3 = vmov 0.0   ;;  %vm31_vm1 = vcmask 195584   ;;  %s297_s1 = inlined_call_operand.vmem [shape: f32[24,4], index: 1, kind: input, shape index: {}]   ;;  %s298_s0 = inlined_call_operand.vmem [shape: f32[2,24], index: 0, kind: input, shape index: {}]   ;;  %s299_s3 = inlined_call_operand.vmem [shape: f32[4,24], index: 3, kind: input, shape index: {}]   ;;  %s300_s2 = inlined_call_operand.vmem [shape: f32[1,4], index: 2, kind: input, shape index: {}]   ;;  %s301_s4 = inlined_call_operand.vmem [shape: f32[1,24], index: 4, kind: input, shape index: {}]   ;;  %s302_s5 = inlined_call_operand.vmem [shape: f32[2,24], index: 5, kind: output, shape index: {}]  }
   0x1   :  { %230 = vmatprep.subr.bf16.mxu0 %v240_v0  ;;  %v21_v1 = vld [vmem:[%s297_s1] sm:$0xff]  ;;  %v22_v2 = vld [vmem:[%s297_s1 + $0x8] sm:$0xff]  ;;  %222 = vmatprep.mubr.msk.f32.mxu0 %vm241_vm0, %v242_v3  ;;  %v23_v5 = vld [vmem:[%s297_s1 + $0x10] sm:$0xff]  ;;  %vm118_vm2 = vcmask 1043456   ;;  %vm114_vm3 = vcmask 31744   ;;  %vm198_vm4 = vcmask 189440  }
   0x2   :  { %v231_v4 = vpack.c.bf16 %v22_v2, %v21_v1  ;;  %225 = vmatprep.subr.mxu1 %v242_v3  ;;  %227 = vmatprep.mubr.msk.f32.mxu1 %vm241_vm0, %v242_v3  ;;  %v20_v6 = vld [vmem:[%s298_s0] sm:$0x3] }
   0x3   :  { %v106_v7 = vld [vmem:[%s299_s3] sm:$0xf] }
   0x4   :  { %232 = vmatpush3.bf16.msra.mxu0 %v231_v4  ;;  %226 = vmatpush3.msk.msra.mxu1 %vm118_vm2, %v106_v7  ;;  %v204_v8 = vld [vmem:[%s300_s2] ss:$0 sm:$0xff] }
   0x5   :  { %220 = vmatprep.subr.mxu0 %v242_v3  ;;  %v206_v13 = vld [vmem:[%s301_s4] ss:$0 sm:$0xff] }
   0x8   :  { %221 = vmatpush3.msra.mxu0 %v23_v5 }
   0x9   :  { %223 = vmatmul.mubr.msk.f32.vlgmr.msra.gmra.mrb[0].mxu0 %vm31_vm1, %v20_v6 }
  0xdc   :  { %v101_v9 = vpop.f32.mrb[0].mxu0 }
  0xdd   :  { %v102_v10 = vadd.f32 %v204_v8, %v101_v9  ;;  %v224_v11 = vpop.f32.mrb[1].mxu0 }
  0xdf   :  { %v105_v12 = vmax.f32 %v102_v10, 0.0 }
  0xe1   :  { %228 = vmatmul.mubr.msk.f32.vlgmr.msra.gmra.mrb[0].mxu1 %vm114_vm3, %v105_v12 }
 0x1b4   :  { %v188_v14 = vpop.f32.mrb[0].mxu1 }
 0x1b5   :  { %v189_v15 = vadd.f32 %v206_v13, %v188_v14  ;;  %v229_v16 = vpop.f32.mrb[1].mxu1 }
 0x1b7   :  { %v209_v17 = vmul.f32 -1.442695, %v189_v15 }
 0x1b9   :  { %236 = vpow2.f32 %v209_v17 }
 0x1c3   :  { %v237_v18 = vpop.eup %236 }
 0x1c4   :  { %v195_v19 = vadd.f32 1.0, %v237_v18 }
 0x1c6   :  { %238 = vrcp.f32 %v195_v19 }
 0x1d0   :  { %v239_v20 = vpop.eup %238 }
 0x1d1   :  { %199 = vst.msk [vmem:[%s302_s5] sm:$0x3] %vm198_vm4, %v239_v20 }

// kernel: forward.47
= control target key start
LH: loop header
LB: loop body
LE: loop exit
PB: predicated region body
PF: predicated region fallthrough
CT: control target
= control target key end

     0   :  { %s629_s21 = smov 0   ;;  %s631_s22 = smov 0   ;;  %s680_s0 = inlined_call_operand.vmem [shape: bf16[2,4,24], index: 0, kind: input, shape index: {}]   ;;  %s681_s1 = inlined_call_operand.vmem [shape: bf16[24,24], index: 1, kind: input, shape index: {}]   ;;  %s682_s2 = inlined_call_operand.vmem [shape: f32[1,24], index: 2, kind: input, shape index: {}]   ;;  %s683_s3 = inlined_call_operand.vmem [shape: f32[1,24], index: 3, kind: input, shape index: {}]   ;;  %s684_s4 = inlined_call_operand.vmem [shape: f32[2,1,24], index: 4, kind: input, shape index: {}]   ;;  %s685_s5 = inlined_call_operand.vmem [shape: bf16[2,4,24], index: 5, kind: input, shape index: {}]   ;;  %s686_s6 = inlined_call_operand.vmem [shape: bf16[2,4,24], index: 6, kind: output, shape index: {}]  }
   0x1   :  { %s633_s23 = smov 0  }
   0x2 LB: > { %s28_s24 = sadd.s32 1, %s586_s22  ;;  %p517_p0 = scmp.ge.s32.totalorder %s590_s23, 1  ;;  %s590_s23 = sphi %s633_s23, %s16_s23   ;;  %s586_s22 = sphi %s631_s22, %s688_s22   ;;  %s582_s21 = sphi %s629_s21, %s687_s21  }
   0x3   : > { %p30_p1 = scmp.ge.s32.totalorder %s28_s24, 2  ;;  %p252_p2 = scmp.lt.s32.totalorder %s590_s23, 3 }
   0x5   : > { %s690_s24 = smov (%p30_p1, %s28_s24), 0  ;;  %p253_p3 = pnand %p517_p0, %p252_p2 }
   0x6   : > { %v566_v0 = vld [vmem:[%s681_s1] sm:$0xff] (!%p253_p3)   ;;  %v592_v1 = vmov (!%p253_p3), 0.0   ;;  %v567_v2 = vld [vmem:[%s681_s1 + $0x8] ss:$0 sps:$4 sm:$0xff] (!%p253_p3)   ;;  %vm348_vm0 = vcmask (!%p253_p3), 1043456   ;;  %vm593_vm1 = vmmov (!%p253_p3), 0  }
   0x7   : > { %256 = sbr.rel (%p253_p3) target bundleno = 247 (0xf7), region = 44  ;;  %532 = vmatprep.subr.bf16.mxu0 (!%p253_p3), %v592_v1  ;;  %536 = vmatprep.mubr.msk.bf16.mxu0 (!%p253_p3), %vm593_vm1, %v592_v1  ;;  %p296_p4 = scmp.lt.s32.totalorder (!%p253_p3), %s582_s21, 1  ;;  %v350_v3 = vsel (!%p253_p3), %vm348_vm0, %v567_v2, 0  ;;  %vm344_vm2 = vcmask (!%p253_p3), 195584   ;;  %v525_v9 = vld [vmem:[%s682_s2] ss:$0 sm:$0xff] (!%p253_p3) }
   0x8   : > { %533 = vmatpush3.bf16.msra.mxu0 (!%p253_p3), %v566_v0  ;;  %v526_v12 = vld [vmem:[%s683_s3] ss:$0 sm:$0xff] (!%p253_p3)  ;;  %vm413_vm3 = vcmask (!%p253_p3), 189440  }
   0x9   : > { %534 = vmatprep.subr.bf16.mxu0 (!%p253_p3), %v592_v1 }
   0xc   : > { %535 = vmatpush3.bf16.msra.mxu0 (!%p253_p3), %v350_v3 }
   0xe   : > { %s692_s21 = smov (!%p296_p4, %s582_s21), 1 }
   0xf   : > { %s518_s29 = sshll.u32 %s692_s21, 1  ;;  %s305_s8 = scalar_lea.vmem %s684_s4, %s692_s21 }
  0x10   : > { %s302_s11 = scalar_lea.vmem %s680_s0, %s518_s29  ;;  %v521_v5 = vld [vmem:[%s305_s8] ss:$0 sm:$0xff]  ;;  %s312_s14 = scalar_lea.vmem %s685_s5, %s518_s29 }
  0x11   : > { %v321_v4 = vld [vmem:[%s302_s11] sm:$0x3]  ;;  %s319_s21 = scalar_lea.vmem %s686_s6, %s518_s29 }
  0x12   : > { %v322_v6 = vunpack.c.l.bf16 %v321_v4  ;;  %v408_v10 = vld [vmem:[%s312_s14] sm:$0x3] }
  0x13   : > { %v409_v14 = vunpack.c.l.bf16 %v408_v10 }
  0x14   : > { %v330_v7 = vmul.f32 %v521_v5, %v322_v6 }
  0x16   : > { %v331_v8 = vpack.c.bf16 %v330_v7, %v330_v7 }
  0x18   : > { %537 = vmatmul.mubr.msk.bf16.vlgmr.msra.gmra.mrb[0].mxu0 %vm344_vm2, %v331_v8 }
  0xeb   : > { %v386_v11 = vpop.f32.mrb[0].mxu0 }
  0xec   : > { %v399_v13 = vmul.f32 %v525_v9, %v386_v11  ;;  %v538_v15 = vpop.f32.mrb[1].mxu0 }
  0xed   : > { %v389_v16 = vpop.f32.mrb[2].mxu0 }
  0xee   : > { %v407_v17 = vadd.f32 %v526_v12, %v399_v13  ;;  %v539_v18 = vpop.f32.mrb[3].mxu0 }
  0xf0   : > { %v410_v19 = vadd.f32 %v409_v14, %v407_v17 }
  0xf2   : > { %v411_v20 = vmax.f32 %v410_v19, 0.0 }
  0xf4   : > { %v412_v21 = vpack.c.bf16 %v411_v20, %v411_v20 }
  0xf6   : > { %414 = vst.msk [vmem:[%s319_s21] sm:$0x3] %vm413_vm3, %v412_v21 }
  0xf7 PF: > { %s16_s23 = sadd.s32 1, %s590_s23   ;;  %s687_s21 = smov %s586_s22 }
  0xf8   : > { %p13_p5 = scmp.ge.s32.totalorder %s16_s23, 4   ;;  %s688_s22 = smov %s690_s24 }
  0xfa   :  { %15 = sbr.rel (!%p13_p5) target bundleno = 2 (0x2), region = 80 }

// kernel: forward.45
= control target key start
LH: loop header
LB: loop body
LE: loop exit
PB: predicated region body
PF: predicated region fallthrough
CT: control target
= control target key end

     0   :  { %s1381_s24 = smov 0   ;;  %s1560_s0 = inlined_call_operand.vmem [shape: bf16[2,4,192], index: 0, kind: input, shape index: {}]   ;;  %s1561_s1 = inlined_call_operand.vmem [shape: bf16[9,24,24], index: 1, kind: input, shape index: {}]   ;;  %s1562_s2 = inlined_call_operand.vmem [shape: f32[1,24], index: 2, kind: input, shape index: {}]   ;;  %s1563_s3 = inlined_call_operand.vmem [shape: f32[1,24], index: 3, kind: input, shape index: {}]   ;;  %s1564_s4 = inlined_call_operand.vmem [shape: s32[4,1], index: 4, kind: input, shape index: {}]   ;;  %s1565_s5 = inlined_call_operand.vmem [shape: bf16[2,4,24], index: 5, kind: output, shape index: {0}]   ;;  %s1566_s6 = inlined_call_operand.vmem [shape: f32[2,1,24], index: 6, kind: output, shape index: {1}]   ;;  %s1567_s7 = inlined_call_operand.vmem [shape: bf16[2,4,24], index: 7, kind: output, shape index: {2}]  }
   0x1 LB: > { %s1104_s25 = sadd.s32 4294967295, %s1331_s24   ;;  %p1108_p0 = scmp.ge.s32.totalorder %s1331_s24, 1  ;;  %s1331_s24 = sphi %s1381_s24, %s18_s24  }
   0x2   : > { %p242_p1 = scmp.lt.s32.totalorder %s1331_s24, 3 }
   0x4   : > { %p243_p2 = pnand %p1108_p0, %p242_p1 }
   0x5   : > { %p280_p3 = scmp.lt.s32.totalorder (!%p243_p2), %s1104_s25, 1  ;;  %vm298_vm0 = vcmask (!%p243_p2), 519168   ;;  %v1333_v0 = vmov (!%p243_p2), 0   ;;  %v1307_v1 = vld [vmem:[%s1561_s1 + $0x18] sm:$0xff] (!%p243_p2)   ;;  %v1334_v2 = vmov (!%p243_p2), 0.0   ;;  %vm346_vm1 = vcmask (!%p243_p2), 1043456  }
   0x6   : > { %246 = sbr.rel (%p243_p2) target bundleno = 426 (0x1aa), region = 40  ;;  %299 = vst.msk [vmem:[#allocation2 + $0x8] sm:$0xf] (!%p243_p2), %vm298_vm0, %v1333_v0  ;;  %297 = vst [vmem:[#allocation2] sm:$0xf] (!%p243_p2), %v1333_v0  ;;  %1305 = vset.pattern.permute.xlu1 (!%p243_p2), %v1333_v0  ;;  %1306 = vset.pattern.permute.xlu0 (!%p243_p2), %v1333_v0  ;;  %vm316_vm2 = vcmask (!%p243_p2), 521220  }
   0x7   : > { %1213 = vmatprep.subr.bf16.mxu1 (!%p243_p2), %v1334_v2  ;;  %1197 = vmatprep.subr.bf16.mxu0 (!%p243_p2), %v1334_v2  ;;  %v1308_v3 = vld [vmem:[%s1561_s1 + $0x20] ss:$0 sps:$4 sm:$0xff] (!%p243_p2)   ;;  %vm1335_vm3 = vmmov (!%p243_p2), 0   ;;  %v1311_v7 = vld [vmem:[%s1561_s1 + $0x8] ss:$0 sps:$4 sm:$0xff] (!%p243_p2)   ;;  %s1336_s15 = smov (!%p243_p2), 112  }
   0x8   : > { %1214 = vmatpush3.bf16.msra.mxu1 (!%p243_p2), %v1307_v1  ;;  %v1309_v4 = vld [vmem:[%s1561_s1] sm:$0xff] (!%p243_p2)   ;;  %v487_v5 = vsel (!%p243_p2), %vm346_vm1, %v1308_v3, 0  ;;  %1217 = vmatprep.mubr.msk.bf16.mxu1 (!%p243_p2), %vm1335_vm3, %v1334_v2  ;;  %v348_v9 = vsel (!%p243_p2), %vm346_vm1, %v1311_v7, 0  ;;  %s1337_s16 = smov (!%p243_p2), 80   ;;  %s1338_s17 = smov (!%p243_p2), 32   ;;  %vm342_vm7 = vcmask (!%p243_p2), 195584  }
   0x9   : > { %1215 = vmatprep.subr.bf16.mxu1 (!%p243_p2), %v1334_v2  ;;  %1201 = vmatprep.mubr.msk.bf16.mxu0 (!%p243_p2), %vm1335_vm3, %v1334_v2  ;;  %v318_v42 = vld [vmem:[%s1564_s4] sm:$0xf] (!%p243_p2)  ;;  %v1310_v44 = vld [vmem:[%s1561_s1 + $0x30] sm:$0xff] (!%p243_p2)   ;;  %v1313_v45 = vld [vmem:[%s1561_s1 + $0x38] ss:$0 sps:$4 sm:$0xff] (!%p243_p2)   ;;  %vm970_vm8 = vcmask (!%p243_p2), 261120  }
   0xa   : > { %1198 = vmatpush3.bf16.msra.mxu0 (!%p243_p2), %v1309_v4  ;;  %vm390_vm4 = vcmp.ge.s32.totalorder (!%p243_p2), %v318_v42, 1  ;;  %vm391_vm5 = vcmp.lt.s32.totalorder (!%p243_p2), %v318_v42, 2  ;;  %v1312_v47 = vld [vmem:[%s1561_s1 + $0xc] sm:$0xff] (!%p243_p2)   ;;  %v622_v48 = vsel (!%p243_p2), %vm346_vm1, %v1313_v45, 0  ;;  %v1314_v49 = vld [vmem:[%s1561_s1 + $0x14] ss:$0 sps:$4 sm:$0xff] (!%p243_p2)  }
   0xb   : > { %1199 = vmatprep.subr.bf16.mxu0 (!%p243_p2), %v1334_v2  ;;  %vm392_vm6 = vmand (!%p243_p2), %vm390_vm4, %vm391_vm5  ;;  %v422_v52 = vsel (!%p243_p2), %vm346_vm1, %v1314_v49, 0  ;;  %v1315_v54 = vld [vmem:[%s1561_s1 + $0x3c] sm:$0xff] (!%p243_p2)   ;;  %v1316_v55 = vld [vmem:[%s1561_s1 + $0x24] sm:$0xff] (!%p243_p2)   ;;  %v1339_v7 = vmov (!%p243_p2), 1983009808   ;;  %s1340_s29 = smov (!%p243_p2), 104  }
   0xc   : > { %1216 = vmatpush3.bf16.msra.mxu1 (!%p243_p2), %v487_v5  ;;  %v393_v43 = vsel (!%p243_p2), %vm392_vm6, 1, %v1333_v0  ;;  %v1317_v56 = vld [vmem:[%s1561_s1 + $0x2c] ss:$0 sps:$4 sm:$0xff] (!%p243_p2)   ;;  %v1318_v57 = vld [vmem:[%s1561_s1 + $0x44] ss:$0 sps:$4 sm:$0xff] (!%p243_p2)   ;;  %v1320_v1 = vld [vmem:[%s1561_s1 + $0x54] sm:$0xff] (!%p243_p2)  }
   0xd   : > { %s1569_s25 = smov (!%p280_p3, %s1104_s25), 1  ;;  %1229 = vmatprep.subr.bf16.mxu1 %v1334_v2  ;;  %v558_v58 = vsel %vm346_vm1, %v1317_v56, 0  ;;  %v684_v59 = vsel %vm346_vm1, %v1318_v57, 0  ;;  %v1319_v62 = vld [vmem:[%s1561_s1 + $0x48] sm:$0xff]   ;;  %v1321_v63 = vld [vmem:[%s1561_s1 + $0x50] ss:$0 sps:$4 sm:$0xff]  }
   0xe   : > { %s1169_s30 = sshll.u32 %s1569_s25, 2  ;;  %1200 = vmatpush3.bf16.msra.mxu0 %v348_v9  ;;  %v755_v4 = vsel %vm346_vm1, %v1321_v63, 0  ;;  %v1322_v5 = vld [vmem:[%s1561_s1 + $0x5c] ss:$0 sps:$4 sm:$0xff]   ;;  %v987_v9 = vlaneseq  ;;  %vm944_vm9 = vcmask 189440   ;;  %vm946_vm11 = vcmask 191488   ;;  %s291_s20 = scalar_lea.vmem %s1566_s6, %s1569_s25 }
   0xf   : > { %s1411_s12 = scalar_lea.vmem %s1560_s0, %s1169_s30  ;;  %1205 = vmatprep.subr.bf16.mxu0 %v1334_v2  ;;  %s1111_s30 = sshll.u32 %s1569_s25, 1  ;;  %vm955_vm12 = vcmask 188416  }
  0x10   : > { %v1113_v6 = vld.sshfl [vmem:[%s1411_s12] sm:$0x33 pattern:$0x76325410]  ;;  %s295_s10 = scalar_lea.vmem %s1567_s7, %s1111_s30 }
  0x11   : > { %317 = vst.msk [vmem:[#allocation2 + $0x8] sm:$0x30] %vm316_vm2, %v1113_v6  ;;  %v312_v8 = vcombine.low %v1113_v6, %v1113_v6  ;;  %v964_v36 = vld [vmem:[%s1411_s12] sm:$0xf] }
  0x12   : > { %v965_v37 = vunpack.c.l.bf16 %v964_v36  ;;  %v1436_v38 = vld [vmem:[%s1411_s12] sm:$0x3]  ;;  %v974_v40 = vld [vmem:[%s1411_s12 + $0x2] sm:$0x3] }
  0x13   : > { %315 = vst [vmem:[#allocation2] sm:$0x30] %v312_v8  ;;  %v958_v39 = vunpack.c.l.bf16 %v1436_v38  ;;  %v975_v41 = vunpack.c.l.bf16 %v974_v40  ;;  %v985_v8 = vunpack.c.l.s4 %v1339_v7 }
  0x18   : > { %v465_v10 = vld [vmem:[#allocation2 + $0x8] sm:$0x18] }
  0x19   : > { %v319_v11 = vld [vmem:[#allocation2 + $0x8] sm:$0x1c]  ;;  %v471_v13 = vrot.slane %v465_v10, 3 }
  0x1a   : > { %v727_v12 = vld [vmem:[#allocation2 + $0x8] sm:$0x38]  ;;  %v324_v14 = vshrl.u32 %v319_v11, 16  ;;  %v327_v15 = vshll.u32 %v319_v11, 16  ;;  %v602_v16 = vld [vmem:[#allocation2] sm:$0x30] }
  0x1b   : > { %v400_v17 = vld [vmem:[#allocation2] sm:$0x18]  ;;  %472 = vrot.lane.b32.xlu0 %v471_v13, %s1336_s15  ;;  %v1427_v21 = vrot.slane %v602_v16, 4  ;;  %v733_v22 = vshrl.u32 %v727_v12, 16  ;;  %v736_v25 = vshll.u32 %v727_v12, 16  ;;  %v818_v12 = vsel %vm346_vm1, %v1322_v5, 0 }
  0x1c   : > { %v530_v18 = vld [vmem:[#allocation2] sm:$0x38]  ;;  %v326_v19 = vrot.slane %v324_v14, 2  ;;  %v329_v20 = vrot.slane %v327_v15, 3  ;;  %v406_v27 = vrot.slane %v400_v17, 3  ;;  %v986_v15 = vunpack.c.0.s8 %v985_v8 }
  0x1d   : > { %v536_v23 = vshrl.u32 %v530_v18, 16  ;;  %v539_v24 = vshll.u32 %v530_v18, 16  ;;  %669 = vrot.lane.b32.xlu1 %v1427_v21, %s1337_s16  ;;  %v735_v30 = vrot.slane %v733_v22, 3  ;;  %v738_v31 = vrot.slane %v736_v25, 4  ;;  %v861_v33 = vld [vmem:[#allocation2 + $0x8] sm:$0x30] }
  0x1e   : > { %v330_v26 = vor.u32 %v329_v20, %v326_v19  ;;  %v867_v35 = vrot.slane %v861_v33, 4  ;;  %v988_v16 = vshrl.u32 %v987_v9, 7  ;;  %v1323_v22 = vld [vmem:[%s1561_s1 + $0x60] sm:$0xff]  }
  0x1f   : > { %v538_v28 = vrot.slane %v536_v23, 3  ;;  %v541_v29 = vrot.slane %v539_v24, 4  ;;  %v739_v34 = vor.u32 %v738_v31, %v735_v30  ;;  %v1324_v23 = vld [vmem:[%s1561_s1 + $0x68] ss:$0 sps:$4 sm:$0xff]  }
  0x20   : > { %331 = vrot.lane.b32.xlu0 %v330_v26, %s1336_s15  ;;  %v989_v20 = vsub.s32 %v986_v15, %v988_v16  ;;  %v883_v26 = vsel %vm346_vm1, %v1324_v23, 0 }
  0x21   : > { %407 = vrot.lane.b32.xlu1 %v406_v27, %s1338_s17  ;;  %v542_v32 = vor.u32 %v541_v29, %v538_v28 }
  0x24   : > { %803 = vrot.lane.b32.xlu0 %v1427_v21, %s1338_s17 }
  0x25   : > { %543 = vrot.lane.b32.xlu1 %v542_v32, %s1337_s16 }
  0x28   : > { %740 = vrot.lane.b32.xlu0 %v739_v34, %s1336_s15 }
  0x29   : > { %868 = vrot.lane.b32.xlu1 %v867_v35, %s1336_s15 }
  0x2c   : > { %967 = vrot.lane.b32.xlu0 %v965_v37, %s1338_s17  ;;  %s288_s17 = scalar_lea.vmem %s1565_s5, %s1111_s30 }
  0x2d   : > { %960 = vrot.lane.b32.xlu1 %v958_v39, %s1337_s16 }
  0x30   : > { %977 = vrot.lane.b32.xlu0 %v975_v41, %s1336_s15 }
  0x31   : > { %395 = vperm.xlu1 %1305, %v393_v43  }
  0x8d   : > { %v473_v46 = vpop.permute.xlu0 %472 }
  0x8e   : > { %1218 = vmatmul.mubr.msk.bf16.vlgmr.msra.gmra.mrb[0].mxu1 %vm342_vm7, %v473_v46 }
  0x8f   : > { %1230 = vmatpush3.bf16.msra.mxu1 %v1310_v44  ;;  %1233 = vmatprep.mubr.msk.bf16.mxu1 %vm1335_vm3, %v1334_v2  ;;  %v670_v51 = vpop.permute.xlu1 %669 }
  0x90   : > { %1231 = vmatprep.subr.bf16.mxu1 %v1334_v2 }
  0x92   : > { %v332_v50 = vpop.permute.xlu0 %331 }
  0x93   : > { %1202 = vmatmul.mubr.msk.bf16.vlgmr.msra.gmra.mrb[0].mxu0 %vm342_vm7, %v332_v50  ;;  %1232 = vmatpush3.bf16.msra.mxu1 %v622_v48  ;;  %v408_v53 = vpop.permute.xlu1 %407 }
  0x94   : > { %1206 = vmatpush3.bf16.msra.mxu0 %v1312_v47  ;;  %1209 = vmatprep.mubr.msk.bf16.mxu0 %vm1335_vm3, %v1334_v2 }
  0x95   : > { %1207 = vmatprep.subr.bf16.mxu0 %v1334_v2  ;;  %1237 = vmatprep.subr.bf16.mxu1 %v1334_v2 }
  0x96   : > { %v804_v60 = vpop.permute.xlu0 %803 }
  0x97   : > { %v544_v61 = vpop.permute.xlu1 %543 }
  0x98   : > { %1208 = vmatpush3.bf16.msra.mxu0 %v422_v52 }
  0x99   : > { %1221 = vmatprep.subr.bf16.mxu0 %v1334_v2 }
  0x9a   : > { %1234 = vmatmul.mubr.msk.bf16.vlgmr.msra.gmra.mrb[0].mxu1 %vm342_vm7, %v1427_v21  ;;  %v741_v0 = vpop.permute.xlu0 %740 }
  0x9b   : > { %1210 = vmatmul.mubr.msk.bf16.vlgmr.msra.gmra.mrb[4].mxu0 %vm342_vm7, %v408_v53  ;;  %1238 = vmatpush3.bf16.msra.mxu1 %v1315_v54  ;;  %v869_v3 = vpop.permute.xlu1 %868  ;;  %v1166_v54 = vld [vmem:[%s1563_s3] ss:$0 sm:$0xff] }
  0x9c   : > { %1222 = vmatpush3.bf16.msra.mxu0 %v1316_v55  ;;  %1239 = vmatprep.subr.bf16.mxu1 %v1334_v2 }
  0x9d   : > { %1223 = vmatprep.subr.bf16.mxu0 %v1334_v2  ;;  %1225 = vmatprep.mubr.msk.bf16.mxu0 %vm1335_vm3, %v1334_v2 }
  0x9e   : > { %1241 = vmatprep.mubr.msk.bf16.mxu1 %vm1335_vm3, %v1334_v2  ;;  %v968_v6 = vpop.permute.xlu0 %967 }
  0x9f   : > { %1240 = vmatpush3.bf16.msra.mxu1 %v684_v59  ;;  %v969_v10 = vrot.slane %v968_v6, 4  ;;  %v961_v11 = vpop.permute.xlu1 %960 }
  0xa0   : > { %1224 = vmatpush3.bf16.msra.mxu0 %v558_v58  ;;  %1253 = vmatprep.subr.bf16.mxu1 %v1334_v2  ;;  %v963_v13 = vadd.f32 %v961_v11, %v958_v39 }
  0xa1   : > { %1245 = vmatprep.subr.bf16.mxu0 %v1334_v2  ;;  %v971_v14 = vsel %vm970_vm8, %v968_v6, %v969_v10 }
  0xa2   : > { %v973_v17 = vadd.f32 %v971_v14, %v963_v13  ;;  %v978_v18 = vpop.permute.xlu0 %977 }
  0xa3   : > { %1226 = vmatmul.mubr.msk.bf16.vlgmr.msra.gmra.mrb[8].mxu0 %vm342_vm7, %v544_v61 }
  0xa4   : > { %1246 = vmatpush3.bf16.msra.mxu0 %v1319_v62  ;;  %1249 = vmatprep.mubr.msk.bf16.mxu0 %vm1335_vm3, %v1334_v2  ;;  %v980_v19 = vadd.f32 %v978_v18, %v973_v17 }
  0xa5   : > { %1247 = vmatprep.subr.bf16.mxu0 %v1334_v2 }
  0xa6   : > { %1242 = vmatmul.mubr.msk.bf16.vlgmr.msra.gmra.mrb[0].mxu1 %vm342_vm7, %v670_v51  ;;  %v981_v21 = vmul.f32 0.25, %v980_v19  ;;  %v1165_v51 = vld [vmem:[%s1562_s2] ss:$0 sm:$0xff] }
  0xa7   : > { %1254 = vmatpush3.bf16.msra.mxu1 %v1320_v1  ;;  %1257 = vmatprep.mubr.msk.bf16.mxu1 %vm1335_vm3, %v1334_v2 }
  0xa8   : > { %1248 = vmatpush3.bf16.msra.mxu0 %v755_v4  ;;  %1255 = vmatprep.subr.bf16.mxu1 %v1334_v2  ;;  %v982_v24 = vpack.c.bf16 %v981_v21, %v981_v21 }
  0xaa   : > { %v990_v25 = vrot.slane %v982_v24, %v989_v20 }
  0xab   : > { %1250 = vmatmul.mubr.msk.bf16.vlgmr.msra.gmra.mrb[12].mxu0 %vm342_vm7, %v741_v0  ;;  %1256 = vmatpush3.bf16.msra.mxu1 %v818_v12 }
  0xac   : > { %1261 = vmatprep.subr.bf16.mxu1 %v1334_v2  ;;  %991 = vrot.lane.b32.xlu0 %v990_v25, %s1340_s29 }
  0xb0   : > { %v396_v29 = vpop.permute.xlu1 %395 }
  0xb1   : > { %vm397_vm10 = vcmp.eq.s32.totalorder %v396_v29, 1 }
  0xb2   : > { %1258 = vmatmul.mubr.msk.bf16.vlgmr.msra.gmra.mrb[0].mxu1 %vm342_vm7, %v804_v60 }
  0xb3   : > { %1262 = vmatpush3.bf16.msra.mxu1 %v1323_v22  ;;  %1265 = vmatprep.mubr.msk.bf16.mxu1 %vm1335_vm3, %v1334_v2 }
  0xb4   : > { %1263 = vmatprep.subr.bf16.mxu1 %v1334_v2 }
  0xb7   : > { %1264 = vmatpush3.bf16.msra.mxu1 %v883_v26 }
  0xbe   : > { %1266 = vmatmul.mubr.msk.bf16.vlgmr.msra.gmra.mrb[0].mxu1 %vm342_vm7, %v869_v3 }
 0x11e   : > { %v992_v27 = vpop.permute.xlu0 %991 }
 0x11f   : > { %994 = vst.msk [vmem:[%s295_s10] sm:$0x3] %vm944_vm9, %v992_v27 }
 0x166   : > { %v384_v28 = vpop.f32.mrb[0].mxu0 }
 0x167   : > { %v1203_v2 = vpop.f32.mrb[1].mxu0  ;;  %v398_v32 = vsel %vm397_vm10, %v384_v28, 0.0 }
 0x168   : > { %v387_v30 = vpop.f32.mrb[2].mxu0 }
 0x169   : > { %v1204_v31 = vpop.f32.mrb[3].mxu0 }
 0x16e   : > { %v458_v33 = vpop.f32.mrb[4].mxu0 }
 0x16f   : > { %v1211_v34 = vpop.f32.mrb[5].mxu0  ;;  %v464_v35 = vadd.f32 %v458_v33, %v398_v32 }
 0x170   : > { %v461_v36 = vpop.f32.mrb[6].mxu0 }
 0x171   : > { %v1212_v37 = vpop.f32.mrb[7].mxu0 }
 0x176   : > { %v594_v38 = vpop.f32.mrb[8].mxu0 }
 0x177   : > { %v600_v39 = vsel %vm397_vm10, %v594_v38, 0.0  ;;  %v1227_v40 = vpop.f32.mrb[9].mxu0 }
 0x178   : > { %v1270_v41 = vadd.f32 %v600_v39, %v464_v35  ;;  %v597_v42 = vpop.f32.mrb[10].mxu0 }
 0x179   : > { %v1228_v43 = vpop.f32.mrb[11].mxu0 }
 0x17e   : > { %v791_v44 = vpop.f32.mrb[12].mxu0 }
 0x17f   : > { %v797_v45 = vsel %vm397_vm10, %v791_v44, 0.0  ;;  %v1251_v46 = vpop.f32.mrb[13].mxu0 }
 0x180   : > { %v1271_v47 = vadd.f32 %v1270_v41, %v797_v45  ;;  %v794_v48 = vpop.f32.mrb[14].mxu0 }
 0x181   : > { %v1252_v49 = vpop.f32.mrb[15].mxu0 }
 0x191   : > { %v919_v50 = vpop.f32.mrb[0].mxu1 }
 0x192   : > { %v1272_v52 = vadd.f32 %v1271_v47, %v919_v50  ;;  %v1267_v53 = vpop.f32.mrb[1].mxu1 }
 0x193   : > { %v922_v55 = vpop.f32.mrb[2].mxu1 }
 0x194   : > { %v933_v56 = vmul.f32 %v1272_v52, %v1165_v51  ;;  %v1268_v57 = vpop.f32.mrb[3].mxu1 }
 0x196   : > { %v941_v58 = vadd.f32 %v1166_v54, %v933_v56 }
 0x198   : > { %v942_v59 = vmax.f32 %v941_v58, 0.0 }
 0x19a   : > { %v943_v60 = vpack.c.bf16 %v942_v59, %v942_v59  ;;  %v947_v61 = vsel %vm946_vm11, %v942_v59, 0.0 }
 0x19b   : > { %v948_v62 = vrot.slane %v947_v61, 4 }
 0x19c   : > { %945 = vst.msk [vmem:[%s288_s17] sm:$0x3] %vm944_vm9, %v943_v60 }
 0x19d   : > { %v949_v63 = vadd.f32 %v948_v62, %v947_v61 }
 0x19f   : > { %v950_v0 = vrot.slane %v949_v63, 2 }
 0x1a1   : > { %v951_v1 = vadd.f32 %v950_v0, %v949_v63 }
 0x1a3   : > { %v952_v3 = vrot.slane %v951_v1, 1 }
 0x1a5   : > { %v953_v4 = vadd.f32 %v952_v3, %v951_v1 }
 0x1a7   : > { %v954_v5 = vmul.f32 0.25, %v953_v4 }
 0x1a9   : > { %956 = vst.msk [vmem:[%s291_s20] sm:$0x1] %vm955_vm12, %v954_v5 }
 0x1aa PF: > { %s18_s24 = sadd.s32 1, %s1331_s24  }
 0x1ab   : > { %p15_p4 = scmp.ge.s32.totalorder %s18_s24, 4  }
 0x1ad   :  { %17 = sbr.rel (!%p15_p4) target bundleno = 1 (0x1), region = 102 }

// kernel: forward.48
= control target key start
LH: loop header
LB: loop body
LE: loop exit
PB: predicated region body
PF: predicated region fallthrough
CT: control target
= control target key end

     0   :  { %s484_s15 = smov 0   ;;  %s486_s16 = smov 0   ;;  %s529_s0 = inlined_call_operand.vmem [shape: bf16[2,4,24], index: 0, kind: input, shape index: {}]   ;;  %s530_s1 = inlined_call_operand.vmem [shape: bf16[24,24], index: 1, kind: input, shape index: {}]   ;;  %s531_s2 = inlined_call_operand.vmem [shape: f32[1,24], index: 2, kind: input, shape index: {}]   ;;  %s532_s3 = inlined_call_operand.vmem [shape: f32[1,24], index: 3, kind: input, shape index: {}]   ;;  %s533_s4 = inlined_call_operand.vmem [shape: bf16[2,4,24], index: 4, kind: output, shape index: {}]  }
   0x1   :  { %s488_s17 = smov 0  }
   0x2 LB: > { %s26_s18 = sadd.s32 1, %s451_s16  ;;  %p384_p0 = scmp.ge.s32.totalorder %s455_s17, 1  ;;  %s455_s17 = sphi %s488_s17, %s14_s17   ;;  %s451_s16 = sphi %s486_s16, %s535_s16   ;;  %s447_s15 = sphi %s484_s15, %s534_s15  }
   0x3   : > { %p28_p1 = scmp.ge.s32.totalorder %s26_s18, 2  ;;  %p180_p2 = scmp.lt.s32.totalorder %s455_s17, 3 }
   0x5   : > { %s537_s18 = smov (%p28_p1, %s26_s18), 0  ;;  %p181_p3 = pnand %p384_p0, %p180_p2 }
   0x6   : > { %v431_v0 = vld [vmem:[%s530_s1] sm:$0xff] (!%p181_p3)   ;;  %v457_v1 = vmov (!%p181_p3), 0.0   ;;  %v432_v2 = vld [vmem:[%s530_s1 + $0x8] ss:$0 sps:$4 sm:$0xff] (!%p181_p3)   ;;  %vm242_vm0 = vcmask (!%p181_p3), 1043456   ;;  %vm458_vm1 = vmmov (!%p181_p3), 0  }
   0x7   : > { %184 = sbr.rel (%p181_p3) target bundleno = 239 (0xef), region = 36  ;;  %397 = vmatprep.subr.bf16.mxu0 (!%p181_p3), %v457_v1  ;;  %401 = vmatprep.mubr.msk.bf16.mxu0 (!%p181_p3), %vm458_vm1, %v457_v1  ;;  %p210_p4 = scmp.lt.s32.totalorder (!%p181_p3), %s447_s15, 1  ;;  %v244_v3 = vsel (!%p181_p3), %vm242_vm0, %v432_v2, 0  ;;  %vm238_vm2 = vcmask (!%p181_p3), 195584   ;;  %v390_v5 = vld [vmem:[%s531_s2] ss:$0 sm:$0xff] (!%p181_p3) }
   0x8   : > { %398 = vmatpush3.bf16.msra.mxu0 (!%p181_p3), %v431_v0  ;;  %v391_v7 = vld [vmem:[%s532_s3] ss:$0 sm:$0xff] (!%p181_p3)  ;;  %vm304_vm3 = vcmask (!%p181_p3), 189440  }
   0x9   : > { %399 = vmatprep.subr.bf16.mxu0 (!%p181_p3), %v457_v1 }
   0xc   : > { %400 = vmatpush3.bf16.msra.mxu0 (!%p181_p3), %v244_v3 }
   0xe   : > { %s539_s15 = smov (!%p210_p4, %s447_s15), 1 }
   0xf   : > { %s385_s23 = sshll.u32 %s539_s15, 1 }
  0x10   : > { %s216_s26 = scalar_lea.vmem %s529_s0, %s385_s23  ;;  %s223_s7 = scalar_lea.vmem %s533_s4, %s385_s23 }
  0x11   : > { %v225_v4 = vld [vmem:[%s216_s26] sm:$0x3] }
  0x12   : > { %402 = vmatmul.mubr.msk.bf16.vlgmr.msra.gmra.mrb[0].mxu0 %vm238_vm2, %v225_v4 }
  0xe5   : > { %v280_v6 = vpop.f32.mrb[0].mxu0 }
  0xe6   : > { %v293_v8 = vmul.f32 %v390_v5, %v280_v6  ;;  %v403_v9 = vpop.f32.mrb[1].mxu0 }
  0xe7   : > { %v283_v10 = vpop.f32.mrb[2].mxu0 }
  0xe8   : > { %v301_v11 = vadd.f32 %v391_v7, %v293_v8  ;;  %v404_v12 = vpop.f32.mrb[3].mxu0 }
  0xea   : > { %v302_v13 = vmax.f32 %v301_v11, 0.0 }
  0xec   : > { %v303_v14 = vpack.c.bf16 %v302_v13, %v302_v13 }
  0xee   : > { %305 = vst.msk [vmem:[%s223_s7] sm:$0x3] %vm304_vm3, %v303_v14 }
  0xef PF: > { %s14_s17 = sadd.s32 1, %s455_s17   ;;  %s534_s15 = smov %s451_s16 }
  0xf0   : > { %p11_p5 = scmp.ge.s32.totalorder %s14_s17, 4   ;;  %s535_s16 = smov %s537_s18 }
  0xf2   :  { %13 = sbr.rel (!%p11_p5) target bundleno = 2 (0x2), region = 66 }

// kernel: forward.50
= control target key start
LH: loop header
LB: loop body
LE: loop exit
PB: predicated region body
PF: predicated region fallthrough
CT: control target
= control target key end

     0   :  { %v240_v0 = vmov 0.0|0.0   ;;  %vm241_vm0 = vmmov 0   ;;  %v242_v3 = vmov 0.0   ;;  %vm31_vm1 = vcmask 195584   ;;  %s297_s1 = inlined_call_operand.vmem [shape: f32[24,6], index: 1, kind: input, shape index: {}]   ;;  %s298_s0 = inlined_call_operand.vmem [shape: f32[2,24], index: 0, kind: input, shape index: {}]   ;;  %s299_s3 = inlined_call_operand.vmem [shape: f32[6,24], index: 3, kind: input, shape index: {}]   ;;  %s300_s2 = inlined_call_operand.vmem [shape: f32[1,6], index: 2, kind: input, shape index: {}]   ;;  %s301_s4 = inlined_call_operand.vmem [shape: f32[1,24], index: 4, kind: input, shape index: {}]   ;;  %s302_s5 = inlined_call_operand.vmem [shape: f32[2,24], index: 5, kind: output, shape index: {}]  }
   0x1   :  { %230 = vmatprep.subr.bf16.mxu0 %v240_v0  ;;  %v21_v1 = vld [vmem:[%s297_s1] sm:$0xff]  ;;  %v22_v2 = vld [vmem:[%s297_s1 + $0x8] sm:$0xff]  ;;  %222 = vmatprep.mubr.msk.f32.mxu0 %vm241_vm0, %v242_v3  ;;  %v23_v5 = vld [vmem:[%s297_s1 + $0x10] sm:$0xff]  ;;  %vm118_vm2 = vcmask 1045504   ;;  %vm114_vm3 = vcmask 48128   ;;  %vm198_vm4 = vcmask 189440  }
   0x2   :  { %v231_v4 = vpack.c.bf16 %v22_v2, %v21_v1  ;;  %225 = vmatprep.subr.mxu1 %v242_v3  ;;  %227 = vmatprep.mubr.msk.f32.mxu1 %vm241_vm0, %v242_v3  ;;  %v20_v6 = vld [vmem:[%s298_s0] sm:$0x3] }
   0x3   :  { %v106_v7 = vld [vmem:[%s299_s3] sm:$0x3f] }
   0x4   :  { %232 = vmatpush3.bf16.msra.mxu0 %v231_v4  ;;  %226 = vmatpush3.msk.msra.mxu1 %vm118_vm2, %v106_v7  ;;  %v204_v8 = vld [vmem:[%s300_s2] ss:$0 sm:$0xff] }
   0x5   :  { %220 = vmatprep.subr.mxu0 %v242_v3  ;;  %v206_v13 = vld [vmem:[%s301_s4] ss:$0 sm:$0xff] }
   0x8   :  { %221 = vmatpush3.msra.mxu0 %v23_v5 }
   0x9   :  { %223 = vmatmul.mubr.msk.f32.vlgmr.msra.gmra.mrb[0].mxu0 %vm31_vm1, %v20_v6 }
  0xdc   :  { %v101_v9 = vpop.f32.mrb[0].mxu0 }
  0xdd   :  { %v102_v10 = vadd.f32 %v204_v8, %v101_v9  ;;  %v224_v11 = vpop.f32.mrb[1].mxu0 }
  0xdf   :  { %v105_v12 = vmax.f32 %v102_v10, 0.0 }
  0xe1   :  { %228 = vmatmul.mubr.msk.f32.vlgmr.msra.gmra.mrb[0].mxu1 %vm114_vm3, %v105_v12 }
 0x1b4   :  { %v188_v14 = vpop.f32.mrb[0].mxu1 }
 0x1b5   :  { %v189_v15 = vadd.f32 %v206_v13, %v188_v14  ;;  %v229_v16 = vpop.f32.mrb[1].mxu1 }
 0x1b7   :  { %v209_v17 = vmul.f32 -1.442695, %v189_v15 }
 0x1b9   :  { %236 = vpow2.f32 %v209_v17 }
 0x1c3   :  { %v237_v18 = vpop.eup %236 }
 0x1c4   :  { %v195_v19 = vadd.f32 1.0, %v237_v18 }
 0x1c6   :  { %238 = vrcp.f32 %v195_v19 }
 0x1d0   :  { %v239_v20 = vpop.eup %238 }
 0x1d1   :  { %199 = vst.msk [vmem:[%s302_s5] sm:$0x3] %vm198_vm4, %v239_v20 }

// kernel: forward.49
= control target key start
LH: loop header
LB: loop body
LE: loop exit
PB: predicated region body
PF: predicated region fallthrough
CT: control target
= control target key end

     0   :  { %s1223_s21 = smov 0   ;;  %s1380_s0 = inlined_call_operand.vmem [shape: bf16[2,4,24], index: 0, kind: input, shape index: {}]   ;;  %s1381_s1 = inlined_call_operand.vmem [shape: bf16[9,24,24], index: 1, kind: input, shape index: {}]   ;;  %s1382_s2 = inlined_call_operand.vmem [shape: f32[1,24], index: 2, kind: input, shape index: {}]   ;;  %s1383_s3 = inlined_call_operand.vmem [shape: f32[1,24], index: 3, kind: input, shape index: {}]   ;;  %s1384_s4 = inlined_call_operand.vmem [shape: s32[4,1], index: 4, kind: input, shape index: {}]   ;;  %s1385_s5 = inlined_call_operand.vmem [shape: bf16[2,4,24], index: 5, kind: output, shape index: {0}]   ;;  %s1386_s6 = inlined_call_operand.vmem [shape: f32[2,1,24], index: 6, kind: output, shape index: {1}]  }
   0x1 LB: > { %s985_s22 = sadd.s32 4294967295, %s1183_s21   ;;  %p989_p0 = scmp.ge.s32.totalorder %s1183_s21, 1  ;;  %s1183_s21 = sphi %s1223_s21, %s17_s21  }
   0x2   : > { %p214_p1 = scmp.lt.s32.totalorder %s1183_s21, 3 }
   0x4   : > { %p215_p2 = pnand %p989_p0, %p214_p1 }
   0x5   : > { %v1159_v0 = vld [vmem:[%s1381_s1] sm:$0xff] (!%p215_p2)   ;;  %v1185_v1 = vmov (!%p215_p2), 0.0   ;;  %v1160_v2 = vld [vmem:[%s1381_s1 + $0xc] sm:$0xff] (!%p215_p2)   ;;  %vm300_vm0 = vcmask (!%p215_p2), 1043456   ;;  %v1161_v3 = vld [vmem:[%s1381_s1 + $0x8] ss:$0 sps:$4 sm:$0xff] (!%p215_p2)  }
   0x6   : > { %218 = sbr.rel (%p215_p2) target bundleno = 302 (0x12e), region = 40  ;;  %1075 = vmatprep.subr.bf16.mxu0 (!%p215_p2), %v1185_v1  ;;  %1083 = vmatprep.subr.bf16.mxu1 (!%p215_p2), %v1185_v1  ;;  %v1162_v4 = vld [vmem:[%s1381_s1 + $0x14] ss:$0 sps:$4 sm:$0xff] (!%p215_p2)   ;;  %p245_p3 = scmp.lt.s32.totalorder (!%p215_p2), %s985_s22, 1  ;;  %vm257_vm1 = vcmask (!%p215_p2), 191488   ;;  %v302_v5 = vsel (!%p215_p2), %vm300_vm0, %v1161_v3, 0 }
   0x7   : > { %1076 = vmatpush3.bf16.msra.mxu0 (!%p215_p2), %v1159_v0  ;;  %1084 = vmatpush3.bf16.msra.mxu1 (!%p215_p2), %v1160_v2  ;;  %vm1186_vm2 = vmmov (!%p215_p2), 0   ;;  %v1187_v6 = vmov (!%p215_p2), 0   ;;  %v374_v7 = vsel (!%p215_p2), %vm300_vm0, %v1162_v4, 0  ;;  %vm259_vm3 = vcmask (!%p215_p2), 195590   ;;  %v274_v10 = vld [vmem:[%s1384_s4] sm:$0xf] (!%p215_p2) }
   0x8   : > { %1077 = vmatprep.subr.bf16.mxu0 (!%p215_p2), %v1185_v1  ;;  %1085 = vmatprep.subr.bf16.mxu1 (!%p215_p2), %v1185_v1  ;;  %258 = vst.msk [vmem:[#allocation2] sm:$0xf] (!%p215_p2), %vm257_vm1, %v1187_v6  ;;  %vm272_vm4 = vcmask (!%p215_p2), 193540   ;;  %vm296_vm5 = vcmask (!%p215_p2), 195584   ;;  %v1164_v11 = vld [vmem:[%s1381_s1 + $0x24] sm:$0xff] (!%p215_p2)   ;;  %vm344_vm6 = vcmp.ge.s32.totalorder (!%p215_p2), %v274_v10, 1 }
   0x9   : > { %1079 = vmatprep.mubr.msk.bf16.mxu0 (!%p215_p2), %vm1186_vm2, %v1185_v1  ;;  %1087 = vmatprep.mubr.msk.bf16.mxu1 (!%p215_p2), %vm1186_vm2, %v1185_v1  ;;  %260 = vst.msk [vmem:[#allocation2] sm:$0xc0] (!%p215_p2), %vm259_vm3, %v1187_v6  ;;  %vm345_vm7 = vcmp.lt.s32.totalorder (!%p215_p2), %v274_v10, 2  ;;  %v1166_v18 = vld [vmem:[%s1381_s1 + $0x2c] ss:$0 sps:$4 sm:$0xff] (!%p215_p2)   ;;  %vm485_vm8 = vcmp.ge.s32.totalorder (!%p215_p2), %v274_v10, 0 }
   0xa   : > { %1158 = vset.pattern.permute.xlu0 (!%p215_p2), %v1187_v6  ;;  %vm486_vm9 = vcmp.lt.s32.totalorder (!%p215_p2), %v274_v10, 1  ;;  %vm346_vm10 = vmand (!%p215_p2), %vm344_vm6, %vm345_vm7  ;;  %v1163_v24 = vld [vmem:[%s1381_s1 + $0x18] sm:$0xff] (!%p215_p2)   ;;  %v1165_v28 = vld [vmem:[%s1381_s1 + $0x20] ss:$0 sps:$4 sm:$0xff] (!%p215_p2)   ;;  %v509_v29 = vsel (!%p215_p2), %vm300_vm0, %v1166_v18, 0  ;;  %vm895_vm14 = vcmask (!%p215_p2), 189440  }
   0xb   : > { %1078 = vmatpush3.bf16.msra.mxu0 (!%p215_p2), %v302_v5  ;;  %1086 = vmatpush3.bf16.msra.mxu1 (!%p215_p2), %v374_v7  ;;  %vm487_vm11 = vmand (!%p215_p2), %vm485_vm8, %vm486_vm9  ;;  %v347_v30 = vsel (!%p215_p2), %vm346_vm10, 1, %v1187_v6  ;;  %v1168_v34 = vld [vmem:[%s1381_s1 + $0x3c] sm:$0xff] (!%p215_p2)   ;;  %v443_v36 = vsel (!%p215_p2), %vm300_vm0, %v1165_v28, 0  ;;  %v1170_v37 = vld [vmem:[%s1381_s1 + $0x44] ss:$0 sps:$4 sm:$0xff] (!%p215_p2)   ;;  %vm905_vm15 = vcmask (!%p215_p2), 188416  }
   0xc   : > { %1091 = vmatprep.subr.bf16.mxu0 (!%p215_p2), %v1185_v1  ;;  %1099 = vmatprep.subr.bf16.mxu1 (!%p215_p2), %v1185_v1  ;;  %v488_v35 = vsel (!%p215_p2), %vm487_vm11, 1, %v1187_v6  ;;  %v1167_v40 = vld [vmem:[%s1381_s1 + $0x30] sm:$0xff] (!%p215_p2)   ;;  %v1169_v41 = vld [vmem:[%s1381_s1 + $0x38] ss:$0 sps:$4 sm:$0xff] (!%p215_p2)   ;;  %v642_v42 = vsel (!%p215_p2), %vm300_vm0, %v1170_v37, 0  ;;  %v1171_v49 = vld [vmem:[%s1381_s1 + $0x48] sm:$0xff] (!%p215_p2)  }
   0xd   : > { %s1388_s22 = smov (!%p245_p3, %s985_s22), 1  ;;  %349 = vperm.xlu0 %1158, %v347_v30   ;;  %v1173_v45 = vld [vmem:[%s1381_s1 + $0x54] sm:$0xff]   ;;  %v573_v46 = vsel %vm300_vm0, %v1169_v41, 0  ;;  %v1174_v47 = vld [vmem:[%s1381_s1 + $0x5c] ss:$0 sps:$4 sm:$0xff]   ;;  %v1175_v58 = vld [vmem:[%s1381_s1 + $0x60] sm:$0xff]  }
   0xe   : > { %s990_s7 = sshll.u32 %s1388_s22, 1  ;;  %v1172_v50 = vld [vmem:[%s1381_s1 + $0x50] ss:$0 sps:$4 sm:$0xff]   ;;  %v764_v52 = vsel %vm300_vm0, %v1174_v47, 0  ;;  %v1176_v59 = vld [vmem:[%s1381_s1 + $0x68] ss:$0 sps:$4 sm:$0xff]   ;;  %s255_s8 = scalar_lea.vmem %s1386_s6, %s1388_s22 }
   0xf   : > { %s248_s10 = scalar_lea.vmem %s1380_s0, %s990_s7  ;;  %v700_v55 = vsel %vm300_vm0, %v1172_v50, 0  ;;  %v833_v62 = vsel %vm300_vm0, %v1176_v59, 0  ;;  %s252_s28 = scalar_lea.vmem %s1385_s5, %s990_s7 }
  0x10   : > { %v992_v8 = vld.sshfl [vmem:[%s248_s10] sm:$0x3 pattern:$0x76325410] }
  0x11   : > { %v270_v9 = vcombine.low %v992_v8, %v992_v8  ;;  %490 = vperm.xlu0 %1158, %v488_v35  }
  0x13   : > { %273 = vst.msk [vmem:[#allocation2] sm:$0x30] %vm272_vm4, %v270_v9 }
  0x1a   : > { %v275_v12 = vld [vmem:[#allocation2] sm:$0x1c]  ;;  %v744_v51 = vld [vmem:[#allocation2] sm:$0x60] }
  0x1b   : > { %v354_v13 = vld [vmem:[#allocation2] sm:$0x18]  ;;  %v280_v15 = vshrl.u32 %v275_v12, 16  ;;  %v283_v16 = vshll.u32 %v275_v12, 16  ;;  %v750_v53 = vrot.slane %v744_v51, 5 }
  0x1c   : > { %v417_v14 = vld [vmem:[#allocation2] sm:$0x38]  ;;  %v360_v17 = vrot.slane %v354_v13, 3 }
  0x1d   : > { %v423_v19 = vshrl.u32 %v417_v14, 16  ;;  %v426_v20 = vshll.u32 %v417_v14, 16  ;;  %v282_v21 = vrot.slane %v280_v15, 2  ;;  %v285_v22 = vrot.slane %v283_v16, 3  ;;  %v616_v26 = vld [vmem:[#allocation2] sm:$0x70] }
  0x1e   : > { %1088 = vmatmul.mubr.msk.bf16.vlgmr.msra.gmra.mrb[0].mxu1 %vm296_vm5, %v360_v17  ;;  %v622_v32 = vshrl.u32 %v616_v26, 16  ;;  %v625_v33 = vshll.u32 %v616_v26, 16  ;;  %v553_v44 = vld [vmem:[#allocation2] sm:$0x30] }
  0x1f   : > { %v425_v23 = vrot.slane %v423_v19, 3  ;;  %1100 = vmatpush3.bf16.msra.mxu1 %v1164_v11  ;;  %1103 = vmatprep.mubr.msk.bf16.mxu1 %vm1186_vm2, %v1185_v1  ;;  %v428_v25 = vrot.slane %v426_v20, 4  ;;  %v286_v27 = vor.u32 %v285_v22, %v282_v21  ;;  %v559_v48 = vrot.slane %v553_v44, 4  ;;  %v807_v54 = vld [vmem:[#allocation2] sm:$0xe0] }
  0x20   : > { %1101 = vmatprep.subr.bf16.mxu1 %v1185_v1  ;;  %v624_v38 = vrot.slane %v622_v32, 4  ;;  %v627_v39 = vrot.slane %v625_v33, 5  ;;  %v813_v56 = vshrl.u32 %v807_v54, 16  ;;  %v816_v57 = vshll.u32 %v807_v54, 16 }
  0x21   : > { %1080 = vmatmul.mubr.msk.bf16.vlgmr.msra.gmra.mrb[0].mxu0 %vm296_vm5, %v286_v27  ;;  %v429_v31 = vor.u32 %v428_v25, %v425_v23 }
  0x22   : > { %1092 = vmatpush3.bf16.msra.mxu0 %v1163_v24  ;;  %1095 = vmatprep.mubr.msk.bf16.mxu0 %vm1186_vm2, %v1185_v1  ;;  %v628_v43 = vor.u32 %v627_v39, %v624_v38  ;;  %v815_v60 = vrot.slane %v813_v56, 5  ;;  %v818_v61 = vrot.slane %v816_v57, 6 }
  0x23   : > { %1102 = vmatpush3.bf16.msra.mxu1 %v509_v29  ;;  %1093 = vmatprep.subr.bf16.mxu0 %v1185_v1 }
  0x24   : > { %1115 = vmatprep.subr.bf16.mxu1 %v1185_v1  ;;  %v819_v63 = vor.u32 %v818_v61, %v815_v60 }
  0x26   : > { %1104 = vmatmul.mubr.msk.bf16.vlgmr.msra.gmra.mrb[4].mxu1 %vm296_vm5, %v429_v31  ;;  %1094 = vmatpush3.bf16.msra.mxu0 %v443_v36 }
  0x27   : > { %1116 = vmatpush3.bf16.msra.mxu1 %v1168_v34  ;;  %1107 = vmatprep.subr.bf16.mxu0 %v1185_v1 }
  0x28   : > { %1117 = vmatprep.subr.bf16.mxu1 %v1185_v1  ;;  %1119 = vmatprep.mubr.msk.bf16.mxu1 %vm1186_vm2, %v1185_v1 }
  0x29   : > { %1096 = vmatmul.mubr.msk.bf16.vlgmr.msra.gmra.mrb[4].mxu0 %vm296_vm5, %v429_v31 }
  0x2a   : > { %1108 = vmatpush3.bf16.msra.mxu0 %v1167_v40  ;;  %1111 = vmatprep.mubr.msk.bf16.mxu0 %vm1186_vm2, %v1185_v1 }
  0x2b   : > { %1118 = vmatpush3.bf16.msra.mxu1 %v642_v42  ;;  %1109 = vmatprep.subr.bf16.mxu0 %v1185_v1 }
  0x2c   : > { %1131 = vmatprep.subr.bf16.mxu1 %v1185_v1 }
  0x2e   : > { %1120 = vmatmul.mubr.msk.bf16.vlgmr.msra.gmra.mrb[8].mxu1 %vm296_vm5, %v628_v43  ;;  %1110 = vmatpush3.bf16.msra.mxu0 %v573_v46 }
  0x2f   : > { %1132 = vmatpush3.bf16.msra.mxu1 %v1173_v45  ;;  %1123 = vmatprep.subr.bf16.mxu0 %v1185_v1 }
  0x30   : > { %1133 = vmatprep.subr.bf16.mxu1 %v1185_v1  ;;  %1135 = vmatprep.mubr.msk.bf16.mxu1 %vm1186_vm2, %v1185_v1 }
  0x31   : > { %1112 = vmatmul.mubr.msk.bf16.vlgmr.msra.gmra.mrb[8].mxu0 %vm296_vm5, %v559_v48  ;;  %v1044_v48 = vld [vmem:[%s1382_s2] ss:$0 sm:$0xff] }
  0x32   : > { %1124 = vmatpush3.bf16.msra.mxu0 %v1171_v49  ;;  %1127 = vmatprep.mubr.msk.bf16.mxu0 %vm1186_vm2, %v1185_v1 }
  0x33   : > { %1125 = vmatprep.subr.bf16.mxu0 %v1185_v1  ;;  %1134 = vmatpush3.bf16.msra.mxu1 %v764_v52  ;;  %v1045_v52 = vld [vmem:[%s1383_s3] ss:$0 sm:$0xff] }
  0x36   : > { %1126 = vmatpush3.bf16.msra.mxu0 %v700_v55  ;;  %1136 = vmatmul.mubr.msk.bf16.vlgmr.msra.gmra.mrb[12].mxu1 %vm296_vm5, %v750_v53 }
  0x37   : > { %1139 = vmatprep.subr.bf16.mxu0 %v1185_v1 }
  0x39   : > { %1128 = vmatmul.mubr.msk.bf16.vlgmr.msra.gmra.mrb[12].mxu0 %vm296_vm5, %v628_v43 }
  0x3a   : > { %1140 = vmatpush3.bf16.msra.mxu0 %v1175_v58  ;;  %1143 = vmatprep.mubr.msk.bf16.mxu0 %vm1186_vm2, %v1185_v1 }
  0x3b   : > { %1141 = vmatprep.subr.bf16.mxu0 %v1185_v1 }
  0x3e   : > { %1142 = vmatpush3.bf16.msra.mxu0 %v833_v62 }
  0x41   : > { %1144 = vmatmul.mubr.msk.bf16.vlgmr.msra.gmra.mrb[16].mxu0 %vm296_vm5, %v819_v63 }
  0x8c   : > { %v350_v0 = vpop.permute.xlu0 %349 }
  0x8d   : > { %vm351_vm12 = vcmp.eq.s32.totalorder %v350_v0, 1 }
  0x90   : > { %v491_v1 = vpop.permute.xlu0 %490 }
  0x91   : > { %vm492_vm13 = vcmp.eq.s32.totalorder %v491_v1, 1 }
  0xf1   : > { %v410_v2 = vpop.f32.mrb[0].mxu1 }
  0xf2   : > { %v1089_v3 = vpop.f32.mrb[1].mxu1 }
  0xf3   : > { %v413_v4 = vpop.f32.mrb[2].mxu1 }
  0xf4   : > { %v1090_v5 = vpop.f32.mrb[3].mxu1  ;;  %v338_v6 = vpop.f32.mrb[0].mxu0 }
  0xf5   : > { %v352_v7 = vsel %vm351_vm12, %v338_v6, 0.0  ;;  %v1081_v8 = vpop.f32.mrb[1].mxu0 }
  0xf6   : > { %v416_v9 = vadd.f32 %v410_v2, %v352_v7  ;;  %v341_v10 = vpop.f32.mrb[2].mxu0 }
  0xf7   : > { %v1082_v11 = vpop.f32.mrb[3].mxu0 }
  0xf9   : > { %v545_v12 = vpop.f32.mrb[4].mxu1 }
  0xfa   : > { %v1105_v13 = vpop.f32.mrb[5].mxu1  ;;  %v551_v19 = vsel %vm351_vm12, %v545_v12, 0.0 }
  0xfb   : > { %v548_v14 = vpop.f32.mrb[6].mxu1 }
  0xfc   : > { %v1106_v15 = vpop.f32.mrb[7].mxu1  ;;  %v479_v16 = vpop.f32.mrb[4].mxu0 }
  0xfd   : > { %v493_v17 = vsel %vm492_vm13, %v479_v16, 0.0  ;;  %v1097_v18 = vpop.f32.mrb[5].mxu0 }
  0xfe   : > { %v494_v20 = vadd.f32 %v493_v17, %v416_v9  ;;  %v482_v21 = vpop.f32.mrb[6].mxu0 }
  0xff   : > { %v1098_v22 = vpop.f32.mrb[7].mxu0 }
 0x100   : > { %v552_v23 = vadd.f32 %v551_v19, %v494_v20 }
 0x101   : > { %v678_v24 = vpop.f32.mrb[8].mxu1 }
 0x102   : > { %v1121_v25 = vpop.f32.mrb[9].mxu1  ;;  %v684_v29 = vsel %vm492_vm13, %v678_v24, 0.0 }
 0x103   : > { %v681_v26 = vpop.f32.mrb[10].mxu1 }
 0x104   : > { %v1122_v27 = vpop.f32.mrb[11].mxu1  ;;  %v609_v28 = vpop.f32.mrb[8].mxu0 }
 0x105   : > { %v615_v30 = vadd.f32 %v609_v28, %v552_v23  ;;  %v1113_v31 = vpop.f32.mrb[9].mxu0 }
 0x106   : > { %v612_v32 = vpop.f32.mrb[10].mxu0 }
 0x107   : > { %v685_v33 = vadd.f32 %v684_v29, %v615_v30  ;;  %v1114_v34 = vpop.f32.mrb[11].mxu0 }
 0x109   : > { %v800_v35 = vpop.f32.mrb[12].mxu1 }
 0x10a   : > { %v1137_v36 = vpop.f32.mrb[13].mxu1 }
 0x10b   : > { %v803_v37 = vpop.f32.mrb[14].mxu1 }
 0x10c   : > { %v736_v38 = vpop.f32.mrb[12].mxu0  ;;  %v1138_v39 = vpop.f32.mrb[15].mxu1 }
 0x10d   : > { %v742_v40 = vsel %vm351_vm12, %v736_v38, 0.0  ;;  %v1129_v41 = vpop.f32.mrb[13].mxu0 }
 0x10e   : > { %v743_v42 = vadd.f32 %v742_v40, %v685_v33  ;;  %v739_v43 = vpop.f32.mrb[14].mxu0 }
 0x10f   : > { %v1130_v44 = vpop.f32.mrb[15].mxu0 }
 0x110   : > { %v806_v45 = vadd.f32 %v800_v35, %v743_v42 }
 0x114   : > { %v869_v46 = vpop.f32.mrb[16].mxu0 }
 0x115   : > { %v875_v47 = vsel %vm492_vm13, %v869_v46, 0.0  ;;  %v1145_v49 = vpop.f32.mrb[17].mxu0 }
 0x116   : > { %v876_v50 = vadd.f32 %v875_v47, %v806_v45  ;;  %v872_v51 = vpop.f32.mrb[18].mxu0 }
 0x117   : > { %v1146_v53 = vpop.f32.mrb[19].mxu0 }
 0x118   : > { %v884_v54 = vmul.f32 %v1044_v48, %v876_v50 }
 0x11a   : > { %v892_v55 = vadd.f32 %v1045_v52, %v884_v54 }
 0x11c   : > { %v893_v56 = vmax.f32 %v892_v55, 0.0 }
 0x11e   : > { %v894_v57 = vpack.c.bf16 %v893_v56, %v893_v56  ;;  %v897_v58 = vsel %vm257_vm1, %v893_v56, 0.0 }
 0x11f   : > { %v898_v59 = vrot.slane %v897_v58, 4 }
 0x120   : > { %896 = vst.msk [vmem:[%s252_s28] sm:$0x3] %vm895_vm14, %v894_v57 }
 0x121   : > { %v899_v60 = vadd.f32 %v898_v59, %v897_v58 }
 0x123   : > { %v900_v61 = vrot.slane %v899_v60, 2 }
 0x125   : > { %v901_v62 = vadd.f32 %v900_v61, %v899_v60 }
 0x127   : > { %v902_v63 = vrot.slane %v901_v62, 1 }
 0x129   : > { %v903_v0 = vadd.f32 %v902_v63, %v901_v62 }
 0x12b   : > { %v904_v2 = vmul.f32 0.25, %v903_v0 }
 0x12d   : > { %906 = vst.msk [vmem:[%s255_s8] sm:$0x1] %vm905_vm15, %v904_v2 }
 0x12e PF: > { %s17_s21 = sadd.s32 1, %s1183_s21  }
 0x12f   : > { %p14_p4 = scmp.ge.s32.totalorder %s17_s21, 4  }
 0x131   :  { %16 = sbr.rel (!%p14_p4) target bundleno = 1 (0x1), region = 90 }

// kernel: forward.54
= control target key start
LH: loop header
LB: loop body
LE: loop exit
PB: predicated region body
PF: predicated region fallthrough
CT: control target
= control target key end

     0   :  { %v247_v0 = vmov 0.0|0.0   ;;  %vm248_vm0 = vmmov 0   ;;  %v249_v4 = vmov 0.0   ;;  %vm32_vm1 = vcmask 261120   ;;  %s307_s1 = inlined_call_operand.vmem [shape: f32[32,6], index: 1, kind: input, shape index: {}]   ;;  %s308_s0 = inlined_call_operand.vmem [shape: f32[2,32], index: 0, kind: input, shape index: {}]   ;;  %s309_s3 = inlined_call_operand.vmem [shape: f32[6,32], index: 3, kind: input, shape index: {}]   ;;  %s310_s2 = inlined_call_operand.vmem [shape: f32[1,6], index: 2, kind: input, shape index: {}]   ;;  %s311_s4 = inlined_call_operand.vmem [shape: f32[1,32], index: 4, kind: input, shape index: {}]   ;;  %s312_s5 = inlined_call_operand.vmem [shape: f32[2,32], index: 5, kind: output, shape index: {}]  }
   0x1   :  { %234 = vmatprep.subr.bf16.mxu0 %v247_v0  ;;  %v21_v1 = vld [vmem:[%s307_s1] sm:$0xff]  ;;  %v22_v2 = vld [vmem:[%s307_s1 + $0x8] sm:$0xff]  ;;  %v23_v3 = vld [vmem:[%s307_s1 + $0x10] sm:$0xff]  ;;  %226 = vmatprep.mubr.msk.f32.mxu0 %vm248_vm0, %v249_v4  ;;  %vm119_vm2 = vcmask 1045504   ;;  %vm115_vm3 = vcmask 48128   ;;  %vm199_vm4 = vcmask 254976  }
   0x2   :  { %v235_v5 = vpack.c.bf16 %v22_v2, %v21_v1  ;;  %v24_v6 = vld [vmem:[%s307_s1 + $0x18] sm:$0xff]  ;;  %229 = vmatprep.subr.mxu1 %v249_v4  ;;  %231 = vmatprep.mubr.msk.f32.mxu1 %vm248_vm0, %v249_v4  ;;  %v20_v8 = vld [vmem:[%s308_s0] sm:$0x3] }
   0x3   :  { %v238_v7 = vpack.c.bf16 %v24_v6, %v23_v3  ;;  %v107_v9 = vld [vmem:[%s309_s3] sm:$0x3f] }
   0x4   :  { %236 = vmatpush3.bf16.msra.mxu0 %v235_v5  ;;  %230 = vmatpush3.msk.msra.mxu1 %vm119_vm2, %v107_v9  ;;  %v205_v10 = vld [vmem:[%s310_s2] ss:$0 sm:$0xff] }
   0x5   :  { %237 = vmatprep.subr.bf16.mxu0 %v247_v0  ;;  %v207_v15 = vld [vmem:[%s311_s4] ss:$0 sm:$0xff] }
   0x8   :  { %239 = vmatpush3.bf16.msra.mxu0 %v238_v7 }
   0xb   :  { %227 = vmatmul.mubr.msk.f32.vlgmr.msra.gmra.mrb[0].mxu0 %vm32_vm1, %v20_v8 }
  0xde   :  { %v102_v11 = vpop.f32.mrb[0].mxu0 }
  0xdf   :  { %v103_v12 = vadd.f32 %v205_v10, %v102_v11  ;;  %v228_v13 = vpop.f32.mrb[1].mxu0 }
  0xe1   :  { %v106_v14 = vmax.f32 %v103_v12, 0.0 }
  0xe3   :  { %232 = vmatmul.mubr.msk.f32.vlgmr.msra.gmra.mrb[0].mxu1 %vm115_vm3, %v106_v14 }
 0x1b6   :  { %v189_v16 = vpop.f32.mrb[0].mxu1 }
 0x1b7   :  { %v190_v17 = vadd.f32 %v207_v15, %v189_v16  ;;  %v233_v18 = vpop.f32.mrb[1].mxu1 }
 0x1b9   :  { %v210_v19 = vmul.f32 -1.442695, %v190_v17 }
 0x1bb   :  { %243 = vpow2.f32 %v210_v19 }
 0x1c5   :  { %v244_v20 = vpop.eup %243 }
 0x1c6   :  { %v196_v21 = vadd.f32 1.0, %v244_v20 }
 0x1c8   :  { %245 = vrcp.f32 %v196_v21 }
 0x1d2   :  { %v246_v22 = vpop.eup %245 }
 0x1d3   :  { %200 = vst.msk [vmem:[%s312_s5] sm:$0x3] %vm199_vm4, %v246_v22 }

// kernel: forward.52
= control target key start
LH: loop header
LB: loop body
LE: loop exit
PB: predicated region body
PF: predicated region fallthrough
CT: control target
= control target key end

     0   :  { %s488_s15 = smov 0   ;;  %s490_s16 = smov 0   ;;  %s533_s0 = inlined_call_operand.vmem [shape: bf16[2,4,24], index: 0, kind: input, shape index: {}]   ;;  %s534_s1 = inlined_call_operand.vmem [shape: bf16[24,64], index: 1, kind: input, shape index: {}]   ;;  %s535_s2 = inlined_call_operand.vmem [shape: f32[1,64], index: 2, kind: input, shape index: {}]   ;;  %s536_s3 = inlined_call_operand.vmem [shape: f32[1,64], index: 3, kind: input, shape index: {}]   ;;  %s537_s4 = inlined_call_operand.vmem [shape: bf16[2,4,64], index: 4, kind: output, shape index: {}]  }
   0x1   :  { %s492_s17 = smov 0  }
   0x2 LB: > { %s26_s18 = sadd.s32 1, %s455_s16  ;;  %p388_p0 = scmp.ge.s32.totalorder %s459_s17, 1  ;;  %s459_s17 = sphi %s492_s17, %s14_s17   ;;  %s455_s16 = sphi %s490_s16, %s539_s16   ;;  %s451_s15 = sphi %s488_s15, %s538_s15  }
   0x3   : > { %p28_p1 = scmp.ge.s32.totalorder %s26_s18, 2  ;;  %p180_p2 = scmp.lt.s32.totalorder %s459_s17, 3 }
   0x5   : > { %s541_s18 = smov (%p28_p1, %s26_s18), 0  ;;  %p181_p3 = pnand %p388_p0, %p180_p2 }
   0x6   : > { %v435_v0 = vld [vmem:[%s534_s1] sm:$0xff] (!%p181_p3)   ;;  %v461_v1 = vmov (!%p181_p3), 0.0   ;;  %v436_v2 = vld [vmem:[%s534_s1 + $0x8] ss:$0 sps:$4 sm:$0xff] (!%p181_p3)   ;;  %vm242_vm0 = vcmask (!%p181_p3), 1043456   ;;  %vm462_vm1 = vmmov (!%p181_p3), 0   ;;  %v302_v5 = vlaneseq (!%p181_p3) }
   0x7   : > { %184 = sbr.rel (%p181_p3) target bundleno = 240 (0xf0), region = 36  ;;  %401 = vmatprep.subr.bf16.mxu0 (!%p181_p3), %v461_v1  ;;  %405 = vmatprep.mubr.msk.bf16.mxu0 (!%p181_p3), %vm462_vm1, %v461_v1  ;;  %p210_p4 = scmp.lt.s32.totalorder (!%p181_p3), %s451_s15, 1  ;;  %v244_v3 = vsel (!%p181_p3), %vm242_vm0, %v436_v2, 0  ;;  %vm238_vm2 = vcmask (!%p181_p3), 195584   ;;  %v394_v6 = vld [vmem:[%s535_s2] ss:$0 sm:$0xff] (!%p181_p3) }
   0x8   : > { %402 = vmatpush3.bf16.msra.mxu0 (!%p181_p3), %v435_v0  ;;  %v395_v8 = vld [vmem:[%s536_s3] ss:$0 sm:$0xff] (!%p181_p3)  ;;  %v303_v9 = vand.u32 (!%p181_p3), 127, %v302_v5  ;;  %vm308_vm4 = vcmask (!%p181_p3), 517120  }
   0x9   : > { %403 = vmatprep.subr.bf16.mxu0 (!%p181_p3), %v461_v1 }
   0xa   : > { %vm304_vm3 = vcmp.lt.s32.totalorder (!%p181_p3), %v303_v9, 32 }
   0xc   : > { %404 = vmatpush3.bf16.msra.mxu0 (!%p181_p3), %v244_v3 }
   0xe   : > { %s543_s15 = smov (!%p210_p4, %s451_s15), 1 }
   0xf   : > { %s389_s23 = sshll.u32 %s543_s15, 1 }
  0x10   : > { %s216_s26 = scalar_lea.vmem %s533_s0, %s389_s23  ;;  %s223_s7 = scalar_lea.vmem %s537_s4, %s389_s23 }
  0x11   : > { %v225_v4 = vld [vmem:[%s216_s26] sm:$0x3] }
  0x12   : > { %406 = vmatmul.mubr.msk.bf16.vlgmr.msra.gmra.mrb[0].mxu0 %vm238_vm2, %v225_v4 }
  0xe5   : > { %v280_v7 = vpop.f32.mrb[0].mxu0 }
  0xe6   : > { %v293_v10 = vmul.f32 %v394_v6, %v280_v7  ;;  %v407_v11 = vpop.f32.mrb[1].mxu0 }
  0xe7   : > { %v283_v12 = vpop.f32.mrb[2].mxu0 }
  0xe8   : > { %v301_v13 = vadd.f32 %v395_v8, %v293_v10  ;;  %v408_v14 = vpop.f32.mrb[3].mxu0 }
  0xea   : > { %v305_v15 = vmax.f32 %v301_v13, 0.0 }
  0xec   : > { %v306_v16 = vsel %vm304_vm3, %v305_v15, %v301_v13 }
  0xed   : > { %v307_v17 = vpack.c.bf16 %v306_v16, %v306_v16 }
  0xef   : > { %309 = vst.msk [vmem:[%s223_s7] sm:$0x3] %vm308_vm4, %v307_v17 }
  0xf0 PF: > { %s14_s17 = sadd.s32 1, %s459_s17   ;;  %s538_s15 = smov %s455_s16 }
  0xf1   : > { %p11_p5 = scmp.ge.s32.totalorder %s14_s17, 4   ;;  %s539_s16 = smov %s541_s18 }
  0xf3   :  { %13 = sbr.rel (!%p11_p5) target bundleno = 2 (0x2), region = 66 }

// kernel: forward.55
= control target key start
LH: loop header
LB: loop body
LE: loop exit
PB: predicated region body
PF: predicated region fallthrough
CT: control target
= control target key end

     0   :  { %s629_s21 = smov 0   ;;  %s631_s22 = smov 0   ;;  %s680_s0 = inlined_call_operand.vmem [shape: bf16[2,4,32], index: 0, kind: input, shape index: {}]   ;;  %s681_s1 = inlined_call_operand.vmem [shape: bf16[32,32], index: 1, kind: input, shape index: {}]   ;;  %s682_s2 = inlined_call_operand.vmem [shape: f32[1,32], index: 2, kind: input, shape index: {}]   ;;  %s683_s3 = inlined_call_operand.vmem [shape: f32[1,32], index: 3, kind: input, shape index: {}]   ;;  %s684_s4 = inlined_call_operand.vmem [shape: f32[2,1,32], index: 4, kind: input, shape index: {}]   ;;  %s685_s5 = inlined_call_operand.vmem [shape: bf16[2,4,32], index: 5, kind: input, shape index: {}]   ;;  %s686_s6 = inlined_call_operand.vmem [shape: bf16[2,4,32], index: 6, kind: output, shape index: {}]  }
   0x1   :  { %s633_s23 = smov 0  }
   0x2 LB: > { %s28_s24 = sadd.s32 1, %s586_s22  ;;  %p517_p0 = scmp.ge.s32.totalorder %s590_s23, 1  ;;  %s590_s23 = sphi %s633_s23, %s16_s23   ;;  %s586_s22 = sphi %s631_s22, %s688_s22   ;;  %s582_s21 = sphi %s629_s21, %s687_s21  }
   0x3   : > { %p30_p1 = scmp.ge.s32.totalorder %s28_s24, 2  ;;  %p252_p2 = scmp.lt.s32.totalorder %s590_s23, 3 }
   0x5   : > { %s690_s24 = smov (%p30_p1, %s28_s24), 0  ;;  %p253_p3 = pnand %p517_p0, %p252_p2 }
   0x6   : > { %v566_v0 = vld [vmem:[%s681_s1] sm:$0xff] (!%p253_p3)   ;;  %v592_v1 = vmov (!%p253_p3), 0.0   ;;  %v567_v2 = vld [vmem:[%s681_s1 + $0x8] sm:$0xff] (!%p253_p3)   ;;  %vm593_vm0 = vmmov (!%p253_p3), 0   ;;  %p296_p4 = scmp.lt.s32.totalorder (!%p253_p3), %s582_s21, 1  ;;  %vm348_vm1 = vcmask (!%p253_p3), 261120  }
   0x7   : > { %256 = sbr.rel (%p253_p3) target bundleno = 247 (0xf7), region = 44  ;;  %532 = vmatprep.subr.bf16.mxu0 (!%p253_p3), %v592_v1  ;;  %536 = vmatprep.mubr.msk.bf16.mxu0 (!%p253_p3), %vm593_vm0, %v592_v1  ;;  %v525_v8 = vld [vmem:[%s682_s2] ss:$0 sm:$0xff] (!%p253_p3)  ;;  %vm413_vm2 = vcmask (!%p253_p3), 254976  }
   0x8   : > { %533 = vmatpush3.bf16.msra.mxu0 (!%p253_p3), %v566_v0  ;;  %v526_v11 = vld [vmem:[%s683_s3] ss:$0 sm:$0xff] (!%p253_p3) }
   0x9   : > { %534 = vmatprep.subr.bf16.mxu0 (!%p253_p3), %v592_v1 }
   0xc   : > { %535 = vmatpush3.bf16.msra.mxu0 (!%p253_p3), %v567_v2 }
   0xe   : > { %s692_s21 = smov (!%p296_p4, %s582_s21), 1 }
   0xf   : > { %s518_s29 = sshll.u32 %s692_s21, 1  ;;  %s305_s8 = scalar_lea.vmem %s684_s4, %s692_s21 }
  0x10   : > { %s302_s11 = scalar_lea.vmem %s680_s0, %s518_s29  ;;  %v521_v4 = vld [vmem:[%s305_s8] ss:$0 sm:$0xff]  ;;  %s312_s14 = scalar_lea.vmem %s685_s5, %s518_s29 }
  0x11   : > { %v321_v3 = vld [vmem:[%s302_s11] sm:$0x3]  ;;  %s319_s21 = scalar_lea.vmem %s686_s6, %s518_s29 }
  0x12   : > { %v322_v5 = vunpack.c.l.bf16 %v321_v3  ;;  %v408_v9 = vld [vmem:[%s312_s14] sm:$0x3] }
  0x13   : > { %v409_v13 = vunpack.c.l.bf16 %v408_v9 }
  0x14   : > { %v330_v6 = vmul.f32 %v521_v4, %v322_v5 }
  0x16   : > { %v331_v7 = vpack.c.bf16 %v330_v6, %v330_v6 }
  0x18   : > { %537 = vmatmul.mubr.msk.bf16.vlgmr.msra.gmra.mrb[0].mxu0 %vm348_vm1, %v331_v7 }
  0xeb   : > { %v386_v10 = vpop.f32.mrb[0].mxu0 }
  0xec   : > { %v399_v12 = vmul.f32 %v525_v8, %v386_v10  ;;  %v538_v14 = vpop.f32.mrb[1].mxu0 }
  0xed   : > { %v389_v15 = vpop.f32.mrb[2].mxu0 }
  0xee   : > { %v407_v16 = vadd.f32 %v526_v11, %v399_v12  ;;  %v539_v17 = vpop.f32.mrb[3].mxu0 }
  0xf0   : > { %v410_v18 = vadd.f32 %v409_v13, %v407_v16 }
  0xf2   : > { %v411_v19 = vmax.f32 %v410_v18, 0.0 }
  0xf4   : > { %v412_v20 = vpack.c.bf16 %v411_v19, %v411_v19 }
  0xf6   : > { %414 = vst.msk [vmem:[%s319_s21] sm:$0x3] %vm413_vm2, %v412_v20 }
  0xf7 PF: > { %s16_s23 = sadd.s32 1, %s590_s23   ;;  %s687_s21 = smov %s586_s22 }
  0xf8   : > { %p13_p5 = scmp.ge.s32.totalorder %s16_s23, 4   ;;  %s688_s22 = smov %s690_s24 }
  0xfa   :  { %15 = sbr.rel (!%p13_p5) target bundleno = 2 (0x2), region = 80 }

// kernel: forward.53
= control target key start
LH: loop header
LB: loop body
LE: loop exit
PB: predicated region body
PF: predicated region fallthrough
CT: control target
= control target key end

     0   :  { %s1865_s24 = smov 0   ;;  %s2081_s0 = inlined_call_operand.vmem [shape: bf16[2,4,64], index: 0, kind: input, shape index: {}]   ;;  %s2082_s1 = inlined_call_operand.vmem [shape: bf16[18,16,32], index: 1, kind: input, shape index: {}]   ;;  %s2083_s2 = inlined_call_operand.vmem [shape: f32[1,32], index: 2, kind: input, shape index: {}]   ;;  %s2084_s3 = inlined_call_operand.vmem [shape: f32[1,32], index: 3, kind: input, shape index: {}]   ;;  %s2085_s4 = inlined_call_operand.vmem [shape: s32[4,1], index: 4, kind: input, shape index: {}]   ;;  %s2086_s5 = inlined_call_operand.vmem [shape: bf16[2,4,32], index: 5, kind: output, shape index: {0}]   ;;  %s2087_s6 = inlined_call_operand.vmem [shape: f32[2,1,32], index: 6, kind: output, shape index: {1}]   ;;  %s2088_s7 = inlined_call_operand.vmem [shape: bf16[2,4,32], index: 7, kind: output, shape index: {2}]  }
   0x1 LB: > { %s1531_s25 = sadd.s32 4294967295, %s1818_s24   ;;  %p1535_p0 = scmp.ge.s32.totalorder %s1818_s24, 1  ;;  %s1818_s24 = sphi %s1865_s24, %s18_s24  }
   0x2   : > { %p241_p1 = scmp.lt.s32.totalorder %s1818_s24, 3 }
   0x4   : > { %p242_p2 = pnand %p1535_p0, %p241_p1 }
   0x5   : > { %vm294_vm0 = vcmask (!%p242_p2), 519168   ;;  %p278_p3 = scmp.lt.s32.totalorder (!%p242_p2), %s1531_s25, 1  ;;  %vm296_vm1 = vcmask (!%p242_p2), 519170   ;;  %v1820_v0 = vmov (!%p242_p2), 0   ;;  %v1792_v1 = vld [vmem:[%s2082_s1] sm:$0xff] (!%p242_p2)   ;;  %v1821_v2 = vmov (!%p242_p2), 0.0  }
   0x6   : > { %245 = sbr.rel (%p242_p2) target bundleno = 405 (0x195), region = 40  ;;  %295 = vst.msk [vmem:[#allocation2] sm:$0xf] (!%p242_p2), %vm294_vm0, %v1820_v0  ;;  %298 = vst.msk [vmem:[#allocation2 + $0x8] sm:$0xf] (!%p242_p2), %vm294_vm0, %v1820_v0  ;;  %1781 = vset.pattern.permute.xlu1 (!%p242_p2), %v1820_v0  ;;  %1782 = vset.pattern.permute.xlu0 (!%p242_p2), %v1820_v0  ;;  %v1793_v3 = vld [vmem:[%s2082_s1 + $0x8] sm:$0xff] (!%p242_p2)  }
   0x7   : > { %297 = vst.msk [vmem:[#allocation2 + $0x4] sm:$0xc] (!%p242_p2), %vm296_vm1, %v1820_v0  ;;  %1660 = vmatprep.subr.bf16.mxu0 (!%p242_p2), %v1821_v2  ;;  %1666 = vmatprep.subr.bf16.mxu1 (!%p242_p2), %v1821_v2  ;;  %vm1822_vm2 = vmmov (!%p242_p2), 0   ;;  %vm300_vm3 = vcmask (!%p242_p2), 517120   ;;  %s1823_s11 = smov (!%p242_p2), 112   ;;  %v1795_v19 = vld [vmem:[%s2082_s1 + $0x18] sm:$0xff] (!%p242_p2)  }
   0x8   : > { %1661 = vmatpush3.bf16.msra.mxu0 (!%p242_p2), %v1792_v1  ;;  %1662 = vmatprep.mubr.msk.bf16.mxu0 (!%p242_p2), %vm1822_vm2, %v1821_v2  ;;  %v1790_v18 = vld [vmem:[#allocation2 + $0x4] ss:$0 sps:$4 sm:$0xcc] (!%p242_p2)   ;;  %vm326_vm4 = vcmask (!%p242_p2), 130048   ;;  %v1794_v33 = vld [vmem:[%s2082_s1 + $0x10] sm:$0xff] (!%p242_p2)   ;;  %v1797_v37 = vld [vmem:[%s2082_s1 + $0x28] sm:$0xff] (!%p242_p2)  }
   0x9   : > { %1667 = vmatpush3.bf16.msra.mxu1 (!%p242_p2), %v1793_v3  ;;  %1672 = vmatprep.subr.bf16.mxu0 (!%p242_p2), %v1821_v2  ;;  %v1268_v34 = vrot.slane (!%p242_p2), %v1790_v18, 2  ;;  %v1796_v41 = vld [vmem:[%s2082_s1 + $0x20] sm:$0xff] (!%p242_p2)   ;;  %v1800_v44 = vld [vmem:[%s2082_s1 + $0x38] sm:$0xff] (!%p242_p2)   ;;  %v1798_v48 = vld [vmem:[%s2082_s1 + $0x30] sm:$0xff] (!%p242_p2)   ;;  %s1824_s8 = smov (!%p242_p2), 96   ;;  %vm1403_vm1 = vcmask (!%p242_p2), 254976  }
   0xa   : > { %1668 = vmatprep.mubr.msk.bf16.mxu1 (!%p242_p2), %vm1822_vm2, %v1821_v2  ;;  %1678 = vmatprep.subr.bf16.mxu1 (!%p242_p2), %v1821_v2  ;;  %v302_v43 = vld [vmem:[%s2085_s4] sm:$0xf] (!%p242_p2)  ;;  %v1803_v51 = vld [vmem:[%s2082_s1 + $0x48] sm:$0xff] (!%p242_p2)   ;;  %v1804_v59 = vld [vmem:[%s2082_s1 + $0x50] sm:$0xff] (!%p242_p2)  }
   0xb   : > { %vm370_vm5 = vcmp.ge.s32.totalorder (!%p242_p2), %v302_v43, 1  ;;  %vm371_vm6 = vcmp.lt.s32.totalorder (!%p242_p2), %v302_v43, 2  ;;  %vm502_vm7 = vcmp.ge.s32.totalorder (!%p242_p2), %v302_v43, 0  ;;  %vm503_vm8 = vcmp.lt.s32.totalorder (!%p242_p2), %v302_v43, 1  ;;  %v1801_v55 = vld [vmem:[%s2082_s1 + $0x40] sm:$0xff] (!%p242_p2)   ;;  %v1805_v60 = vld [vmem:[%s2082_s1 + $0x58] sm:$0xff] (!%p242_p2)  }
   0xc   : > { %vm372_vm9 = vmand (!%p242_p2), %vm370_vm5, %vm371_vm6  ;;  %vm915_vm10 = vcmp.ge.s32.totalorder (!%p242_p2), %v302_v43, 2  ;;  %vm1038_vm12 = vcmp.lt.s32.totalorder (!%p242_p2), %v302_v43, 0  ;;  %v1806_v62 = vld [vmem:[%s2082_s1 + $0x60] sm:$0xff] (!%p242_p2)   ;;  %v1808_v3 = vld [vmem:[%s2082_s1 + $0x70] sm:$0xff] (!%p242_p2)   ;;  %vm1414_vm5 = vcmask (!%p242_p2), 253952  }
   0xd   : > { %s2090_s25 = smov (!%p278_p3, %s1531_s25), 1  ;;  %v1783_v5 = vld [vmem:[#allocation2] ss:$0 sps:$4 sm:$0x66]   ;;  %v303_v8 = vld [vmem:[#allocation2] sm:$0xc]  ;;  %vm504_vm11 = vmand %vm502_vm7, %vm503_vm8 }
   0xe   : > { %s1891_s30 = sshll.u32 %s2090_s25, 1  ;;  %v1784_v6 = vld [vmem:[#allocation2] ss:$0 sps:$4 sm:$0xcc]   ;;  %v863_v7 = vrot.slane %v1783_v5, 1  ;;  %v373_v45 = vsel %vm372_vm9, 1, %v1820_v0  ;;  %vm916_vm13 = vmand %vm915_vm10, %vm371_vm6  ;;  %s288_s19 = scalar_lea.vmem %s2087_s6, %s2090_s25 }
   0xf   : > { %s1898_s10 = scalar_lea.vmem %s2081_s0, %s1891_s30  ;;  %v380_v9 = vld [vmem:[#allocation2] sm:$0x8]  ;;  %v931_v10 = vrot.slane %v1784_v6, 2  ;;  %v1791_v13 = vld [vmem:[#allocation2 + $0x4] sm:$0x18]   ;;  %v505_v46 = vsel %vm504_vm11, 1, %v1820_v0  ;;  %vm1039_vm14 = vmand %vm502_vm7, %vm1038_vm12  ;;  %s292_s9 = scalar_lea.vmem %s2088_s7, %s1891_s30 }
  0x10   : > { %v299_v4 = vld [vmem:[%s1898_s10] sm:$0x3]  ;;  %864 = vrot.lane.b32.xlu0 %v863_v7, %s1823_s11  ;;  %v1331_v32 = vrot.slane %v1791_v13, 3  ;;  %v917_v47 = vsel %vm916_vm13, 1, %v1820_v0  ;;  %v1040_v52 = vsel %vm1039_vm14, 1, %v1820_v0  ;;  %v1807_v0 = vld [vmem:[%s2082_s1 + $0x68] sm:$0xff]   ;;  %s285_s16 = scalar_lea.vmem %s2086_s5, %s1891_s30 }
  0x11   : > { %301 = vst.msk [vmem:[#allocation2 + $0x4] sm:$0x3] %vm300_vm3, %v299_v4  ;;  %v1416_v49 = vld [vmem:[%s1898_s10] sm:$0x3]  ;;  %v1809_v5 = vld [vmem:[%s2082_s1 + $0x78] sm:$0xff]  }
  0x12   : > { %v1810_v7 = vld [vmem:[%s2082_s1 + $0x80] sm:$0xff]  }
  0x14   : > { %932 = vrot.lane.b32.xlu0 %v931_v10, %s1823_s11 }
  0x18   : > { %v304_v11 = vld [vmem:[#allocation2 + $0x4] sm:$0x1] }
  0x19   : > { %v1905_v12 = vld [vmem:[#allocation2 + $0x4] sm:$0x3]  ;;  %v1544_v14 = vcombine.low %v380_v9, %v304_v11  ;;  %v1539_v16 = vcombine.low %v303_v8, %v304_v11  ;;  %v1811_v8 = vld [vmem:[%s2082_s1 + $0x88] sm:$0xff]  }
  0x1a   : > { %v1549_v15 = vcombine.low %v380_v9, %v1905_v12  ;;  %v1908_v17 = vld [vmem:[#allocation2 + $0x4] ss:$0 sps:$4 sm:$0x66]   ;;  %v1599_v28 = vcombine.low %v1905_v12, %v1905_v12 }
  0x1b   : > { %v1799_v20 = vld [vmem:[#allocation2 + $0x4] ss:$0 sps:$4 sm:$0x77]   ;;  %v387_v21 = vrot.slane %v1544_v14, 3  ;;  %v313_v24 = vshrl.u32 %v1539_v16, 16  ;;  %v316_v25 = vshll.u32 %v1539_v16, 16 }
  0x1c   : > { %v446_v22 = vshrl.u32 %v1549_v15, 16  ;;  %v449_v23 = vshll.u32 %v1549_v15, 16  ;;  %v739_v26 = vrot.slane %v1908_v17, 1  ;;  %v626_v36 = vshll.u32 %v1799_v20, 16 }
  0x1d   : > { %987 = vrot.lane.b32.xlu1 %v387_v21, %s1823_s11  ;;  %v315_v27 = vrot.slane %v313_v24, 2  ;;  %1669 = vmatmul.mubr.msk.bf16.vlgmr.msra.gmra.mrb[0].mxu1 %vm326_vm4, %v387_v21  ;;  %v318_v31 = vrot.slane %v316_v25, 3  ;;  %v624_v39 = vshrl.u32 %v1799_v20, 16  ;;  %v1802_v50 = vld [vmem:[#allocation2 + $0x4] ss:$0 sps:$4 sm:$0xee]  }
  0x1e   : > { %v448_v29 = vrot.slane %v446_v22, 3  ;;  %v451_v30 = vrot.slane %v449_v23, 4  ;;  %1157 = vrot.lane.b32.xlu0 %v739_v26, %s1823_s11  ;;  %1679 = vmatpush3.bf16.msra.mxu1 %v1795_v19  ;;  %v628_v40 = vrot.slane %v626_v36, 1  ;;  %v798_v53 = vshrl.u32 %v1802_v50, 16 }
  0x1f   : > { %1680 = vmatprep.mubr.msk.bf16.mxu1 %vm1822_vm2, %v1821_v2  ;;  %1690 = vmatprep.subr.bf16.mxu1 %v1821_v2  ;;  %v319_v35 = vor.u32 %v318_v31, %v315_v27  ;;  %v801_v54 = vshll.u32 %v1802_v50, 16 }
  0x20   : > { %v452_v38 = vor.u32 %v451_v30, %v448_v29  ;;  %v629_v42 = vor.u32 %v628_v40, %v624_v39  ;;  %v800_v56 = vrot.slane %v798_v53, 1 }
  0x21   : > { %1102 = vrot.lane.b32.xlu1 %v1599_v28, %s1823_s11  ;;  %1663 = vmatmul.mubr.msk.bf16.vlgmr.msra.gmra.mrb[0].mxu0 %vm326_vm4, %v319_v35  ;;  %v803_v57 = vrot.slane %v801_v54, 2 }
  0x22   : > { %1332 = vrot.lane.b32.xlu0 %v1331_v32, %s1823_s11  ;;  %1673 = vmatpush3.bf16.msra.mxu0 %v1794_v33 }
  0x23   : > { %1674 = vmatprep.mubr.msk.bf16.mxu0 %vm1822_vm2, %v1821_v2  ;;  %1684 = vmatprep.subr.bf16.mxu0 %v1821_v2  ;;  %v804_v58 = vor.u32 %v803_v57, %v800_v56 }
  0x25   : > { %1269 = vrot.lane.b32.xlu1 %v1268_v34, %s1823_s11  ;;  %1681 = vmatmul.mubr.msk.bf16.vlgmr.msra.gmra.mrb[4].mxu1 %vm326_vm4, %v452_v38 }
  0x26   : > { %1691 = vmatpush3.bf16.msra.mxu1 %v1797_v37  ;;  %1692 = vmatprep.mubr.msk.bf16.mxu1 %vm1822_vm2, %v1821_v2 }
  0x27   : > { %1702 = vmatprep.subr.bf16.mxu1 %v1821_v2  ;;  %507 = vperm.xlu0 %1782, %v505_v46  }
  0x29   : > { %1675 = vmatmul.mubr.msk.bf16.vlgmr.msra.gmra.mrb[4].mxu0 %vm326_vm4, %v452_v38  ;;  %375 = vperm.xlu1 %1781, %v373_v45  }
  0x2a   : > { %1685 = vmatpush3.bf16.msra.mxu0 %v1796_v41  ;;  %1686 = vmatprep.mubr.msk.bf16.mxu0 %vm1822_vm2, %v1821_v2 }
  0x2b   : > { %1696 = vmatprep.subr.bf16.mxu0 %v1821_v2  ;;  %1418 = vrot.lane.b32.xlu0 %v1416_v49, %s1824_s8 }
  0x2d   : > { %1693 = vmatmul.mubr.msk.bf16.vlgmr.msra.gmra.mrb[8].mxu1 %vm326_vm4, %v629_v42  ;;  %919 = vperm.xlu1 %1781, %v917_v47  }
  0x2e   : > { %1703 = vmatpush3.bf16.msra.mxu1 %v1800_v44  ;;  %1704 = vmatprep.mubr.msk.bf16.mxu1 %vm1822_vm2, %v1821_v2 }
  0x2f   : > { %1714 = vmatprep.subr.bf16.mxu1 %v1821_v2 }
  0x31   : > { %1687 = vmatmul.mubr.msk.bf16.vlgmr.msra.gmra.mrb[8].mxu0 %vm326_vm4, %v1905_v12  ;;  %1042 = vperm.xlu1 %1781, %v1040_v52  }
  0x32   : > { %1697 = vmatpush3.bf16.msra.mxu0 %v1798_v48  ;;  %1698 = vmatprep.mubr.msk.bf16.mxu0 %vm1822_vm2, %v1821_v2 }
  0x33   : > { %1708 = vmatprep.subr.bf16.mxu0 %v1821_v2 }
  0x35   : > { %1705 = vmatmul.mubr.msk.bf16.vlgmr.msra.gmra.mrb[12].mxu1 %vm326_vm4, %v739_v26 }
  0x36   : > { %1715 = vmatpush3.bf16.msra.mxu1 %v1803_v51  ;;  %1716 = vmatprep.mubr.msk.bf16.mxu1 %vm1822_vm2, %v1821_v2 }
  0x37   : > { %1726 = vmatprep.subr.bf16.mxu1 %v1821_v2 }
  0x39   : > { %1699 = vmatmul.mubr.msk.bf16.vlgmr.msra.gmra.mrb[12].mxu0 %vm326_vm4, %v629_v42 }
  0x3a   : > { %1709 = vmatpush3.bf16.msra.mxu0 %v1801_v55  ;;  %1710 = vmatprep.mubr.msk.bf16.mxu0 %vm1822_vm2, %v1821_v2 }
  0x3b   : > { %1720 = vmatprep.subr.bf16.mxu0 %v1821_v2 }
  0x41   : > { %1711 = vmatmul.mubr.msk.bf16.vlgmr.msra.gmra.mrb[16].mxu0 %vm326_vm4, %v804_v58 }
  0x42   : > { %1721 = vmatpush3.bf16.msra.mxu0 %v1804_v59  ;;  %1722 = vmatprep.mubr.msk.bf16.mxu0 %vm1822_vm2, %v1821_v2 }
  0x43   : > { %1732 = vmatprep.subr.bf16.mxu0 %v1821_v2 }
  0x82   : > { %v865_v61 = vpop.permute.xlu0 %864 }
  0x83   : > { %1717 = vmatmul.mubr.msk.bf16.vlgmr.msra.gmra.mrb[16].mxu1 %vm326_vm4, %v865_v61 }
  0x84   : > { %1727 = vmatpush3.bf16.msra.mxu1 %v1805_v60  ;;  %1728 = vmatprep.mubr.msk.bf16.mxu1 %vm1822_vm2, %v1821_v2 }
  0x85   : > { %1738 = vmatprep.subr.bf16.mxu1 %v1821_v2 }
  0x86   : > { %v933_v63 = vpop.permute.xlu0 %932 }
  0x87   : > { %1723 = vmatmul.mubr.msk.bf16.vlgmr.msra.gmra.mrb[20].mxu0 %vm326_vm4, %v933_v63 }
  0x88   : > { %1733 = vmatpush3.bf16.msra.mxu0 %v1806_v62  ;;  %1734 = vmatprep.mubr.msk.bf16.mxu0 %vm1822_vm2, %v1821_v2 }
  0x89   : > { %1744 = vmatprep.subr.bf16.mxu0 %v1821_v2 }
  0x8f   : > { %v988_v1 = vpop.permute.xlu1 %987 }
  0x90   : > { %1729 = vmatmul.mubr.msk.bf16.vlgmr.msra.gmra.mrb[20].mxu1 %vm326_vm4, %v988_v1  ;;  %1735 = vmatmul.mubr.msk.bf16.vlgmr.msra.gmra.mrb[24].mxu0 %vm326_vm4, %v988_v1  ;;  %v1158_v6 = vpop.permute.xlu0 %1157 }
  0x91   : > { %1739 = vmatpush3.bf16.msra.mxu1 %v1807_v0  ;;  %1740 = vmatprep.mubr.msk.bf16.mxu1 %vm1822_vm2, %v1821_v2 }
  0x92   : > { %1750 = vmatprep.subr.bf16.mxu1 %v1821_v2  ;;  %1745 = vmatpush3.bf16.msra.mxu0 %v1808_v3 }
  0x93   : > { %v1103_v4 = vpop.permute.xlu1 %1102  ;;  %1746 = vmatprep.mubr.msk.bf16.mxu0 %vm1822_vm2, %v1821_v2  ;;  %1756 = vmatprep.subr.bf16.mxu0 %v1821_v2 }
  0x94   : > { %v1333_v10 = vpop.permute.xlu0 %1332 }
  0x97   : > { %v1270_v9 = vpop.permute.xlu1 %1269 }
  0x98   : > { %1741 = vmatmul.mubr.msk.bf16.vlgmr.msra.gmra.mrb[24].mxu1 %vm326_vm4, %v1103_v4  ;;  %1747 = vmatmul.mubr.msk.bf16.vlgmr.msra.gmra.mrb[28].mxu0 %vm326_vm4, %v1158_v6 }
  0x99   : > { %1751 = vmatpush3.bf16.msra.mxu1 %v1809_v5  ;;  %1752 = vmatprep.mubr.msk.bf16.mxu1 %vm1822_vm2, %v1821_v2 }
  0x9a   : > { %1762 = vmatprep.subr.bf16.mxu1 %v1821_v2  ;;  %1757 = vmatpush3.bf16.msra.mxu0 %v1810_v7 }
  0x9b   : > { %1758 = vmatprep.mubr.msk.bf16.mxu0 %vm1822_vm2, %v1821_v2 }
  0xa0   : > { %1753 = vmatmul.mubr.msk.bf16.vlgmr.msra.gmra.mrb[28].mxu1 %vm326_vm4, %v1158_v6  ;;  %1759 = vmatmul.mubr.msk.bf16.vlgmr.msra.gmra.mrb[32].mxu0 %vm326_vm4, %v1270_v9 }
  0xa1   : > { %1763 = vmatpush3.bf16.msra.mxu1 %v1811_v8  ;;  %1764 = vmatprep.mubr.msk.bf16.mxu1 %vm1822_vm2, %v1821_v2 }
  0xa6   : > { %v508_v20 = vpop.permute.xlu0 %507 }
  0xa7   : > { %vm509_vm0 = vcmp.eq.s32.totalorder %v508_v20, 1 }
  0xa8   : > { %1765 = vmatmul.mubr.msk.bf16.vlgmr.msra.gmra.mrb[32].mxu1 %vm326_vm4, %v1333_v10  ;;  %v376_v12 = vpop.permute.xlu1 %375  ;;  %vm1405_vm4 = vcmask 257024  }
  0xa9   : > { %vm377_vm15 = vcmp.eq.s32.totalorder %v376_v12, 1 }
  0xaa   : > { %v1419_v56 = vpop.permute.xlu0 %1418 }
  0xab   : > { %1421 = vst.msk [vmem:[%s292_s9] sm:$0x3] %vm1403_vm1, %v1419_v56 }
  0xac   : > { %v920_v63 = vpop.permute.xlu1 %919 }
  0xad   : > { %vm921_vm2 = vcmp.eq.s32.totalorder %v920_v63, 1 }
  0xb0   : > { %v1043_v8 = vpop.permute.xlu1 %1042 }
  0xb1   : > { %vm1044_vm3 = vcmp.eq.s32.totalorder %v1043_v8, 1 }
  0xf0   : > { %v431_v11 = vpop.f32.mrb[0].mxu1 }
  0xf1   : > { %v1670_v13 = vpop.f32.mrb[1].mxu1 }
  0xf2   : > { %v434_v14 = vpop.f32.mrb[2].mxu1 }
  0xf3   : > { %v1671_v15 = vpop.f32.mrb[3].mxu1 }
  0xf4   : > { %v364_v16 = vpop.f32.mrb[0].mxu0 }
  0xf5   : > { %v1664_v17 = vpop.f32.mrb[1].mxu0  ;;  %v378_v18 = vsel %vm377_vm15, %v364_v16, 0.0 }
  0xf6   : > { %v367_v19 = vpop.f32.mrb[2].mxu0  ;;  %v437_v21 = vadd.f32 %v431_v11, %v378_v18 }
  0xf7   : > { %v1665_v22 = vpop.f32.mrb[3].mxu0 }
  0xf8   : > { %v555_v2 = vpop.f32.mrb[4].mxu1 }
  0xf9   : > { %v1682_v23 = vpop.f32.mrb[5].mxu1  ;;  %v561_v29 = vsel %vm377_vm15, %v555_v2, 0.0 }
  0xfa   : > { %v558_v24 = vpop.f32.mrb[6].mxu1 }
  0xfb   : > { %v1683_v25 = vpop.f32.mrb[7].mxu1 }
  0xfc   : > { %v496_v26 = vpop.f32.mrb[4].mxu0 }
  0xfd   : > { %v510_v27 = vsel %vm509_vm0, %v496_v26, 0.0  ;;  %v1676_v28 = vpop.f32.mrb[5].mxu0 }
  0xfe   : > { %v511_v30 = vadd.f32 %v510_v27, %v437_v21  ;;  %v499_v31 = vpop.f32.mrb[6].mxu0 }
  0xff   : > { %v1677_v32 = vpop.f32.mrb[7].mxu0 }
 0x100   : > { %v673_v33 = vpop.f32.mrb[8].mxu1  ;;  %v562_v34 = vadd.f32 %v561_v29, %v511_v30 }
 0x101   : > { %v1694_v35 = vpop.f32.mrb[9].mxu1  ;;  %v679_v39 = vsel %vm509_vm0, %v673_v33, 0.0 }
 0x102   : > { %v676_v36 = vpop.f32.mrb[10].mxu1 }
 0x103   : > { %v1695_v37 = vpop.f32.mrb[11].mxu1 }
 0x104   : > { %v609_v38 = vpop.f32.mrb[8].mxu0 }
 0x105   : > { %v615_v40 = vadd.f32 %v609_v38, %v562_v34  ;;  %v1688_v41 = vpop.f32.mrb[9].mxu0 }
 0x106   : > { %v612_v42 = vpop.f32.mrb[10].mxu0 }
 0x107   : > { %v680_v43 = vadd.f32 %v679_v39, %v615_v40  ;;  %v1689_v44 = vpop.f32.mrb[11].mxu0 }
 0x108   : > { %v783_v45 = vpop.f32.mrb[12].mxu1 }
 0x109   : > { %v1706_v46 = vpop.f32.mrb[13].mxu1 }
 0x10a   : > { %v786_v47 = vpop.f32.mrb[14].mxu1 }
 0x10b   : > { %v1707_v48 = vpop.f32.mrb[15].mxu1 }
 0x10c   : > { %v724_v49 = vpop.f32.mrb[12].mxu0  ;;  %v1620_v48 = vld [vmem:[%s2083_s2] ss:$0 sm:$0xff] }
 0x10d   : > { %v730_v50 = vsel %vm377_vm15, %v724_v49, 0.0  ;;  %v1700_v51 = vpop.f32.mrb[13].mxu0 }
 0x10e   : > { %v731_v52 = vadd.f32 %v730_v50, %v680_v43  ;;  %v727_v53 = vpop.f32.mrb[14].mxu0 }
 0x10f   : > { %v1701_v54 = vpop.f32.mrb[15].mxu0 }
 0x110   : > { %v789_v55 = vadd.f32 %v783_v45, %v731_v52  ;;  %v1621_v52 = vld [vmem:[%s2084_s3] ss:$0 sm:$0xff] }
 0x114   : > { %v848_v57 = vpop.f32.mrb[16].mxu0 }
 0x115   : > { %v854_v58 = vsel %vm509_vm0, %v848_v57, 0.0  ;;  %v1712_v59 = vpop.f32.mrb[17].mxu0 }
 0x116   : > { %v855_v60 = vadd.f32 %v854_v58, %v789_v55  ;;  %v851_v61 = vpop.f32.mrb[18].mxu0 }
 0x117   : > { %v1713_v62 = vpop.f32.mrb[19].mxu0 }
 0x156   : > { %v909_v0 = vpop.f32.mrb[16].mxu1 }
 0x157   : > { %v922_v1 = vsel %vm921_vm2, %v909_v0, 0.0  ;;  %v1718_v3 = vpop.f32.mrb[17].mxu1 }
 0x158   : > { %v923_v4 = vadd.f32 %v922_v1, %v855_v60  ;;  %v912_v5 = vpop.f32.mrb[18].mxu1 }
 0x159   : > { %v1719_v6 = vpop.f32.mrb[19].mxu1 }
 0x15a   : > { %v977_v7 = vpop.f32.mrb[20].mxu0 }
 0x15b   : > { %v983_v9 = vadd.f32 %v977_v7, %v923_v4  ;;  %v1724_v10 = vpop.f32.mrb[21].mxu0 }
 0x15c   : > { %v980_v11 = vpop.f32.mrb[22].mxu0 }
 0x15d   : > { %v1725_v12 = vpop.f32.mrb[23].mxu0 }
 0x163   : > { %v1032_v13 = vpop.f32.mrb[20].mxu1  ;;  %v1090_v19 = vpop.f32.mrb[24].mxu0 }
 0x164   : > { %v1045_v14 = vsel %vm1044_vm3, %v1032_v13, 0.0  ;;  %v1730_v15 = vpop.f32.mrb[21].mxu1  ;;  %v1096_v20 = vsel %vm921_vm2, %v1090_v19, 0.0  ;;  %v1736_v21 = vpop.f32.mrb[25].mxu0 }
 0x165   : > { %v1046_v16 = vadd.f32 %v1045_v14, %v983_v9  ;;  %v1035_v17 = vpop.f32.mrb[22].mxu1  ;;  %v1093_v2 = vpop.f32.mrb[26].mxu0 }
 0x166   : > { %v1731_v18 = vpop.f32.mrb[23].mxu1  ;;  %v1737_v23 = vpop.f32.mrb[27].mxu0 }
 0x167   : > { %v1097_v22 = vadd.f32 %v1096_v20, %v1046_v16 }
 0x16b   : > { %v1147_v24 = vpop.f32.mrb[24].mxu1  ;;  %v1202_v29 = vpop.f32.mrb[28].mxu0 }
 0x16c   : > { %v1153_v25 = vadd.f32 %v1147_v24, %v1097_v22  ;;  %v1742_v26 = vpop.f32.mrb[25].mxu1  ;;  %v1208_v30 = vsel %vm1044_vm3, %v1202_v29, 0.0  ;;  %v1748_v31 = vpop.f32.mrb[29].mxu0 }
 0x16d   : > { %v1150_v27 = vpop.f32.mrb[26].mxu1  ;;  %v1205_v33 = vpop.f32.mrb[30].mxu0 }
 0x16e   : > { %v1743_v28 = vpop.f32.mrb[27].mxu1  ;;  %v1209_v32 = vadd.f32 %v1208_v30, %v1153_v25  ;;  %v1749_v34 = vpop.f32.mrb[31].mxu0 }
 0x173   : > { %v1253_v35 = vpop.f32.mrb[28].mxu1  ;;  %v1314_v41 = vpop.f32.mrb[32].mxu0 }
 0x174   : > { %v1259_v36 = vsel %vm921_vm2, %v1253_v35, 0.0  ;;  %v1754_v37 = vpop.f32.mrb[29].mxu1  ;;  %v1760_v43 = vpop.f32.mrb[33].mxu0 }
 0x175   : > { %v1260_v38 = vadd.f32 %v1259_v36, %v1209_v32  ;;  %v1256_v39 = vpop.f32.mrb[30].mxu1  ;;  %v1317_v44 = vpop.f32.mrb[34].mxu0 }
 0x176   : > { %v1755_v40 = vpop.f32.mrb[31].mxu1  ;;  %v1761_v45 = vpop.f32.mrb[35].mxu0 }
 0x177   : > { %v1320_v42 = vadd.f32 %v1314_v41, %v1260_v38 }
 0x17b   : > { %v1377_v46 = vpop.f32.mrb[32].mxu1 }
 0x17c   : > { %v1383_v47 = vsel %vm1044_vm3, %v1377_v46, 0.0  ;;  %v1766_v49 = vpop.f32.mrb[33].mxu1 }
 0x17d   : > { %v1384_v50 = vadd.f32 %v1383_v47, %v1320_v42  ;;  %v1380_v51 = vpop.f32.mrb[34].mxu1 }
 0x17e   : > { %v1767_v53 = vpop.f32.mrb[35].mxu1 }
 0x17f   : > { %v1392_v54 = vmul.f32 %v1620_v48, %v1384_v50 }
 0x181   : > { %v1400_v55 = vadd.f32 %v1621_v52, %v1392_v54 }
 0x183   : > { %v1401_v56 = vmax.f32 %v1400_v55, 0.0 }
 0x185   : > { %v1402_v57 = vpack.c.bf16 %v1401_v56, %v1401_v56  ;;  %v1406_v58 = vsel %vm1405_vm4, %v1401_v56, 0.0 }
 0x186   : > { %v1407_v59 = vrot.slane %v1406_v58, 4 }
 0x187   : > { %1404 = vst.msk [vmem:[%s285_s16] sm:$0x3] %vm1403_vm1, %v1402_v57 }
 0x188   : > { %v1408_v60 = vadd.f32 %v1407_v59, %v1406_v58 }
 0x18a   : > { %v1409_v61 = vrot.slane %v1408_v60, 2 }
 0x18c   : > { %v1410_v62 = vadd.f32 %v1409_v61, %v1408_v60 }
 0x18e   : > { %v1411_v63 = vrot.slane %v1410_v62, 1 }
 0x190   : > { %v1412_v0 = vadd.f32 %v1411_v63, %v1410_v62 }
 0x192   : > { %v1413_v1 = vmul.f32 0.25, %v1412_v0 }
 0x194   : > { %1415 = vst.msk [vmem:[%s288_s19] sm:$0x1] %vm1414_vm5, %v1413_v1 }
 0x195 PF: > { %s18_s24 = sadd.s32 1, %s1818_s24  }
 0x196   : > { %p15_p4 = scmp.ge.s32.totalorder %s18_s24, 4  }
 0x198   :  { %17 = sbr.rel (!%p15_p4) target bundleno = 1 (0x1), region = 111 }

</bundles_post_ra>
